<compile_context>
chip_gen: v7x
topology: tpu7x:2x2x1
jax: 0.10.0
libtpu: 0.0.40
codegen_flags: <defaults>
</compile_context>

<pallas_src>
import math

import jax
import jax.numpy as jnp
from jax import lax
from jax.experimental import pallas as pl
from jax.experimental.pallas import tpu as pltpu

# Hyperparameters (match the PyTorch module defaults except hidden_dim kept small).
STATE_DIM = 5        # state = [x, y, vx, vy, angle]
ACTION_DIM = 2
Q_DIM = STATE_DIM + ACTION_DIM
NUM_HEADS = 3
K_FEAT = 5           # per-head feature dim (hard-coded to 5 in the reference module)
HIDDEN_DIM = 32
NUM_LAYERS = 2


def _tile_lanes(x, reps):
    """Tile a (rows, cols) tile `reps` times along the lane (last) axis via concat-doubling."""
    if reps == 1:
        return x
    half = _tile_lanes(x, reps // 2)
    out = jnp.concatenate([half, half], axis=-1)
    if reps % 2:
        out = jnp.concatenate([out, x], axis=-1)
    return out


def critic_q_kernel(s_ref, qf_ref, at_ref, w1a_ref, w1q_ref, b1_ref,
                    w2_ref, b2_ref, wo_ref, bo_ref, out_ref, xattn_ref):
    s = s_ref[0]          # (5, t, bb)  state, batch-last compact planes
    qf = qf_ref[0]        # (7, t*bb)   [state|action], lane index = agent_i*bb + batch
    _, t, bb = s.shape
    nt = t * bb

    # ---- self-pair (diagonal) masks, built once ----------------------------------
    col = lax.broadcasted_iota(jnp.int32, (t, nt), 1)
    jlo = lax.broadcasted_iota(jnp.int32, (t, nt), 0) * bb
    diag = jnp.logical_and(col >= jlo, col < jlo + bb)    # True where agent_i == agent_j
    neg_diag = jnp.where(diag, -1e30, 0.0)                # additive softmax mask
    one_diag = jnp.where(diag, 1.0, 0.0)                  # rsqrt guard (r2 == 0 exactly on diag)

    # ---- pairwise relative-state channel planes, (t, t*bb) ------------------------
    # Row j carries agent_j quantities (tiled along lanes); the lane axis carries the
    # agent_i / batch pair and is read straight from the flat layout (no reshapes).
    p0 = _tile_lanes(s[0], t)
    p1 = _tile_lanes(s[1], t)
    p2 = _tile_lanes(s[2], t)
    p3 = _tile_lanes(s[3], t)
    ang = 0.5 * math.pi - s[4]                            # (t, bb), indexed by agent_j
    ca = _tile_lanes(jnp.cos(ang), t)
    sa = _tile_lanes(jnp.sin(ang), t)

    d0 = p0 - qf[0:1]
    d1 = p1 - qf[1:2]
    d2 = p2 - qf[2:3]
    d3 = p3 - qf[3:4]
    g0 = d0 * ca - d1 * sa
    g1 = d0 * sa + d1 * ca
    g2 = d2 * ca - d3 * sa
    g3 = d2 * sa + d3 * ca

    r2 = g0 * g0 + g1 * g1
    inv_r = lax.rsqrt(r2 + one_diag)      # one rsqrt replaces sqrt + two divides
    c0 = g0 * inv_r
    c1 = g1 * inv_r
    r = r2 * inv_r                        # = sqrt(r2); exactly 0 on the diagonal
    # r_trans = 1 / (1 + exp(-1 + 5*(r - 0.2)))   (exact; see notes on approx reciprocal)
    c4 = 1.0 / (1.0 + jnp.exp(5.0 * (r - 0.2) - 1.0))
    channels = (c0, c1, g2, g3, c4)

    # ---- per-(head, channel) score coefficients on the MXU ------------------------
    # coef[h*5+c, col] = q_state[col, :] . (wq_h (.) wk_{c,h}) / sqrt(5)
    coef = jnp.dot(at_ref[...], qf, preferred_element_type=jnp.float32)   # (15, nt)

    # ---- per-head masked softmax + value reductions -------------------------------
    for hh in range(NUM_HEADS):
        base = hh * K_FEAT
        sc = coef[base:base + 1] * channels[0]
        for c in range(1, K_FEAT):
            sc = sc + coef[base + c:base + c + 1] * channels[c]
        sc = sc + neg_diag                               # exclude self-pair
        m = jnp.max(sc, axis=0, keepdims=True)           # (1, nt)  cross-sublane reduce
        p = jnp.exp(sc - m)
        inv_l = 1.0 / jnp.sum(p, axis=0, keepdims=True)
        w = p * inv_l
        for c in range(K_FEAT):
            # softmax-weighted reduction of each channel plane -> one GEMM-ready row
            xattn_ref[base + c, :] = jnp.sum(w * channels[c], axis=0)

    # ---- MLP head: value projection folded through layer 1, GEMMs on the MXU ------
    xattn = xattn_ref[...]                               # (15, nt)
    h1 = (jnp.dot(w1a_ref[...], xattn, preferred_element_type=jnp.float32)
          + jnp.dot(w1q_ref[...], qf, preferred_element_type=jnp.float32)
          + b1_ref[...])
    h1 = jnp.maximum(h1, 0.0)
    h2 = jnp.maximum(
        jnp.dot(w2_ref[...], h1, preferred_element_type=jnp.float32) + b2_ref[...], 0.0)
    # TODO(synk): on v6e/v7x the HIDDENxHIDDEN GEMM could run in bf16 for a small extra
    # win if the critic tolerates ~1e-3 relative error.
    val = jnp.sum(h2 * wo_ref[...], axis=0, keepdims=True) + bo_ref[...]   # (1, nt)
    out_ref[0] = val                                      # lane-dense, unmasked store


def _pick_batch_block(b, t, vmem_budget_bytes=20 * 1024 * 1024):
    """Largest batch block whose ~live f32 set fits the VMEM budget, keeping >=2 grid steps."""
    per_elem = 4 * (14 * t * t + 128 * t)      # rough live f32 bytes per batch element
    cap = max(1, vmem_budget_bytes // per_elem)
    target = min(b, 256, cap)
    if b >= 2:
        target = min(target, b // 2)           # >= 2 grid steps: megacore / both v7x TCs
    target = max(1, int(target))
    bb = 1
    for d in range(1, target + 1):
        if b % d == 0:
            bb = d
    return bb


def own_ref_transformer_q(state, action, params, *, batch_block=None):
    b, t, sd = state.shape
    assert sd == STATE_DIM and action.shape == (b, t, ACTION_DIM)
    assert t >= 2, "need >= 2 agents: self is masked out of the softmax"
    bb = _pick_batch_block(b, t) if batch_block is None else batch_block
    assert b % bb == 0
    g = b // bb
    nt = t * bb
    h, k = NUM_HEADS, K_FEAT

    wq, wk, wv = params["wq"], params["wk"], params["wv"]
    w1, b1 = params["w1"], params["b1"]
    w2, b2 = params["w2"], params["b2"]
    wo, bo = params["wo"], params["bo"]

    # Score coefficients A[d, h*k+c] = sum_f wq[d,h*k+f]*wk[c,h*k+f]; 1/sqrt(k) folded in
    # (applies to both the state and action halves, keeping scores consistently scaled).
    wq_h = wq.reshape(Q_DIM, h, k)
    wk_h = wk.reshape(K_FEAT, h, k)
    a = jnp.einsum('dhf,chf->dhc', wq_h, wk_h).reshape(Q_DIM, h * k)
    a_t = (a * (1.0 / math.sqrt(float(k)))).T                      # (15, 7)

    # tovalues folded through the attention rows of layer 1:
    #   wvw1[h*k + c, :] = wv[c, h*k:(h+1)*k] @ w1[h*k:(h+1)*k, :]
    wv_h = wv.reshape(K_FEAT, h, k)
    w1_attn = w1[:h * k].reshape(h, k, HIDDEN_DIM)
    wvw1 = jnp.einsum('chf,hfo->hco', wv_h, w1_attn).reshape(h * k, HIDDEN_DIM)
    w1a_t = wvw1.T                                                 # (32, 15)
    w1q_t = w1[h * k:].T                                           # (32, 7)
    b1_t = b1.reshape(HIDDEN_DIM, 1)
    w2_t = w2.T                                                    # (32, 32)
    b2_t = b2.reshape(HIDDEN_DIM, 1)
    # wo stays a (32, 1) column; bo is (1, 1).

    # Layout plumbing (outside the kernel): batch-last compact planes + flat lane slab.
    q_state = jnp.concatenate([state, action], axis=-1)            # (b, t, 7)
    q_bl = q_state.reshape(g, bb, t, Q_DIM).transpose(0, 3, 2, 1)  # (g, 7, t, bb)
    q_flat = q_bl.reshape(g, Q_DIM, nt)                            # lane = agent*bb + batch
    s_bl = q_bl[:, :STATE_DIM]                                     # (g, 5, t, bb)

    weights = (a_t, w1a_t, w1q_t, b1_t, w2_t, b2_t, wo, bo)

    def _wspec(x):
        nd = x.ndim
        return pl.BlockSpec(x.shape, lambda i, nd=nd: (0,) * nd)

    cost = pl.CostEstimate(
        flops=int(b * t * t * (30 + 35 * NUM_HEADS)
                  + 2 * b * t * (Q_DIM * h * k + h * k * HIDDEN_DIM + Q_DIM * HIDDEN_DIM
                                 + HIDDEN_DIM * HIDDEN_DIM + HIDDEN_DIM)),
        transcendentals=int(b * t * t * (NUM_HEADS + 2) + 2 * b * t),
        bytes_accessed=int(4 * (s_bl.size + q_flat.size + g * nt
                                + sum(x.size for x in weights))),
    )

    out = pl.pallas_call(
        critic_q_kernel,
        out_shape=jax.ShapeDtypeStruct((g, 1, nt), jnp.float32),
        grid_spec=pltpu.PrefetchScalarGridSpec(
            num_scalar_prefetch=0,
            grid=(g,),
            in_specs=[
                pl.BlockSpec((1, STATE_DIM, t, bb), lambda i: (i, 0, 0, 0)),
                pl.BlockSpec((1, Q_DIM, nt), lambda i: (i, 0, 0)),
            ] + [_wspec(x) for x in weights],
            out_specs=pl.BlockSpec((1, 1, nt), lambda i: (i, 0, 0)),
            scratch_shapes=[pltpu.VMEM((h * k, nt), jnp.float32)],
        ),
        compiler_params=pltpu.CompilerParams(
            dimension_semantics=("parallel",),
            vmem_limit_bytes=48 * 1024 * 1024,
        ),
        cost_estimate=cost,
    )(s_bl, q_flat, *weights)

    # (g, 1, nt) -> (b, t, 1): each column is (agent_i, batch-within-block)
    return out.reshape(g, t, bb).transpose(0, 2, 1).reshape(b, t, 1)


def init_params(key):
    ks = jax.random.split(key, 9)

    def lin(kw, fan_in, fan_out):
        bound = 1.0 / math.sqrt(fan_in)
        return jax.random.uniform(kw, (fan_in, fan_out), jnp.float32, -bound, bound)

    def bias(kb, fan_in, fan_out):
        bound = 1.0 / math.sqrt(fan_in)
        return jax.random.uniform(kb, (1, fan_out), jnp.float32, -bound, bound)

    in_mlp = NUM_HEADS * K_FEAT + STATE_DIM + ACTION_DIM
    return {
        "wq": lin(ks[0], Q_DIM, NUM_HEADS * K_FEAT),       # toqueries (no bias)
        "wk": lin(ks[1], K_FEAT, NUM_HEADS * K_FEAT),      # tokeys (no bias)
        "wv": lin(ks[2], K_FEAT, NUM_HEADS * K_FEAT),      # tovalues (no bias)
        "w1": lin(ks[3], in_mlp, HIDDEN_DIM),
        "b1": bias(ks[4], in_mlp, HIDDEN_DIM),
        "w2": lin(ks[5], HIDDEN_DIM, HIDDEN_DIM),
        "b2": bias(ks[6], HIDDEN_DIM, HIDDEN_DIM),
        "wo": jax.random.uniform(ks[7], (HIDDEN_DIM, 1), jnp.float32, -0.003, 0.003),
        "bo": jax.random.uniform(ks[8], (1, 1), jnp.float32, -0.003, 0.003),
    }


def ref_forward(state, action, p):
    """Pure-JAX transcription of the PyTorch forward (including the boolean-mask gather)."""
    b, t, _ = state.shape
    h, k = NUM_HEADS, K_FEAT
    q_state = jnp.concatenate([state, action], axis=-1)
    pos = state[..., 0:4]
    rel = pos[:, None, :, :] - pos[:, :, None, :]
    xy = jnp.swapaxes(rel.reshape(b, t, t, 2, 2), 3, 4)
    ang = -state[..., -1] + 0.5 * jnp.pi
    ca = jnp.cos(ang)[:, None, :, None]
    sa = jnp.sin(ang)[:, None, :, None]
    xc, yc = xy[:, :, :, 0, :], xy[:, :, :, 1, :]
    xn = xc * ca - yc * sa
    yn = xc * sa + yc * ca
    rel4 = jnp.swapaxes(jnp.concatenate([xn, yn], axis=3).reshape(b, t, t, 2, 2), 3, 4).reshape(b, t, t, 4)
    off = jnp.array([[j for j in range(t) if j != i] for i in range(t)], dtype=jnp.int32)
    rel4 = rel4[:, jnp.arange(t)[:, None], off, :]                 # (b, t, t-1, 4)
    r = jnp.sqrt(rel4[..., 0] ** 2 + rel4[..., 1] ** 2)[..., None]
    r_trans = 1.0 / (1.0 + jnp.exp(-1.0 + 5.0 * (r - 0.2)))
    rel5 = jnp.concatenate([rel4[..., 0:2] / r, rel4[..., 2:4], r_trans], axis=-1)
    q = q_state @ p["wq"]
    kk = rel5 @ p["wk"]
    vv = rel5 @ p["wv"]
    outs = []
    for hh in range(h):
        qh = q[..., hh * k:(hh + 1) * k]
        kh = kk[..., hh * k:(hh + 1) * k]
        vh = vv[..., hh * k:(hh + 1) * k]
        sc = jnp.einsum('btmc,btc->btm', kh, qh) / math.sqrt(k)
        w = jax.nn.softmax(sc, axis=-1)
        outs.append(jnp.einsum('btm,btmc->btc', w, vh))
    x = jnp.concatenate(outs + [q_state], axis=-1)
    x = jax.nn.relu(x @ p["w1"] + p["b1"])
    x = jax.nn.relu(x @ p["w2"] + p["b2"])
    return x @ p["wo"] + p["bo"]


if __name__ == "__main__":
    key = jax.random.PRNGKey(0)
    kp, ks, ka = jax.random.split(key, 3)
    params = init_params(kp)

    # 256 batch elements x 8 agents: auto batch_block=128 -> 2 lane-dense grid steps.
    b, t = 256, 8
    state = jax.random.normal(ks, (b, t, STATE_DIM), jnp.float32)
    action = jax.random.normal(ka, (b, t, ACTION_DIM), jnp.float32)

    with jax.default_matmul_precision("highest"):
        out = jax.block_until_ready(own_ref_transformer_q(state, action, params))
        ref = jax.block_until_ready(ref_forward(state, action, params))

    assert out.shape == (b, t, 1)
    if not jnp.allclose(out, ref, rtol=2e-3, atol=3e-4):
        max_err = float(jnp.max(jnp.abs(out - ref)))
        raise AssertionError(f"Pallas kernel output does not match JAX reference (max abs err={max_err})")
    print("KERNEL_OK")
</pallas_src>

<mosaic_0001>
module attributes {stable_mosaic.version = 11 : i64} {
  func.func @critic_q_kernel(%arg0: i32, %arg1: memref<1x5x8x128xf32, #tpu.memory_space<vmem>>, %arg2: memref<1x7x1024xf32, #tpu.memory_space<vmem>>, %arg3: memref<15x7xf32, #tpu.memory_space<vmem>>, %arg4: memref<32x15xf32, #tpu.memory_space<vmem>>, %arg5: memref<32x7xf32, #tpu.memory_space<vmem>>, %arg6: memref<32x1xf32, #tpu.memory_space<vmem>>, %arg7: memref<32x32xf32, #tpu.memory_space<vmem>>, %arg8: memref<32x1xf32, #tpu.memory_space<vmem>>, %arg9: memref<32x1xf32, #tpu.memory_space<vmem>>, %arg10: memref<1x1xf32, #tpu.memory_space<vmem>>, %arg11: memref<1x1x1024xf32, #tpu.memory_space<vmem>>, %arg12: memref<15x1024xf32, #tpu.memory_space<vmem>>) attributes {dimension_semantics = [#tpu.dimension_semantics<parallel>], iteration_bounds = array<i64: 2>, scalar_prefetch = 0 : i64, scratch_operands = 1 : i64, tpu.core_type = #tpu.core_type<tc>, window_params = [{transform_indices = @transform_0, window_bounds = array<i64: 1, 5, 8, 128>}, {transform_indices = @transform_1, window_bounds = array<i64: 1, 7, 1024>}, {pipeline_mode = #tpu.pipeline_mode<synchronous>, transform_indices = @transform_2, window_bounds = array<i64: 15, 7>}, {pipeline_mode = #tpu.pipeline_mode<synchronous>, transform_indices = @transform_3, window_bounds = array<i64: 32, 15>}, {pipeline_mode = #tpu.pipeline_mode<synchronous>, transform_indices = @transform_4, window_bounds = array<i64: 32, 7>}, {pipeline_mode = #tpu.pipeline_mode<synchronous>, transform_indices = @transform_5, window_bounds = array<i64: 32, 1>}, {pipeline_mode = #tpu.pipeline_mode<synchronous>, transform_indices = @transform_6, window_bounds = array<i64: 32, 32>}, {pipeline_mode = #tpu.pipeline_mode<synchronous>, transform_indices = @transform_7, window_bounds = array<i64: 32, 1>}, {pipeline_mode = #tpu.pipeline_mode<synchronous>, transform_indices = @transform_8, window_bounds = array<i64: 32, 1>}, {pipeline_mode = #tpu.pipeline_mode<synchronous>, transform_indices = @transform_9, window_bounds = array<i64: 1, 1>}, {transform_indices = @transform_10, window_bounds = array<i64: 1, 1, 1024>}]} {
    %c0 = arith.constant 0 : index
    %c0_0 = arith.constant 0 : index
    %c0_1 = arith.constant 0 : index
    %c0_2 = arith.constant 0 : index
    %0 = vector.load %arg1[%c0, %c0_0, %c0_1, %c0_2] : memref<1x5x8x128xf32, #tpu.memory_space<vmem>>, vector<1x5x8x128xf32>
    %1 = vector.shape_cast %0 : vector<1x5x8x128xf32> to vector<5x8x128xf32>
    %c0_3 = arith.constant 0 : index
    %c0_4 = arith.constant 0 : index
    %c0_5 = arith.constant 0 : index
    %2 = vector.load %arg2[%c0_3, %c0_4, %c0_5] : memref<1x7x1024xf32, #tpu.memory_space<vmem>>, vector<1x7x1024xf32>
    %3 = vector.shape_cast %2 : vector<1x7x1024xf32> to vector<7x1024xf32>
    %4 = tpu.iota {dimensions = array<i32: 1>} : vector<8x1024xi32>
    %5 = tpu.iota {dimensions = array<i32: 0>} : vector<8x1024xi32>
    %c128_i32 = arith.constant 128 : i32
    %6 = vector.broadcast %c128_i32 : i32 to vector<8x1024xi32>
    %7 = arith.muli %5, %6 : vector<8x1024xi32>
    %8 = arith.cmpi sge, %4, %7 : vector<8x1024xi32>
    %c128_i32_6 = arith.constant 128 : i32
    %9 = vector.broadcast %c128_i32_6 : i32 to vector<8x1024xi32>
    %10 = arith.addi %7, %9 : vector<8x1024xi32>
    %11 = arith.cmpi slt, %4, %10 : vector<8x1024xi32>
    %12 = arith.andi %8, %11 : vector<8x1024xi1>
    %cst = arith.constant -1.000000e+30 : f32
    %cst_7 = arith.constant 0.000000e+00 : f32
    %13 = vector.broadcast %cst : f32 to vector<8x1024xf32>
    %14 = vector.broadcast %cst_7 : f32 to vector<8x1024xf32>
    %15 = arith.select %12, %13, %14 : vector<8x1024xi1>, vector<8x1024xf32>
    %cst_8 = arith.constant 1.000000e+00 : f32
    %cst_9 = arith.constant 0.000000e+00 : f32
    %16 = vector.broadcast %cst_8 : f32 to vector<8x1024xf32>
    %17 = vector.broadcast %cst_9 : f32 to vector<8x1024xf32>
    %18 = arith.select %12, %16, %17 : vector<8x1024xi1>, vector<8x1024xf32>
    %19 = vector.extract_strided_slice %1 {offsets = [0, 0, 0], sizes = [1, 8, 128], strides = [1, 1, 1]} : vector<5x8x128xf32> to vector<1x8x128xf32>
    %20 = vector.shape_cast %19 : vector<1x8x128xf32> to vector<8x128xf32>
    %21 = tpu.concatenate %20, %20 in 1 : vector<8x128xf32>, vector<8x128xf32> -> vector<8x256xf32>
    %22 = tpu.concatenate %21, %21 in 1 : vector<8x256xf32>, vector<8x256xf32> -> vector<8x512xf32>
    %23 = tpu.concatenate %22, %22 in 1 : vector<8x512xf32>, vector<8x512xf32> -> vector<8x1024xf32>
    %24 = vector.extract_strided_slice %1 {offsets = [1, 0, 0], sizes = [1, 8, 128], strides = [1, 1, 1]} : vector<5x8x128xf32> to vector<1x8x128xf32>
    %25 = vector.shape_cast %24 : vector<1x8x128xf32> to vector<8x128xf32>
    %26 = tpu.concatenate %25, %25 in 1 : vector<8x128xf32>, vector<8x128xf32> -> vector<8x256xf32>
    %27 = tpu.concatenate %26, %26 in 1 : vector<8x256xf32>, vector<8x256xf32> -> vector<8x512xf32>
    %28 = tpu.concatenate %27, %27 in 1 : vector<8x512xf32>, vector<8x512xf32> -> vector<8x1024xf32>
    %29 = vector.extract_strided_slice %1 {offsets = [2, 0, 0], sizes = [1, 8, 128], strides = [1, 1, 1]} : vector<5x8x128xf32> to vector<1x8x128xf32>
    %30 = vector.shape_cast %29 : vector<1x8x128xf32> to vector<8x128xf32>
    %31 = tpu.concatenate %30, %30 in 1 : vector<8x128xf32>, vector<8x128xf32> -> vector<8x256xf32>
    %32 = tpu.concatenate %31, %31 in 1 : vector<8x256xf32>, vector<8x256xf32> -> vector<8x512xf32>
    %33 = tpu.concatenate %32, %32 in 1 : vector<8x512xf32>, vector<8x512xf32> -> vector<8x1024xf32>
    %34 = vector.extract_strided_slice %1 {offsets = [3, 0, 0], sizes = [1, 8, 128], strides = [1, 1, 1]} : vector<5x8x128xf32> to vector<1x8x128xf32>
    %35 = vector.shape_cast %34 : vector<1x8x128xf32> to vector<8x128xf32>
    %36 = tpu.concatenate %35, %35 in 1 : vector<8x128xf32>, vector<8x128xf32> -> vector<8x256xf32>
    %37 = tpu.concatenate %36, %36 in 1 : vector<8x256xf32>, vector<8x256xf32> -> vector<8x512xf32>
    %38 = tpu.concatenate %37, %37 in 1 : vector<8x512xf32>, vector<8x512xf32> -> vector<8x1024xf32>
    %39 = vector.extract_strided_slice %1 {offsets = [4, 0, 0], sizes = [1, 8, 128], strides = [1, 1, 1]} : vector<5x8x128xf32> to vector<1x8x128xf32>
    %40 = vector.shape_cast %39 : vector<1x8x128xf32> to vector<8x128xf32>
    %cst_10 = arith.constant 1.57079637 : f32
    %41 = vector.broadcast %cst_10 : f32 to vector<8x128xf32>
    %42 = arith.subf %41, %40 : vector<8x128xf32>
    %43 = math.cos %42 : vector<8x128xf32>
    %44 = tpu.concatenate %43, %43 in 1 : vector<8x128xf32>, vector<8x128xf32> -> vector<8x256xf32>
    %45 = tpu.concatenate %44, %44 in 1 : vector<8x256xf32>, vector<8x256xf32> -> vector<8x512xf32>
    %46 = tpu.concatenate %45, %45 in 1 : vector<8x512xf32>, vector<8x512xf32> -> vector<8x1024xf32>
    %47 = math.sin %42 : vector<8x128xf32>
    %48 = tpu.concatenate %47, %47 in 1 : vector<8x128xf32>, vector<8x128xf32> -> vector<8x256xf32>
    %49 = tpu.concatenate %48, %48 in 1 : vector<8x256xf32>, vector<8x256xf32> -> vector<8x512xf32>
    %50 = tpu.concatenate %49, %49 in 1 : vector<8x512xf32>, vector<8x512xf32> -> vector<8x1024xf32>
    %51 = vector.extract_strided_slice %3 {offsets = [0, 0], sizes = [1, 1024], strides = [1, 1]} : vector<7x1024xf32> to vector<1x1024xf32>
    %52 = vector.broadcast %51 : vector<1x1024xf32> to vector<8x1024xf32>
    %53 = arith.subf %23, %52 : vector<8x1024xf32>
    %54 = vector.extract_strided_slice %3 {offsets = [1, 0], sizes = [1, 1024], strides = [1, 1]} : vector<7x1024xf32> to vector<1x1024xf32>
    %55 = vector.broadcast %54 : vector<1x1024xf32> to vector<8x1024xf32>
    %56 = arith.subf %28, %55 : vector<8x1024xf32>
    %57 = vector.extract_strided_slice %3 {offsets = [2, 0], sizes = [1, 1024], strides = [1, 1]} : vector<7x1024xf32> to vector<1x1024xf32>
    %58 = vector.broadcast %57 : vector<1x1024xf32> to vector<8x1024xf32>
    %59 = arith.subf %33, %58 : vector<8x1024xf32>
    %60 = vector.extract_strided_slice %3 {offsets = [3, 0], sizes = [1, 1024], strides = [1, 1]} : vector<7x1024xf32> to vector<1x1024xf32>
    %61 = vector.broadcast %60 : vector<1x1024xf32> to vector<8x1024xf32>
    %62 = arith.subf %38, %61 : vector<8x1024xf32>
    %63 = arith.mulf %53, %46 : vector<8x1024xf32>
    %64 = arith.mulf %56, %50 : vector<8x1024xf32>
    %65 = arith.subf %63, %64 : vector<8x1024xf32>
    %66 = arith.mulf %53, %50 : vector<8x1024xf32>
    %67 = arith.mulf %56, %46 : vector<8x1024xf32>
    %68 = arith.addf %66, %67 : vector<8x1024xf32>
    %69 = arith.mulf %59, %46 : vector<8x1024xf32>
    %70 = arith.mulf %62, %50 : vector<8x1024xf32>
    %71 = arith.subf %69, %70 : vector<8x1024xf32>
    %72 = arith.mulf %59, %50 : vector<8x1024xf32>
    %73 = arith.mulf %62, %46 : vector<8x1024xf32>
    %74 = arith.addf %72, %73 : vector<8x1024xf32>
    %75 = arith.mulf %65, %65 : vector<8x1024xf32>
    %76 = arith.mulf %68, %68 : vector<8x1024xf32>
    %77 = arith.addf %75, %76 : vector<8x1024xf32>
    %78 = arith.addf %77, %18 : vector<8x1024xf32>
    %79 = math.rsqrt %78 : vector<8x1024xf32>
    %80 = arith.mulf %65, %79 : vector<8x1024xf32>
    %81 = arith.mulf %68, %79 : vector<8x1024xf32>
    %82 = arith.mulf %77, %79 : vector<8x1024xf32>
    %cst_11 = arith.constant 2.000000e-01 : f32
    %83 = vector.broadcast %cst_11 : f32 to vector<8x1024xf32>
    %84 = arith.subf %82, %83 : vector<8x1024xf32>
    %cst_12 = arith.constant 5.000000e+00 : f32
    %85 = vector.broadcast %cst_12 : f32 to vector<8x1024xf32>
    %86 = arith.mulf %85, %84 : vector<8x1024xf32>
    %cst_13 = arith.constant 1.000000e+00 : f32
    %87 = vector.broadcast %cst_13 : f32 to vector<8x1024xf32>
    %88 = arith.subf %86, %87 : vector<8x1024xf32>
    %89 = math.exp %88 : vector<8x1024xf32>
    %cst_14 = arith.constant 1.000000e+00 : f32
    %90 = vector.broadcast %cst_14 : f32 to vector<8x1024xf32>
    %91 = arith.addf %90, %89 : vector<8x1024xf32>
    %cst_15 = arith.constant 1.000000e+00 : f32
    %92 = vector.broadcast %cst_15 : f32 to vector<8x1024xf32>
    %93 = arith.divf %92, %91 : vector<8x1024xf32>
    %c0_16 = arith.constant 0 : index
    %c0_17 = arith.constant 0 : index
    %94 = vector.load %arg3[%c0_16, %c0_17] : memref<15x7xf32, #tpu.memory_space<vmem>>, vector<15x7xf32>
    %cst_18 = arith.constant dense<0.000000e+00> : vector<15x1024xf32>
    %95 = tpu.matmul %94, %3, %cst_18 {dimension_numbers = #tpu.dot_dimension_numbers<[1], [0], [0], [1], [0, 0, 1, 1], [], []>, precision = #tpu.contract_precision<fp32>} : vector<15x7xf32>, vector<7x1024xf32>, vector<15x1024xf32> -> vector<15x1024xf32>
    %96 = vector.extract_strided_slice %95 {offsets = [0, 0], sizes = [1, 1024], strides = [1, 1]} : vector<15x1024xf32> to vector<1x1024xf32>
    %97 = vector.broadcast %96 : vector<1x1024xf32> to vector<8x1024xf32>
    %98 = arith.mulf %97, %80 : vector<8x1024xf32>
    %99 = vector.extract_strided_slice %95 {offsets = [1, 0], sizes = [1, 1024], strides = [1, 1]} : vector<15x1024xf32> to vector<1x1024xf32>
    %100 = vector.broadcast %99 : vector<1x1024xf32> to vector<8x1024xf32>
    %101 = arith.mulf %100, %81 : vector<8x1024xf32>
    %102 = arith.addf %98, %101 : vector<8x1024xf32>
    %103 = vector.extract_strided_slice %95 {offsets = [2, 0], sizes = [1, 1024], strides = [1, 1]} : vector<15x1024xf32> to vector<1x1024xf32>
    %104 = vector.broadcast %103 : vector<1x1024xf32> to vector<8x1024xf32>
    %105 = arith.mulf %104, %71 : vector<8x1024xf32>
    %106 = arith.addf %102, %105 : vector<8x1024xf32>
    %107 = vector.extract_strided_slice %95 {offsets = [3, 0], sizes = [1, 1024], strides = [1, 1]} : vector<15x1024xf32> to vector<1x1024xf32>
    %108 = vector.broadcast %107 : vector<1x1024xf32> to vector<8x1024xf32>
    %109 = arith.mulf %108, %74 : vector<8x1024xf32>
    %110 = arith.addf %106, %109 : vector<8x1024xf32>
    %111 = vector.extract_strided_slice %95 {offsets = [4, 0], sizes = [1, 1024], strides = [1, 1]} : vector<15x1024xf32> to vector<1x1024xf32>
    %112 = vector.broadcast %111 : vector<1x1024xf32> to vector<8x1024xf32>
    %113 = arith.mulf %112, %93 : vector<8x1024xf32>
    %114 = arith.addf %110, %113 : vector<8x1024xf32>
    %115 = arith.addf %114, %15 : vector<8x1024xf32>
    %cst_19 = arith.constant dense<0xFF800000> : vector<1024xf32>
    %116 = vector.multi_reduction <maximumf>, %115, %cst_19 [0] : vector<8x1024xf32> to vector<1024xf32>
    %117 = vector.shape_cast %116 : vector<1024xf32> to vector<1x1024xf32>
    %118 = vector.broadcast %117 : vector<1x1024xf32> to vector<8x1024xf32>
    %119 = arith.subf %115, %118 : vector<8x1024xf32>
    %120 = math.exp %119 : vector<8x1024xf32>
    %cst_20 = arith.constant dense<0.000000e+00> : vector<1024xf32>
    %121 = vector.multi_reduction <add>, %120, %cst_20 [0] : vector<8x1024xf32> to vector<1024xf32>
    %122 = vector.shape_cast %121 : vector<1024xf32> to vector<1x1024xf32>
    %cst_21 = arith.constant 1.000000e+00 : f32
    %123 = vector.broadcast %cst_21 : f32 to vector<1x1024xf32>
    %124 = arith.divf %123, %122 : vector<1x1024xf32>
    %125 = vector.broadcast %124 : vector<1x1024xf32> to vector<8x1024xf32>
    %126 = arith.mulf %120, %125 : vector<8x1024xf32>
    %127 = arith.mulf %126, %80 : vector<8x1024xf32>
    %cst_22 = arith.constant dense<0.000000e+00> : vector<1024xf32>
    %128 = vector.multi_reduction <add>, %127, %cst_22 [0] : vector<8x1024xf32> to vector<1024xf32>
    %c0_23 = arith.constant 0 : index
    %c0_24 = arith.constant 0 : index
    %129 = vector.load %arg12[%c0_23, %c0_24] : memref<15x1024xf32, #tpu.memory_space<vmem>>, vector<1x1024xf32>
    %130 = vector.shape_cast %129 : vector<1x1024xf32> to vector<1024xf32>
    %131 = vector.shape_cast %128 : vector<1024xf32> to vector<1x1024xf32>
    tpu.vector_store %arg12[%c0_23, %c0_24], %131 {strides = array<i32>} : memref<15x1024xf32, #tpu.memory_space<vmem>>, vector<1x1024xf32>,
    %132 = arith.mulf %126, %81 : vector<8x1024xf32>
    %cst_25 = arith.constant dense<0.000000e+00> : vector<1024xf32>
    %133 = vector.multi_reduction <add>, %132, %cst_25 [0] : vector<8x1024xf32> to vector<1024xf32>
    %c1 = arith.constant 1 : index
    %c0_26 = arith.constant 0 : index
    %134 = vector.load %arg12[%c1, %c0_26] : memref<15x1024xf32, #tpu.memory_space<vmem>>, vector<1x1024xf32>
    %135 = vector.shape_cast %134 : vector<1x1024xf32> to vector<1024xf32>
    %136 = vector.shape_cast %133 : vector<1024xf32> to vector<1x1024xf32>
    tpu.vector_store %arg12[%c1, %c0_26], %136 {strides = array<i32>} : memref<15x1024xf32, #tpu.memory_space<vmem>>, vector<1x1024xf32>,
    %137 = arith.mulf %126, %71 : vector<8x1024xf32>
    %cst_27 = arith.constant dense<0.000000e+00> : vector<1024xf32>
    %138 = vector.multi_reduction <add>, %137, %cst_27 [0] : vector<8x1024xf32> to vector<1024xf32>
    %c2 = arith.constant 2 : index
    %c0_28 = arith.constant 0 : index
    %139 = vector.load %arg12[%c2, %c0_28] : memref<15x1024xf32, #tpu.memory_space<vmem>>, vector<1x1024xf32>
    %140 = vector.shape_cast %139 : vector<1x1024xf32> to vector<1024xf32>
    %141 = vector.shape_cast %138 : vector<1024xf32> to vector<1x1024xf32>
    tpu.vector_store %arg12[%c2, %c0_28], %141 {strides = array<i32>} : memref<15x1024xf32, #tpu.memory_space<vmem>>, vector<1x1024xf32>,
    %142 = arith.mulf %126, %74 : vector<8x1024xf32>
    %cst_29 = arith.constant dense<0.000000e+00> : vector<1024xf32>
    %143 = vector.multi_reduction <add>, %142, %cst_29 [0] : vector<8x1024xf32> to vector<1024xf32>
    %c3 = arith.constant 3 : index
    %c0_30 = arith.constant 0 : index
    %144 = vector.load %arg12[%c3, %c0_30] : memref<15x1024xf32, #tpu.memory_space<vmem>>, vector<1x1024xf32>
    %145 = vector.shape_cast %144 : vector<1x1024xf32> to vector<1024xf32>
    %146 = vector.shape_cast %143 : vector<1024xf32> to vector<1x1024xf32>
    tpu.vector_store %arg12[%c3, %c0_30], %146 {strides = array<i32>} : memref<15x1024xf32, #tpu.memory_space<vmem>>, vector<1x1024xf32>,
    %147 = arith.mulf %126, %93 : vector<8x1024xf32>
    %cst_31 = arith.constant dense<0.000000e+00> : vector<1024xf32>
    %148 = vector.multi_reduction <add>, %147, %cst_31 [0] : vector<8x1024xf32> to vector<1024xf32>
    %c4 = arith.constant 4 : index
    %c0_32 = arith.constant 0 : index
    %149 = vector.load %arg12[%c4, %c0_32] : memref<15x1024xf32, #tpu.memory_space<vmem>>, vector<1x1024xf32>
    %150 = vector.shape_cast %149 : vector<1x1024xf32> to vector<1024xf32>
    %151 = vector.shape_cast %148 : vector<1024xf32> to vector<1x1024xf32>
    tpu.vector_store %arg12[%c4, %c0_32], %151 {strides = array<i32>} : memref<15x1024xf32, #tpu.memory_space<vmem>>, vector<1x1024xf32>,
    %152 = vector.extract_strided_slice %95 {offsets = [5, 0], sizes = [1, 1024], strides = [1, 1]} : vector<15x1024xf32> to vector<1x1024xf32>
    %153 = vector.broadcast %152 : vector<1x1024xf32> to vector<8x1024xf32>
    %154 = arith.mulf %153, %80 : vector<8x1024xf32>
    %155 = vector.extract_strided_slice %95 {offsets = [6, 0], sizes = [1, 1024], strides = [1, 1]} : vector<15x1024xf32> to vector<1x1024xf32>
    %156 = vector.broadcast %155 : vector<1x1024xf32> to vector<8x1024xf32>
    %157 = arith.mulf %156, %81 : vector<8x1024xf32>
    %158 = arith.addf %154, %157 : vector<8x1024xf32>
    %159 = vector.extract_strided_slice %95 {offsets = [7, 0], sizes = [1, 1024], strides = [1, 1]} : vector<15x1024xf32> to vector<1x1024xf32>
    %160 = vector.broadcast %159 : vector<1x1024xf32> to vector<8x1024xf32>
    %161 = arith.mulf %160, %71 : vector<8x1024xf32>
    %162 = arith.addf %158, %161 : vector<8x1024xf32>
    %163 = vector.extract_strided_slice %95 {offsets = [8, 0], sizes = [1, 1024], strides = [1, 1]} : vector<15x1024xf32> to vector<1x1024xf32>
    %164 = vector.broadcast %163 : vector<1x1024xf32> to vector<8x1024xf32>
    %165 = arith.mulf %164, %74 : vector<8x1024xf32>
    %166 = arith.addf %162, %165 : vector<8x1024xf32>
    %167 = vector.extract_strided_slice %95 {offsets = [9, 0], sizes = [1, 1024], strides = [1, 1]} : vector<15x1024xf32> to vector<1x1024xf32>
    %168 = vector.broadcast %167 : vector<1x1024xf32> to vector<8x1024xf32>
    %169 = arith.mulf %168, %93 : vector<8x1024xf32>
    %170 = arith.addf %166, %169 : vector<8x1024xf32>
    %171 = arith.addf %170, %15 : vector<8x1024xf32>
    %cst_33 = arith.constant dense<0xFF800000> : vector<1024xf32>
    %172 = vector.multi_reduction <maximumf>, %171, %cst_33 [0] : vector<8x1024xf32> to vector<1024xf32>
    %173 = vector.shape_cast %172 : vector<1024xf32> to vector<1x1024xf32>
    %174 = vector.broadcast %173 : vector<1x1024xf32> to vector<8x1024xf32>
    %175 = arith.subf %171, %174 : vector<8x1024xf32>
    %176 = math.exp %175 : vector<8x1024xf32>
    %cst_34 = arith.constant dense<0.000000e+00> : vector<1024xf32>
    %177 = vector.multi_reduction <add>, %176, %cst_34 [0] : vector<8x1024xf32> to vector<1024xf32>
    %178 = vector.shape_cast %177 : vector<1024xf32> to vector<1x1024xf32>
    %cst_35 = arith.constant 1.000000e+00 : f32
    %179 = vector.broadcast %cst_35 : f32 to vector<1x1024xf32>
    %180 = arith.divf %179, %178 : vector<1x1024xf32>
    %181 = vector.broadcast %180 : vector<1x1024xf32> to vector<8x1024xf32>
    %182 = arith.mulf %176, %181 : vector<8x1024xf32>
    %183 = arith.mulf %182, %80 : vector<8x1024xf32>
    %cst_36 = arith.constant dense<0.000000e+00> : vector<1024xf32>
    %184 = vector.multi_reduction <add>, %183, %cst_36 [0] : vector<8x1024xf32> to vector<1024xf32>
    %c5 = arith.constant 5 : index
    %c0_37 = arith.constant 0 : index
    %185 = vector.load %arg12[%c5, %c0_37] : memref<15x1024xf32, #tpu.memory_space<vmem>>, vector<1x1024xf32>
    %186 = vector.shape_cast %185 : vector<1x1024xf32> to vector<1024xf32>
    %187 = vector.shape_cast %184 : vector<1024xf32> to vector<1x1024xf32>
    tpu.vector_store %arg12[%c5, %c0_37], %187 {strides = array<i32>} : memref<15x1024xf32, #tpu.memory_space<vmem>>, vector<1x1024xf32>,
    %188 = arith.mulf %182, %81 : vector<8x1024xf32>
    %cst_38 = arith.constant dense<0.000000e+00> : vector<1024xf32>
    %189 = vector.multi_reduction <add>, %188, %cst_38 [0] : vector<8x1024xf32> to vector<1024xf32>
    %c6 = arith.constant 6 : index
    %c0_39 = arith.constant 0 : index
    %190 = vector.load %arg12[%c6, %c0_39] : memref<15x1024xf32, #tpu.memory_space<vmem>>, vector<1x1024xf32>
    %191 = vector.shape_cast %190 : vector<1x1024xf32> to vector<1024xf32>
    %192 = vector.shape_cast %189 : vector<1024xf32> to vector<1x1024xf32>
    tpu.vector_store %arg12[%c6, %c0_39], %192 {strides = array<i32>} : memref<15x1024xf32, #tpu.memory_space<vmem>>, vector<1x1024xf32>,
    %193 = arith.mulf %182, %71 : vector<8x1024xf32>
    %cst_40 = arith.constant dense<0.000000e+00> : vector<1024xf32>
    %194 = vector.multi_reduction <add>, %193, %cst_40 [0] : vector<8x1024xf32> to vector<1024xf32>
    %c7 = arith.constant 7 : index
    %c0_41 = arith.constant 0 : index
    %195 = vector.load %arg12[%c7, %c0_41] : memref<15x1024xf32, #tpu.memory_space<vmem>>, vector<1x1024xf32>
    %196 = vector.shape_cast %195 : vector<1x1024xf32> to vector<1024xf32>
    %197 = vector.shape_cast %194 : vector<1024xf32> to vector<1x1024xf32>
    tpu.vector_store %arg12[%c7, %c0_41], %197 {strides = array<i32>} : memref<15x1024xf32, #tpu.memory_space<vmem>>, vector<1x1024xf32>,
    %198 = arith.mulf %182, %74 : vector<8x1024xf32>
    %cst_42 = arith.constant dense<0.000000e+00> : vector<1024xf32>
    %199 = vector.multi_reduction <add>, %198, %cst_42 [0] : vector<8x1024xf32> to vector<1024xf32>
    %c8 = arith.constant 8 : index
    %c0_43 = arith.constant 0 : index
    %200 = vector.load %arg12[%c8, %c0_43] : memref<15x1024xf32, #tpu.memory_space<vmem>>, vector<1x1024xf32>
    %201 = vector.shape_cast %200 : vector<1x1024xf32> to vector<1024xf32>
    %202 = vector.shape_cast %199 : vector<1024xf32> to vector<1x1024xf32>
    tpu.vector_store %arg12[%c8, %c0_43], %202 {strides = array<i32>} : memref<15x1024xf32, #tpu.memory_space<vmem>>, vector<1x1024xf32>,
    %203 = arith.mulf %182, %93 : vector<8x1024xf32>
    %cst_44 = arith.constant dense<0.000000e+00> : vector<1024xf32>
    %204 = vector.multi_reduction <add>, %203, %cst_44 [0] : vector<8x1024xf32> to vector<1024xf32>
    %c9 = arith.constant 9 : index
    %c0_45 = arith.constant 0 : index
    %205 = vector.load %arg12[%c9, %c0_45] : memref<15x1024xf32, #tpu.memory_space<vmem>>, vector<1x1024xf32>
    %206 = vector.shape_cast %205 : vector<1x1024xf32> to vector<1024xf32>
    %207 = vector.shape_cast %204 : vector<1024xf32> to vector<1x1024xf32>
    tpu.vector_store %arg12[%c9, %c0_45], %207 {strides = array<i32>} : memref<15x1024xf32, #tpu.memory_space<vmem>>, vector<1x1024xf32>,
    %208 = vector.extract_strided_slice %95 {offsets = [10, 0], sizes = [1, 1024], strides = [1, 1]} : vector<15x1024xf32> to vector<1x1024xf32>
    %209 = vector.broadcast %208 : vector<1x1024xf32> to vector<8x1024xf32>
    %210 = arith.mulf %209, %80 : vector<8x1024xf32>
    %211 = vector.extract_strided_slice %95 {offsets = [11, 0], sizes = [1, 1024], strides = [1, 1]} : vector<15x1024xf32> to vector<1x1024xf32>
    %212 = vector.broadcast %211 : vector<1x1024xf32> to vector<8x1024xf32>
    %213 = arith.mulf %212, %81 : vector<8x1024xf32>
    %214 = arith.addf %210, %213 : vector<8x1024xf32>
    %215 = vector.extract_strided_slice %95 {offsets = [12, 0], sizes = [1, 1024], strides = [1, 1]} : vector<15x1024xf32> to vector<1x1024xf32>
    %216 = vector.broadcast %215 : vector<1x1024xf32> to vector<8x1024xf32>
    %217 = arith.mulf %216, %71 : vector<8x1024xf32>
    %218 = arith.addf %214, %217 : vector<8x1024xf32>
    %219 = vector.extract_strided_slice %95 {offsets = [13, 0], sizes = [1, 1024], strides = [1, 1]} : vector<15x1024xf32> to vector<1x1024xf32>
    %220 = vector.broadcast %219 : vector<1x1024xf32> to vector<8x1024xf32>
    %221 = arith.mulf %220, %74 : vector<8x1024xf32>
    %222 = arith.addf %218, %221 : vector<8x1024xf32>
    %223 = vector.extract_strided_slice %95 {offsets = [14, 0], sizes = [1, 1024], strides = [1, 1]} : vector<15x1024xf32> to vector<1x1024xf32>
    %224 = vector.broadcast %223 : vector<1x1024xf32> to vector<8x1024xf32>
    %225 = arith.mulf %224, %93 : vector<8x1024xf32>
    %226 = arith.addf %222, %225 : vector<8x1024xf32>
    %227 = arith.addf %226, %15 : vector<8x1024xf32>
    %cst_46 = arith.constant dense<0xFF800000> : vector<1024xf32>
    %228 = vector.multi_reduction <maximumf>, %227, %cst_46 [0] : vector<8x1024xf32> to vector<1024xf32>
    %229 = vector.shape_cast %228 : vector<1024xf32> to vector<1x1024xf32>
    %230 = vector.broadcast %229 : vector<1x1024xf32> to vector<8x1024xf32>
    %231 = arith.subf %227, %230 : vector<8x1024xf32>
    %232 = math.exp %231 : vector<8x1024xf32>
    %cst_47 = arith.constant dense<0.000000e+00> : vector<1024xf32>
    %233 = vector.multi_reduction <add>, %232, %cst_47 [0] : vector<8x1024xf32> to vector<1024xf32>
    %234 = vector.shape_cast %233 : vector<1024xf32> to vector<1x1024xf32>
    %cst_48 = arith.constant 1.000000e+00 : f32
    %235 = vector.broadcast %cst_48 : f32 to vector<1x1024xf32>
    %236 = arith.divf %235, %234 : vector<1x1024xf32>
    %237 = vector.broadcast %236 : vector<1x1024xf32> to vector<8x1024xf32>
    %238 = arith.mulf %232, %237 : vector<8x1024xf32>
    %239 = arith.mulf %238, %80 : vector<8x1024xf32>
    %cst_49 = arith.constant dense<0.000000e+00> : vector<1024xf32>
    %240 = vector.multi_reduction <add>, %239, %cst_49 [0] : vector<8x1024xf32> to vector<1024xf32>
    %c10 = arith.constant 10 : index
    %c0_50 = arith.constant 0 : index
    %241 = vector.load %arg12[%c10, %c0_50] : memref<15x1024xf32, #tpu.memory_space<vmem>>, vector<1x1024xf32>
    %242 = vector.shape_cast %241 : vector<1x1024xf32> to vector<1024xf32>
    %243 = vector.shape_cast %240 : vector<1024xf32> to vector<1x1024xf32>
    tpu.vector_store %arg12[%c10, %c0_50], %243 {strides = array<i32>} : memref<15x1024xf32, #tpu.memory_space<vmem>>, vector<1x1024xf32>,
    %244 = arith.mulf %238, %81 : vector<8x1024xf32>
    %cst_51 = arith.constant dense<0.000000e+00> : vector<1024xf32>
    %245 = vector.multi_reduction <add>, %244, %cst_51 [0] : vector<8x1024xf32> to vector<1024xf32>
    %c11 = arith.constant 11 : index
    %c0_52 = arith.constant 0 : index
    %246 = vector.load %arg12[%c11, %c0_52] : memref<15x1024xf32, #tpu.memory_space<vmem>>, vector<1x1024xf32>
    %247 = vector.shape_cast %246 : vector<1x1024xf32> to vector<1024xf32>
    %248 = vector.shape_cast %245 : vector<1024xf32> to vector<1x1024xf32>
    tpu.vector_store %arg12[%c11, %c0_52], %248 {strides = array<i32>} : memref<15x1024xf32, #tpu.memory_space<vmem>>, vector<1x1024xf32>,
    %249 = arith.mulf %238, %71 : vector<8x1024xf32>
    %cst_53 = arith.constant dense<0.000000e+00> : vector<1024xf32>
    %250 = vector.multi_reduction <add>, %249, %cst_53 [0] : vector<8x1024xf32> to vector<1024xf32>
    %c12 = arith.constant 12 : index
    %c0_54 = arith.constant 0 : index
    %251 = vector.load %arg12[%c12, %c0_54] : memref<15x1024xf32, #tpu.memory_space<vmem>>, vector<1x1024xf32>
    %252 = vector.shape_cast %251 : vector<1x1024xf32> to vector<1024xf32>
    %253 = vector.shape_cast %250 : vector<1024xf32> to vector<1x1024xf32>
    tpu.vector_store %arg12[%c12, %c0_54], %253 {strides = array<i32>} : memref<15x1024xf32, #tpu.memory_space<vmem>>, vector<1x1024xf32>,
    %254 = arith.mulf %238, %74 : vector<8x1024xf32>
    %cst_55 = arith.constant dense<0.000000e+00> : vector<1024xf32>
    %255 = vector.multi_reduction <add>, %254, %cst_55 [0] : vector<8x1024xf32> to vector<1024xf32>
    %c13 = arith.constant 13 : index
    %c0_56 = arith.constant 0 : index
    %256 = vector.load %arg12[%c13, %c0_56] : memref<15x1024xf32, #tpu.memory_space<vmem>>, vector<1x1024xf32>
    %257 = vector.shape_cast %256 : vector<1x1024xf32> to vector<1024xf32>
    %258 = vector.shape_cast %255 : vector<1024xf32> to vector<1x1024xf32>
    tpu.vector_store %arg12[%c13, %c0_56], %258 {strides = array<i32>} : memref<15x1024xf32, #tpu.memory_space<vmem>>, vector<1x1024xf32>,
    %259 = arith.mulf %238, %93 : vector<8x1024xf32>
    %cst_57 = arith.constant dense<0.000000e+00> : vector<1024xf32>
    %260 = vector.multi_reduction <add>, %259, %cst_57 [0] : vector<8x1024xf32> to vector<1024xf32>
    %c14 = arith.constant 14 : index
    %c0_58 = arith.constant 0 : index
    %261 = vector.load %arg12[%c14, %c0_58] : memref<15x1024xf32, #tpu.memory_space<vmem>>, vector<1x1024xf32>
    %262 = vector.shape_cast %261 : vector<1x1024xf32> to vector<1024xf32>
    %263 = vector.shape_cast %260 : vector<1024xf32> to vector<1x1024xf32>
    tpu.vector_store %arg12[%c14, %c0_58], %263 {strides = array<i32>} : memref<15x1024xf32, #tpu.memory_space<vmem>>, vector<1x1024xf32>,
    %c0_59 = arith.constant 0 : index
    %c0_60 = arith.constant 0 : index
    %264 = vector.load %arg12[%c0_59, %c0_60] : memref<15x1024xf32, #tpu.memory_space<vmem>>, vector<15x1024xf32>
    %c0_61 = arith.constant 0 : index
    %c0_62 = arith.constant 0 : index
    %265 = vector.load %arg4[%c0_61, %c0_62] : memref<32x15xf32, #tpu.memory_space<vmem>>, vector<32x15xf32>
    %cst_63 = arith.constant dense<0.000000e+00> : vector<32x1024xf32>
    %266 = tpu.matmul %265, %264, %cst_63 {dimension_numbers = #tpu.dot_dimension_numbers<[1], [0], [0], [1], [0, 0, 1, 1], [], []>, precision = #tpu.contract_precision<fp32>} : vector<32x15xf32>, vector<15x1024xf32>, vector<32x1024xf32> -> vector<32x1024xf32>
    %c0_64 = arith.constant 0 : index
    %c0_65 = arith.constant 0 : index
    %267 = vector.load %arg5[%c0_64, %c0_65] : memref<32x7xf32, #tpu.memory_space<vmem>>, vector<32x7xf32>
    %cst_66 = arith.constant dense<0.000000e+00> : vector<32x1024xf32>
    %268 = tpu.matmul %267, %3, %cst_66 {dimension_numbers = #tpu.dot_dimension_numbers<[1], [0], [0], [1], [0, 0, 1, 1], [], []>, precision = #tpu.contract_precision<fp32>} : vector<32x7xf32>, vector<7x1024xf32>, vector<32x1024xf32> -> vector<32x1024xf32>
    %269 = arith.addf %266, %268 : vector<32x1024xf32>
    %c0_67 = arith.constant 0 : index
    %c0_68 = arith.constant 0 : index
    %270 = vector.load %arg6[%c0_67, %c0_68] : memref<32x1xf32, #tpu.memory_space<vmem>>, vector<32x1xf32>
    %271 = vector.broadcast %270 : vector<32x1xf32> to vector<32x1024xf32>
    %272 = arith.addf %269, %271 : vector<32x1024xf32>
    %cst_69 = arith.constant 0.000000e+00 : f32
    %273 = vector.broadcast %cst_69 : f32 to vector<32x1024xf32>
    %274 = arith.maximumf %272, %273 : vector<32x1024xf32>
    %c0_70 = arith.constant 0 : index
    %c0_71 = arith.constant 0 : index
    %275 = vector.load %arg7[%c0_70, %c0_71] : memref<32x32xf32, #tpu.memory_space<vmem>>, vector<32x32xf32>
    %cst_72 = arith.constant dense<0.000000e+00> : vector<32x1024xf32>
    %276 = tpu.matmul %275, %274, %cst_72 {dimension_numbers = #tpu.dot_dimension_numbers<[1], [0], [0], [1], [0, 0, 1, 1], [], []>, precision = #tpu.contract_precision<fp32>} : vector<32x32xf32>, vector<32x1024xf32>, vector<32x1024xf32> -> vector<32x1024xf32>
    %c0_73 = arith.constant 0 : index
    %c0_74 = arith.constant 0 : index
    %277 = vector.load %arg8[%c0_73, %c0_74] : memref<32x1xf32, #tpu.memory_space<vmem>>, vector<32x1xf32>
    %278 = vector.broadcast %277 : vector<32x1xf32> to vector<32x1024xf32>
    %279 = arith.addf %276, %278 : vector<32x1024xf32>
    %cst_75 = arith.constant 0.000000e+00 : f32
    %280 = vector.broadcast %cst_75 : f32 to vector<32x1024xf32>
    %281 = arith.maximumf %279, %280 : vector<32x1024xf32>
    %c0_76 = arith.constant 0 : index
    %c0_77 = arith.constant 0 : index
    %282 = vector.load %arg9[%c0_76, %c0_77] : memref<32x1xf32, #tpu.memory_space<vmem>>, vector<32x1xf32>
    %283 = vector.broadcast %282 : vector<32x1xf32> to vector<32x1024xf32>
    %284 = arith.mulf %281, %283 : vector<32x1024xf32>
    %cst_78 = arith.constant dense<0.000000e+00> : vector<1024xf32>
    %285 = vector.multi_reduction <add>, %284, %cst_78 [0] : vector<32x1024xf32> to vector<1024xf32>
    %286 = vector.shape_cast %285 : vector<1024xf32> to vector<1x1024xf32>
    %c0_79 = arith.constant 0 : index
    %c0_80 = arith.constant 0 : index
    %287 = vector.load %arg10[%c0_79, %c0_80] : memref<1x1xf32, #tpu.memory_space<vmem>>, vector<1x1xf32>
    %288 = vector.broadcast %287 : vector<1x1xf32> to vector<1x1024xf32>
    %289 = arith.addf %286, %288 : vector<1x1024xf32>
    %c0_81 = arith.constant 0 : index
    %c0_82 = arith.constant 0 : index
    %c0_83 = arith.constant 0 : index
    %290 = vector.load %arg11[%c0_81, %c0_82, %c0_83] : memref<1x1x1024xf32, #tpu.memory_space<vmem>>, vector<1x1x1024xf32>
    %291 = vector.shape_cast %290 : vector<1x1x1024xf32> to vector<1x1024xf32>
    %292 = vector.shape_cast %289 : vector<1x1024xf32> to vector<1x1x1024xf32>
    tpu.vector_store %arg11[%c0_81, %c0_82, %c0_83], %292 {strides = array<i32>} : memref<1x1x1024xf32, #tpu.memory_space<vmem>>, vector<1x1x1024xf32>,
    return
  }
  func.func @transform_0(%arg0: i32) -> (i32, i32, i32, i32) {
    %c0_i32 = arith.constant 0 : i32
    %c0_i32_0 = arith.constant 0 : i32
    %c0_i32_1 = arith.constant 0 : i32
    %c0_i32_2 = arith.constant 0 : i32
    return %arg0, %c0_i32, %c0_i32_0, %c0_i32_1 : i32, i32, i32, i32
  }
  func.func @transform_1(%arg0: i32) -> (i32, i32, i32) {
    %c0_i32 = arith.constant 0 : i32
    %c0_i32_0 = arith.constant 0 : i32
    %c0_i32_1 = arith.constant 0 : i32
    return %arg0, %c0_i32, %c0_i32_0 : i32, i32, i32
  }
  func.func @transform_2(%arg0: i32) -> (i32, i32) {
    %c0_i32 = arith.constant 0 : i32
    %c0_i32_0 = arith.constant 0 : i32
    %c0_i32_1 = arith.constant 0 : i32
    return %c0_i32, %c0_i32_0 : i32, i32
  }
  func.func @transform_3(%arg0: i32) -> (i32, i32) {
    %c0_i32 = arith.constant 0 : i32
    %c0_i32_0 = arith.constant 0 : i32
    %c0_i32_1 = arith.constant 0 : i32
    return %c0_i32, %c0_i32_0 : i32, i32
  }
  func.func @transform_4(%arg0: i32) -> (i32, i32) {
    %c0_i32 = arith.constant 0 : i32
    %c0_i32_0 = arith.constant 0 : i32
    %c0_i32_1 = arith.constant 0 : i32
    return %c0_i32, %c0_i32_0 : i32, i32
  }
  func.func @transform_5(%arg0: i32) -> (i32, i32) {
    %c0_i32 = arith.constant 0 : i32
    %c0_i32_0 = arith.constant 0 : i32
    %c0_i32_1 = arith.constant 0 : i32
    return %c0_i32, %c0_i32_0 : i32, i32
  }
  func.func @transform_6(%arg0: i32) -> (i32, i32) {
    %c0_i32 = arith.constant 0 : i32
    %c0_i32_0 = arith.constant 0 : i32
    %c0_i32_1 = arith.constant 0 : i32
    return %c0_i32, %c0_i32_0 : i32, i32
  }
  func.func @transform_7(%arg0: i32) -> (i32, i32) {
    %c0_i32 = arith.constant 0 : i32
    %c0_i32_0 = arith.constant 0 : i32
    %c0_i32_1 = arith.constant 0 : i32
    return %c0_i32, %c0_i32_0 : i32, i32
  }
  func.func @transform_8(%arg0: i32) -> (i32, i32) {
    %c0_i32 = arith.constant 0 : i32
    %c0_i32_0 = arith.constant 0 : i32
    %c0_i32_1 = arith.constant 0 : i32
    return %c0_i32, %c0_i32_0 : i32, i32
  }
  func.func @transform_9(%arg0: i32) -> (i32, i32) {
    %c0_i32 = arith.constant 0 : i32
    %c0_i32_0 = arith.constant 0 : i32
    %c0_i32_1 = arith.constant 0 : i32
    return %c0_i32, %c0_i32_0 : i32, i32
  }
  func.func @transform_10(%arg0: i32) -> (i32, i32, i32) {
    %c0_i32 = arith.constant 0 : i32
    %c0_i32_0 = arith.constant 0 : i32
    %c0_i32_1 = arith.constant 0 : i32
    return %arg0, %c0_i32, %c0_i32_0 : i32, i32, i32
  }
}

</mosaic_0001>

<bundles_post_ra>
// kernel: tpu_custom_call.1
= control target key start
LH: loop header
LB: loop body
LE: loop exit
PB: predicated region body
PF: predicated region fallthrough
CT: control target
= control target key end

     0   :  { %s19693_s0 = inlined_call_operand.vmem [shape: f32[2,5,8,128], index: 0, kind: input, shape index: {}]   ;;  %s19694_s1 = inlined_call_operand.vmem [shape: f32[2,7,1024], index: 1, kind: input, shape index: {}]   ;;  %s19695_s2 = inlined_call_operand.vmem [shape: f32[15,7], index: 2, kind: input, shape index: {}]   ;;  %s19696_s3 = inlined_call_operand.vmem [shape: f32[32,15], index: 3, kind: input, shape index: {}]   ;;  %s19697_s4 = inlined_call_operand.vmem [shape: f32[32,7], index: 4, kind: input, shape index: {}]   ;;  %s19698_s5 = inlined_call_operand.vmem [shape: f32[32,1], index: 5, kind: input, shape index: {}]   ;;  %s19699_s6 = inlined_call_operand.vmem [shape: f32[32,32], index: 6, kind: input, shape index: {}]   ;;  %s19700_s7 = inlined_call_operand.vmem [shape: f32[32,1], index: 7, kind: input, shape index: {}]   ;;  %s19701_s8 = inlined_call_operand.vmem [shape: f32[32,1], index: 8, kind: input, shape index: {}]   ;;  %s19702_s9 = inlined_call_operand.<no memory space> [shape: f32[1,1], index: 9, kind: input, shape index: {}]   ;;  %s19703_s10 = inlined_call_operand.hbm [shape: f32[2,1,1024], index: 10, kind: output, shape index: {}]  }
   0x1   :  { %v15_v0 = vstv %s19702_s9 }
   0x2   :  { %16 = vst [vmem:[#allocation3] sm:$0x1] %v15_v0 }
   0x3   :  { %17 = vsyncpa [#allocation5], 0 }
   0x4   :  { %19 = vsyncpa [#allocation5 + $0x1], 0  ;;  %s15605_s15 = smov 0   ;;  %s15607_s16 = smov 0  }
   0x5   :  { %s15609_s17 = smov 0   ;;  %s15611_s18 = smov 0  }
   0x6 LB: > { %s15626_s9 = sadd.s32 4294967295, %s15535_s18   ;;  %s14319_s19 = sadd.s32 4294967294, %s15535_s18   ;;  %s15535_s18 = sphi %s15611_s18, %s20309_s18   ;;  %s15531_s17 = sphi %s15609_s17, %s20308_s17   ;;  %s15527_s16 = sphi %s15607_s16, %s20307_s16   ;;  %s15523_s15 = sphi %s15605_s15, %s20306_s15  }
   0x7   : > { %s15630_s20 = sadd.s32 1, %s15535_s18   ;;  %s252_s21 = sadd.s32 1, %s15531_s17 }
   0x8   : > { %s249_s22 = ssub.s32 %s15535_s18, %s15630_s20  ;;  %p262_p0 = scmp.ne.s32.totalorder %s15531_s17, %s15527_s16 }
   0x9   : > { %p250_p1 = scmp.eq.s32.totalorder %s249_s22, 0  ;;  %p263_p2 = scmp.eq.s32.totalorder %s15626_s9, 1 }
   0xa   : > { %p268_p3 = scmp.ne.s32.totalorder %s15527_s16, %s15523_s15  ;;  %p269_p4 = scmp.eq.s32.totalorder %s14319_s19, 1 }
   0xb   : > { %s15641_s23 = scalar_select %p250_p1, %s15531_s17, %s252_s21  }
   0xc   : > { %p15643_p5 = por %p263_p2, %p262_p0  ;;  %p15647_p6 = por %p269_p4, %p268_p3 }
   0xd   : > { %p14322_p7 = scmp.ge.s32.totalorder %s15535_s18, 1  ;;  %p327_p8 = scmp.lt.s32.totalorder %s15535_s18, 3 }
   0xf   : > { %p328_p9 = pnand %p14322_p7, %p327_p8 }
  0x11   : > { %331 = sbr.rel (%p328_p9) target bundleno = 1574 (0x626), region = 60 }
  0x18   : > { %p370_p10 = scmp.lt.s32.totalorder %s15626_s9, 1  ;;  %v19704_v1 = vlaneseq  ;;  %vm1047_vm0 = vcmask 1046528   ;;  %v19706_v3 = vmov 0.0   ;;  %vm1040_vm1 = vcmask 56320   ;;  %v1038_v23 = vld [vmem:[%s19695_s2] sm:$0xff]  ;;  %s14357_s29 = sshll.u32 %s15626_s9, 7 }
  0x19   : > { %1138 = vmatprep.mubr.f32.mxu0 %v19706_v3  ;;  %1652 = vmatprep.mubr.f32.mxu1 %v19706_v3  ;;  %v1039_v32 = vld [vmem:[%s19695_s2 + $0x8] sm:$0x7f]  ;;  %v1042_v36 = vsel %vm1040_vm1, %v1038_v23, 0  ;;  %s15546_s21 = smov [#allocation4]  }
  0x1a   : > { %s371_s26 = scalar_select %p370_p10, %s15626_s9, 1  ;;  %v15656_v2 = vshrl.u32 %v19704_v1, 7  ;;  %v1045_v44 = vsel %vm1040_vm1, %v1039_v32, 0 }
  0x1b   : > { %s15477_s22 = sshll.u32 %s15546_s21, 4  ;;  %s15478_s22 = int_to_ptr.vmem [resolvable:$false] %s15477_s22 }
  0x1c   : > { %19901 = vst [vmem:[#allocation7_spill] sm:$0xff] %v15656_v2  ;;  %s15270_s27 = smul.u32 40, %s371_s26  ;;  %s14356_s28 = sshll.u32 %s371_s26, 6  ;;  %v15661_v4 = vsub.s32 0, %v15656_v2  ;;  %v15664_v5 = vsub.s32 1, %v15656_v2  ;;  %v15667_v6 = vsub.s32 2, %v15656_v2 }
  0x1d   : > { %v15670_v7 = vsub.s32 3, %v15656_v2  ;;  %s15675_s11 = scalar_lea.vmem %s19694_s1, %s14356_s28  ;;  %s15479_s26 = scalar_lea.vmem %s15478_s22, 256 }
  0x1e   : > { %19902 = vst [vmem:[#allocation8_spill] sm:$0xff] %v15661_v4  ;;  %19903 = vst [vmem:[#allocation9_spill] sm:$0xff] %v15664_v5  ;;  %s374_s14 = scalar_lea.vmem %s19693_s0, %s15270_s27  ;;  %v386_v8 = vld [vmem:[%s15675_s11 + $0x8] sm:$0x7f]  ;;  %v388_v9 = vld [vmem:[%s15675_s11 + $0x18] sm:$0x7f] }
  0x1f   : > { %19904 = vst [vmem:[#allocation10_spill] sm:$0xff] %v15667_v6  ;;  %19905 = vst [vmem:[#allocation11_spill] sm:$0xff] %v15670_v7  ;;  %v15682_v10 = vld [vmem:[%s374_s14] sm:$0xff]  ;;  %v15684_v11 = vld [vmem:[%s374_s14 + $0x8] sm:$0xff]  ;;  %v661_v13 = vrot.slane %v386_v8, %v15661_v4  ;;  %v701_v14 = vrot.slane %v386_v8, %v15664_v5  ;;  %v741_v15 = vrot.slane %v386_v8, %v15667_v6  ;;  %v1052_v19 = vsel %vm1047_vm0, %v386_v8, 0  ;;  %s367_s27 = sand.u32 1, %s15527_s16  }
  0x20   : > { %v15686_v12 = vld [vmem:[%s374_s14 + $0x10] sm:$0xff]  ;;  %v781_v16 = vrot.slane %v386_v8, %v15670_v7  ;;  %v15692_v17 = vld [vmem:[%s374_s14 + $0x18] sm:$0xff]  ;;  %v384_v18 = vld [vmem:[%s374_s14 + $0x20] sm:$0xff]  ;;  %v669_v20 = vrot.slane %v388_v9, %v15661_v4  ;;  %v709_v21 = vrot.slane %v388_v9, %v15664_v5  ;;  %v749_v22 = vrot.slane %v388_v9, %v15667_v6  ;;  %s14323_s28 = sshll.u32 %s367_s27, 3  ;;  %s19651_s14 = scalar_lea.hbm %s19703_s10, %s14357_s29 }
  0x21   : > { %v15701_v24 = vsub.f32 1.5707964, %v384_v18  ;;  %v15704_v25 = vsub.f32 %v15682_v10, %v661_v13  ;;  %v15707_v26 = vsub.f32 %v15684_v11, %v701_v14  ;;  %v15710_v27 = vsub.f32 %v15686_v12, %v741_v15  ;;  %v385_v35 = vld [vmem:[%s15675_s11] sm:$0x7f]  ;;  %v387_v53 = vld [vmem:[%s15675_s11 + $0x10] sm:$0x7f] }
  0x22   : > { %v15713_v28 = vsub.f32 %v15692_v17, %v781_v16  ;;  %v15715_v29 = vand.u32 4294901760, %v1052_v19  ;;  %v15718_v30 = vsub.f32 %v15682_v10, %v669_v20  ;;  %v15721_v31 = vsub.f32 %v15684_v11, %v709_v21  ;;  %s369_s30 = scalar_lea.vmem [#allocation4], %s14323_s28  ;;  %s14234_s9 = scalar_lea.sflag [#allocation5], %s367_s27 }
  0x23   : > { %v19705_v33 = vand.u32 2147483647, %v15701_v24  ;;  %v450_v34 = vand.u32 2139095040, %v15701_v24  ;;  %v15732_v37 = vsub.f32 %v15686_v12, %v749_v22  ;;  %v789_v38 = vrot.slane %v388_v9, %v15670_v7 }
  0x24   : > { %1073 = vmatprep.subr.mxu0 %v15715_v29  ;;  %v1058_v39 = vsel %vm1047_vm0, %v388_v9, 0  ;;  %v657_v40 = vrot.slane %v385_v35, %v15661_v4  ;;  %v697_v47 = vrot.slane %v385_v35, %v15664_v5  ;;  %v737_v48 = vrot.slane %v385_v35, %v15667_v6 }
  0x25   : > { %v451_v41 = vshrl.u32 %v450_v34, 23  ;;  %v454_v42 = vand.u32 8388607, %v19705_v33  ;;  %v15739_v43 = vand.u32 4294901760, %v1058_v39  ;;  %v15743_v45 = vsub.f32 %v15692_v17, %v789_v38 }
  0x26   : > { %v15746_v46 = vsub.f32 %v15682_v10, %v657_v40  ;;  %v777_v51 = vrot.slane %v385_v35, %v15670_v7  ;;  %v1049_v52 = vsel %vm1047_vm0, %v385_v35, 0  ;;  %v15755_v54 = vsub.f32 %v15684_v11, %v697_v47 }
  0x27   : > { %v14327_v49 = vadd.s32 4294967169, %v451_v41  ;;  %v455_v50 = vor.u32 8388608, %v454_v42  ;;  %1587 = vmatprep.subr.mxu1 %v15739_v43  ;;  %v15758_v55 = vsub.f32 %v15686_v12, %v737_v48  ;;  %v15760_v56 = vand.u32 4294901760, %v1049_v52 }
  0x28   : > { %v665_v57 = vrot.slane %v387_v53, %v15661_v4  ;;  %v15766_v60 = vsub.f32 %v15692_v17, %v777_v51  ;;  %v705_v61 = vrot.slane %v387_v53, %v15664_v5  ;;  %v745_v63 = vrot.slane %v387_v53, %v15667_v6 }
  0x29   : > { %v457_v58 = vadd.s32 1, %v14327_v49  ;;  %v15763_v59 = vshll.u32 %v455_v50, 8  ;;  %1075 = vmatpush1.msra.mxu0 %v15760_v56  ;;  %v785_v0 = vrot.slane %v387_v53, %v15670_v7  ;;  %v1055_v8 = vsel %vm1047_vm0, %v387_v53, 0 }
  0x2a   : > { %v15771_v62 = vsub.f32 %v15682_v10, %v665_v57  ;;  %v15777_v9 = vsub.f32 %v15684_v11, %v705_v61  ;;  %v15779_v13 = vand.u32 4294901760, %v1055_v8  ;;  %v15781_v14 = vand.u32 4294901760, %v1042_v36 }
  0x2b   : > { %vm458_vm2 = vcmp.gt.s32.totalorder %v457_v58, 0  ;;  %v15784_v16 = vsub.f32 %v15686_v12, %v745_v63  ;;  %v15787_v18 = vsub.f32 %v15692_v17, %v785_v0  ;;  %v15789_v20 = vand.u32 4294901760, %v1045_v44 }
  0x2c   : > { %19906 = vst [vmem:[#allocation12_spill] sm:$0xff] %v15771_v62  ;;  %19907 = vst [vmem:[#allocation13_spill] sm:$0xff] %v15777_v9  ;;  %v459_v15 = vsel %vm458_vm2, %v457_v58, 0  ;;  %1589 = vmatpush1.msra.mxu1 %v15779_v13  ;;  %v15793_v23 = vsub.f32 %v1042_v36, %v15781_v14  ;;  %v15796_v32 = vsub.f32 %v1052_v19, %v15715_v29  ;;  %v15538_v42 = vmov 683565275  }
  0x2d   : > { %19908 = vst [vmem:[#allocation14_spill] sm:$0xff] %v15784_v16  ;;  %19909 = vst [vmem:[#allocation15_spill] sm:$0xff] %v15787_v18  ;;  %v460_v21 = vshrl.u32 %v459_v15, 5  ;;  %v461_v22 = vand.u32 31, %v459_v15  ;;  %v15799_v34 = vsub.f32 %v1045_v44, %v15789_v20  ;;  %v15802_v35 = vsub.f32 %v1058_v39, %v15739_v43 }
  0x2e   : > { %19910 = vst [vmem:[#allocation16_spill] sm:$0xff] %v15796_v32  ;;  %v15805_v38 = vsub.f32 %v1049_v52, %v15760_v56  ;;  %v15808_v40 = vsub.f32 %v1055_v8, %v15779_v13  ;;  %v15539_v36 = vmov 2475754826   ;;  %v15540_v49 = vmov 2131351028  }
  0x2f   : > { %19911 = vst [vmem:[#allocation17_spill] sm:$0xff] %v15802_v35  ;;  %v462_v41 = vsub.s32 32, %v461_v22  ;;  %v464_v47 = vshll.u32 %v15538_v42, %v461_v22  ;;  %v467_v48 = vshll.u32 %v15539_v36, %v461_v22  ;;  %v470_v19 = vshll.u32 %v15540_v49, %v461_v22 }
  0x30   : > { %19912 = vst [vmem:[#allocation18_spill] sm:$0xff] %v15805_v38  ;;  %19913 = vst [vmem:[#allocation19_spill] sm:$0xff] %v15808_v40  ;;  %v15541_v50 = vmov 2102212464   ;;  %v15542_v44 = vmov 920167782  }
  0x31   : > { %v473_v51 = vshll.u32 %v15541_v50, %v461_v22  ;;  %v476_v53 = vshll.u32 %v15542_v44, %v461_v22  ;;  %vm479_vm3 = vcmp.lt.s32.totalorder %v460_v21, 1  ;;  %vm480_vm4 = vcmp.lt.s32.totalorder %v460_v21, 2 }
  0x32   : > { %v463_v39 = vshrl.u32 %v15538_v42, %v462_v41  ;;  %v465_v57 = vshrl.u32 %v15539_v36, %v462_v41  ;;  %v468_v52 = vshrl.u32 %v15540_v49, %v462_v41  ;;  %v471_v58 = vshrl.u32 %v15541_v50, %v462_v41 }
  0x33   : > { %v474_v61 = vshrl.u32 %v15542_v44, %v462_v41  ;;  %v15543_v63 = vmov 1326507024   ;;  %vm481_vm5 = vcmp.lt.s32.totalorder %v460_v21, 3  ;;  %vm482_vm6 = vcmp.lt.s32.totalorder %v460_v21, 4 }
  0x34   : > { %v477_v0 = vshrl.u32 %v15543_v63, %v462_v41  ;;  %v466_v8 = vor.u32 %v465_v57, %v464_v47  ;;  %v469_v15 = vor.u32 %v468_v52, %v467_v48  ;;  %v472_v1 = vor.u32 %v471_v58, %v470_v19 }
  0x35   : > { %v15811_v33 = vand.u32 4294901760, %v15793_v23  ;;  %v475_v3 = vor.u32 %v474_v61, %v473_v51  ;;  %v15814_v22 = vand.u32 4294901760, %v15799_v34  ;;  %v15817_v42 = vand.u32 4294901760, %v15796_v32 }
  0x36   : > { %v478_v18 = vor.u32 %v477_v0, %v476_v53  ;;  %v483_v36 = vsel %vm479_vm3, %v463_v39, %v466_v8  ;;  %v484_v49 = vsel %vm482_vm6, %v472_v1, 2102212464  ;;  %v487_v41 = vsel %vm479_vm3, %v466_v8, %v469_v15 }
  0x37   : > { %19914 = vst [vmem:[#allocation20_spill] sm:$0xff] %v15817_v42  ;;  %v491_v47 = vsel %vm479_vm3, %v469_v15, %v472_v1  ;;  %v485_v48 = vsel %vm481_vm5, %v469_v15, %v484_v49  ;;  %v488_v19 = vsel %vm482_vm6, %v475_v3, 920167782  ;;  %v1142_v51 = vsub.f32 %v15793_v23, %v15811_v33  ;;  %v15857_v49 = vld [vmem:[%s15675_s11 + $0x28] sm:$0x7f] }
  0x38   : > { %v492_v50 = vsel %vm482_vm6, %v478_v18, 1326507024  ;;  %v486_v44 = vsel %vm480_vm4, %v483_v36, %v485_v48  ;;  %v489_v53 = vsel %vm481_vm5, %v472_v1, %v488_v19  ;;  %v1153_v39 = vsub.f32 %v15799_v34, %v15814_v22 }
  0x39   : > { %v493_v57 = vsel %vm481_vm5, %v475_v3, %v492_v50  ;;  %v490_v52 = vsel %vm480_vm4, %v487_v41, %v489_v53  ;;  %v502_v61 = vmul.u32 %v15763_v59, %v486_v44  ;;  %v15833_v18 = vand.u32 4294901760, %v1142_v51 }
  0x3a   : > { %v494_v58 = vsel %vm480_vm4, %v491_v47, %v493_v57  ;;  %v15840_v8 = vmul.u32.u64.low %v15763_v59, %v490_v52  ;;  %v15841_v1 = vmul.u32.u64.high %v15763_v59, %v490_v52, %v15840_v8  ;;  %v15846_v3 = vand.u32 4294901760, %v1153_v39 }
  0x3b   : > { %v15836_v63 = vmul.u32.u64.low %v15763_v59, %v494_v58  ;;  %v15837_v0 = vmul.u32.u64.high %v15763_v59, %v494_v58, %v15836_v63  ;;  %1144 = vmatmul.mubr.f32.vlgmr.msra.gmra.mrb[0].mxu0 %v15833_v18  ;;  %1658 = vmatmul.mubr.f32.vlgmr.msra.gmra.mrb[0].mxu1 %v15833_v18  ;;  %v1164_v21 = vsub.f32 %v15796_v32, %v15817_v42  ;;  %v15851_v15 = vand.u32 4294901760, %v15802_v35 }
  0x3c   : > { %v15854_v36 = vand.u32 4294901760, %v15805_v38  ;;  %v19917_v59 = vmov 0.0   ;;  %v15862_v41 = vand.u32 4294901760, %v15808_v40  ;;  %v677_v47 = vrot.slane %v15857_v49, %v15661_v4 }
  0x3d   : > { %19915 = vst [vmem:[#allocation21_spill] sm:$0xff] %v15851_v15  ;;  %1149 = vmatprep.mubr.f32.mxu0 %v19917_v59  ;;  %1663 = vmatprep.mubr.f32.mxu1 %v19917_v59  ;;  %v717_v48 = vrot.slane %v15857_v49, %v15664_v5  ;;  %v757_v19 = vrot.slane %v15857_v49, %v15667_v6  ;;  %v15870_v50 = vand.u32 4294901760, %v1164_v21  ;;  %v505_v57 = vadd.s32 1, %v15841_v1 }
  0x3e   : > { %19916 = vst [vmem:[#allocation22_spill] sm:$0xff] %v15854_v36  ;;  %19918 = vst [vmem:[#allocation23_spill] sm:$0xff] %v15862_v41  ;;  %v1678_v51 = vsub.f32 %v15802_v35, %v15851_v15  ;;  %v1170_v44 = vsub.f32 %v15805_v38, %v15854_v36  ;;  %v797_v53 = vrot.slane %v15857_v49, %v15670_v7  ;;  %vm449_vm10 = vcmp.lt.s32.totalorder %v15701_v24, 0 }
  0x3f   : > { %19919 = vst [vmem:[#allocation24_spill] sm:$0xff] %v15870_v50  ;;  %vm504_vm7 = vc.u32 %v15837_v0, %v15840_v8  ;;  %v1684_v39 = vsub.f32 %v15808_v40, %v15862_v41  ;;  %1155 = vmatmul.mubr.f32.gmra.mrb[2].mxu0 %v15846_v3  ;;  %1669 = vmatmul.mubr.f32.gmra.mrb[2].mxu1 %v15846_v3  ;;  %vm539_vm3 = vweird.f32 %v15701_v24 }
  0x40   : > { %v15885_v52 = vand.u32 4294901760, %v1678_v51  ;;  %v15887_v58 = vand.u32 4294901760, %v1170_v44  ;;  %v15890_v63 = vsub.f32 %v15682_v10, %v677_v47  ;;  %v15893_v21 = vsub.f32 %v15684_v11, %v717_v48  ;;  %1166 = vmatprep.subr.mxu0 %v15870_v50  ;;  %1235 = vmatprep.mubr.f32.mxu0 %v19917_v59  ;;  %v15907_v47 = vld [vmem:[%s15675_s11 + $0x38] sm:$0x7f] }
  0x41   : > { %v506_v16 = vsel %vm504_vm7, %v505_v57, %v15841_v1  ;;  %v15898_v9 = vand.u32 4294901760, %v1684_v39  ;;  %v15901_v62 = vsub.f32 %v15686_v12, %v757_v19  ;;  %v15904_v51 = vsub.f32 %v15692_v17, %v797_v53  ;;  %1749 = vmatprep.mubr.f32.mxu1 %v19917_v59  ;;  %v15930_v39 = vld [vmem:[%s15675_s11 + $0x20] sm:$0x7f] }
  0x42   : > { %19920 = vst [vmem:[#allocation25_spill] sm:$0xff] %v15885_v52  ;;  %19921 = vst [vmem:[#allocation26_spill] sm:$0xff] %v15887_v58  ;;  %v507_v44 = vadd.s32 %v506_v16, %v502_v61  ;;  %1680 = vmatprep.subr.mxu1 %v15885_v52  ;;  %1172 = vmatpush1.msra.mxu0 %v15887_v58  ;;  %v685_v1 = vrot.slane %v15907_v47, %v15661_v4 }
  0x43   : > { %19922 = vst [vmem:[#allocation27_spill] sm:$0xff] %v15898_v9  ;;  %v725_v48 = vrot.slane %v15907_v47, %v15664_v5  ;;  %1686 = vmatpush1.msra.mxu1 %v15898_v9  ;;  %v765_v19 = vrot.slane %v15907_v47, %v15667_v6  ;;  %v805_v16 = vrot.slane %v15907_v47, %v15670_v7 }
  0x44   : > { %v508_v61 = vadd.s32 536870912, %v507_v44  ;;  %1237 = vmatmul.mubr.f32.vlgmr.msra.gmra.mrb[0].mxu0 %v15781_v14  ;;  %1751 = vmatmul.mubr.f32.vlgmr.msra.gmra.mrb[0].mxu1 %v15781_v14  ;;  %v15924_v53 = vsub.f32 %v15682_v10, %v685_v1  ;;  %v673_v52 = vrot.slane %v15930_v39, %v15661_v4  ;;  %v753_v50 = vrot.slane %v15930_v39, %v15667_v6 }
  0x45   : > { %v15927_v57 = vsub.f32 %v15684_v11, %v725_v48  ;;  %1242 = vmatprep.mubr.f32.mxu0 %v19917_v59  ;;  %1756 = vmatprep.mubr.f32.mxu1 %v19917_v59  ;;  %v15935_v9 = vsub.f32 %v15686_v12, %v765_v19  ;;  %v15938_v58 = vsub.f32 %v15692_v17, %v805_v16  ;;  %v391_v16 = vld [vmem:[%s15675_s11 + $0x30] sm:$0x7f]  ;;  %s14248_s11 = sshll.u32 %s369_s30, 4  ;;  %s19653_s11 = int_to_ptr.vmem [resolvable:$true] %s14248_s11 }
  0x46   : > { %v15942_v1 = vshrl.u32 %v508_v61, 30  ;;  %1252 = vmatprep.subr.mxu0 %v15796_v32  ;;  %1766 = vmatprep.subr.mxu1 %v15802_v35  ;;  %v713_v48 = vrot.slane %v15930_v39, %v15664_v5  ;;  %v793_v19 = vrot.slane %v15930_v39, %v15670_v7  ;;  %v15956_v61 = vsub.f32 %v15682_v10, %v673_v52  ;;  %s15473_s19 = scalar_lea.vmem %s19653_s11, 128  ;;  %p15480_p0 = scmp.lt.s32.totalorder %s19653_s11, %s15478_s22 }
  0x47   : > { %19923 = vst [vmem:[#allocation28_spill] sm:$0xff] %v15935_v9  ;;  %19924 = vst [vmem:[#allocation29_spill] sm:$0xff] %v15938_v58  ;;  %1255 = vmatpush1.msra.mxu0 %v15805_v38  ;;  %1769 = vmatpush1.msra.mxu1 %v15808_v40  ;;  %v681_v32 = vrot.slane %v391_v16, %v15661_v4  ;;  %v721_v35 = vrot.slane %v391_v16, %v15664_v5  ;;  %p15474_p11 = scmp.ne.s32.totalorder %s19653_s11, %s15473_s19  ;;  %p15481_p1 = scmp.lt.s32.totalorder %s15479_s26, %s15473_s19 }
  0x48   : > { %v510_v58 = vshll.u32 %v15942_v1, 30  ;;  %1244 = vmatmul.mubr.f32.gmra.mrb[2].mxu0 %v15789_v20  ;;  %1758 = vmatmul.mubr.f32.gmra.mrb[2].mxu1 %v15789_v20  ;;  %v15964_v9 = vsub.f32 %v15684_v11, %v713_v48  ;;  %v15967_v38 = vsub.f32 %v15686_v12, %v753_v50  ;;  %v15972_v52 = vsub.f32 %v15692_v17, %v793_v19 }
  0x49   : > { %1318 = vmatprep.mubr.f32.mxu0 %v19917_v59  ;;  %1832 = vmatprep.mubr.f32.mxu1 %v19917_v59  ;;  %v15975_v5 = vsub.f32 %v15682_v10, %v681_v32  ;;  %v15978_v4 = vsub.f32 %v15684_v11, %v721_v35  ;;  %v761_v50 = vrot.slane %v391_v16, %v15667_v6  ;;  %p15475_p12 = pnand %p15474_p11, %p15643_p5  ;;  %p15482_p2 = por %p15481_p1, %p15480_p0 }
  0x4a   : > { %19925 = vst [vmem:[#allocation30_spill] sm:$0xff] %v15967_v38  ;;  %v511_v40 = vsub.s32 %v507_v44, %v510_v58  ;;  %1336 = vmatprep.subr.mxu0 %v15715_v29  ;;  %1850 = vmatprep.subr.mxu1 %v15739_v43  ;;  %v801_v48 = vrot.slane %v391_v16, %v15670_v7 }
  0x4b   : > { %v15987_v10 = vsub.f32 %v15686_v12, %v761_v50  ;;  %v1064_v12 = vsel %vm1047_vm0, %v15857_v49, 0  ;;  %v503_v19 = vadd.s32 %v15840_v8, %v15837_v0  ;;  %v1061_v0 = vsel %vm1047_vm0, %v15930_v39, 0  ;;  %p15476_p13 = pneg %p15475_p12 }
  0x4c   : > { %v513_v38 = vsub.s32 0, %v511_v40  ;;  %1321 = vmatmul.mubr.f32.vlgmr.msra.gmra.mrb[0].mxu0 %v15793_v23  ;;  %1835 = vmatmul.mubr.f32.vlgmr.msra.gmra.mrb[0].mxu1 %v15793_v23  ;;  %v15992_v11 = vsub.f32 %v15692_v17, %v801_v48  ;;  %v1070_v17 = vsel %vm1047_vm0, %v15907_v47, 0  ;;  %v16006_v58 = vand.u32 4294901760, %v1064_v12 }
  0x4d   : > { %1326 = vmatprep.mubr.f32.mxu0 %v19917_v59  ;;  %1840 = vmatprep.mubr.f32.mxu1 %v19917_v59  ;;  %v16008_v44 = vand.u32 4294901760, %v1070_v17  ;;  %v1067_v8 = vsel %vm1047_vm0, %v391_v16, 0  ;;  %v16033_v7 = vand.u32 4294901760, %v1061_v0  ;;  %p15483_p3 = pnand %p15482_p2, %p15476_p13 }
  0x4e   : > { %v14328_v32 = vmin.u32 %v513_v38, %v511_v40  ;;  %1338 = vmatpush1.msra.mxu0 %v15760_v56  ;;  %1852 = vmatpush1.msra.mxu1 %v15779_v13  ;;  %v16035_v16 = vand.u32 4294901760, %v1067_v8 }
  0x4f   : > { %1423 = vmatprep.subr.mxu0 %v15817_v42  ;;  %1937 = vmatprep.subr.mxu1 %v15851_v15 }
  0x50   : > { %v515_v35 = vclz %v14328_v32  ;;  %1329 = vmatmul.mubr.f32.gmra.mrb[2].mxu0 %v15799_v34  ;;  %1843 = vmatmul.mubr.f32.gmra.mrb[2].mxu1 %v15799_v34  ;;  %v16024_v32 = vsub.f32 %v1064_v12, %v16006_v58 }
  0x51   : > { %1401 = vmatprep.mubr.f32.mxu0 %v19917_v59  ;;  %1915 = vmatprep.mubr.f32.mxu1 %v19917_v59 }
  0x52   : > { %v14329_v38 = vadd.s32 4294967294, %v515_v35  ;;  %19926 = vst [vmem:[#allocation31_spill] sm:$0xff] %v16024_v32  ;;  %v16027_v35 = vsub.f32 %v1070_v17, %v16008_v44  ;;  %v16038_v12 = vand.u32 4294901760, %v16024_v32 }
  0x54   : > { %vm14330_vm8 = vcmp.lt.s32.totalorder %v14329_v38, 0  ;;  %1405 = vmatmul.mubr.f32.vlgmr.msra.gmra.mrb[0].mxu0 %v15811_v33  ;;  %1919 = vmatmul.mubr.f32.vlgmr.msra.gmra.mrb[0].mxu1 %v15811_v33  ;;  %19927 = vst [vmem:[#allocation32_spill] sm:$0xff] %v16027_v35  ;;  %v16041_v17 = vand.u32 4294901760, %v16027_v35 }
  0x55   : > { %v518_v49 = vsel %vm14330_vm8, 0, %v14329_v38  ;;  %1410 = vmatprep.mubr.f32.mxu0 %v19917_v59  ;;  %1924 = vmatprep.mubr.f32.mxu1 %v19917_v59 }
  0x56   : > { %v519_v47 = vsub.s32 32, %v518_v49  ;;  %v520_v50 = vshll.u32 %v511_v40, %v518_v49  ;;  %v523_v48 = vsub.s32 4294967266, %v518_v49  ;;  %1427 = vmatpush1.msra.mxu0 %v15854_v36  ;;  %1941 = vmatpush1.msra.mxu1 %v15862_v41 }
  0x57   : > { %1506 = vmatprep.subr.mxu0 %v15715_v29  ;;  %2020 = vmatprep.subr.mxu1 %v15739_v43 }
  0x58   : > { %v521_v40 = vshrl.u32 %v503_v19, %v519_v47  ;;  %v524_v38 = vadd.s32 127, %v523_v48  ;;  %1414 = vmatmul.mubr.f32.gmra.mrb[2].mxu0 %v15814_v22  ;;  %1928 = vmatmul.mubr.f32.gmra.mrb[2].mxu1 %v15814_v22  ;;  %v533_v48 = vsub.s32 4, %v15942_v1 }
  0x59   : > { %1490 = vmatprep.mubr.f32.mxu0 %v19917_v59  ;;  %2004 = vmatprep.mubr.f32.mxu1 %v19917_v59 }
  0x5a   : > { %v522_v49 = vor.u32 %v521_v40, %v520_v50  ;;  %v525_v39 = vshll.u32 %v524_v38, 23  ;;  %v16051_v40 = vsub.f32 %v1061_v0, %v16033_v7  ;;  %v16054_v38 = vsub.f32 %v1067_v8, %v16035_v16 }
  0x5b   : > { %v19930_v0 = vand.u32 2147483647, %v15701_v24  ;;  %v534_v6 = vsel %vm449_vm10, %v533_v48, %v15942_v1 }
  0x5c   : > { %v526_v19 = vor.u32 4788187, %v525_v39  ;;  %v529_v47 = vcvt.s32.f32 %v522_v49  ;;  %1492 = vmatmul.mubr.f32.vlgmr.msra.gmra.mrb[0].mxu0 %v15781_v14  ;;  %2006 = vmatmul.mubr.f32.vlgmr.msra.gmra.mrb[0].mxu1 %v15781_v14  ;;  %19928 = vst [vmem:[#allocation33_spill] sm:$0xff] %v16051_v40  ;;  %19929 = vst [vmem:[#allocation34_spill] sm:$0xff] %v16054_v38  ;;  %v2192_v49 = vsub.f32 %v16024_v32, %v16038_v12  ;;  %v16071_v41 = vand.u32 4294901760, %v16051_v40 }
  0x5d   : > { %1497 = vmatprep.mubr.f32.mxu0 %v19917_v59  ;;  %2011 = vmatprep.mubr.f32.mxu1 %v19917_v59  ;;  %v2706_v39 = vsub.f32 %v16027_v35, %v16041_v17  ;;  %vm448_vm9 = vcmp.le.f32.partialorder %v19930_v0, 0.7853982 }
  0x5e   : > { %v527_v50 = vand.u32 2147483647, %v526_v19  ;;  %1508 = vmatpush1.msra.mxu0 %v15760_v56  ;;  %2022 = vmatpush1.msra.mxu1 %v15779_v13  ;;  %v536_v42 = vsel %vm448_vm9, 0, %v534_v6  ;;  %v2198_v1 = vsub.f32 %v16051_v40, %v16071_v41 }
  0x5f   : > { %2101 = vmatprep.subr.mxu0 %v16006_v58  ;;  %2615 = vmatprep.subr.mxu1 %v16008_v44  ;;  %v16078_v36 = vand.u32 4294901760, %v2706_v39  ;;  %v643_v6 = vadd.s32 3, %v536_v42 }
  0x60   : > { %v530_v19 = vmul.f32 %v529_v47, %v527_v50  ;;  %1499 = vmatmul.mubr.f32.gmra.mrb[2].mxu0 %v15789_v20  ;;  %2013 = vmatmul.mubr.f32.gmra.mrb[2].mxu1 %v15789_v20  ;;  %v16074_v47 = vand.u32 4294901760, %v16054_v38  ;;  %v16076_v50 = vand.u32 4294901760, %v2192_v49  ;;  %v16097_v49 = vand.u32 4294901760, %v2198_v1 }
  0x61   : > { %1571 = vmatprep.mubr.f32.mxu0 %v19917_v59  ;;  %2085 = vmatprep.mubr.f32.mxu1 %v19917_v59  ;;  %19933 = vst [vmem:[#allocation37_spill] sm:$0xff] %v16078_v36  ;;  %v16114_v1 = vmul.u32 128, %v15656_v2 }
  0x62   : > { %v531_v8 = vxor.u32 2147483648, %v530_v19  ;;  %19931 = vst [vmem:[#allocation35_spill] sm:$0xff] %v16074_v47  ;;  %19932 = vst [vmem:[#allocation36_spill] sm:$0xff] %v16076_v50  ;;  %v2712_v48 = vsub.f32 %v16054_v38, %v16074_v47 }
  0x63   : > { %19934 = vst [vmem:[#allocation38_spill] sm:$0xff] %v16097_v49 }
  0x64   : > { %v532_v0 = vsel %vm449_vm10, %v531_v8, %v530_v19  ;;  %1573 = vmatmul.mubr.f32.vlgmr.msra.gmra.mrb[0].mxu0 %v15781_v14  ;;  %2087 = vmatmul.mubr.f32.vlgmr.msra.gmra.mrb[0].mxu1 %v15781_v14  ;;  %v16099_v39 = vand.u32 4294901760, %v2712_v48  ;;  %v540_v19 = vand.u32 3, %v536_v42  ;;  %v644_v8 = vand.u32 3, %v643_v6 }
  0x65   : > { %v535_v15 = vsel %vm448_vm9, %v15701_v24, %v532_v0  ;;  %1578 = vmatprep.mubr.f32.mxu0 %v19917_v59  ;;  %2092 = vmatprep.mubr.f32.mxu1 %v19917_v59  ;;  %v19936_v24 = vlaneseq }
  0x66   : > { %15325 = vcosq.f32 %v535_v15  ;;  %2103 = vmatpush1.msra.mxu0 %v16033_v7  ;;  %2617 = vmatpush1.msra.mxu1 %v16035_v16  ;;  %19935 = vst [vmem:[#allocation39_spill] sm:$0xff] %v16099_v39  ;;  %vm545_vm11 = vcmp.eq.s32.totalorder %v540_v19, 2  ;;  %vm649_vm12 = vcmp.eq.s32.totalorder %v644_v8, 2  ;;  %vm542_vm13 = vcmp.eq.s32.totalorder %v540_v19, 0 }
  0x67   : > { %15327 = vsinq.f32 %v535_v15  ;;  %2194 = vmatprep.subr.mxu0 %v16076_v50  ;;  %2708 = vmatprep.subr.mxu1 %v16078_v36  ;;  %vm646_vm14 = vcmp.eq.s32.totalorder %v644_v8, 0  ;;  %vm541_vm15 = vcmp.lt.s32.totalorder %v540_v19, 2  ;;  %vm645_vm2 = vcmp.lt.s32.totalorder %v644_v8, 2 }
  0x68   : > { %1580 = vmatmul.mubr.f32.gmra.mrb[2].mxu0 %v15789_v20  ;;  %2094 = vmatmul.mubr.f32.gmra.mrb[2].mxu1 %v15789_v20 }
  0x69   : > { %2166 = vmatprep.mubr.f32.mxu0 %v19917_v59  ;;  %2680 = vmatprep.mubr.f32.mxu1 %v19917_v59 }
  0x6c   : > { %2172 = vmatmul.mubr.f32.vlgmr.msra.gmra.mrb[4].mxu0 %v15833_v18  ;;  %2686 = vmatmul.mubr.f32.vlgmr.msra.gmra.mrb[4].mxu1 %v15833_v18 }
  0x6d   : > { %2177 = vmatprep.mubr.f32.mxu0 %v19917_v59  ;;  %2691 = vmatprep.mubr.f32.mxu1 %v19917_v59 }
  0x6e   : > { %2200 = vmatpush1.msra.mxu0 %v16097_v49  ;;  %2714 = vmatpush1.msra.mxu1 %v16099_v39 }
  0x6f   : > { %2280 = vmatprep.subr.mxu0 %v16024_v32  ;;  %2794 = vmatprep.subr.mxu1 %v16027_v35 }
  0x70   : > { %v15326_v15 = vpop.eup %15325  ;;  %2183 = vmatmul.mubr.f32.gmra.mrb[6].mxu0 %v15846_v3  ;;  %2697 = vmatmul.mubr.f32.gmra.mrb[6].mxu1 %v15846_v3 }
  0x71   : > { %v15328_v42 = vpop.eup %15327  ;;  %v546_v18 = vxor.u32 2147483648, %v15326_v15  ;;  %2263 = vmatprep.mubr.f32.mxu0 %v19917_v59  ;;  %2777 = vmatprep.mubr.f32.mxu1 %v19917_v59 }
  0x72   : > { %v543_v0 = vxor.u32 2147483648, %v15328_v42 }
  0x73   : > { %v547_v48 = vsel %vm545_vm11, %v546_v18, %v15328_v42  ;;  %v651_v6 = vsel %vm649_vm12, %v546_v18, %v15328_v42  ;;  %v16131_v42 = vadd.s32 128, %v16114_v1 }
  0x74   : > { %v544_v35 = vsel %vm542_vm13, %v15326_v15, %v543_v0  ;;  %v648_v3 = vsel %vm646_vm14, %v15326_v15, %v543_v0  ;;  %2265 = vmatmul.mubr.f32.vlgmr.msra.gmra.mrb[4].mxu0 %v15781_v14  ;;  %2779 = vmatmul.mubr.f32.vlgmr.msra.gmra.mrb[4].mxu1 %v15781_v14  ;;  %v16128_v15 = vand.u32 127, %v19936_v24 }
  0x75   : > { %v548_v32 = vsel %vm541_vm15, %v544_v35, %v547_v48  ;;  %v652_v39 = vsel %vm645_vm2, %v648_v3, %v651_v6  ;;  %2270 = vmatprep.mubr.f32.mxu0 %v19917_v59  ;;  %2784 = vmatprep.mubr.f32.mxu1 %v19917_v59 }
  0x76   : > { %v16121_v19 = vsel %vm539_vm3, nan, %v548_v32  ;;  %v16123_v8 = vsel %vm539_vm3, nan, %v652_v39  ;;  %2283 = vmatpush1.msra.mxu0 %v16051_v40  ;;  %2797 = vmatpush1.msra.mxu1 %v16054_v38  ;;  %vm405_vm4 = vcmp.ge.s32.totalorder %v16128_v15, %v16114_v1  ;;  %vm414_vm5 = vcmp.lt.s32.totalorder %v16128_v15, %v16131_v42 }
  0x77   : > { %v16135_v35 = vmul.f32 %v15704_v25, %v16121_v19  ;;  %v16139_v32 = vmul.f32 %v15707_v26, %v16123_v8  ;;  %v16143_v39 = vmul.f32 %v15704_v25, %v16123_v8  ;;  %v16147_v18 = vmul.f32 %v15707_v26, %v16121_v19  ;;  %2364 = vmatprep.subr.mxu0 %v16006_v58  ;;  %vm16410_vm6 = vmand %vm405_vm4, %vm414_vm5 }
  0x78   : > { %v16152_v0 = vmul.f32 %v15710_v27, %v16121_v19  ;;  %v16156_v48 = vmul.f32 %v15713_v28, %v16123_v8  ;;  %v16160_v6 = vmul.f32 %v15710_v27, %v16123_v8  ;;  %v16164_v25 = vmul.f32 %v15713_v28, %v16121_v19  ;;  %2272 = vmatmul.mubr.f32.gmra.mrb[6].mxu0 %v15789_v20 }
  0x79   : > { %v16169_v26 = vmul.f32 %v15718_v30, %v16121_v19  ;;  %v16173_v3 = vmul.f32 %v15721_v31, %v16123_v8  ;;  %v16177_v24 = vmul.f32 %v15718_v30, %v16123_v8  ;;  %v16181_v27 = vmul.f32 %v15721_v31, %v16121_v19  ;;  %2786 = vmatmul.mubr.f32.gmra.mrb[6].mxu1 %v15789_v20 }
  0x7a   : > { %19937 = vst [vmem:[#allocation40_spill] sm:$0xff] %v16152_v0  ;;  %19938 = vst [vmem:[#allocation41_spill] sm:$0xff] %v16156_v48  ;;  %v16186_v28 = vmul.f32 %v15732_v37, %v16121_v19  ;;  %v16190_v2 = vmul.f32 %v15743_v45, %v16123_v8  ;;  %v16194_v38 = vmul.f32 %v15732_v37, %v16123_v8  ;;  %2346 = vmatprep.mubr.f32.mxu0 %v19917_v59 }
  0x7b   : > { %19939 = vst [vmem:[#allocation42_spill] sm:$0xff] %v16160_v6  ;;  %19940 = vst [vmem:[#allocation43_spill] sm:$0xff] %v16164_v25  ;;  %v16198_v30 = vmul.f32 %v15743_v45, %v16121_v19  ;;  %v16203_v31 = vmul.f32 %v15746_v46, %v16121_v19  ;;  %v16207_v40 = vmul.f32 %v15755_v54, %v16123_v8  ;;  %2860 = vmatprep.mubr.f32.mxu1 %v19917_v59  ;;  %v19949_v6 = vld [vmem:[#allocation15_spill] sm:$0xff] }
  0x7c   : > { %19941 = vst [vmem:[#allocation44_spill] sm:$0xff] %v16186_v28  ;;  %19942 = vst [vmem:[#allocation45_spill] sm:$0xff] %v16190_v2  ;;  %v16211_v49 = vmul.f32 %v15746_v46, %v16123_v8  ;;  %v16215_v37 = vmul.f32 %v15755_v54, %v16121_v19  ;;  %v16220_v45 = vmul.f32 %v15758_v55, %v16121_v19  ;;  %2349 = vmatmul.mubr.f32.vlgmr.msra.gmra.mrb[4].mxu0 %v15793_v23  ;;  %v19945_v54 = vld [vmem:[#allocation12_spill] sm:$0xff]  ;;  %v19947_v2 = vld [vmem:[#allocation14_spill] sm:$0xff] }
  0x7d   : > { %19943 = vst [vmem:[#allocation46_spill] sm:$0xff] %v16194_v38  ;;  %19944 = vst [vmem:[#allocation47_spill] sm:$0xff] %v16198_v30  ;;  %v870_v36 = vmul.f32 %v15766_v60, %v16123_v8  ;;  %v16226_v50 = vmul.f32 %v15758_v55, %v16123_v8  ;;  %v16230_v46 = vmul.f32 %v15766_v60, %v16121_v19  ;;  %v19946_v38 = vld [vmem:[#allocation13_spill] sm:$0xff]  ;;  %2863 = vmatmul.mubr.f32.vlgmr.msra.gmra.mrb[4].mxu1 %v15793_v23 }
  0x7e   : > { %v816_v30 = vmul.f32 %v19945_v54, %v16121_v19  ;;  %v824_v28 = vmul.f32 %v19946_v38, %v16123_v8  ;;  %v840_v55 = vmul.f32 %v19945_v54, %v16123_v8  ;;  %v848_v60 = vmul.f32 %v19946_v38, %v16121_v19  ;;  %2354 = vmatprep.mubr.f32.mxu0 %v19917_v59 }
  0x7f   : > { %v16248_v25 = vmul.f32 %v19947_v2, %v16121_v19  ;;  %v16252_v0 = vmul.f32 %v19949_v6, %v16123_v8  ;;  %v16256_v48 = vmul.f32 %v19947_v2, %v16123_v8  ;;  %v16260_v54 = vmul.f32 %v19949_v6, %v16121_v19  ;;  %2868 = vmatprep.mubr.f32.mxu1 %v19917_v59 }
  0x80   : > { %v16265_v23 = vmul.f32 %v15890_v63, %v16121_v19  ;;  %v16269_v38 = vmul.f32 %v15893_v21, %v16123_v8  ;;  %v16277_v2 = vmul.f32 %v15893_v21, %v16121_v19  ;;  %v16282_v6 = vmul.f32 %v15901_v62, %v16121_v19  ;;  %2357 = vmatmul.mubr.f32.gmra.mrb[6].mxu0 %v15799_v34 }
  0x81   : > { %19948 = vst [vmem:[#allocation12_spill] sm:$0xff] %v16248_v25  ;;  %v16273_v25 = vmul.f32 %v15890_v63, %v16123_v8  ;;  %v16294_v63 = vmul.f32 %v15904_v51, %v16121_v19  ;;  %v16299_v21 = vmul.f32 %v15924_v53, %v16121_v19  ;;  %2871 = vmatmul.mubr.f32.gmra.mrb[6].mxu1 %v15799_v34 }
  0x82   : > { %19950 = vst [vmem:[#allocation13_spill] sm:$0xff] %v16265_v23  ;;  %19951 = vst [vmem:[#allocation14_spill] sm:$0xff] %v16269_v38  ;;  %v16286_v23 = vmul.f32 %v15904_v51, %v16123_v8  ;;  %v16290_v38 = vmul.f32 %v15901_v62, %v16123_v8  ;;  %v16311_v62 = vmul.f32 %v15927_v57, %v16121_v19  ;;  %v19958_v51 = vld [vmem:[#allocation28_spill] sm:$0xff]  ;;  %2878 = vmatprep.subr.mxu1 %v16008_v44 }
  0x83   : > { %19952 = vst [vmem:[#allocation15_spill] sm:$0xff] %v16282_v6  ;;  %19955 = vst [vmem:[#allocation50_spill] sm:$0xff] %v16294_v63  ;;  %v16303_v6 = vmul.f32 %v15927_v57, %v16123_v8  ;;  %v16316_v63 = vmul.f32 %v19958_v51, %v16121_v19  ;;  %v16333_v34 = vmul.f32 %v15956_v61, %v16121_v19  ;;  %2366 = vmatpush1.msra.mxu0 %v16033_v7 }
  0x84   : > { %19953 = vst [vmem:[#allocation48_spill] sm:$0xff] %v16286_v23  ;;  %19954 = vst [vmem:[#allocation49_spill] sm:$0xff] %v16290_v38  ;;  %v16307_v23 = vmul.f32 %v15924_v53, %v16123_v8  ;;  %v19960_v38 = vld [vmem:[#allocation29_spill] sm:$0xff]  ;;  %v16337_v57 = vmul.f32 %v15964_v9, %v16123_v8  ;;  %2429 = vmatprep.mubr.f32.mxu0 %v19917_v59  ;;  %2880 = vmatpush1.msra.mxu1 %v16035_v16 }
  0x85   : > { %19956 = vst [vmem:[#allocation51_spill] sm:$0xff] %v16299_v21  ;;  %19957 = vst [vmem:[#allocation52_spill] sm:$0xff] %v16303_v6  ;;  %v16320_v21 = vmul.f32 %v19960_v38, %v16123_v8  ;;  %v16324_v6 = vmul.f32 %v19958_v51, %v16123_v8  ;;  %v16328_v53 = vmul.f32 %v19960_v38, %v16121_v19  ;;  %v19964_v38 = vld [vmem:[#allocation30_spill] sm:$0xff]  ;;  %2943 = vmatprep.mubr.f32.mxu1 %v19917_v59 }
  0x86   : > { %19959 = vst [vmem:[#allocation28_spill] sm:$0xff] %v16316_v63  ;;  %v16341_v63 = vmul.f32 %v15956_v61, %v16123_v8  ;;  %v16345_v51 = vmul.f32 %v15964_v9, %v16121_v19  ;;  %v16362_v61 = vmul.f32 %v15972_v52, %v16121_v19  ;;  %v16367_v9 = vmul.f32 %v15975_v5, %v16121_v19 }
  0x87   : > { %19961 = vst [vmem:[#allocation29_spill] sm:$0xff] %v16320_v21  ;;  %19962 = vst [vmem:[#allocation53_spill] sm:$0xff] %v16324_v6  ;;  %v16354_v6 = vmul.f32 %v15972_v52, %v16123_v8  ;;  %v16358_v21 = vmul.f32 %v19964_v38, %v16123_v8  ;;  %v6054_v52 = vld [vmem:[%s19697_s4] sm:$0xff]  ;;  %2433 = vmatmul.mubr.f32.vlgmr.msra.gmra.mrb[4].mxu0 %v15811_v33  ;;  %2947 = vmatmul.mubr.f32.vlgmr.msra.gmra.mrb[4].mxu1 %v15811_v33 }
  0x88   : > { %19963 = vst [vmem:[#allocation54_spill] sm:$0xff] %v16328_v53  ;;  %v16350_v53 = vmul.f32 %v19964_v38, %v16121_v19  ;;  %19968 = vst [vmem:[#allocation57_spill] sm:$0xff] %v16362_v61  ;;  %v16379_v38 = vmul.f32 %v15978_v4, %v16121_v19  ;;  %v16387_v61 = vmul.f32 %v15987_v10, %v16121_v19  ;;  %2438 = vmatprep.mubr.f32.mxu0 %v19917_v59 }
  0x89   : > { %19966 = vst [vmem:[#allocation55_spill] sm:$0xff] %v16354_v6  ;;  %19967 = vst [vmem:[#allocation56_spill] sm:$0xff] %v16358_v21  ;;  %v16375_v6 = vmul.f32 %v15975_v5, %v16123_v8  ;;  %v16391_v21 = vmul.f32 %v15992_v11, %v16123_v8  ;;  %v16395_v5 = vmul.f32 %v15987_v10, %v16123_v8  ;;  %2952 = vmatprep.mubr.f32.mxu1 %v19917_v59 }
  0x8a   : > { %19965 = vst [vmem:[#allocation30_spill] sm:$0xff] %v16350_v53  ;;  %v16371_v53 = vmul.f32 %v15978_v4, %v16123_v8  ;;  %19969 = vst [vmem:[#allocation58_spill] sm:$0xff] %v16387_v61  ;;  %v16399_v4 = vmul.f32 %v15992_v11, %v16121_v19  ;;  %v19973_v61 = vmov 0  ;;  %v16416_v10 = vsub.f32 %v16203_v31, %v16207_v40  ;;  %2451 = vmatprep.subr.mxu0 %v16038_v12 }
  0x8b   : > { %19970 = vst [vmem:[#allocation59_spill] sm:$0xff] %v16391_v21  ;;  %19971 = vst [vmem:[#allocation60_spill] sm:$0xff] %v16395_v5  ;;  %v19974_v61 = vsel %vm16410_vm6, 4294967295, %v19973_v61  ;;  %v16420_v11 = vadd.f32 %v16215_v37, %v16211_v49  ;;  %v16423_v33 = vsub.f32 %v16220_v45, %v870_v36  ;;  %v6059_v19 = vsel %vm1040_vm1, %v6054_v52, 0  ;;  %2965 = vmatprep.subr.mxu1 %v16041_v17  ;;  %v6055_v36 = vld [vmem:[%s19697_s4 + $0x8] sm:$0xff] }
  0x8c   : > { %19972 = vst [vmem:[#allocation61_spill] sm:$0xff] %v16399_v4  ;;  %19975 = vst [vmem:[#allocation62_spill] sm:$0xff] %v19974_v61  ;;  %v16430_v8 = vadd.f32 %v16230_v46, %v16226_v50  ;;  %v16432_v4 = vsub.f32 %v816_v30, %v824_v28  ;;  %v16434_v40 = vadd.f32 %v848_v60, %v840_v55  ;;  %2455 = vmatpush1.msra.mxu0 %v16071_v41 }
  0x8d   : > { %19976 = vst [vmem:[#allocation63_spill] sm:$0xff] %v16423_v33  ;;  %v910_v49 = vmul.f32 %v16416_v10, %v16416_v10  ;;  %v918_v31 = vmul.f32 %v16420_v11, %v16420_v11  ;;  %2969 = vmatpush1.msra.mxu1 %v16074_v47  ;;  %v438_v50 = vsel %vm16410_vm6, 1.0, %v19917_v59  ;;  %2442 = vmatmul.mubr.f32.gmra.mrb[6].mxu0 %v15814_v22  ;;  %v16456_v37 = vand.u32 4294901760, %v6059_v19  ;;  %v19979_v33 = vld [vmem:[#allocation25_spill] sm:$0xff] }
  0x8e   : > { %19977 = vst [vmem:[#allocation64_spill] sm:$0xff] %v16430_v8  ;;  %v912_v28 = vmul.f32 %v16432_v4, %v16432_v4  ;;  %v920_v30 = vmul.f32 %v16434_v40, %v16434_v40  ;;  %2956 = vmatmul.mubr.f32.gmra.mrb[6].mxu1 %v15814_v22  ;;  %2518 = vmatprep.mubr.f32.mxu0 %v19917_v59  ;;  %v6062_v46 = vsel %vm1040_vm1, %v6055_v36, 0  ;;  %v6056_v22 = vld [vmem:[%s19697_s4 + $0x10] sm:$0xff] }
  0x8f   : > { %v16458_v45 = vadd.f32 %v918_v31, %v910_v49  ;;  %3032 = vmatprep.mubr.f32.mxu1 %v19917_v59  ;;  %2534 = vmatprep.subr.mxu0 %v16006_v58  ;;  %v16473_v52 = vsub.f32 %v16135_v35, %v16139_v32  ;;  %v16477_v49 = vadd.f32 %v16147_v18, %v16143_v39  ;;  %v16484_v31 = vand.u32 4294901760, %v6062_v46 }
  0x90   : > { %v16463_v55 = vadd.f32 %v920_v30, %v912_v28  ;;  %3048 = vmatprep.subr.mxu1 %v16008_v44  ;;  %v16482_v36 = vsub.f32 %v6059_v19, %v16456_v37  ;;  %v6065_v35 = vsel %vm1040_vm1, %v6056_v22, 0  ;;  %v16500_v18 = vsub.f32 %v16169_v26, %v16173_v3 }
  0x91   : > { %v934_v60 = vadd.f32 %v16458_v45, %v438_v50  ;;  %2520 = vmatmul.mubr.f32.vlgmr.msra.gmra.mrb[4].mxu0 %v15781_v14  ;;  %v6057_v50 = vld [vmem:[%s19697_s4 + $0x18] sm:$0xff]  ;;  %v911_v32 = vmul.f32 %v16473_v52, %v16473_v52  ;;  %v919_v39 = vmul.f32 %v16477_v49, %v16477_v49  ;;  %v16509_v30 = vadd.f32 %v16181_v27, %v16177_v24 }
  0x92   : > { %3034 = vmatmul.mubr.f32.vlgmr.msra.gmra.mrb[4].mxu1 %v15781_v14  ;;  %2525 = vmatprep.mubr.f32.mxu0 %v19917_v59  ;;  %v6068_v19 = vsel %vm1040_vm1, %v6057_v50, 0  ;;  %v16514_v22 = vand.u32 4294901760, %v16482_v36  ;;  %v16517_v26 = vsub.f32 %v6062_v46, %v16484_v31  ;;  %v16519_v3 = vand.u32 4294901760, %v6065_v35 }
  0x93   : > { %15329 = vrsqrt.f32 %v934_v60  ;;  %3039 = vmatprep.mubr.f32.mxu1 %v19917_v59  ;;  %2536 = vmatpush1.msra.mxu0 %v16033_v7  ;;  %v16505_v28 = vadd.f32 %v919_v39, %v911_v32  ;;  %v913_v60 = vmul.f32 %v16500_v18, %v16500_v18  ;;  %v921_v24 = vmul.f32 %v16509_v30, %v16509_v30 }
  0x94   : > { %3050 = vmatpush1.msra.mxu1 %v16035_v16  ;;  %6071 = vmatprep.subr.mxu0 %v15715_v29  ;;  %v16527_v27 = vand.u32 4294901760, %v6068_v19  ;;  %v6140_v46 = vsub.f32 %v16482_v36, %v16514_v22  ;;  %v16534_v50 = vand.u32 4294901760, %v16517_v26  ;;  %v16537_v32 = vsub.f32 %v6065_v35, %v16519_v3 }
  0x95   : > { %6683 = vmatprep.subr.mxu1 %v15739_v43  ;;  %2527 = vmatmul.mubr.f32.gmra.mrb[6].mxu0 %v15789_v20  ;;  %v16539_v39 = vadd.f32 %v921_v24, %v913_v60 }
  0x96   : > { %3041 = vmatmul.mubr.f32.gmra.mrb[6].mxu1 %v15789_v20  ;;  %2599 = vmatprep.mubr.f32.mxu0 %v19917_v59  ;;  %v16559_v24 = vand.u32 4294901760, %v6140_v46  ;;  %v6151_v61 = vsub.f32 %v16517_v26, %v16534_v50  ;;  %v396_v46 = vadd.s32 256, %v16128_v15 }
  0x97   : > { %3113 = vmatprep.mubr.f32.mxu1 %v19917_v59 }
  0x98   : > { %vm407_vm1 = vcmp.ge.s32.totalorder %v396_v46, %v16114_v1  ;;  %vm416_vm7 = vcmp.lt.s32.totalorder %v396_v46, %v16131_v42  ;;  %v397_v46 = vadd.s32 384, %v16128_v15 }
  0x99   : > { %2601 = vmatmul.mubr.f32.vlgmr.msra.gmra.mrb[4].mxu0 %v15781_v14  ;;  %vm16598_vm8 = vmand %vm407_vm1, %vm416_vm7 }
  0x9a   : > { %3115 = vmatmul.mubr.f32.vlgmr.msra.gmra.mrb[4].mxu1 %v15781_v14  ;;  %2606 = vmatprep.mubr.f32.mxu0 %v19917_v59  ;;  %v19978_v14 = vld [vmem:[#allocation24_spill] sm:$0xff]  ;;  %vm408_vm12 = vcmp.ge.s32.totalorder %v397_v46, %v16114_v1  ;;  %vm417_vm13 = vcmp.lt.s32.totalorder %v397_v46, %v16131_v42  ;;  %v19995_v46 = vld [vmem:[#allocation19_spill] sm:$0xff] }
  0x9b   : > { %3120 = vmatprep.mubr.f32.mxu1 %v19917_v59  ;;  %6073 = vmatpush1.msra.mxu0 %v15760_v56  ;;  %vm16630_vm14 = vmand %vm408_vm12, %vm417_vm13 }
  0x9c   : > { %6685 = vmatpush1.msra.mxu1 %v15779_v13  ;;  %6186 = vmatprep.subr.mxu0 %v19978_v14  ;;  %v16564_v14 = vand.u32 4294901760, %v16537_v32 }
  0x9d   : > { %v16543_v8 = vpop.eup %15329  ;;  %6798 = vmatprep.subr.mxu1 %v19979_v33  ;;  %2608 = vmatmul.mubr.f32.gmra.mrb[6].mxu0 %v15789_v20  ;;  %v16567_v33 = vsub.f32 %v6068_v19, %v16527_v27  ;;  %v19982_v19 = vld [vmem:[#allocation26_spill] sm:$0xff] }
  0x9e   : > { %v16551_v35 = vmul.f32 %v16543_v8, %v16416_v10  ;;  %v16555_v60 = vmul.f32 %v16543_v8, %v16420_v11  ;;  %3122 = vmatmul.mubr.f32.gmra.mrb[6].mxu1 %v15789_v20  ;;  %6136 = vmatprep.mubr.f32.mxu0 %v19917_v59  ;;  %v16573_v20 = vand.u32 4294901760, %v6151_v61  ;;  %v6162_v10 = vsub.f32 %v16537_v32, %v16564_v14  ;;  %v19985_v61 = vld [vmem:[#allocation17_spill] sm:$0xff] }
  0x9f   : > { %6748 = vmatprep.mubr.f32.mxu1 %v19917_v59  ;;  %v16578_v11 = vand.u32 4294901760, %v16567_v33 }
  0xa0   : > { %19980 = vst [vmem:[#allocation24_spill] sm:$0xff] %v16551_v35  ;;  %19981 = vst [vmem:[#allocation25_spill] sm:$0xff] %v16555_v60  ;;  %v19983_v60 = vld [vmem:[#allocation27_spill] sm:$0xff]  ;;  %v19984_v35 = vld [vmem:[#allocation16_spill] sm:$0xff]  ;;  %v16589_v47 = vand.u32 4294901760, %v6162_v10 }
  0xa1   : > { %6142 = vmatmul.mubr.f32.vlgmr.msra.gmra.mrb[8].mxu0 %v16559_v24  ;;  %v6173_v5 = vsub.f32 %v16567_v33, %v16578_v11 }
  0xa2   : > { %6754 = vmatmul.mubr.f32.vlgmr.msra.gmra.mrb[8].mxu1 %v16559_v24  ;;  %6147 = vmatprep.mubr.f32.mxu0 %v19917_v59 }
  0xa3   : > { %6759 = vmatprep.mubr.f32.mxu1 %v19917_v59  ;;  %6192 = vmatpush1.msra.mxu0 %v19982_v19  ;;  %v16604_v10 = vand.u32 4294901760, %v6173_v5  ;;  %v440_v19 = vsel %vm16598_vm8, 1.0, %v19917_v59 }
  0xa4   : > { %6804 = vmatpush1.msra.mxu1 %v19983_v60  ;;  %6286 = vmatprep.subr.mxu0 %v19984_v35  ;;  %v395_v35 = vadd.s32 128, %v16128_v15  ;;  %v19986_v60 = vmov 0  ;;  %v936_v5 = vadd.f32 %v16463_v55, %v440_v19  ;;  %v19994_v19 = vld [vmem:[#allocation18_spill] sm:$0xff] }
  0xa5   : > { %6898 = vmatprep.subr.mxu1 %v19985_v61  ;;  %6153 = vmatmul.mubr.f32.gmra.mrb[10].mxu0 %v16573_v20  ;;  %v19987_v60 = vsel %vm16598_vm8, 4294967295, %v19986_v60  ;;  %v19989_v61 = vmov 0 }
  0xa6   : > { %6765 = vmatmul.mubr.f32.gmra.mrb[10].mxu1 %v16573_v20  ;;  %6158 = vmatprep.mubr.f32.mxu0 %v19917_v59  ;;  %19988 = vst [vmem:[#allocation26_spill] sm:$0xff] %v19987_v60  ;;  %vm406_vm9 = vcmp.ge.s32.totalorder %v395_v35, %v16114_v1  ;;  %vm415_vm10 = vcmp.lt.s32.totalorder %v395_v35, %v16131_v42  ;;  %15331 = vrsqrt.f32 %v936_v5 }
  0xa7   : > { %6770 = vmatprep.mubr.f32.mxu1 %v19917_v59  ;;  %vm16619_vm11 = vmand %vm406_vm9, %vm415_vm10 }
  0xa8   : > { %v19990_v61 = vsel %vm16619_vm11, 4294967295, %v19989_v61  ;;  %v439_v35 = vsel %vm16619_vm11, 1.0, %v19917_v59 }
  0xa9   : > { %6164 = vmatmul.mubr.f32.gmra.mrb[12].mxu0 %v16589_v47  ;;  %19991 = vst [vmem:[#allocation27_spill] sm:$0xff] %v19990_v61  ;;  %v935_v21 = vadd.f32 %v16505_v28, %v439_v35  ;;  %v441_v61 = vsel %vm16630_vm14, 1.0, %v19917_v59 }
  0xaa   : > { %6776 = vmatmul.mubr.f32.gmra.mrb[12].mxu1 %v16589_v47  ;;  %6169 = vmatprep.mubr.f32.mxu0 %v19917_v59  ;;  %v937_v5 = vadd.f32 %v16539_v39, %v441_v61 }
  0xab   : > { %6781 = vmatprep.mubr.f32.mxu1 %v19917_v59  ;;  %15333 = vrsqrt.f32 %v935_v21  ;;  %v16663_v21 = vadd.f32 %v16260_v54, %v16256_v48  ;;  %v20001_v48 = vld [vmem:[#allocation41_spill] sm:$0xff]  ;;  %v20002_v54 = vld [vmem:[#allocation40_spill] sm:$0xff] }
  0xac   : > { %15335 = vrsqrt.f32 %v937_v5 }
  0xad   : > { %6175 = vmatmul.mubr.f32.gmra.mrb[14].mxu0 %v16604_v10  ;;  %19998 = vst [vmem:[#allocation17_spill] sm:$0xff] %v16663_v21 }
  0xae   : > { %6787 = vmatmul.mubr.f32.gmra.mrb[14].mxu1 %v16604_v10  ;;  %6255 = vmatprep.mubr.f32.mxu0 %v19917_v59 }
  0xaf   : > { %6867 = vmatprep.mubr.f32.mxu1 %v19917_v59 }
  0xb0   : > { %v16653_v35 = vpop.eup %15331 }
  0xb1   : > { %6257 = vmatmul.mubr.f32.vlgmr.msra.gmra.mrb[8].mxu0 %v16456_v37  ;;  %v16667_v61 = vmul.f32 %v16653_v35, %v16432_v4  ;;  %v16671_v5 = vmul.f32 %v16653_v35, %v16434_v40  ;;  %v16683_v4 = vsub.f32 %v20002_v54, %v20001_v48  ;;  %v20004_v40 = vld [vmem:[#allocation42_spill] sm:$0xff]  ;;  %v20010_v54 = vld [vmem:[#allocation45_spill] sm:$0xff] }
  0xb2   : > { %6869 = vmatmul.mubr.f32.vlgmr.msra.gmra.mrb[8].mxu1 %v16456_v37  ;;  %6262 = vmatprep.mubr.f32.mxu0 %v19917_v59 }
  0xb3   : > { %6874 = vmatprep.mubr.f32.mxu1 %v19917_v59  ;;  %6289 = vmatpush1.msra.mxu0 %v19994_v19  ;;  %v19996_v19 = vld [vmem:[#allocation12_spill] sm:$0xff]  ;;  %19999 = vst [vmem:[#allocation18_spill] sm:$0xff] %v16667_v61  ;;  %20000 = vst [vmem:[#allocation19_spill] sm:$0xff] %v16671_v5 }
  0xb4   : > { %6901 = vmatpush1.msra.mxu1 %v19995_v46  ;;  %6386 = vmatprep.subr.mxu0 %v15715_v29  ;;  %v16659_v46 = vsub.f32 %v19996_v19, %v16252_v0  ;;  %20003 = vst [vmem:[#allocation12_spill] sm:$0xff] %v16683_v4  ;;  %v20005_v19 = vld [vmem:[#allocation43_spill] sm:$0xff]  ;;  %v20009_v61 = vld [vmem:[#allocation20_spill] sm:$0xff] }
  0xb5   : > { %6998 = vmatprep.subr.mxu1 %v15739_v43  ;;  %6264 = vmatmul.mubr.f32.gmra.mrb[10].mxu0 %v16484_v31  ;;  %v16677_v0 = vpop.eup %15333  ;;  %v16687_v21 = vadd.f32 %v20005_v19, %v20004_v40  ;;  %v20011_v40 = vld [vmem:[#allocation44_spill] sm:$0xff]  ;;  %v20013_v19 = vld [vmem:[#allocation46_spill] sm:$0xff] }
  0xb6   : > { %6876 = vmatmul.mubr.f32.gmra.mrb[10].mxu1 %v16484_v31  ;;  %6269 = vmatprep.mubr.f32.mxu0 %v19917_v59  ;;  %19997 = vst [vmem:[#allocation16_spill] sm:$0xff] %v16659_v46  ;;  %v16691_v46 = vmul.f32 %v16677_v0, %v16473_v52  ;;  %v16695_v5 = vmul.f32 %v16677_v0, %v16477_v49  ;;  %v16700_v48 = vpop.eup %15335 }
  0xb7   : > { %6881 = vmatprep.mubr.f32.mxu1 %v19917_v59  ;;  %20006 = vst [vmem:[#allocation41_spill] sm:$0xff] %v16687_v21  ;;  %v16706_v52 = vsub.f32 %v20011_v40, %v20010_v54  ;;  %v20014_v21 = vld [vmem:[#allocation47_spill] sm:$0xff]  ;;  %v16714_v4 = vmul.f32 %v16700_v48, %v16500_v18  ;;  %v20019_v18 = vld [vmem:[#allocation22_spill] sm:$0xff]  ;;  %v398_v54 = vadd.s32 512, %v16128_v15  ;;  %v400_v40 = vadd.s32 768, %v16128_v15 }
  0xb8   : > { %20007 = vst [vmem:[#allocation40_spill] sm:$0xff] %v16691_v46  ;;  %20008 = vst [vmem:[#allocation42_spill] sm:$0xff] %v16695_v5  ;;  %v16710_v49 = vadd.f32 %v20014_v21, %v20013_v19  ;;  %v20018_v5 = vld [vmem:[#allocation21_spill] sm:$0xff]  ;;  %v16801_v21 = vsub.f32 %v16367_v9, %v16371_v53  ;;  %v20023_v19 = vld [vmem:[#allocation14_spill] sm:$0xff] }
  0xb9   : > { %6271 = vmatmul.mubr.f32.gmra.mrb[12].mxu0 %v16519_v3  ;;  %20012 = vst [vmem:[#allocation43_spill] sm:$0xff] %v16706_v52  ;;  %20016 = vst [vmem:[#allocation45_spill] sm:$0xff] %v16714_v4  ;;  %vm409_vm15 = vcmp.ge.s32.totalorder %v398_v54, %v16114_v1  ;;  %vm418_vm2 = vcmp.lt.s32.totalorder %v398_v54, %v16131_v42  ;;  %vm411_vm3 = vcmp.ge.s32.totalorder %v400_v40, %v16114_v1  ;;  %v20030_v54 = vmov 0 }
  0xba   : > { %6883 = vmatmul.mubr.f32.gmra.mrb[12].mxu1 %v16519_v3  ;;  %6276 = vmatprep.mubr.f32.mxu0 %v19917_v59  ;;  %20015 = vst [vmem:[#allocation20_spill] sm:$0xff] %v16710_v49  ;;  %vm420_vm4 = vcmp.lt.s32.totalorder %v400_v40, %v16131_v42  ;;  %vm16833_vm5 = vmand %vm409_vm15, %vm418_vm2 }
  0xbb   : > { %6888 = vmatprep.mubr.f32.mxu1 %v19917_v59  ;;  %vm16849_vm1 = vmand %vm411_vm3, %vm420_vm4 }
  0xbc   : > { %v20031_v54 = vsel %vm16849_vm1, 4294967295, %v20030_v54 }
  0xbd   : > { %6278 = vmatmul.mubr.f32.gmra.mrb[14].mxu0 %v16527_v27  ;;  %20032 = vst [vmem:[#allocation47_spill] sm:$0xff] %v20031_v54 }
  0xbe   : > { %6890 = vmatmul.mubr.f32.gmra.mrb[14].mxu1 %v16527_v27  ;;  %6352 = vmatprep.mubr.f32.mxu0 %v19917_v59 }
  0xbf   : > { %6964 = vmatprep.mubr.f32.mxu1 %v19917_v59 }
  0xc1   : > { %6355 = vmatmul.mubr.f32.vlgmr.msra.gmra.mrb[8].mxu0 %v16482_v36 }
  0xc2   : > { %6967 = vmatmul.mubr.f32.vlgmr.msra.gmra.mrb[8].mxu1 %v16482_v36  ;;  %6360 = vmatprep.mubr.f32.mxu0 %v19917_v59 }
  0xc3   : > { %6972 = vmatprep.mubr.f32.mxu1 %v19917_v59  ;;  %6388 = vmatpush1.msra.mxu0 %v15760_v56 }
  0xc4   : > { %7000 = vmatpush1.msra.mxu1 %v15779_v13  ;;  %6491 = vmatprep.subr.mxu0 %v20009_v61  ;;  %v16718_v61 = vmul.f32 %v16700_v48, %v16509_v30  ;;  %v20020_v30 = vld [vmem:[#allocation23_spill] sm:$0xff] }
  0xc5   : > { %6363 = vmatmul.mubr.f32.gmra.mrb[10].mxu0 %v16517_v26  ;;  %7103 = vmatprep.subr.mxu1 %v20018_v5  ;;  %v16805_v5 = vadd.f32 %v16379_v38, %v16375_v6  ;;  %v399_v38 = vadd.s32 640, %v16128_v15 }
  0xc6   : > { %6975 = vmatmul.mubr.f32.gmra.mrb[10].mxu1 %v16517_v26  ;;  %20017 = vst [vmem:[#allocation44_spill] sm:$0xff] %v16718_v61  ;;  %6368 = vmatprep.mubr.f32.mxu0 %v19917_v59 }
  0xc7   : > { %6980 = vmatprep.mubr.f32.mxu1 %v19917_v59  ;;  %vm410_vm7 = vcmp.ge.s32.totalorder %v399_v38, %v16114_v1  ;;  %vm419_vm9 = vcmp.lt.s32.totalorder %v399_v38, %v16131_v42 }
  0xc8   : > { %vm16871_vm10 = vmand %vm410_vm7, %vm419_vm9 }
  0xc9   : > { %6371 = vmatmul.mubr.f32.gmra.mrb[12].mxu0 %v16537_v32  ;;  %v443_v38 = vsel %vm16871_vm10, 1.0, %v19917_v59 }
  0xca   : > { %6983 = vmatmul.mubr.f32.gmra.mrb[12].mxu1 %v16537_v32  ;;  %6376 = vmatprep.mubr.f32.mxu0 %v19917_v59 }
  0xcb   : > { %6988 = vmatprep.mubr.f32.mxu1 %v19917_v59 }
  0xcd   : > { %6379 = vmatmul.mubr.f32.gmra.mrb[14].mxu0 %v16567_v33 }
  0xce   : > { %6991 = vmatmul.mubr.f32.gmra.mrb[14].mxu1 %v16567_v33  ;;  %6451 = vmatprep.mubr.f32.mxu0 %v19917_v59 }
  0xcf   : > { %7063 = vmatprep.mubr.f32.mxu1 %v19917_v59 }
  0xd1   : > { %6455 = vmatmul.mubr.f32.vlgmr.msra.gmra.mrb[8].mxu0 %v16514_v22 }
  0xd2   : > { %7067 = vmatmul.mubr.f32.vlgmr.msra.gmra.mrb[8].mxu1 %v16514_v22  ;;  %6460 = vmatprep.mubr.f32.mxu0 %v19917_v59 }
  0xd3   : > { %7072 = vmatprep.mubr.f32.mxu1 %v19917_v59  ;;  %6495 = vmatpush1.msra.mxu0 %v20019_v18  ;;  %v20024_v18 = vld [vmem:[#allocation13_spill] sm:$0xff] }
  0xd4   : > { %7107 = vmatpush1.msra.mxu1 %v20020_v30  ;;  %6588 = vmatprep.subr.mxu0 %v15715_v29  ;;  %v20021_v29 = vld [vmem:[#allocation36_spill] sm:$0xff]  ;;  %v20028_v30 = vld [vmem:[#allocation38_spill] sm:$0xff] }
  0xd5   : > { %7200 = vmatprep.subr.mxu1 %v15739_v43  ;;  %6464 = vmatmul.mubr.f32.gmra.mrb[10].mxu0 %v16534_v50  ;;  %v20022_v43 = vld [vmem:[#allocation37_spill] sm:$0xff] }
  0xd6   : > { %7076 = vmatmul.mubr.f32.gmra.mrb[10].mxu1 %v16534_v50  ;;  %6469 = vmatprep.mubr.f32.mxu0 %v19917_v59 }
  0xd7   : > { %7081 = vmatprep.mubr.f32.mxu1 %v19917_v59 }
  0xd9   : > { %6473 = vmatmul.mubr.f32.gmra.mrb[12].mxu0 %v16564_v14 }
  0xda   : > { %7085 = vmatmul.mubr.f32.gmra.mrb[12].mxu1 %v16564_v14  ;;  %6478 = vmatprep.mubr.f32.mxu0 %v19917_v59 }
  0xdb   : > { %7090 = vmatprep.mubr.f32.mxu1 %v19917_v59 }
  0xdd   : > { %6482 = vmatmul.mubr.f32.gmra.mrb[14].mxu0 %v16578_v11 }
  0xde   : > { %7094 = vmatmul.mubr.f32.gmra.mrb[14].mxu1 %v16578_v11  ;;  %6558 = vmatprep.mubr.f32.mxu0 %v19917_v59 }
  0xdf   : > { %7170 = vmatprep.mubr.f32.mxu1 %v19917_v59 }
  0xe1   : > { %6560 = vmatmul.mubr.f32.vlgmr.msra.gmra.mrb[8].mxu0 %v16456_v37 }
  0xe2   : > { %7172 = vmatmul.mubr.f32.vlgmr.msra.gmra.mrb[8].mxu1 %v16456_v37  ;;  %6565 = vmatprep.mubr.f32.mxu0 %v19917_v59 }
  0xe3   : > { %7177 = vmatprep.mubr.f32.mxu1 %v19917_v59  ;;  %6590 = vmatpush1.msra.mxu0 %v15760_v56  ;;  %v16793_v56 = vsub.f32 %v16333_v34, %v16337_v57  ;;  %v16811_v34 = vsub.f32 %v20024_v18, %v20023_v19  ;;  %v916_v57 = vmul.f32 %v16801_v21, %v16801_v21  ;;  %v401_v19 = vadd.s32 896, %v16128_v15  ;;  %v20033_v18 = vld [vmem:[#allocation52_spill] sm:$0xff] }
  0xe4   : > { %7202 = vmatpush1.msra.mxu1 %v15779_v13  ;;  %7295 = vmatprep.subr.mxu0 %v16006_v58  ;;  %v16797_v13 = vadd.f32 %v16345_v51, %v16341_v63  ;;  %v16815_v63 = vadd.f32 %v16277_v2, %v16273_v25  ;;  %v924_v51 = vmul.f32 %v16805_v5, %v16805_v5  ;;  %v20025_v25 = vmov 0 }
  0xe5   : > { %7907 = vmatprep.subr.mxu1 %v16008_v44  ;;  %6567 = vmatmul.mubr.f32.gmra.mrb[10].mxu0 %v16484_v31  ;;  %v914_v6 = vmul.f32 %v16793_v56, %v16793_v56  ;;  %v20026_v25 = vsel %vm16833_vm5, 4294967295, %v20025_v25  ;;  %vm412_vm12 = vcmp.ge.s32.totalorder %v401_v19, %v16114_v1  ;;  %vm421_vm13 = vcmp.lt.s32.totalorder %v401_v19, %v16131_v42 }
  0xe6   : > { %7179 = vmatmul.mubr.f32.gmra.mrb[10].mxu1 %v16484_v31  ;;  %6572 = vmatprep.mubr.f32.mxu0 %v19917_v59  ;;  %v922_v53 = vmul.f32 %v16797_v13, %v16797_v13  ;;  %20027 = vst [vmem:[#allocation46_spill] sm:$0xff] %v20026_v25  ;;  %v16839_v9 = vadd.f32 %v924_v51, %v916_v57  ;;  %v444_v51 = vsel %vm16849_vm1, 1.0, %v19917_v59  ;;  %vm16881_vm15 = vmand %vm412_vm12, %vm421_vm13  ;;  %v20095_v25 = vld [vmem:[#allocation63_spill] sm:$0xff] }
  0xe7   : > { %7184 = vmatprep.mubr.f32.mxu1 %v19917_v59  ;;  %v923_v40 = vmul.f32 %v16815_v63, %v16815_v63  ;;  %v966_v42 = vmul.f32 %v16543_v8, %v16458_v45  ;;  %v968_v19 = vmul.f32 %v16653_v35, %v16463_v55  ;;  %v445_v8 = vsel %vm16881_vm15, 1.0, %v19917_v59 }
  0xe8   : > { %v16837_v2 = vadd.f32 %v922_v53, %v914_v6  ;;  %v20034_v6 = vld [vmem:[#allocation51_spill] sm:$0xff]  ;;  %v940_v15 = vadd.f32 %v16839_v9, %v444_v51 }
  0xe9   : > { %6574 = vmatmul.mubr.f32.gmra.mrb[12].mxu0 %v16519_v3  ;;  %v16858_v53 = vsub.f32 %v20034_v6, %v20033_v18  ;;  %v16887_v18 = vadd.f32 %v16311_v62, %v16307_v23  ;;  %v967_v62 = vmul.f32 %v16677_v0, %v16505_v28  ;;  %v14335_v55 = vadd.f32 -0.2, %v966_v42 }
  0xea   : > { %7186 = vmatmul.mubr.f32.gmra.mrb[12].mxu1 %v16519_v3  ;;  %6579 = vmatprep.mubr.f32.mxu0 %v19917_v59  ;;  %v14337_v35 = vadd.f32 -0.2, %v968_v19 }
  0xeb   : > { %7191 = vmatprep.mubr.f32.mxu1 %v19917_v59  ;;  %v917_v1 = vmul.f32 %v16858_v53, %v16858_v53  ;;  %v925_v23 = vmul.f32 %v16887_v18, %v16887_v18  ;;  %v14336_v28 = vadd.f32 -0.2, %v967_v62 }
  0xed   : > { %6581 = vmatmul.mubr.f32.gmra.mrb[14].mxu0 %v16527_v27  ;;  %v933_v45 = vadd.f32 %v925_v23, %v917_v1  ;;  %v983_v51 = vmul.f32 5.0, %v14336_v28 }
  0xee   : > { %7193 = vmatmul.mubr.f32.gmra.mrb[14].mxu1 %v16527_v27  ;;  %6653 = vmatprep.mubr.f32.mxu0 %v19917_v59 }
  0xef   : > { %7265 = vmatprep.mubr.f32.mxu1 %v19917_v59  ;;  %v941_v6 = vadd.f32 %v933_v45, %v445_v8 }
  0xf1   : > { %6655 = vmatmul.mubr.f32.vlgmr.msra.gmra.mrb[8].mxu0 %v16456_v37 }
  0xf2   : > { %7267 = vmatmul.mubr.f32.vlgmr.msra.gmra.mrb[8].mxu1 %v16456_v37  ;;  %6660 = vmatprep.mubr.f32.mxu0 %v19917_v59 }
  0xf3   : > { %7272 = vmatprep.mubr.f32.mxu1 %v19917_v59  ;;  %7297 = vmatpush1.msra.mxu0 %v16033_v7 }
  0xf4   : > { %7909 = vmatpush1.msra.mxu1 %v16035_v16  ;;  %7410 = vmatprep.subr.mxu0 %v20021_v29  ;;  %v20029_v29 = vld [vmem:[#allocation39_spill] sm:$0xff] }
  0xf5   : > { %8022 = vmatprep.subr.mxu1 %v20022_v43  ;;  %6662 = vmatmul.mubr.f32.gmra.mrb[10].mxu0 %v16484_v31  ;;  %v442_v43 = vsel %vm16833_vm5, 1.0, %v19917_v59 }
  0xf6   : > { %7274 = vmatmul.mubr.f32.gmra.mrb[10].mxu1 %v16484_v31  ;;  %6667 = vmatprep.mubr.f32.mxu0 %v19917_v59  ;;  %v938_v57 = vadd.f32 %v16837_v2, %v442_v43  ;;  %v20039_v43 = vmov 0 }
  0xf7   : > { %7279 = vmatprep.mubr.f32.mxu1 %v19917_v59  ;;  %v20040_v43 = vsel %vm16881_vm15, 4294967295, %v20039_v43 }
  0xf8   : > { %15337 = vrsqrt.f32 %v938_v57  ;;  %20041 = vst [vmem:[#allocation22_spill] sm:$0xff] %v20040_v43  ;;  %v982_v57 = vmul.f32 5.0, %v14335_v55 }
  0xf9   : > { %6669 = vmatmul.mubr.f32.gmra.mrb[12].mxu0 %v16519_v3  ;;  %15339 = vrsqrt.f32 %v940_v15 }
  0xfa   : > { %7281 = vmatmul.mubr.f32.gmra.mrb[12].mxu1 %v16519_v3  ;;  %6674 = vmatprep.mubr.f32.mxu0 %v19917_v59 }
  0xfb   : > { %7286 = vmatprep.mubr.f32.mxu1 %v19917_v59 }
  0xfd   : > { %6676 = vmatmul.mubr.f32.gmra.mrb[14].mxu0 %v16527_v27 }
  0xfe   : > { %7288 = vmatmul.mubr.f32.gmra.mrb[14].mxu1 %v16527_v27  ;;  %7360 = vmatprep.mubr.f32.mxu0 %v19917_v59 }
  0xff   : > { %7972 = vmatprep.mubr.f32.mxu1 %v19917_v59 }
 0x101   : > { %7366 = vmatmul.mubr.f32.vlgmr.msra.gmra.mrb[16].mxu0 %v16559_v24 }
 0x102   : > { %7978 = vmatmul.mubr.f32.vlgmr.msra.gmra.mrb[16].mxu1 %v16559_v24  ;;  %7371 = vmatprep.mubr.f32.mxu0 %v19917_v59  ;;  %v915_v24 = vmul.f32 %v16811_v34, %v16811_v34 }
 0x103   : > { %7983 = vmatprep.mubr.f32.mxu1 %v19917_v59  ;;  %7416 = vmatpush1.msra.mxu0 %v20028_v30  ;;  %v20035_v30 = vmov 0 }
 0x104   : > { %8028 = vmatpush1.msra.mxu1 %v20029_v29  ;;  %v20036_v30 = vsel %vm16871_vm10, 4294967295, %v20035_v30  ;;  %v20038_v29 = vld [vmem:[#allocation31_spill] sm:$0xff] }
 0x105   : > { %7377 = vmatmul.mubr.f32.gmra.mrb[18].mxu0 %v16573_v20  ;;  %20037 = vst [vmem:[#allocation21_spill] sm:$0xff] %v20036_v30  ;;  %7510 = vmatprep.subr.mxu0 %v20038_v29  ;;  %v20043_v29 = vld [vmem:[#allocation33_spill] sm:$0xff] }
 0x106   : > { %7989 = vmatmul.mubr.f32.gmra.mrb[18].mxu1 %v16573_v20  ;;  %7382 = vmatprep.mubr.f32.mxu0 %v19917_v59  ;;  %v931_v20 = vadd.f32 %v923_v40, %v915_v24  ;;  %v20042_v24 = vld [vmem:[#allocation32_spill] sm:$0xff]  ;;  %v20094_v30 = vld [vmem:[#allocation25_spill] sm:$0xff] }
 0x107   : > { %7994 = vmatprep.mubr.f32.mxu1 %v19917_v59  ;;  %8122 = vmatprep.subr.mxu1 %v20042_v24 }
 0x108   : > { %v939_v40 = vadd.f32 %v931_v20, %v443_v38  ;;  %v20044_v38 = vld [vmem:[#allocation34_spill] sm:$0xff] }
 0x109   : > { %7388 = vmatmul.mubr.f32.gmra.mrb[20].mxu0 %v16589_v47 }
 0x10a   : > { %8000 = vmatmul.mubr.f32.gmra.mrb[20].mxu1 %v16589_v47  ;;  %7393 = vmatprep.mubr.f32.mxu0 %v19917_v59  ;;  %15341 = vrsqrt.f32 %v939_v40  ;;  %v969_v47 = vmul.f32 %v16700_v48, %v16539_v39  ;;  %v16915_v39 = vpop.eup %15337  ;;  %v984_v48 = vmul.f32 5.0, %v14337_v35  ;;  %v14343_v40 = vadd.f32 -1.0, %v982_v57 }
 0x10b   : > { %8005 = vmatprep.mubr.f32.mxu1 %v19917_v59  ;;  %15343 = vrsqrt.f32 %v941_v6  ;;  %v970_v15 = vmul.f32 %v16915_v39, %v16837_v2 }
 0x10c   : > { %v14338_v0 = vadd.f32 -0.2, %v969_v47  ;;  %v14345_v2 = vadd.f32 -1.0, %v984_v48  ;;  %v998_v6 = vmul.f32 1.442695, %v14343_v40 }
 0x10d   : > { %7399 = vmatmul.mubr.f32.gmra.mrb[22].mxu0 %v16604_v10  ;;  %v14339_v19 = vadd.f32 -0.2, %v970_v15 }
 0x10e   : > { %8011 = vmatmul.mubr.f32.gmra.mrb[22].mxu1 %v16604_v10  ;;  %7479 = vmatprep.mubr.f32.mxu0 %v19917_v59  ;;  %v16919_v10 = vpop.eup %15339  ;;  %v985_v1 = vmul.f32 5.0, %v14338_v0  ;;  %v1002_v57 = vmul.f32 1.442695, %v14345_v2  ;;  %15345 = vpow2.f32 %v998_v6 }
 0x10f   : > { %8091 = vmatprep.mubr.f32.mxu1 %v19917_v59  ;;  %v972_v24 = vmul.f32 %v16919_v10, %v16839_v9  ;;  %v14344_v9 = vadd.f32 -1.0, %v983_v51  ;;  %v986_v8 = vmul.f32 5.0, %v14339_v19 }
 0x110   : > { %v14346_v47 = vadd.f32 -1.0, %v985_v1  ;;  %15347 = vpow2.f32 %v1002_v57  ;;  %v20045_v57 = vld [vmem:[#allocation7_spill] sm:$0xff] }
 0x111   : > { %7481 = vmatmul.mubr.f32.vlgmr.msra.gmra.mrb[16].mxu0 %v16456_v37  ;;  %v14341_v23 = vadd.f32 -0.2, %v972_v24  ;;  %v14347_v28 = vadd.f32 -1.0, %v986_v8 }
 0x112   : > { %8093 = vmatmul.mubr.f32.vlgmr.msra.gmra.mrb[16].mxu1 %v16456_v37  ;;  %7486 = vmatprep.mubr.f32.mxu0 %v19917_v59 }
 0x113   : > { %8098 = vmatprep.mubr.f32.mxu1 %v19917_v59  ;;  %7513 = vmatpush1.msra.mxu0 %v20043_v29  ;;  %v988_v55 = vmul.f32 5.0, %v14341_v23  ;;  %v1004_v29 = vmul.f32 1.442695, %v14346_v47  ;;  %v1006_v1 = vmul.f32 1.442695, %v14347_v28 }
 0x114   : > { %8125 = vmatpush1.msra.mxu1 %v20044_v38  ;;  %7610 = vmatprep.subr.mxu0 %v16006_v58  ;;  %v16929_v42 = vpop.eup %15341 }
 0x115   : > { %8222 = vmatprep.subr.mxu1 %v16008_v44  ;;  %7488 = vmatmul.mubr.f32.gmra.mrb[18].mxu0 %v16484_v31  ;;  %v971_v62 = vmul.f32 %v16929_v42, %v931_v20  ;;  %v16938_v0 = vpop.eup %15343  ;;  %v1000_v20 = vmul.f32 1.442695, %v14344_v9  ;;  %v14349_v51 = vadd.f32 -1.0, %v988_v55 }
 0x116   : > { %8100 = vmatmul.mubr.f32.gmra.mrb[18].mxu1 %v16484_v31  ;;  %7493 = vmatprep.mubr.f32.mxu0 %v19917_v59  ;;  %v973_v15 = vmul.f32 %v16938_v0, %v933_v45 }
 0x117   : > { %8105 = vmatprep.mubr.f32.mxu1 %v19917_v59  ;;  %v14340_v35 = vadd.f32 -0.2, %v971_v62  ;;  %15349 = vpow2.f32 %v1000_v20  ;;  %v1010_v40 = vmul.f32 1.442695, %v14349_v51 }
 0x118   : > { %v14342_v24 = vadd.f32 -0.2, %v973_v15  ;;  %15351 = vpow2.f32 %v1004_v29  ;;  %v20046_v15 = vld [vmem:[#allocation55_spill] sm:$0xff]  ;;  %v20047_v29 = vld [vmem:[#allocation30_spill] sm:$0xff] }
 0x119   : > { %7495 = vmatmul.mubr.f32.gmra.mrb[20].mxu0 %v16519_v3  ;;  %v987_v48 = vmul.f32 5.0, %v14340_v35  ;;  %15353 = vpow2.f32 %v1006_v1  ;;  %v20049_v1 = vld [vmem:[#allocation56_spill] sm:$0xff] }
 0x11a   : > { %8107 = vmatmul.mubr.f32.gmra.mrb[20].mxu1 %v16519_v3  ;;  %7500 = vmatprep.mubr.f32.mxu0 %v19917_v59  ;;  %v989_v19 = vmul.f32 5.0, %v14342_v24  ;;  %15355 = vpow2.f32 %v1010_v40  ;;  %v20050_v24 = vld [vmem:[#allocation57_spill] sm:$0xff] }
 0x11b   : > { %8112 = vmatprep.mubr.f32.mxu1 %v19917_v59  ;;  %v14348_v38 = vadd.f32 -1.0, %v987_v48  ;;  %v16968_v48 = vsub.s32 4, %v20045_v57  ;;  %v16980_v40 = vadd.f32 %v20050_v24, %v20049_v1  ;;  %v17063_v1 = vsel %vm16598_vm8, -1e+30, %v19917_v59 }
 0x11c   : > { %v14350_v45 = vadd.f32 -1.0, %v989_v19  ;;  %v16984_v19 = vmul.f32 %v16915_v39, %v16793_v56  ;;  %v17005_v56 = vmul.f32 %v16919_v10, %v16805_v5  ;;  %v20071_v5 = vld [vmem:[#allocation29_spill] sm:$0xff] }
 0x11d   : > { %7502 = vmatmul.mubr.f32.gmra.mrb[22].mxu0 %v16527_v27  ;;  %v1008_v2 = vmul.f32 1.442695, %v14348_v38  ;;  %v16976_v38 = vsub.f32 %v20047_v29, %v20046_v15  ;;  %20051 = vst [vmem:[#allocation36_spill] sm:$0xff] %v16980_v40  ;;  %v17035_v15 = vmul.f32 %v16938_v0, %v16858_v53  ;;  %v17049_v29 = vsub.s32 7, %v20045_v57 }
 0x11e   : > { %8114 = vmatmul.mubr.f32.gmra.mrb[22].mxu1 %v16527_v27  ;;  %7576 = vmatprep.mubr.f32.mxu0 %v19917_v59  ;;  %v1012_v23 = vmul.f32 1.442695, %v14350_v45  ;;  %20052 = vst [vmem:[#allocation37_spill] sm:$0xff] %v16984_v19  ;;  %v20055_v45 = vld [vmem:[#allocation58_spill] sm:$0xff]  ;;  %20061 = vst [vmem:[#allocation52_spill] sm:$0xff] %v17005_v56  ;;  %v20100_v56 = vld [vmem:[#allocation19_spill] sm:$0xff] }
 0x11f   : > { %8188 = vmatprep.mubr.f32.mxu1 %v19917_v59  ;;  %15357 = vpow2.f32 %v1008_v2  ;;  %20048 = vst [vmem:[#allocation23_spill] sm:$0xff] %v16976_v38  ;;  %v20054_v2 = vld [vmem:[#allocation59_spill] sm:$0xff]  ;;  %20077 = vst [vmem:[#allocation30_spill] sm:$0xff] %v17035_v15  ;;  %v20103_v38 = vld [vmem:[#allocation17_spill] sm:$0xff] }
 0x120   : > { %15359 = vpow2.f32 %v1012_v23  ;;  %v16993_v23 = vsub.f32 %v20055_v45, %v20054_v2 }
 0x121   : > { %7579 = vmatmul.mubr.f32.vlgmr.msra.gmra.mrb[16].mxu0 %v16482_v36 }
 0x122   : > { %8191 = vmatmul.mubr.f32.vlgmr.msra.gmra.mrb[16].mxu1 %v16482_v36  ;;  %7584 = vmatprep.mubr.f32.mxu0 %v19917_v59  ;;  %v15346_v36 = vpop.eup %15345  ;;  %20056 = vst [vmem:[#allocation13_spill] sm:$0xff] %v16993_v23 }
 0x123   : > { %8196 = vmatprep.mubr.f32.mxu1 %v19917_v59  ;;  %7612 = vmatpush1.msra.mxu0 %v16033_v7  ;;  %v15348_v62 = vpop.eup %15347 }
 0x124   : > { %8224 = vmatpush1.msra.mxu1 %v16035_v16  ;;  %7715 = vmatprep.subr.mxu0 %v16038_v12  ;;  %v15350_v9 = vpop.eup %15349  ;;  %v1014_v12 = vadd.f32 1.0, %v15346_v36  ;;  %v1016_v47 = vadd.f32 1.0, %v15348_v62  ;;  %v20057_v36 = vld [vmem:[#allocation60_spill] sm:$0xff]  ;;  %v20058_v62 = vld [vmem:[#allocation61_spill] sm:$0xff] }
 0x125   : > { %8327 = vmatprep.subr.mxu1 %v16041_v17  ;;  %7587 = vmatmul.mubr.f32.gmra.mrb[18].mxu0 %v16517_v26  ;;  %v15352_v8 = vpop.eup %15351 }
 0x126   : > { %8199 = vmatmul.mubr.f32.gmra.mrb[18].mxu1 %v16517_v26  ;;  %7592 = vmatprep.mubr.f32.mxu0 %v19917_v59  ;;  %v15354_v17 = vpop.eup %15353  ;;  %v1015_v26 = vadd.f32 1.0, %v15350_v9  ;;  %v1017_v35 = vadd.f32 1.0, %v15352_v8  ;;  %15361 = vrcp.f32 %v1014_v12  ;;  %v16997_v9 = vadd.f32 %v20058_v62, %v20057_v36 }
 0x127   : > { %8204 = vmatprep.mubr.f32.mxu1 %v19917_v59  ;;  %v15356_v55 = vpop.eup %15355  ;;  %v1018_v28 = vadd.f32 1.0, %v15354_v17  ;;  %15363 = vrcp.f32 %v1016_v47  ;;  %v17001_v8 = vmul.f32 %v16919_v10, %v16801_v21  ;;  %v20066_v17 = vld [vmem:[#allocation49_spill] sm:$0xff]  ;;  %v20067_v47 = vld [vmem:[#allocation50_spill] sm:$0xff]  ;;  %v17022_v21 = vmul.f32 %v16929_v42, %v16815_v63  ;;  %v20072_v10 = vld [vmem:[#allocation28_spill] sm:$0xff] }
 0x128   : > { %15365 = vrcp.f32 %v1015_v26  ;;  %20059 = vst [vmem:[#allocation38_spill] sm:$0xff] %v16997_v9  ;;  %v17014_v26 = vadd.f32 %v20067_v47, %v20066_v17  ;;  %v17043_v63 = vsub.s32 5, %v20045_v57  ;;  %v17074_v36 = vsel %vm16619_vm11, -1e+30, %v19917_v59  ;;  %v20090_v47 = vld [vmem:[#allocation11_spill] sm:$0xff]  ;;  %v20099_v9 = vld [vmem:[#allocation18_spill] sm:$0xff] }
 0x129   : > { %7595 = vmatmul.mubr.f32.gmra.mrb[20].mxu0 %v16537_v32  ;;  %v15358_v6 = vpop.eup %15357  ;;  %15367 = vrcp.f32 %v1017_v35  ;;  %20060 = vst [vmem:[#allocation39_spill] sm:$0xff] %v17001_v8  ;;  %20070 = vst [vmem:[#allocation33_spill] sm:$0xff] %v17022_v21  ;;  %v17027_v35 = vsub.f32 %v20072_v10, %v20071_v5  ;;  %v17079_v62 = vsel %vm16630_vm14, -1e+30, %v19917_v59 }
 0x12a   : > { %8207 = vmatmul.mubr.f32.gmra.mrb[20].mxu1 %v16537_v32  ;;  %7600 = vmatprep.mubr.f32.mxu0 %v19917_v59  ;;  %v15360_v32 = vpop.eup %15359  ;;  %15369 = vrcp.f32 %v1018_v28  ;;  %v1019_v20 = vadd.f32 1.0, %v15358_v6  ;;  %20068 = vst [vmem:[#allocation31_spill] sm:$0xff] %v17014_v26  ;;  %v20074_v6 = vld [vmem:[#allocation53_spill] sm:$0xff]  ;;  %v20075_v28 = vld [vmem:[#allocation54_spill] sm:$0xff]  ;;  %20084 = vst [vmem:[#allocation58_spill] sm:$0xff] %v17074_v36 }
 0x12b   : > { %8212 = vmatprep.mubr.f32.mxu1 %v19917_v59  ;;  %v1021_v51 = vadd.f32 1.0, %v15360_v32  ;;  %20073 = vst [vmem:[#allocation34_spill] sm:$0xff] %v17027_v35  ;;  %v17031_v32 = vadd.f32 %v20075_v28, %v20074_v6  ;;  %20085 = vst [vmem:[#allocation60_spill] sm:$0xff] %v17079_v62  ;;  %v20108_v36 = vld [vmem:[#allocation41_spill] sm:$0xff] }
 0x12d   : > { %7603 = vmatmul.mubr.f32.gmra.mrb[22].mxu0 %v16567_v33  ;;  %20076 = vst [vmem:[#allocation55_spill] sm:$0xff] %v17031_v32  ;;  %v20096_v32 = vld [vmem:[#allocation64_spill] sm:$0xff] }
 0x12e   : > { %8215 = vmatmul.mubr.f32.gmra.mrb[22].mxu1 %v16567_v33  ;;  %7675 = vmatprep.mubr.f32.mxu0 %v19917_v59  ;;  %v1020_v33 = vadd.f32 1.0, %v15356_v55  ;;  %v17018_v55 = vmul.f32 %v16929_v42, %v16811_v34  ;;  %v17039_v34 = vmul.f32 %v16938_v0, %v16887_v18  ;;  %v17046_v42 = vsub.s32 6, %v20045_v57  ;;  %v20093_v57 = vld [vmem:[#allocation24_spill] sm:$0xff] }
 0x12f   : > { %8287 = vmatprep.mubr.f32.mxu1 %v19917_v59 }
 0x130   : > { %20069 = vst [vmem:[#allocation32_spill] sm:$0xff] %v17018_v55  ;;  %20078 = vst [vmem:[#allocation56_spill] sm:$0xff] %v17039_v34  ;;  %15371 = vrcp.f32 %v1020_v33  ;;  %v17053_v53 = vpop.eup %15361 }
 0x131   : > { %7679 = vmatmul.mubr.f32.vlgmr.msra.gmra.mrb[16].mxu0 %v16514_v22  ;;  %20079 = vst [vmem:[#allocation57_spill] sm:$0xff] %v17053_v53  ;;  %15373 = vrcp.f32 %v1019_v20  ;;  %v17067_v33 = vpop.eup %15363 }
 0x132   : > { %8291 = vmatmul.mubr.f32.vlgmr.msra.gmra.mrb[16].mxu1 %v16514_v22  ;;  %7684 = vmatprep.mubr.f32.mxu0 %v19917_v59  ;;  %v16988_v22 = vmul.f32 %v16915_v39, %v16797_v13  ;;  %v20062_v13 = vld [vmem:[#allocation35_spill] sm:$0xff]  ;;  %v20063_v39 = vld [vmem:[#allocation48_spill] sm:$0xff]  ;;  %20082 = vst [vmem:[#allocation59_spill] sm:$0xff] %v17067_v33  ;;  %15375 = vrcp.f32 %v1021_v51 }
 0x133   : > { %8296 = vmatprep.mubr.f32.mxu1 %v19917_v59  ;;  %7719 = vmatpush1.msra.mxu0 %v16071_v41  ;;  %v20064_v41 = vld [vmem:[#allocation15_spill] sm:$0xff] }
 0x134   : > { %20053 = vst [vmem:[#allocation14_spill] sm:$0xff] %v16988_v22  ;;  %8331 = vmatpush1.msra.mxu1 %v20062_v13  ;;  %v17010_v12 = vsub.f32 %v20064_v41, %v20063_v39  ;;  %7812 = vmatprep.subr.mxu0 %v16006_v58  ;;  %v17082_v58 = vpop.eup %15365  ;;  %v20088_v13 = vld [vmem:[#allocation9_spill] sm:$0xff]  ;;  %v20089_v41 = vld [vmem:[#allocation10_spill] sm:$0xff] }
 0x135   : > { %7688 = vmatmul.mubr.f32.gmra.mrb[18].mxu0 %v16534_v50  ;;  %8424 = vmatprep.subr.mxu1 %v16008_v44  ;;  %20086 = vst [vmem:[#allocation61_spill] sm:$0xff] %v17082_v58  ;;  %v20087_v44 = vld [vmem:[#allocation8_spill] sm:$0xff]  ;;  %v17093_v60 = vpop.eup %15367 }
 0x136   : > { %20065 = vst [vmem:[#allocation51_spill] sm:$0xff] %v17010_v12  ;;  %8300 = vmatmul.mubr.f32.gmra.mrb[18].mxu1 %v16534_v50  ;;  %7693 = vmatprep.mubr.f32.mxu0 %v19917_v59  ;;  %v17058_v50 = vsel %vm16410_vm6, -1e+30, %v19917_v59  ;;  %20091 = vst [vmem:[#allocation35_spill] sm:$0xff] %v17093_v60  ;;  %v17100_v45 = vpop.eup %15369  ;;  %vm8518_vm6 = vcmask 121856  }
 0x137   : > { %8305 = vmatprep.mubr.f32.mxu1 %v19917_v59  ;;  %v1574_v24 = vpop.f32.mrb[0].mxu0  ;;  %v17069_v2 = vpop.f32.mrb[0].mxu1  ;;  %20092 = vst [vmem:[#allocation48_spill] sm:$0xff] %v17100_v45 }
 0x138   : > { %v3131_v20 = vrot.slane %v1574_v24, %v20087_v44  ;;  %v3171_v39 = vrot.slane %v1574_v24, %v20088_v13  ;;  %v3219_v17 = vrot.slane %v1574_v24, %v20089_v41  ;;  %v3267_v5 = vrot.slane %v1574_v24, %v20090_v47  ;;  %v17088_v10 = vpop.f32.mrb[1].mxu0  ;;  %v17090_v6 = vpop.f32.mrb[1].mxu1 }
 0x139   : > { %7697 = vmatmul.mubr.f32.gmra.mrb[20].mxu0 %v16564_v14  ;;  %v3315_v51 = vrot.slane %v1574_v24, %v16968_v48  ;;  %v4099_v28 = vrot.slane %v1574_v24, %v17043_v63  ;;  %v4139_v18 = vrot.slane %v1574_v24, %v17046_v42  ;;  %v4187_v0 = vrot.slane %v1574_v24, %v17049_v29 }
 0x13a   : > { %8309 = vmatmul.mubr.f32.gmra.mrb[20].mxu1 %v16564_v14  ;;  %7702 = vmatprep.mubr.f32.mxu0 %v19917_v59  ;;  %v3160_v43 = vmul.f32 %v3131_v20, %v20093_v57  ;;  %v3200_v54 = vmul.f32 %v3171_v39, %v20094_v30  ;;  %v3248_v14 = vmul.f32 %v3219_v17, %v20095_v25  ;;  %v17146_v40 = vpop.eup %15371 }
 0x13b   : > { %v3296_v35 = vmul.f32 %v3267_v5, %v20096_v32  ;;  %8314 = vmatprep.mubr.f32.mxu1 %v19917_v59  ;;  %v3344_v34 = vmul.f32 %v17053_v53, %v3315_v51  ;;  %v17109_v15 = vmul.f32 %v4099_v28, %v20093_v57  ;;  %v17112_v24 = vmul.f32 %v4139_v18, %v20094_v30  ;;  %v17117_v20 = vpop.f32.mrb[2].mxu0  ;;  %v17119_v39 = vpop.f32.mrb[2].mxu1 }
 0x13c   : > { %v17115_v26 = vmul.f32 %v4187_v0, %v20095_v25  ;;  %v3208_v17 = vadd.f32 %v3200_v54, %v3160_v43  ;;  %v3139_v5 = vrot.slane %v17069_v2, %v20087_v44  ;;  %v3179_v51 = vrot.slane %v17069_v2, %v20088_v13  ;;  %v17128_v18 = vpop.f32.mrb[3].mxu0  ;;  %v17130_v0 = vpop.f32.mrb[3].mxu1  ;;  %20102 = vst [vmem:[#allocation50_spill] sm:$0xff] %v17146_v40  ;;  %v20107_v40 = vld [vmem:[#allocation12_spill] sm:$0xff] }
 0x13d   : > { %7706 = vmatmul.mubr.f32.gmra.mrb[22].mxu0 %v16578_v11  ;;  %v3227_v28 = vrot.slane %v17069_v2, %v20089_v41  ;;  %20097 = vst [vmem:[#allocation15_spill] sm:$0xff] %v17128_v18  ;;  %20098 = vst [vmem:[#allocation49_spill] sm:$0xff] %v17130_v0  ;;  %v3275_v12 = vrot.slane %v17069_v2, %v20090_v47  ;;  %v3323_v54 = vrot.slane %v17069_v2, %v16968_v48 }
 0x13e   : > { %8318 = vmatmul.mubr.f32.gmra.mrb[22].mxu1 %v16578_v11  ;;  %v4107_v43 = vrot.slane %v17069_v2, %v17043_v63  ;;  %v4147_v21 = vrot.slane %v17069_v2, %v17046_v42  ;;  %7782 = vmatprep.mubr.f32.mxu0 %v19917_v59  ;;  %v3256_v55 = vadd.f32 %v3248_v14, %v3208_v17  ;;  %v20101_v11 = vld [vmem:[#allocation16_spill] sm:$0xff]  ;;  %v17157_v14 = vpop.eup %15373 }
 0x13f   : > { %v3162_v23 = vmul.f32 %v3139_v5, %v20099_v9  ;;  %v3202_v8 = vmul.f32 %v3179_v51, %v20100_v56  ;;  %v3250_v45 = vmul.f32 %v3227_v28, %v20101_v11  ;;  %8394 = vmatprep.mubr.f32.mxu1 %v19917_v59  ;;  %v3298_v22 = vmul.f32 %v3275_v12, %v20103_v38  ;;  %v17164_v28 = vpop.eup %15375 }
 0x140   : > { %v3346_v19 = vmul.f32 %v17067_v33, %v3323_v54  ;;  %v17151_v0 = vmul.f32 %v4107_v43, %v20099_v9  ;;  %v17154_v62 = vmul.f32 %v4147_v21, %v20100_v56  ;;  %20104 = vst [vmem:[#allocation29_spill] sm:$0xff] %v17157_v14  ;;  %v3304_v17 = vadd.f32 %v3296_v35, %v3256_v55 }
 0x141   : > { %7784 = vmatmul.mubr.f32.vlgmr.msra.gmra.mrb[16].mxu0 %v16456_v37  ;;  %v3210_v5 = vadd.f32 %v3202_v8, %v3162_v23  ;;  %v4195_v51 = vrot.slane %v17069_v2, %v17049_v29  ;;  %v3135_v12 = vrot.slane %v17088_v10, %v20087_v44  ;;  %20105 = vst [vmem:[#allocation28_spill] sm:$0xff] %v17164_v28  ;;  %v20106_v28 = vld [vmem:[#allocation42_spill] sm:$0xff] }
 0x142   : > { %8396 = vmatmul.mubr.f32.vlgmr.msra.gmra.mrb[16].mxu1 %v16456_v37  ;;  %v3175_v21 = vrot.slane %v17088_v10, %v20088_v13  ;;  %v3223_v54 = vrot.slane %v17088_v10, %v20089_v41  ;;  %v3271_v55 = vrot.slane %v17088_v10, %v20090_v47  ;;  %v3319_v23 = vrot.slane %v17088_v10, %v16968_v48 }
 0x143   : > { %7789 = vmatprep.mubr.f32.mxu0 %v19917_v59  ;;  %v3352_v8 = vadd.f32 %v3344_v34, %v3304_v17  ;;  %v3258_v35 = vadd.f32 %v3250_v45, %v3210_v5  ;;  %v17176_v2 = vmul.f32 %v4195_v51, %v20101_v11  ;;  %v3161_v43 = vmul.f32 %v3135_v12, %v16691_v46 }
 0x144   : > { %8401 = vmatprep.mubr.f32.mxu1 %v19917_v59  ;;  %v3201_v14 = vmul.f32 %v3175_v21, %v20106_v28  ;;  %v3249_v18 = vmul.f32 %v3223_v54, %v20107_v40  ;;  %v3297_v56 = vmul.f32 %v3271_v55, %v20108_v36  ;;  %v3345_v9 = vmul.f32 %v17082_v58, %v3319_v23 }
 0x145   : > { %7791 = vmatmul.mubr.f32.gmra.mrb[18].mxu0 %v16484_v31  ;;  %v3306_v33 = vadd.f32 %v3298_v22, %v3258_v35  ;;  %v4103_v34 = vrot.slane %v17088_v10, %v17043_v63  ;;  %v4143_v45 = vrot.slane %v17088_v10, %v17046_v42  ;;  %v4191_v17 = vrot.slane %v17088_v10, %v17049_v29 }
 0x146   : > { %8403 = vmatmul.mubr.f32.gmra.mrb[18].mxu1 %v16484_v31  ;;  %v3209_v5 = vadd.f32 %v3201_v14, %v3161_v43  ;;  %v3143_v51 = vrot.slane %v17090_v6, %v20087_v44  ;;  %v3183_v12 = vrot.slane %v17090_v6, %v20088_v13  ;;  %v3231_v22 = vrot.slane %v17090_v6, %v20089_v41 }
 0x147   : > { %7796 = vmatprep.mubr.f32.mxu0 %v19917_v59  ;;  %v3354_v21 = vadd.f32 %v3346_v19, %v3306_v33  ;;  %v17200_v54 = vmul.f32 %v4103_v34, %v16691_v46  ;;  %v17203_v10 = vmul.f32 %v4143_v45, %v20106_v28  ;;  %v17206_v14 = vmul.f32 %v4191_v17, %v20107_v40 }
 0x148   : > { %8408 = vmatprep.mubr.f32.mxu1 %v19917_v59  ;;  %v3257_v55 = vadd.f32 %v3249_v18, %v3209_v5  ;;  %v3163_v23 = vmul.f32 %v3143_v51, %v16714_v4  ;;  %v3203_v35 = vmul.f32 %v3183_v12, %v16718_v61  ;;  %v3251_v43 = vmul.f32 %v3231_v22, %v16706_v52 }
 0x149   : > { %7798 = vmatmul.mubr.f32.gmra.mrb[20].mxu0 %v16519_v3  ;;  %v3279_v19 = vrot.slane %v17090_v6, %v20090_v47  ;;  %v3327_v33 = vrot.slane %v17090_v6, %v16968_v48  ;;  %v4111_v34 = vrot.slane %v17090_v6, %v17043_v63  ;;  %v4151_v18 = vrot.slane %v17090_v6, %v17046_v42 }
 0x14a   : > { %8410 = vmatmul.mubr.f32.gmra.mrb[20].mxu1 %v16519_v3  ;;  %v3305_v45 = vadd.f32 %v3297_v56, %v3257_v55  ;;  %v3211_v17 = vadd.f32 %v3203_v35, %v3163_v23  ;;  %v4199_v5 = vrot.slane %v17090_v6, %v17049_v29  ;;  %v17225_v51 = vadd.f32 %v3352_v8, %v17058_v50 }
 0x14b   : > { %7803 = vmatprep.mubr.f32.mxu0 %v19917_v59  ;;  %v3299_v12 = vmul.f32 %v3279_v19, %v16710_v49  ;;  %v3347_v22 = vmul.f32 %v17093_v60, %v3327_v33  ;;  %v17231_v40 = vmul.f32 %v4111_v34, %v16714_v4  ;;  %v17234_v28 = vmul.f32 %v4151_v18, %v16718_v61 }
 0x14c   : > { %8415 = vmatprep.mubr.f32.mxu1 %v19917_v59  ;;  %v17237_v56 = vadd.f32 %v3345_v9, %v3305_v45  ;;  %v3259_v6 = vadd.f32 %v3251_v43, %v3211_v17  ;;  %v17240_v8 = vmul.f32 %v4199_v5, %v16706_v52  ;;  %v3368_v55 = vrot.slane %v17225_v51, 4  ;;  %8426 = vmatpush1.msra.mxu1 %v16035_v16 }
 0x14d   : > { %7805 = vmatmul.mubr.f32.gmra.mrb[22].mxu0 %v16527_v27  ;;  %v4176_v23 = vadd.f32 %v17112_v24, %v17109_v15  ;;  %v4235_v35 = vrot.slane %v17117_v20, %v20087_v44  ;;  %v4283_v9 = vrot.slane %v17117_v20, %v20088_v13  ;;  %v5068_v43 = vrot.slane %v17117_v20, %v20089_v41 }
 0x14e   : > { %8417 = vmatmul.mubr.f32.gmra.mrb[22].mxu1 %v16527_v27  ;;  %v3307_v19 = vadd.f32 %v3299_v12, %v3259_v6  ;;  %v3369_v33 = vmax.f32 %v17225_v51, %v3368_v55  ;;  %v5108_v16 = vrot.slane %v17117_v20, %v20090_v47  ;;  %v5156_v15 = vrot.slane %v17117_v20, %v16968_v48 }
 0x14f   : > { %7814 = vmatpush1.msra.mxu0 %v16033_v7  ;;  %v4224_v24 = vadd.f32 %v17115_v26, %v4176_v23  ;;  %v4264_v34 = vmul.f32 %v4235_v35, %v20096_v32  ;;  %v4312_v18 = vmul.f32 %v17053_v53, %v4283_v9  ;;  %v5097_v45 = vmul.f32 %v5068_v43, %v20093_v57 }
 0x150   : > { %7877 = vmatprep.mubr.f32.mxu0 %v19917_v59  ;;  %v17265_v17 = vadd.f32 %v3347_v22, %v3307_v19  ;;  %v3370_v5 = vrot.slane %v3369_v33, 2  ;;  %v5137_v12 = vmul.f32 %v5108_v16, %v20094_v30  ;;  %v5185_v6 = vmul.f32 %v5156_v15, %v20095_v25  ;;  %8489 = vmatprep.mubr.f32.mxu1 %v19917_v59 }
 0x151   : > { %7879 = vmatmul.mubr.f32.vlgmr.msra.gmra.mrb[16].mxu0 %v16456_v37  ;;  %v4272_v7 = vadd.f32 %v4264_v34, %v4224_v24  ;;  %v5204_v26 = vrot.slane %v17117_v20, %v17043_v63  ;;  %v5252_v55 = vrot.slane %v17117_v20, %v17046_v42  ;;  %v17276_v23 = vadd.f32 %v3354_v21, %v17063_v1 }
 0x152   : > { %8491 = vmatmul.mubr.f32.vlgmr.msra.gmra.mrb[16].mxu1 %v16456_v37  ;;  %v3371_v22 = vmax.f32 %v3369_v33, %v3370_v5  ;;  %v5145_v35 = vadd.f32 %v5137_v12, %v5097_v45  ;;  %v4178_v9 = vadd.f32 %v17154_v62, %v17151_v0  ;;  %v4243_v43 = vrot.slane %v17119_v39, %v20087_v44 }
 0x153   : > { %7884 = vmatprep.mubr.f32.mxu0 %v19917_v59  ;;  %v4320_v19 = vadd.f32 %v4312_v18, %v4272_v7  ;;  %v5233_v16 = vmul.f32 %v5204_v26, %v20096_v32  ;;  %v5281_v20 = vmul.f32 %v17053_v53, %v5252_v55  ;;  %v3380_v21 = vrot.slane %v17276_v23, 4  ;;  %8496 = vmatprep.mubr.f32.mxu1 %v19917_v59  ;;  %v20109_v26 = vld [vmem:[#allocation59_spill] sm:$0xff] }
 0x154   : > { %v3372_v37 = vrot.slane %v3371_v22, 1  ;;  %v5193_v33 = vadd.f32 %v5185_v6, %v5145_v35  ;;  %v4226_v15 = vadd.f32 %v17176_v2, %v4178_v9  ;;  %v4266_v62 = vmul.f32 %v4243_v43, %v20103_v38  ;;  %v20110_v35 = vld [vmem:[#allocation18_spill] sm:$0xff] }
 0x155   : > { %7886 = vmatmul.mubr.f32.gmra.mrb[18].mxu0 %v16484_v31  ;;  %v17292_v0 = vadd.f32 %v4320_v19, %v17058_v50  ;;  %v3381_v24 = vmax.f32 %v17276_v23, %v3380_v21  ;;  %v4291_v34 = vrot.slane %v17119_v39, %v20088_v13  ;;  %v5076_v18 = vrot.slane %v17119_v39, %v20089_v41 }
 0x156   : > { %8498 = vmatmul.mubr.f32.gmra.mrb[18].mxu1 %v16484_v31  ;;  %v3373_v45 = vmax.f32 %v3371_v22, %v3372_v37  ;;  %v5241_v5 = vadd.f32 %v5233_v16, %v5193_v33  ;;  %v4274_v2 = vadd.f32 %v4266_v62, %v4226_v15  ;;  %v5116_v12 = vrot.slane %v17119_v39, %v20090_v47  ;;  %v20111_v22 = vld [vmem:[#allocation19_spill] sm:$0xff] }
 0x157   : > { %7891 = vmatprep.mubr.f32.mxu0 %v19917_v59  ;;  %v4336_v6 = vrot.slane %v17292_v0, 4  ;;  %v3382_v7 = vrot.slane %v3381_v24, 2  ;;  %v4314_v55 = vmul.f32 %v20109_v26, %v4291_v34  ;;  %v5099_v9 = vmul.f32 %v5076_v18, %v20110_v35  ;;  %8503 = vmatprep.mubr.f32.mxu1 %v19917_v59 }
 0x158   : > { %v3416_v43 = vsub.f32 %v17225_v51, %v3373_v45  ;;  %v5289_v31 = vadd.f32 %v5281_v20, %v5241_v5  ;;  %v5139_v19 = vmul.f32 %v5116_v12, %v20111_v22  ;;  %v5164_v16 = vrot.slane %v17119_v39, %v16968_v48 }
 0x159   : > { %7893 = vmatmul.mubr.f32.gmra.mrb[20].mxu0 %v16519_v3  ;;  %v4337_v21 = vmax.f32 %v17292_v0, %v4336_v6  ;;  %v3383_v37 = vmax.f32 %v3381_v24, %v3382_v7  ;;  %v4322_v33 = vadd.f32 %v4314_v55, %v4274_v2  ;;  %v5212_v15 = vrot.slane %v17119_v39, %v17043_v63  ;;  %v20112_v55 = vld [vmem:[#allocation58_spill] sm:$0xff] }
 0x15a   : > { %8505 = vmatmul.mubr.f32.gmra.mrb[20].mxu1 %v16519_v3  ;;  %v3424_v62 = vmul.f32 1.442695, %v3416_v43  ;;  %v17317_v51 = vadd.f32 %v5289_v31, %v17058_v50  ;;  %v5147_v20 = vadd.f32 %v5139_v19, %v5099_v9  ;;  %v5187_v34 = vmul.f32 %v5164_v16, %v20101_v11  ;;  %7898 = vmatprep.mubr.f32.mxu0 %v19917_v59 }
 0x15b   : > { %8510 = vmatprep.mubr.f32.mxu1 %v19917_v59  ;;  %v4338_v18 = vrot.slane %v4337_v21, 2  ;;  %v3384_v45 = vrot.slane %v3383_v37, 1  ;;  %v17323_v24 = vadd.f32 %v4322_v33, %v17063_v1  ;;  %v5235_v5 = vmul.f32 %v5212_v15, %v20103_v38 }
 0x15c   : > { %15377 = vpow2.f32 %v3424_v62  ;;  %v5305_v3 = vrot.slane %v17317_v51, 4  ;;  %v5195_v2 = vadd.f32 %v5187_v34, %v5147_v20  ;;  %v5260_v50 = vrot.slane %v17119_v39, %v17046_v42  ;;  %v20113_v62 = vld [vmem:[#allocation15_spill] sm:$0xff] }
 0x15d   : > { %7900 = vmatmul.mubr.f32.gmra.mrb[22].mxu0 %v16527_v27  ;;  %v4339_v12 = vmax.f32 %v4337_v21, %v4338_v18  ;;  %v3385_v6 = vmax.f32 %v3383_v37, %v3384_v45  ;;  %v4348_v7 = vrot.slane %v17323_v24, 4  ;;  %v17333_v9 = vadd.f32 %v17237_v56, %v20112_v55 }
 0x15e   : > { %8512 = vmatmul.mubr.f32.gmra.mrb[22].mxu1 %v16527_v27  ;;  %8623 = vmatprep.mubr.f32.mxu0 %v19917_v59  ;;  %v5306_v43 = vmax.f32 %v17317_v51, %v5305_v3  ;;  %v5243_v31 = vadd.f32 %v5235_v5, %v5195_v2  ;;  %v5283_v19 = vmul.f32 %v20109_v26, %v5260_v50 }
 0x15f   : > { %v4177_v39 = vadd.f32 %v17203_v10, %v17200_v54  ;;  %9261 = vmatprep.mubr.f32.mxu1 %v19917_v59  ;;  %v4340_v16 = vrot.slane %v4339_v12, 1  ;;  %v3418_v21 = vsub.f32 %v17276_v23, %v3385_v6  ;;  %v4349_v56 = vmax.f32 %v17323_v24, %v4348_v7 }
 0x160   : > { %v3374_v37 = vrot.slane %v17333_v9, 4  ;;  %v5307_v27 = vrot.slane %v5306_v43, 2  ;;  %v5291_v33 = vadd.f32 %v5283_v19, %v5243_v31  ;;  %v4239_v20 = vrot.slane %v20113_v62, %v20087_v44 }
 0x161   : > { %v4225_v15 = vadd.f32 %v17206_v14, %v4177_v39  ;;  %v4341_v34 = vmax.f32 %v4339_v12, %v4340_v16  ;;  %v3428_v18 = vmul.f32 1.442695, %v3418_v21  ;;  %v4350_v45 = vrot.slane %v4349_v56, 2 }
 0x162   : > { %v3375_v54 = vmax.f32 %v17333_v9, %v3374_v37  ;;  %v5308_v10 = vmax.f32 %v5306_v43, %v5307_v27  ;;  %v17350_v5 = vadd.f32 %v5291_v33, %v17063_v1  ;;  %v4265_v23 = vmul.f32 %v4239_v20, %v20108_v36 }
 0x163   : > { %v4287_v3 = vrot.slane %v20113_v62, %v20088_v13  ;;  %v4384_v2 = vsub.f32 %v17292_v0, %v4341_v34  ;;  %15379 = vpow2.f32 %v3428_v18  ;;  %v4351_v14 = vmax.f32 %v4349_v56, %v4350_v45 }
 0x164   : > { %v3376_v50 = vrot.slane %v3375_v54, 2  ;;  %v5309_v6 = vrot.slane %v5308_v10, 1  ;;  %v5317_v12 = vrot.slane %v17350_v5, 4  ;;  %v4273_v7 = vadd.f32 %v4265_v23, %v4225_v15 }
 0x165   : > { %v4313_v31 = vmul.f32 %v17082_v58, %v4287_v3  ;;  %v4392_v43 = vmul.f32 1.442695, %v4384_v2  ;;  %v4352_v19 = vrot.slane %v4351_v14, 1  ;;  %v5072_v39 = vrot.slane %v20113_v62, %v20089_v41  ;;  %v20114_v3 = vld [vmem:[#allocation42_spill] sm:$0xff] }
 0x166   : > { %v3377_v1 = vmax.f32 %v3375_v54, %v3376_v50  ;;  %v17360_v16 = vpop.eup %15377  ;;  %v5310_v21 = vmax.f32 %v5308_v10, %v5309_v6  ;;  %v5318_v0 = vmax.f32 %v17350_v5, %v5317_v12  ;;  %v5112_v56 = vrot.slane %v20113_v62, %v20090_v47 }
 0x167   : > { %v4321_v37 = vadd.f32 %v4313_v31, %v4273_v7  ;;  %v3440_v27 = vrot.slane %v17360_v16, 4  ;;  %15381 = vpow2.f32 %v4392_v43  ;;  %v4353_v33 = vmax.f32 %v4351_v14, %v4352_v19 }
 0x168   : > { %v3378_v15 = vrot.slane %v3377_v1, 1  ;;  %v5353_v20 = vsub.f32 %v17317_v51, %v5310_v21  ;;  %v5319_v34 = vrot.slane %v5318_v0, 2  ;;  %v5098_v45 = vmul.f32 %v5072_v39, %v16691_v46  ;;  %v20115_v21 = vld [vmem:[#allocation12_spill] sm:$0xff] }
 0x169   : > { %v17368_v18 = vadd.f32 %v4321_v37, %v20112_v55  ;;  %v3441_v54 = vadd.f32 %v17360_v16, %v3440_v27  ;;  %v4386_v10 = vsub.f32 %v17323_v24, %v4353_v33  ;;  %v5138_v2 = vmul.f32 %v5112_v56, %v20114_v3 }
 0x16a   : > { %v3379_v23 = vmax.f32 %v3377_v1, %v3378_v15  ;;  %v5361_v50 = vmul.f32 1.442695, %v5353_v20  ;;  %v5320_v6 = vmax.f32 %v5318_v0, %v5319_v34  ;;  %v5160_v51 = vrot.slane %v20113_v62, %v16968_v48 }
 0x16b   : > { %v4342_v14 = vrot.slane %v17368_v18, 4  ;;  %v3442_v12 = vrot.slane %v3441_v54, 2  ;;  %v4396_v7 = vmul.f32 1.442695, %v4386_v10  ;;  %v5146_v43 = vadd.f32 %v5138_v2, %v5098_v45 }
 0x16c   : > { %v3417_v31 = vsub.f32 %v17333_v9, %v3379_v23  ;;  %v17378_v19 = vpop.f32.mrb[4].mxu0  ;;  %15383 = vpow2.f32 %v5361_v50  ;;  %v5321_v24 = vrot.slane %v5320_v6, 1  ;;  %v5186_v0 = vmul.f32 %v5160_v51, %v20115_v21 }
 0x16d   : > { %v17380_v39 = vpop.f32.mrb[4].mxu1  ;;  %v4343_v1 = vmax.f32 %v17368_v18, %v4342_v14  ;;  %v17384_v37 = vpop.f32.mrb[5].mxu0  ;;  %v3443_v33 = vadd.f32 %v3442_v12, %v3441_v54  ;;  %15385 = vpow2.f32 %v4396_v7  ;;  %v5208_v15 = vrot.slane %v20113_v62, %v17043_v63 }
 0x16e   : > { %v17386_v56 = vpop.f32.mrb[5].mxu1  ;;  %v17388_v27 = vpop.eup %15379  ;;  %v3426_v9 = vmul.f32 1.442695, %v3417_v31  ;;  %v5322_v34 = vmax.f32 %v5320_v6, %v5321_v24  ;;  %v5194_v10 = vadd.f32 %v5186_v0, %v5146_v43  ;;  %v5256_v50 = vrot.slane %v20113_v62, %v17046_v42  ;;  %v20116_v31 = vld [vmem:[#allocation60_spill] sm:$0xff] }
 0x16f   : > { %v3452_v20 = vrot.slane %v17388_v27, 4  ;;  %v4344_v45 = vrot.slane %v4343_v1, 2  ;;  %v3444_v23 = vrot.slane %v3443_v33, 1  ;;  %v5234_v2 = vmul.f32 %v5208_v15, %v20108_v36 }
 0x170   : > { %15387 = vpow2.f32 %v3426_v9  ;;  %v17396_v14 = vpop.f32.mrb[6].mxu0  ;;  %v5355_v12 = vsub.f32 %v17350_v5, %v5322_v34  ;;  %v17404_v6 = vadd.f32 %v17265_v17, %v20116_v31  ;;  %v5282_v15 = vmul.f32 %v17082_v58, %v5256_v50 }
 0x171   : > { %v17398_v54 = vpop.f32.mrb[6].mxu1  ;;  %v3453_v51 = vadd.f32 %v17388_v27, %v3452_v20  ;;  %v4345_v7 = vmax.f32 %v4343_v1, %v4344_v45  ;;  %v17406_v43 = vpop.f32.mrb[7].mxu0  ;;  %v3445_v62 = vadd.f32 %v3444_v23, %v3443_v33  ;;  %v5242_v9 = vadd.f32 %v5234_v2, %v5194_v10 }
 0x172   : > { %v17408_v24 = vpop.f32.mrb[7].mxu1  ;;  %v17410_v0 = vpop.eup %15381  ;;  %v4179_v20 = vadd.f32 %v17234_v28, %v17231_v40  ;;  %v5365_v34 = vmul.f32 1.442695, %v5355_v12  ;;  %v3386_v26 = vrot.slane %v17404_v6, 4  ;;  %v20118_v28 = vld [vmem:[#allocation49_spill] sm:$0xff]  ;;  %v3151_v3 = vrot.slane %v17384_v37, %v20087_v44 }
 0x173   : > { %20117 = vst [vmem:[#allocation53_spill] sm:$0xff] %v17408_v24  ;;  %v4408_v5 = vrot.slane %v17410_v0, 4  ;;  %v3454_v1 = vrot.slane %v3453_v51, 2  ;;  %v4346_v45 = vrot.slane %v4345_v7, 1  ;;  %15389 = vrcp.f32 %v3445_v62 }
 0x174   : > { %v5290_v17 = vadd.f32 %v5282_v15, %v5242_v9  ;;  %v4227_v53 = vadd.f32 %v17240_v8, %v4179_v20  ;;  %15391 = vpow2.f32 %v5365_v34  ;;  %v3387_v40 = vmax.f32 %v17404_v6, %v3386_v26 }
 0x175   : > { %v4409_v38 = vadd.f32 %v17410_v0, %v4408_v5  ;;  %v3455_v33 = vadd.f32 %v3454_v1, %v3453_v51  ;;  %v4347_v10 = vmax.f32 %v4345_v7, %v4346_v45  ;;  %v4247_v2 = vrot.slane %v20118_v28, %v20087_v44 }
 0x176   : > { %v17420_v23 = vadd.f32 %v5290_v17, %v20112_v55  ;;  %v4295_v50 = vrot.slane %v20118_v28, %v20088_v13  ;;  %v17427_v12 = vpop.eup %15383  ;;  %v5080_v51 = vrot.slane %v20118_v28, %v20089_v41  ;;  %v3388_v15 = vrot.slane %v3387_v40, 2 }
 0x177   : > { %v4410_v62 = vrot.slane %v4409_v38, 2  ;;  %v3456_v8 = vrot.slane %v3455_v33, 1  ;;  %v4385_v9 = vsub.f32 %v17368_v18, %v4347_v10  ;;  %v17432_v7 = vpop.eup %15385  ;;  %v5377_v55 = vrot.slane %v17427_v12, 4 }
 0x178   : > { %v5311_v26 = vrot.slane %v17420_v23, 4  ;;  %v4267_v20 = vmul.f32 %v4247_v2, %v16710_v49  ;;  %v4420_v34 = vrot.slane %v17432_v7, 4  ;;  %v3389_v58 = vmax.f32 %v3387_v40, %v3388_v15 }
 0x179   : > { %v4411_v5 = vadd.f32 %v4410_v62, %v4409_v38  ;;  %v3457_v1 = vadd.f32 %v3456_v8, %v3455_v33  ;;  %v4394_v45 = vmul.f32 1.442695, %v4385_v9  ;;  %v5378_v18 = vadd.f32 %v17427_v12, %v5377_v55 }
 0x17a   : > { %v17438_v17 = vpop.eup %15387  ;;  %v5312_v10 = vmax.f32 %v17420_v23, %v5311_v26  ;;  %v4275_v36 = vadd.f32 %v4267_v20, %v4227_v53  ;;  %v4421_v11 = vadd.f32 %v17432_v7, %v4420_v34  ;;  %v3390_v33 = vrot.slane %v3389_v58, 1 }
 0x17b   : > { %v4412_v32 = vrot.slane %v4411_v5, 1  ;;  %15393 = vrcp.f32 %v3457_v1  ;;  %v3446_v21 = vrot.slane %v17438_v17, 4  ;;  %v5379_v2 = vrot.slane %v5378_v18, 2 }
 0x17c   : > { %15395 = vpow2.f32 %v4394_v45  ;;  %v5313_v38 = vrot.slane %v5312_v10, 2  ;;  %v4422_v8 = vrot.slane %v4421_v11, 2  ;;  %v4315_v55 = vmul.f32 %v17093_v60, %v4295_v50 }
 0x17d   : > { %v4413_v62 = vadd.f32 %v4412_v32, %v4411_v5  ;;  %v3447_v9 = vadd.f32 %v17438_v17, %v3446_v21  ;;  %v15390_v25 = vpop.eup %15389  ;;  %v5380_v26 = vadd.f32 %v5379_v2, %v5378_v18  ;;  %v3391_v53 = vmax.f32 %v3389_v58, %v3390_v33 }
 0x17e   : > { %v5314_v40 = vmax.f32 %v5312_v10, %v5313_v38  ;;  %v5100_v15 = vmul.f32 %v5080_v51, %v16714_v4  ;;  %v17447_v20 = vpop.eup %15391  ;;  %v17450_v1 = vmul.f32 %v15390_v25, %v17360_v16  ;;  %v4423_v34 = vadd.f32 %v4422_v8, %v4421_v11  ;;  %v20143_v4 = vld [vmem:[#allocation56_spill] sm:$0xff] }
 0x17f   : > { %15397 = vrcp.f32 %v4413_v62  ;;  %v3448_v45 = vrot.slane %v3447_v9, 2  ;;  %v5381_v32 = vrot.slane %v5380_v26, 1  ;;  %v5389_v5 = vrot.slane %v17447_v20, 4 }
 0x180   : > { %20119 = vst [vmem:[#allocation54_spill] sm:$0xff] %v17450_v1  ;;  %v5315_v21 = vrot.slane %v5314_v40, 1  ;;  %v3419_v50 = vsub.f32 %v17404_v6, %v3391_v53  ;;  %v4424_v22 = vrot.slane %v4423_v34, 1  ;;  %v4323_v10 = vadd.f32 %v4315_v55, %v4275_v36 }
 0x181   : > { %v3449_v18 = vadd.f32 %v3448_v45, %v3447_v9  ;;  %v5120_v58 = vrot.slane %v20118_v28, %v20090_v47  ;;  %v5382_v51 = vadd.f32 %v5381_v32, %v5380_v26  ;;  %v5390_v2 = vadd.f32 %v17447_v20, %v5389_v5 }
 0x182   : > { %v5316_v25 = vmax.f32 %v5314_v40, %v5315_v21  ;;  %v3430_v16 = vmul.f32 1.442695, %v3419_v50  ;;  %v4425_v38 = vadd.f32 %v4424_v22, %v4423_v34  ;;  %v17458_v33 = vadd.f32 %v4323_v10, %v20116_v31 }
 0x183   : > { %v3450_v11 = vrot.slane %v3449_v18, 1  ;;  %v5140_v62 = vmul.f32 %v5120_v58, %v16718_v61  ;;  %15399 = vrcp.f32 %v5382_v51  ;;  %v5391_v6 = vrot.slane %v5390_v2, 2 }
 0x184   : > { %v5354_v8 = vsub.f32 %v17420_v23, %v5316_v25  ;;  %v5168_v36 = vrot.slane %v20118_v28, %v16968_v48  ;;  %15401 = vrcp.f32 %v4425_v38  ;;  %v4354_v26 = vrot.slane %v17458_v33, 4 }
 0x185   : > { %v15394_v9 = vpop.eup %15393  ;;  %v3451_v55 = vadd.f32 %v3450_v11, %v3449_v18  ;;  %v5148_v40 = vadd.f32 %v5140_v62, %v5100_v15  ;;  %v5392_v34 = vadd.f32 %v5391_v6, %v5390_v2  ;;  %15403 = vpow2.f32 %v3430_v16  ;;  %v20122_v6 = vld [vmem:[#allocation37_spill] sm:$0xff] }
 0x186   : > { %v17465_v22 = vpop.eup %15395  ;;  %v17468_v53 = vmul.f32 %v15394_v9, %v17388_v27  ;;  %v5363_v45 = vmul.f32 1.442695, %v5354_v8  ;;  %v4355_v32 = vmax.f32 %v17458_v33, %v4354_v26  ;;  %v5188_v5 = vmul.f32 %v5168_v36, %v16706_v52 }
 0x187   : > { %15405 = vrcp.f32 %v3451_v55  ;;  %v4414_v23 = vrot.slane %v17465_v22, 4  ;;  %v5393_v21 = vrot.slane %v5392_v34, 1  ;;  %v5216_v15 = vrot.slane %v20118_v28, %v17043_v63 }
 0x188   : > { %20120 = vst [vmem:[#allocation62_spill] sm:$0xff] %v17468_v53  ;;  %15407 = vpow2.f32 %v5363_v45  ;;  %v5264_v50 = vrot.slane %v20118_v28, %v17046_v42  ;;  %v4356_v10 = vrot.slane %v4355_v32, 2  ;;  %v5196_v58 = vadd.f32 %v5188_v5, %v5148_v40  ;;  %v20123_v40 = vld [vmem:[#allocation14_spill] sm:$0xff]  ;;  %v20124_v5 = vld [vmem:[#allocation23_spill] sm:$0xff] }
 0x189   : > { %v15398_v27 = vpop.eup %15397  ;;  %v4415_v18 = vadd.f32 %v17465_v22, %v4414_v23  ;;  %v3147_v51 = vrot.slane %v17378_v19, %v20087_v44  ;;  %v5394_v25 = vadd.f32 %v5393_v21, %v5392_v34  ;;  %v5236_v16 = vmul.f32 %v5216_v15, %v16710_v49  ;;  %v20125_v15 = vld [vmem:[#allocation36_spill] sm:$0xff] }
 0x18a   : > { %v17481_v2 = vmul.f32 %v15398_v27, %v17410_v0  ;;  %v5284_v38 = vmul.f32 %v17093_v60, %v5264_v50  ;;  %v4357_v62 = vmax.f32 %v4355_v32, %v4356_v10  ;;  %v3187_v8 = vrot.slane %v17378_v19, %v20088_v13 }
 0x18b   : > { %v4416_v11 = vrot.slane %v4415_v18, 2  ;;  %v3164_v28 = vmul.f32 %v3147_v51, %v20122_v6  ;;  %15409 = vrcp.f32 %v5394_v25  ;;  %v5244_v36 = vadd.f32 %v5236_v16, %v5196_v58 }
 0x18c   : > { %20121 = vst [vmem:[#allocation26_spill] sm:$0xff] %v17481_v2  ;;  %v3235_v9 = vrot.slane %v17378_v19, %v20089_v41  ;;  %v3283_v0 = vrot.slane %v17378_v19, %v20090_v47  ;;  %v4358_v26 = vrot.slane %v4357_v62, 1  ;;  %v3204_v34 = vmul.f32 %v3187_v8, %v20123_v40  ;;  %v20128_v8 = vld [vmem:[#allocation48_spill] sm:$0xff] }
 0x18d   : > { %v4417_v55 = vadd.f32 %v4416_v11, %v4415_v18  ;;  %v3331_v45 = vrot.slane %v17378_v19, %v16968_v48  ;;  %v15400_v23 = vpop.eup %15399  ;;  %v5292_v32 = vadd.f32 %v5284_v38, %v5244_v36  ;;  %v4115_v27 = vrot.slane %v17378_v19, %v17043_v63 }
 0x18e   : > { %v3252_v21 = vmul.f32 %v3235_v9, %v20124_v5  ;;  %v3300_v50 = vmul.f32 %v3283_v0, %v20125_v15  ;;  %v15402_v10 = vpop.eup %15401  ;;  %v17500_v58 = vmul.f32 %v15400_v23, %v17427_v12  ;;  %v4359_v51 = vmax.f32 %v4357_v62, %v4358_v26 }
 0x18f   : > { %v4418_v18 = vrot.slane %v4417_v55, 1  ;;  %v3212_v25 = vadd.f32 %v3204_v34, %v3164_v28  ;;  %v17502_v16 = vpop.eup %15403  ;;  %v17505_v11 = vmul.f32 %v15402_v10, %v17432_v7  ;;  %v17508_v38 = vadd.f32 %v5292_v32, %v20116_v31 }
 0x190   : > { %20126 = vst [vmem:[#allocation27_spill] sm:$0xff] %v17500_v58  ;;  %v3348_v36 = vmul.f32 %v20128_v8, %v3331_v45  ;;  %v17512_v9 = vmul.f32 %v4115_v27, %v20122_v6  ;;  %v3458_v12 = vrot.slane %v17502_v16, 4  ;;  %v4387_v62 = vsub.f32 %v17458_v33, %v4359_v51  ;;  %v20133_v58 = vld [vmem:[#allocation13_spill] sm:$0xff] }
 0x191   : > { %20127 = vst [vmem:[#allocation9_spill] sm:$0xff] %v17505_v11  ;;  %v15406_v0 = vpop.eup %15405  ;;  %v4419_v2 = vadd.f32 %v4418_v18, %v4417_v55  ;;  %v3260_v28 = vadd.f32 %v3252_v21, %v3212_v25  ;;  %v5323_v31 = vrot.slane %v17508_v38, 4  ;;  %v4155_v34 = vrot.slane %v17378_v19, %v17046_v42 }
 0x192   : > { %v17516_v26 = vpop.eup %15407  ;;  %v17519_v7 = vmul.f32 %v15406_v0, %v17438_v17  ;;  %v4203_v45 = vrot.slane %v17378_v19, %v17049_v29  ;;  %v3459_v23 = vadd.f32 %v17502_v16, %v3458_v12  ;;  %v4398_v33 = vmul.f32 1.442695, %v4387_v62 }
 0x193   : > { %15411 = vrcp.f32 %v4419_v2  ;;  %v5383_v55 = vrot.slane %v17516_v26, 4  ;;  %v5324_v32 = vmax.f32 %v17508_v38, %v5323_v31  ;;  %v3308_v21 = vadd.f32 %v3300_v50, %v3260_v28  ;;  %v20131_v31 = vld [vmem:[#allocation39_spill] sm:$0xff] }
 0x194   : > { %20129 = vst [vmem:[#allocation10_spill] sm:$0xff] %v17519_v7  ;;  %v17530_v17 = vmul.f32 %v4155_v34, %v20123_v40  ;;  %v17533_v27 = vmul.f32 %v4203_v45, %v20124_v5  ;;  %v3460_v18 = vrot.slane %v3459_v23, 2  ;;  %15413 = vpow2.f32 %v4398_v33 }
 0x195   : > { %v5384_v10 = vadd.f32 %v17516_v26, %v5383_v55  ;;  %v3155_v19 = vrot.slane %v17380_v39, %v20087_v44  ;;  %v15410_v2 = vpop.eup %15409  ;;  %v5325_v51 = vrot.slane %v5324_v32, 2  ;;  %v17538_v25 = vadd.f32 %v3348_v36, %v3308_v21  ;;  %v20132_v55 = vld [vmem:[#allocation52_spill] sm:$0xff] }
 0x196   : > { %v3195_v50 = vrot.slane %v17380_v39, %v20088_v13  ;;  %v3243_v0 = vrot.slane %v17380_v39, %v20089_v41  ;;  %v17545_v12 = vmul.f32 %v15410_v2, %v17447_v20  ;;  %v3461_v28 = vadd.f32 %v3460_v18, %v3459_v23  ;;  %v20134_v18 = vld [vmem:[#allocation38_spill] sm:$0xff] }
 0x197   : > { %v5385_v62 = vrot.slane %v5384_v10, 2  ;;  %v3166_v34 = vmul.f32 %v3155_v19, %v20131_v31  ;;  %v5326_v45 = vmax.f32 %v5324_v32, %v5325_v51  ;;  %v3291_v36 = vrot.slane %v17380_v39, %v20090_v47 }
 0x198   : > { %20130 = vst [vmem:[#allocation11_spill] sm:$0xff] %v17545_v12  ;;  %v3206_v33 = vmul.f32 %v3195_v50, %v20132_v55  ;;  %v3254_v11 = vmul.f32 %v3243_v0, %v20133_v58  ;;  %v3462_v60 = vrot.slane %v3461_v28, 1  ;;  %v3339_v49 = vrot.slane %v17380_v39, %v16968_v48  ;;  %v20135_v0 = vld [vmem:[#allocation50_spill] sm:$0xff] }
 0x199   : > { %v5386_v21 = vadd.f32 %v5385_v62, %v5384_v10  ;;  %v4123_v20 = vrot.slane %v17380_v39, %v17043_v63  ;;  %v5327_v2 = vrot.slane %v5326_v45, 1  ;;  %v3302_v19 = vmul.f32 %v3291_v36, %v20134_v18 }
 0x19a   : > { %v3214_v23 = vadd.f32 %v3206_v33, %v3166_v34  ;;  %v4163_v32 = vrot.slane %v17380_v39, %v17046_v42  ;;  %v3463_v50 = vadd.f32 %v3462_v60, %v3461_v28  ;;  %v3350_v12 = vmul.f32 %v20135_v0, %v3339_v49 }
 0x19b   : > { %v5387_v51 = vrot.slane %v5386_v21, 1  ;;  %v17561_v10 = vmul.f32 %v4123_v20, %v20131_v31  ;;  %v5328_v62 = vmax.f32 %v5326_v45, %v5327_v2  ;;  %v4211_v34 = vrot.slane %v17380_v39, %v17049_v29  ;;  %v20137_v39 = vld [vmem:[#allocation32_spill] sm:$0xff]  ;;  %v20138_v2 = vld [vmem:[#allocation33_spill] sm:$0xff] }
 0x19c   : > { %v3262_v52 = vadd.f32 %v3254_v11, %v3214_v23  ;;  %v17564_v61 = vmul.f32 %v4163_v32, %v20132_v55  ;;  %15415 = vrcp.f32 %v3463_v50  ;;  %v3191_v49 = vrot.slane %v17384_v37, %v20088_v13 }
 0x19d   : > { %v15412_v33 = vpop.eup %15411  ;;  %v5388_v36 = vadd.f32 %v5387_v51, %v5386_v21  ;;  %v5356_v11 = vsub.f32 %v17508_v38, %v5328_v62  ;;  %v17577_v45 = vmul.f32 %v4211_v34, %v20133_v58  ;;  %v3165_v21 = vmul.f32 %v3151_v3, %v20137_v39 }
 0x19e   : > { %v17573_v60 = vmul.f32 %v15412_v33, %v17465_v22  ;;  %v3310_v28 = vadd.f32 %v3302_v19, %v3262_v52  ;;  %v17579_v20 = vpop.eup %15413  ;;  %v3205_v23 = vmul.f32 %v3191_v49, %v20138_v2  ;;  %v3239_v32 = vrot.slane %v17384_v37, %v20089_v41  ;;  %v20139_v19 = vld [vmem:[#allocation51_spill] sm:$0xff] }
 0x19f   : > { %15417 = vrcp.f32 %v5388_v36  ;;  %v4426_v51 = vrot.slane %v17579_v20, 4  ;;  %v5367_v22 = vmul.f32 1.442695, %v5356_v11  ;;  %v3287_v52 = vrot.slane %v17384_v37, %v20090_v47  ;;  %v20140_v36 = vld [vmem:[#allocation31_spill] sm:$0xff] }
 0x1a0   : > { %20136 = vst [vmem:[#allocation58_spill] sm:$0xff] %v17573_v60  ;;  %v17586_v50 = vadd.f32 %v3350_v12, %v3310_v28  ;;  %v3213_v38 = vadd.f32 %v3205_v23, %v3165_v21  ;;  %v3253_v62 = vmul.f32 %v3239_v32, %v20139_v19  ;;  %v3335_v34 = vrot.slane %v17384_v37, %v16968_v48  ;;  %v20141_v28 = vld [vmem:[#allocation29_spill] sm:$0xff] }
 0x1a1   : > { %v4119_v3 = vrot.slane %v17384_v37, %v17043_v63  ;;  %v4427_v33 = vadd.f32 %v17579_v20, %v4426_v51  ;;  %15419 = vpow2.f32 %v5367_v22  ;;  %v3301_v49 = vmul.f32 %v3287_v52, %v20140_v36 }
 0x1a2   : > { %v4159_v12 = vrot.slane %v17384_v37, %v17046_v42  ;;  %v3261_v11 = vadd.f32 %v3253_v62, %v3213_v38  ;;  %v3349_v60 = vmul.f32 %v20141_v28, %v3335_v34  ;;  %v4207_v23 = vrot.slane %v17384_v37, %v17049_v29 }
 0x1a3   : > { %v17601_v21 = vmul.f32 %v4119_v3, %v20137_v39  ;;  %v4428_v32 = vrot.slane %v4427_v33, 2  ;;  %v3159_v51 = vrot.slane %v17386_v56, %v20087_v44  ;;  %v3199_v22 = vrot.slane %v17386_v56, %v20088_v13  ;;  %v20142_v3 = vld [vmem:[#allocation30_spill] sm:$0xff] }
 0x1a4   : > { %v17606_v30 = vmul.f32 %v4159_v12, %v20138_v2  ;;  %v3309_v52 = vadd.f32 %v3301_v49, %v3261_v11  ;;  %v17613_v38 = vmul.f32 %v4207_v23, %v20139_v19  ;;  %v3247_v62 = vrot.slane %v17386_v56, %v20089_v41  ;;  %v20144_v49 = vld [vmem:[#allocation34_spill] sm:$0xff]  ;;  %v20145_v23 = vld [vmem:[#allocation55_spill] sm:$0xff] }
 0x1a5   : > { %v3295_v37 = vrot.slane %v17386_v56, %v20090_v47  ;;  %v4429_v34 = vadd.f32 %v4428_v32, %v4427_v33  ;;  %v3167_v12 = vmul.f32 %v3159_v51, %v20142_v3  ;;  %v3207_v53 = vmul.f32 %v3199_v22, %v20143_v4  ;;  %v20147_v51 = vld [vmem:[#allocation28_spill] sm:$0xff] }
 0x1a6   : > { %v3343_v35 = vrot.slane %v17386_v56, %v16968_v48  ;;  %v15416_v7 = vpop.eup %15415  ;;  %v17623_v46 = vadd.f32 %v3349_v60, %v3309_v52  ;;  %v3255_v11 = vmul.f32 %v3247_v62, %v20144_v49  ;;  %v4127_v57 = vrot.slane %v17386_v56, %v17043_v63 }
 0x1a7   : > { %v3303_v1 = vmul.f32 %v3295_v37, %v20145_v23  ;;  %v17630_v24 = vmul.f32 %v15416_v7, %v17502_v16  ;;  %v4430_v33 = vrot.slane %v4429_v34, 1  ;;  %v3215_v32 = vadd.f32 %v3207_v53, %v3167_v12 }
 0x1a8   : > { %v3351_v22 = vmul.f32 %v20147_v51, %v3343_v35  ;;  %v17634_v2 = vmul.f32 %v4127_v57, %v20142_v3  ;;  %v4167_v60 = vrot.slane %v17386_v56, %v17046_v42  ;;  %v4215_v52 = vrot.slane %v17386_v56, %v17049_v29 }
 0x1a9   : > { %20146 = vst [vmem:[#allocation15_spill] sm:$0xff] %v17630_v24  ;;  %v15418_v19 = vpop.eup %15417  ;;  %v17643_v37 = vsel %vm16833_vm5, -1e+30, %v19917_v59  ;;  %v4431_v53 = vadd.f32 %v4430_v33, %v4429_v34  ;;  %v3263_v35 = vadd.f32 %v3255_v11, %v3215_v32  ;;  %v4180_v29 = vadd.f32 %v17530_v17, %v17512_v9 }
 0x1aa   : > { %v17646_v16 = vmul.f32 %v15418_v19, %v17516_v26  ;;  %v17650_v57 = vadd.f32 %v17538_v25, %v17643_v37  ;;  %v17653_v7 = vmul.f32 %v4167_v60, %v20143_v4  ;;  %v17656_v12 = vmul.f32 %v4215_v52, %v20144_v49 }
 0x1ab   : > { %v4251_v56 = vrot.slane %v17396_v14, %v20087_v44  ;;  %v17662_v26 = vpop.eup %15419  ;;  %15421 = vrcp.f32 %v4431_v53  ;;  %v3311_v19 = vadd.f32 %v3303_v1, %v3263_v35  ;;  %v4299_v25 = vrot.slane %v17396_v14, %v20088_v13 }
 0x1ac   : > { %20149 = vst [vmem:[#allocation60_spill] sm:$0xff] %v17646_v16  ;;  %v3392_v34 = vrot.slane %v17650_v57, 4  ;;  %v5395_v11 = vrot.slane %v17662_v26, 4  ;;  %v4228_v33 = vadd.f32 %v17533_v27, %v4180_v29  ;;  %v5084_v9 = vrot.slane %v17396_v14, %v20089_v41 }
 0x1ad   : > { %v4268_v32 = vmul.f32 %v4251_v56, %v20125_v15  ;;  %v17672_v17 = vadd.f32 %v3351_v22, %v3311_v19  ;;  %v4316_v1 = vmul.f32 %v20128_v8, %v4299_v25  ;;  %v5124_v52 = vrot.slane %v17396_v14, %v20090_v47 }
 0x1ae   : > { %v3393_v60 = vmax.f32 %v17650_v57, %v3392_v34  ;;  %v5396_v62 = vadd.f32 %v17662_v26, %v5395_v11  ;;  %v5101_v35 = vmul.f32 %v5084_v9, %v20122_v6  ;;  %v5172_v27 = vrot.slane %v17396_v14, %v16968_v48 }
 0x1af   : > { %v4276_v53 = vadd.f32 %v4268_v32, %v4228_v33  ;;  %v5141_v56 = vmul.f32 %v5124_v52, %v20123_v40  ;;  %v5220_v22 = vrot.slane %v17396_v14, %v17043_v63  ;;  %v5268_v19 = vrot.slane %v17396_v14, %v17046_v42 }
 0x1b0   : > { %v3394_v29 = vrot.slane %v3393_v60, 2  ;;  %v5397_v34 = vrot.slane %v5396_v62, 2  ;;  %v5189_v16 = vmul.f32 %v5172_v27, %v20124_v5  ;;  %v17691_v33 = vsel %vm16849_vm1, -1e+30, %v19917_v59 }
 0x1b1   : > { %v4324_v25 = vadd.f32 %v4316_v1, %v4276_v53  ;;  %v5149_v9 = vadd.f32 %v5141_v56, %v5101_v35  ;;  %v5237_v6 = vmul.f32 %v5220_v22, %v20125_v15  ;;  %v5285_v52 = vmul.f32 %v20128_v8, %v5268_v19 }
 0x1b2   : > { %v3395_v32 = vmax.f32 %v3393_v60, %v3394_v29  ;;  %v5398_v40 = vadd.f32 %v5397_v34, %v5396_v62  ;;  %v17700_v14 = vadd.f32 %v17586_v50, %v17691_v33  ;;  %v4182_v1 = vadd.f32 %v17564_v61, %v17561_v10 }
 0x1b3   : > { %v17696_v24 = vadd.f32 %v4324_v25, %v17643_v37  ;;  %v5197_v27 = vadd.f32 %v5189_v16, %v5149_v9  ;;  %v4259_v60 = vrot.slane %v17398_v54, %v20087_v44  ;;  %v4307_v35 = vrot.slane %v17398_v54, %v20088_v13 }
 0x1b4   : > { %v3396_v53 = vrot.slane %v3395_v32, 1  ;;  %v5399_v29 = vrot.slane %v5398_v40, 1  ;;  %v3404_v56 = vrot.slane %v17700_v14, 4  ;;  %v4230_v22 = vadd.f32 %v17577_v45, %v4182_v1 }
 0x1b5   : > { %v4360_v62 = vrot.slane %v17696_v24, 4  ;;  %v15422_v50 = vpop.eup %15421  ;;  %v5245_v34 = vadd.f32 %v5237_v6, %v5197_v27  ;;  %v4270_v61 = vmul.f32 %v4259_v60, %v20134_v18  ;;  %v4318_v10 = vmul.f32 %v20135_v0, %v4307_v35 }
 0x1b6   : > { %v3397_v19 = vmax.f32 %v3395_v32, %v3396_v53  ;;  %v17714_v16 = vmul.f32 %v15422_v50, %v17579_v20  ;;  %v5400_v25 = vadd.f32 %v5399_v29, %v5398_v40  ;;  %v3405_v9 = vmax.f32 %v17700_v14, %v3404_v56 }
 0x1b7   : > { %v4361_v11 = vmax.f32 %v17696_v24, %v4360_v62  ;;  %v5293_v15 = vadd.f32 %v5285_v52, %v5245_v34  ;;  %v4278_v5 = vadd.f32 %v4270_v61, %v4230_v22  ;;  %v5092_v45 = vrot.slane %v17398_v54, %v20089_v41 }
 0x1b8   : > { %v3420_v8 = vsub.f32 %v17650_v57, %v3397_v19  ;;  %15423 = vrcp.f32 %v5400_v25  ;;  %v3406_v32 = vrot.slane %v3405_v9, 2  ;;  %v5132_v1 = vrot.slane %v17398_v54, %v20090_v47 }
 0x1b9   : > { %v4362_v6 = vrot.slane %v4361_v11, 2  ;;  %v17724_v40 = vadd.f32 %v5293_v15, %v17643_v37  ;;  %v4326_v53 = vadd.f32 %v4318_v10, %v4278_v5  ;;  %v5103_v27 = vmul.f32 %v5092_v45, %v20131_v31 }
 0x1ba   : > { %v3432_v20 = vmul.f32 1.442695, %v3420_v8  ;;  %v3407_v57 = vmax.f32 %v3405_v9, %v3406_v32  ;;  %v5143_v52 = vmul.f32 %v5132_v1, %v20132_v55  ;;  %v5180_v35 = vrot.slane %v17398_v54, %v16968_v48 }
 0x1bb   : > { %v4363_v60 = vmax.f32 %v4361_v11, %v4362_v6  ;;  %v5329_v29 = vrot.slane %v17724_v40, 4  ;;  %v17732_v62 = vadd.f32 %v4326_v53, %v17691_v33  ;;  %v5228_v15 = vrot.slane %v17398_v54, %v17043_v63 }
 0x1bc   : > { %15425 = vpow2.f32 %v3432_v20  ;;  %v3408_v5 = vrot.slane %v3407_v57, 1  ;;  %v5151_v37 = vadd.f32 %v5143_v52, %v5103_v27  ;;  %v5191_v56 = vmul.f32 %v5180_v35, %v20133_v58 }
 0x1bd   : > { %v4364_v8 = vrot.slane %v4363_v60, 1  ;;  %v5330_v22 = vmax.f32 %v17724_v40, %v5329_v29  ;;  %v4372_v50 = vrot.slane %v17732_v62, 4  ;;  %v5239_v19 = vmul.f32 %v5228_v15, %v20134_v18 }
 0x1be   : > { %v5276_v34 = vrot.slane %v17398_v54, %v17046_v42  ;;  %v3409_v10 = vmax.f32 %v3407_v57, %v3408_v5  ;;  %v5199_v25 = vadd.f32 %v5191_v56, %v5151_v37  ;;  %v17745_v9 = vsel %vm16871_vm10, -1e+30, %v19917_v59 }
 0x1bf   : > { %v4365_v61 = vmax.f32 %v4363_v60, %v4364_v8  ;;  %v5331_v45 = vrot.slane %v5330_v22, 2  ;;  %v4373_v6 = vmax.f32 %v17732_v62, %v4372_v50  ;;  %v17751_v1 = vadd.f32 %v17623_v46, %v17745_v9 }
 0x1c0   : > { %v5287_v32 = vmul.f32 %v20135_v0, %v5276_v34  ;;  %v3422_v54 = vsub.f32 %v17700_v14, %v3409_v10  ;;  %v5247_v53 = vadd.f32 %v5239_v19, %v5199_v25  ;;  %v4181_v27 = vadd.f32 %v17606_v30, %v17601_v21 }
 0x1c1   : > { %v4388_v20 = vsub.f32 %v17696_v24, %v4365_v61  ;;  %v5332_v60 = vmax.f32 %v5330_v22, %v5331_v45  ;;  %v4374_v57 = vrot.slane %v4373_v6, 2  ;;  %v3398_v52 = vrot.slane %v17751_v1, 4 }
 0x1c2   : > { %v4255_v35 = vrot.slane %v17406_v43, %v20087_v44  ;;  %v15424_v29 = vpop.eup %15423  ;;  %v3436_v8 = vmul.f32 1.442695, %v3422_v54  ;;  %v5295_v46 = vadd.f32 %v5287_v32, %v5247_v53  ;;  %v4229_v5 = vadd.f32 %v17613_v38, %v4181_v27 }
 0x1c3   : > { %v4400_v15 = vmul.f32 1.442695, %v4388_v20  ;;  %v17762_v24 = vmul.f32 %v15424_v29, %v17662_v26  ;;  %v5333_v14 = vrot.slane %v5332_v60, 1  ;;  %v4375_v37 = vmax.f32 %v4373_v6, %v4374_v57 }
 0x1c4   : > { %v3399_v30 = vmax.f32 %v17751_v1, %v3398_v52  ;;  %v17766_v21 = vadd.f32 %v5295_v46, %v17691_v33  ;;  %v4269_v56 = vmul.f32 %v4255_v35, %v20140_v36  ;;  %v4303_v22 = vrot.slane %v17406_v43, %v20088_v13 }
 0x1c5   : > { %20152 = vst [vmem:[#allocation49_spill] sm:$0xff] %v17762_v24  ;;  %15427 = vpow2.f32 %v4400_v15  ;;  %v5334_v19 = vmax.f32 %v5332_v60, %v5333_v14  ;;  %v4376_v38 = vrot.slane %v4375_v37, 1  ;;  %v5088_v6 = vrot.slane %v17406_v43, %v20089_v41  ;;  %v20153_v15 = vld [vmem:[#allocation33_spill] sm:$0xff] }
 0x1c6   : > { %v17771_v50 = vpop.eup %15425  ;;  %15429 = vpow2.f32 %v3436_v8  ;;  %v3400_v26 = vrot.slane %v3399_v30, 2  ;;  %v5341_v61 = vrot.slane %v17766_v21, 4  ;;  %v4277_v10 = vadd.f32 %v4269_v56, %v4229_v5 }
 0x1c7   : > { %v3464_v34 = vrot.slane %v17771_v50, 4  ;;  %v4317_v25 = vmul.f32 %v20141_v28, %v4303_v22  ;;  %v5357_v33 = vsub.f32 %v17724_v40, %v5334_v19  ;;  %v4377_v11 = vmax.f32 %v4375_v37, %v4376_v38  ;;  %v20154_v19 = vld [vmem:[#allocation51_spill] sm:$0xff] }
 0x1c8   : > { %v3401_v45 = vmax.f32 %v3399_v30, %v3400_v26  ;;  %v5342_v20 = vmax.f32 %v17766_v21, %v5341_v61  ;;  %v5128_v53 = vrot.slane %v17406_v43, %v20090_v47  ;;  %v5102_v52 = vmul.f32 %v5088_v6, %v20137_v39 }
 0x1c9   : > { %v3465_v32 = vadd.f32 %v17771_v50, %v3464_v34  ;;  %v4325_v54 = vadd.f32 %v4317_v25, %v4277_v10  ;;  %v5369_v27 = vmul.f32 1.442695, %v5357_v33  ;;  %v4390_v60 = vsub.f32 %v17732_v62, %v4377_v11 }
 0x1ca   : > { %v3402_v57 = vrot.slane %v3401_v45, 1  ;;  %v5343_v35 = vrot.slane %v5342_v20, 2  ;;  %v5142_v8 = vmul.f32 %v5128_v53, %v20153_v15  ;;  %v5176_v14 = vrot.slane %v17406_v43, %v16968_v48 }
 0x1cb   : > { %v3466_v40 = vrot.slane %v3465_v32, 2  ;;  %v17786_v29 = vadd.f32 %v4325_v54, %v17745_v9  ;;  %15431 = vpow2.f32 %v5369_v27  ;;  %v4404_v46 = vmul.f32 1.442695, %v4390_v60 }
 0x1cc   : > { %v3403_v5 = vmax.f32 %v3401_v45, %v3402_v57  ;;  %v5344_v30 = vmax.f32 %v5342_v20, %v5343_v35  ;;  %v5150_v56 = vadd.f32 %v5142_v8, %v5102_v52  ;;  %v5190_v38 = vmul.f32 %v5176_v14, %v20154_v19 }
 0x1cd   : > { %v3467_v37 = vadd.f32 %v3466_v40, %v3465_v32  ;;  %v4366_v62 = vrot.slane %v17786_v29, 4  ;;  %15433 = vpow2.f32 %v4404_v46  ;;  %v5224_v26 = vrot.slane %v17406_v43, %v17043_v63 }
 0x1ce   : > { %v3421_v22 = vsub.f32 %v17751_v1, %v3403_v5  ;;  %v5345_v10 = vrot.slane %v5344_v30, 1  ;;  %v5272_v33 = vrot.slane %v17406_v43, %v17046_v42  ;;  %v5198_v1 = vadd.f32 %v5190_v38, %v5150_v56 }
 0x1cf   : > { %v17796_v34 = vpop.eup %15427  ;;  %v3468_v61 = vrot.slane %v3467_v37, 1  ;;  %v4367_v25 = vmax.f32 %v17786_v29, %v4366_v62  ;;  %v5238_v32 = vmul.f32 %v5224_v26, %v20140_v36  ;;  %v17813_v14 = vsel %vm16881_vm15, -1e+30, %v19917_v59 }
 0x1d0   : > { %v17801_v11 = vpop.eup %15429  ;;  %v4432_v45 = vrot.slane %v17796_v34, 4  ;;  %v3434_v6 = vmul.f32 1.442695, %v3421_v22  ;;  %v5346_v53 = vmax.f32 %v5344_v30, %v5345_v10  ;;  %v5286_v52 = vmul.f32 %v20141_v28, %v5272_v33  ;;  %v20156_v10 = vld [vmem:[#allocation53_spill] sm:$0xff] }
 0x1d1   : > { %v3469_v20 = vadd.f32 %v3468_v61, %v3467_v37  ;;  %v3476_v54 = vrot.slane %v17801_v11, 4  ;;  %v4368_v27 = vrot.slane %v4367_v25, 2  ;;  %v5246_v57 = vadd.f32 %v5238_v32, %v5198_v1 }
 0x1d2   : > { %v4433_v60 = vadd.f32 %v17796_v34, %v4432_v45  ;;  %15435 = vpow2.f32 %v3434_v6  ;;  %v5359_v40 = vsub.f32 %v17766_v21, %v5346_v53  ;;  %v4183_v37 = vadd.f32 %v17653_v7, %v17634_v2 }
 0x1d3   : > { %15437 = vrcp.f32 %v3469_v20  ;;  %v3477_v43 = vadd.f32 %v17801_v11, %v3476_v54  ;;  %v4369_v35 = vmax.f32 %v4367_v25, %v4368_v27  ;;  %v5294_v46 = vadd.f32 %v5286_v52, %v5246_v57 }
 0x1d4   : > { %v4434_v8 = vrot.slane %v4433_v60, 2  ;;  %v5373_v62 = vmul.f32 1.442695, %v5359_v40  ;;  %v17819_v22 = vadd.f32 %v17672_v17, %v17813_v14  ;;  %v4231_v61 = vadd.f32 %v17656_v12, %v4183_v37 }
 0x1d5   : > { %v3478_v30 = vrot.slane %v3477_v43, 2  ;;  %v4370_v56 = vrot.slane %v4369_v35, 1  ;;  %v17821_v38 = vpop.eup %15431  ;;  %v17824_v26 = vadd.f32 %v5294_v46, %v17745_v9  ;;  %v4263_v25 = vrot.slane %v20156_v10, %v20087_v44 }
 0x1d6   : > { %v4435_v21 = vadd.f32 %v4434_v8, %v4433_v60  ;;  %v5401_v2 = vrot.slane %v17821_v38, 4  ;;  %15439 = vpow2.f32 %v5373_v62  ;;  %v3410_v1 = vrot.slane %v17819_v22, 4 }
 0x1d7   : > { %v3479_v7 = vadd.f32 %v3478_v30, %v3477_v43  ;;  %v4371_v33 = vmax.f32 %v4369_v35, %v4370_v56  ;;  %v17830_v45 = vpop.eup %15433  ;;  %v5335_v6 = vrot.slane %v17824_v26, 4  ;;  %v4271_v9 = vmul.f32 %v4263_v25, %v20145_v23 }
 0x1d8   : > { %v4436_v17 = vrot.slane %v4435_v21, 1  ;;  %v5402_v32 = vadd.f32 %v17821_v38, %v5401_v2  ;;  %v4444_v20 = vrot.slane %v17830_v45, 4  ;;  %v3411_v60 = vmax.f32 %v17819_v22, %v3410_v1 }
 0x1d9   : > { %v3480_v12 = vrot.slane %v3479_v7, 1  ;;  %v4389_v54 = vsub.f32 %v17786_v29, %v4371_v33  ;;  %v5336_v27 = vmax.f32 %v17824_v26, %v5335_v6  ;;  %v4279_v57 = vadd.f32 %v4271_v9, %v4231_v61 }
 0x1da   : > { %v4437_v53 = vadd.f32 %v4436_v17, %v4435_v21  ;;  %v5403_v52 = vrot.slane %v5402_v32, 2  ;;  %v4445_v40 = vadd.f32 %v17830_v45, %v4444_v20  ;;  %v3412_v5 = vrot.slane %v3411_v60, 2 }
 0x1db   : > { %v3481_v43 = vadd.f32 %v3480_v12, %v3479_v7  ;;  %v4402_v35 = vmul.f32 1.442695, %v4389_v54  ;;  %v5337_v46 = vrot.slane %v5336_v27, 2  ;;  %v4311_v37 = vrot.slane %v20156_v10, %v20088_v13 }
 0x1dc   : > { %v17841_v8 = vpop.eup %15435  ;;  %15441 = vrcp.f32 %v4437_v53  ;;  %v5404_v30 = vadd.f32 %v5403_v52, %v5402_v32  ;;  %v4446_v62 = vrot.slane %v4445_v40, 2  ;;  %v3413_v25 = vmax.f32 %v3411_v60, %v3412_v5 }
 0x1dd   : > { %v15438_v29 = vpop.eup %15437  ;;  %15443 = vrcp.f32 %v3481_v43  ;;  %v3470_v56 = vrot.slane %v17841_v8, 4  ;;  %v5338_v61 = vmax.f32 %v5336_v27, %v5337_v46  ;;  %v4319_v17 = vmul.f32 %v20147_v51, %v4311_v37 }
 0x1de   : > { %v17847_v21 = vmul.f32 %v15438_v29, %v17771_v50  ;;  %15445 = vpow2.f32 %v4402_v35  ;;  %v5405_v2 = vrot.slane %v5404_v30, 1  ;;  %v4447_v7 = vadd.f32 %v4446_v62, %v4445_v40 }
 0x1df   : > { %v3471_v33 = vadd.f32 %v17841_v8, %v3470_v56  ;;  %v5339_v6 = vrot.slane %v5338_v61, 1  ;;  %v3414_v13 = vrot.slane %v3413_v25, 1  ;;  %v5096_v1 = vrot.slane %v20156_v10, %v20089_v41 }
 0x1e0   : > { %v5136_v9 = vrot.slane %v20156_v10, %v20090_v47  ;;  %v17855_v32 = vpop.eup %15439  ;;  %v5406_v50 = vadd.f32 %v5405_v2, %v5404_v30  ;;  %v4448_v12 = vrot.slane %v4447_v7, 1  ;;  %v4327_v54 = vadd.f32 %v4319_v17, %v4279_v57 }
 0x1e1   : > { %v3472_v20 = vrot.slane %v3471_v33, 2  ;;  %v5413_v53 = vrot.slane %v17855_v32, 4  ;;  %v5340_v27 = vmax.f32 %v5338_v61, %v5339_v6  ;;  %v3415_v60 = vmax.f32 %v3413_v25, %v3414_v13 }
 0x1e2   : > { %v5104_v52 = vmul.f32 %v5096_v1, %v20142_v3  ;;  %15447 = vrcp.f32 %v5406_v50  ;;  %v4449_v43 = vadd.f32 %v4448_v12, %v4447_v7  ;;  %v17860_v41 = vadd.f32 %v4327_v54, %v17813_v14 }
 0x1e3   : > { %v3473_v40 = vadd.f32 %v3472_v20, %v3471_v33  ;;  %v5414_v47 = vadd.f32 %v17855_v32, %v5413_v53  ;;  %v5358_v35 = vsub.f32 %v17824_v26, %v5340_v27  ;;  %v3423_v46 = vsub.f32 %v17819_v22, %v3415_v60  ;;  %v20158_v53 = vld [vmem:[#allocation24_spill] sm:$0xff]  ;;  %v20159_v27 = vld [vmem:[#allocation54_spill] sm:$0xff] }
 0x1e4   : > { %v5144_v57 = vmul.f32 %v5136_v9, %v20143_v4  ;;  %15449 = vrcp.f32 %v4449_v43  ;;  %v4378_v37 = vrot.slane %v17860_v41, 4  ;;  %v5184_v29 = vrot.slane %v20156_v10, %v16968_v48 }
 0x1e5   : > { %v3474_v5 = vrot.slane %v3473_v40, 1  ;;  %v5415_v62 = vrot.slane %v5414_v47, 2  ;;  %v5371_v56 = vmul.f32 1.442695, %v5358_v35  ;;  %v3438_v61 = vmul.f32 1.442695, %v3423_v46 }
 0x1e6   : > { %v15442_v30 = vpop.eup %15441  ;;  %v5152_v25 = vadd.f32 %v5144_v57, %v5104_v52  ;;  %v4379_v22 = vmax.f32 %v17860_v41, %v4378_v37  ;;  %v5192_v33 = vmul.f32 %v5184_v29, %v20144_v49  ;;  %v5232_v13 = vrot.slane %v20156_v10, %v17043_v63  ;;  %v20160_v52 = vld [vmem:[#allocation40_spill] sm:$0xff]  ;;  %v20161_v63 = vld [vmem:[#allocation10_spill] sm:$0xff] }
 0x1e7   : > { %v15444_v2 = vpop.eup %15443  ;;  %v17870_v7 = vmul.f32 %v15442_v30, %v17796_v34  ;;  %v3475_v26 = vadd.f32 %v3474_v5, %v3473_v40  ;;  %v5416_v48 = vadd.f32 %v5415_v62, %v5414_v47  ;;  %15451 = vpow2.f32 %v5371_v56  ;;  %v20162_v46 = vld [vmem:[#allocation18_spill] sm:$0xff]  ;;  %v20166_v56 = vld [vmem:[#allocation37_spill] sm:$0xff] }
 0x1e8   : > { %v17874_v17 = vpop.eup %15445  ;;  %v17877_v6 = vmul.f32 %v15444_v2, %v17801_v11  ;;  %v4380_v34 = vrot.slane %v4379_v22, 2  ;;  %v5200_v9 = vadd.f32 %v5192_v33, %v5152_v25  ;;  %v5240_v12 = vmul.f32 %v5232_v13, %v20145_v23  ;;  %v20163_v57 = vld [vmem:[#allocation62_spill] sm:$0xff] }
 0x1e9   : > { %20157 = vst [vmem:[#allocation13_spill] sm:$0xff] %v17870_v7  ;;  %15453 = vrcp.f32 %v3475_v26  ;;  %v4438_v1 = vrot.slane %v17874_v17, 4  ;;  %v5417_v50 = vrot.slane %v5416_v48, 1  ;;  %v5280_v20 = vrot.slane %v20156_v10, %v17046_v42  ;;  %v20164_v42 = vld [vmem:[#allocation45_spill] sm:$0xff]  ;;  %v20165_v10 = vld [vmem:[#allocation15_spill] sm:$0xff] }
 0x1ea   : > { %15455 = vpow2.f32 %v3438_v61  ;;  %v4381_v54 = vmax.f32 %v4379_v22, %v4380_v34  ;;  %v3512_v60 = vmul.f32 %v20159_v27, %v20158_v53  ;;  %v3513_v43 = vmul.f32 %v20161_v63, %v20160_v52 }
 0x1eb   : > { %v4439_v11 = vadd.f32 %v17874_v17, %v4438_v1  ;;  %v5418_v40 = vadd.f32 %v5417_v50, %v5416_v48  ;;  %v5248_v47 = vadd.f32 %v5240_v12, %v5200_v9  ;;  %v5288_v35 = vmul.f32 %v20147_v51, %v5280_v20 }
 0x1ec   : > { %v3514_v5 = vmul.f32 %v20163_v57, %v20162_v46  ;;  %v15448_v37 = vpop.eup %15447  ;;  %v4382_v30 = vrot.slane %v4381_v54, 1  ;;  %v3515_v62 = vmul.f32 %v20165_v10, %v20164_v42  ;;  %v3516_v61 = vmul.f32 %v17847_v21, %v20166_v56 }
 0x1ed   : > { %v4440_v29 = vrot.slane %v4439_v11, 2  ;;  %v17898_v25 = vmul.f32 %v15448_v37, %v17821_v38  ;;  %15457 = vrcp.f32 %v5418_v40  ;;  %v5296_v2 = vadd.f32 %v5288_v35, %v5248_v47 }
 0x1ee   : > { %v17902_v26 = vmul.f32 %v17877_v6, %v20131_v31  ;;  %v15450_v22 = vpop.eup %15449  ;;  %v4383_v48 = vmax.f32 %v4381_v54, %v4382_v30  ;;  %v3520_v13 = vrot.slane %v3512_v60, 4  ;;  %v3526_v1 = vrot.slane %v3513_v43, 4 }
 0x1ef   : > { %20167 = vst [vmem:[#allocation50_spill] sm:$0xff] %v17898_v25  ;;  %v4441_v33 = vadd.f32 %v4440_v29, %v4439_v11  ;;  %v17905_v34 = vmul.f32 %v15450_v22, %v17830_v45  ;;  %v17908_v9 = vadd.f32 %v5296_v2, %v17813_v14  ;;  %v3532_v50 = vrot.slane %v3514_v5, 4 }
 0x1f0   : > { %v3538_v38 = vrot.slane %v3515_v62, 4  ;;  %v4391_v20 = vsub.f32 %v17860_v41, %v4383_v48  ;;  %v3521_v40 = vadd.f32 %v3520_v13, %v3512_v60  ;;  %v3527_v47 = vadd.f32 %v3526_v1, %v3513_v43 }
 0x1f1   : > { %20168 = vst [vmem:[#allocation29_spill] sm:$0xff] %v17905_v34  ;;  %v4442_v12 = vrot.slane %v4441_v33, 1  ;;  %v17911_v35 = vpop.eup %15451  ;;  %v5347_v11 = vrot.slane %v17908_v9, 4  ;;  %v3533_v54 = vadd.f32 %v3532_v50, %v3514_v5  ;;  %v3544_v29 = vrot.slane %v3516_v61, 4 }
 0x1f2   : > { %v3539_v37 = vadd.f32 %v3538_v38, %v3515_v62  ;;  %v5407_v22 = vrot.slane %v17911_v35, 4  ;;  %v4406_v14 = vmul.f32 1.442695, %v4391_v20  ;;  %v3522_v2 = vrot.slane %v3521_v40, 2 }
 0x1f3   : > { %v15454_v30 = vpop.eup %15453  ;;  %v4443_v45 = vadd.f32 %v4442_v12, %v4441_v33  ;;  %v5348_v41 = vmax.f32 %v17908_v9, %v5347_v11  ;;  %v3528_v60 = vrot.slane %v3527_v47, 2  ;;  %v3534_v43 = vrot.slane %v3533_v54, 2 }
 0x1f4   : > { %v17915_v44 = vpop.eup %15455  ;;  %v17918_v59 = vmul.f32 %v15454_v30, %v17841_v8  ;;  %v5408_v5 = vadd.f32 %v17911_v35, %v5407_v22  ;;  %v3523_v48 = vadd.f32 %v3522_v2, %v3521_v40  ;;  %v3545_v25 = vadd.f32 %v3544_v29, %v3516_v61 }
 0x1f5   : > { %15459 = vrcp.f32 %v4443_v45  ;;  %v3482_v62 = vrot.slane %v17915_v44, 4  ;;  %v5349_v33 = vrot.slane %v5348_v41, 2  ;;  %v3529_v1 = vadd.f32 %v3528_v60, %v3527_v47 }
 0x1f6   : > { %15461 = vpow2.f32 %v4406_v14  ;;  %v3517_v13 = vmul.f32 %v17918_v59, %v20137_v39  ;;  %v5409_v50 = vrot.slane %v5408_v5, 2  ;;  %v3524_v38 = vrot.slane %v3523_v48, 1 }
 0x1f7   : > { %v3483_v8 = vadd.f32 %v17915_v44, %v3482_v62  ;;  %v3535_v12 = vadd.f32 %v3534_v43, %v3533_v54  ;;  %v15458_v20 = vpop.eup %15457  ;;  %v5350_v11 = vmax.f32 %v5348_v41, %v5349_v33  ;;  %v3530_v30 = vrot.slane %v3529_v1, 1 }
 0x1f8   : > { %v3540_v45 = vrot.slane %v3539_v37, 2  ;;  %v17927_v22 = vmul.f32 %v15458_v20, %v17855_v32  ;;  %v5410_v40 = vadd.f32 %v5409_v50, %v5408_v5  ;;  %v17929_v2 = vadd.f32 %v3524_v38, %v3523_v48 }
 0x1f9   : > { %v3484_v14 = vrot.slane %v3483_v8, 2  ;;  %v5351_v24 = vrot.slane %v5350_v11, 1  ;;  %v17931_v34 = vadd.f32 %v3530_v30, %v3529_v1  ;;  %v3536_v47 = vrot.slane %v3535_v12, 1 }
 0x1fa   : > { %20169 = vst [vmem:[#allocation28_spill] sm:$0xff] %v17927_v22  ;;  %v3541_v60 = vadd.f32 %v3540_v45, %v3539_v37  ;;  %v5411_v62 = vrot.slane %v5410_v40, 1  ;;  %v3546_v54 = vrot.slane %v3545_v25, 2  ;;  %v3550_v43 = vrot.slane %v3517_v13, 4 }
 0x1fb   : > { %v3485_v31 = vadd.f32 %v3484_v14, %v3483_v8  ;;  %v5352_v41 = vmax.f32 %v5350_v11, %v5351_v24  ;;  %v3537_v33 = vadd.f32 %v3536_v47, %v3535_v12  ;;  %v3556_v61 = vrot.slane %v17902_v26, 4 }
 0x1fc   : > { %v3542_v39 = vrot.slane %v3541_v60, 1  ;;  %v5412_v32 = vadd.f32 %v5411_v62, %v5410_v40  ;;  %v3547_v5 = vadd.f32 %v3546_v54, %v3545_v25  ;;  %v3551_v50 = vadd.f32 %v3550_v43, %v3517_v13  ;;  %v20171_v40 = vld [vmem:[#allocation25_spill] sm:$0xff]  ;;  %v20173_v43 = vld [vmem:[#allocation19_spill] sm:$0xff] }
 0x1fd   : > { %v3486_v29 = vrot.slane %v3485_v31, 1  ;;  %v5360_v48 = vsub.f32 %v17908_v9, %v5352_v41  ;;  %v3557_v1 = vadd.f32 %v3556_v61, %v17902_v26  ;;  %v3576_v37 = vcombine.low %v17929_v2, %v17931_v34 }
 0x1fe   : > { %v3543_v38 = vadd.f32 %v3542_v39, %v3541_v60  ;;  %15463 = vrcp.f32 %v5412_v32  ;;  %v3548_v24 = vrot.slane %v3547_v5, 1  ;;  %v3552_v12 = vrot.slane %v3551_v50, 2  ;;  %v20175_v32 = vld [vmem:[#allocation14_spill] sm:$0xff] }
 0x1ff   : > { %v15460_v8 = vpop.eup %15459  ;;  %v3487_v20 = vadd.f32 %v3486_v29, %v3485_v31  ;;  %v5375_v25 = vmul.f32 1.442695, %v5360_v48  ;;  %v3558_v13 = vrot.slane %v3557_v1, 2  ;;  %v3628_v31 = vmul.f32 %v20159_v27, %v20171_v40 }
 0x200   : > { %v17938_v11 = vpop.eup %15461  ;;  %v17941_v30 = vmul.f32 %v15460_v8, %v17874_v17  ;;  %v3577_v45 = vcombine.low %v3537_v33, %v3543_v38  ;;  %v3549_v26 = vadd.f32 %v3548_v24, %v3547_v5  ;;  %v3553_v9 = vadd.f32 %v3552_v12, %v3551_v50  ;;  %v20172_v17 = vld [vmem:[#allocation42_spill] sm:$0xff]  ;;  %v20174_v33 = vld [vmem:[#allocation44_spill] sm:$0xff] }
 0x201   : > { %15465 = vrcp.f32 %v3487_v20  ;;  %v4450_v39 = vrot.slane %v17938_v11, 4  ;;  %v3559_v34 = vadd.f32 %v3558_v13, %v3557_v1  ;;  %v15544_v47 = vmov 1966171168   ;;  %v20176_v13 = vld [vmem:[#allocation7_spill] sm:$0xff] }
 0x202   : > { %20170 = vst [vmem:[#allocation46_spill] sm:$0xff] %v17941_v30  ;;  %15467 = vpow2.f32 %v5375_v25  ;;  %v3554_v2 = vrot.slane %v3553_v9, 1  ;;  %v3581_v60 = vunpack.c.l.s4 %v15544_v47  ;;  %v3629_v62 = vmul.f32 %v20161_v63, %v20172_v17 }
 0x203   : > { %v4451_v14 = vadd.f32 %v17938_v11, %v4450_v39  ;;  %v3560_v54 = vrot.slane %v3559_v34, 1  ;;  %v3630_v41 = vmul.f32 %v20163_v57, %v20173_v43  ;;  %v3631_v61 = vmul.f32 %v20165_v10, %v20174_v33 }
 0x204   : > { %v3632_v29 = vmul.f32 %v17847_v21, %v20175_v32  ;;  %v3555_v50 = vadd.f32 %v3554_v2, %v3553_v9  ;;  %v3582_v48 = vunpack.c.0.s8 %v3581_v60  ;;  %v3633_v38 = vmul.f32 %v17918_v59, %v20153_v15 }
 0x205   : > { %v4452_v5 = vrot.slane %v4451_v14, 2  ;;  %v17957_v1 = vadd.f32 %v3560_v54, %v3559_v34  ;;  %v3634_v8 = vmul.f32 %v17877_v6, %v20132_v55  ;;  %v3636_v20 = vrot.slane %v3628_v31, 4 }
 0x206   : > { %v3642_v24 = vrot.slane %v3629_v62, 4  ;;  %v3578_v25 = vcombine.low %v3549_v26, %v3555_v50  ;;  %v17962_v39 = vsub.s32 %v3582_v48, %v20176_v13  ;;  %v3648_v47 = vrot.slane %v3630_v41, 4 }
 0x207   : > { %v4453_v12 = vadd.f32 %v4452_v5, %v4451_v14  ;;  %v3637_v22 = vadd.f32 %v3636_v20, %v3628_v31  ;;  %v3654_v9 = vrot.slane %v3631_v61, 4  ;;  %v3660_v2 = vrot.slane %v3632_v29, 4 }
 0x208   : > { %20177 = vst [vmem:[#allocation47_spill] sm:$0xff] %v17962_v39  ;;  %v3643_v32 = vadd.f32 %v3642_v24, %v3629_v62  ;;  %v15464_v60 = vpop.eup %15463  ;;  %v3586_v34 = vrot.slane %v3576_v37, %v17962_v39  ;;  %v3593_v54 = vrot.slane %v3577_v45, %v17962_v39  ;;  %v17967_v55 = vrot.slane %v3578_v25, %v17962_v39 }
 0x209   : > { %v4454_v33 = vrot.slane %v4453_v12, 1  ;;  %v17970_v14 = vmul.f32 %v15464_v60, %v17911_v35  ;;  %v3638_v26 = vrot.slane %v3637_v22, 2  ;;  %v3649_v50 = vadd.f32 %v3648_v47, %v3630_v41 }
 0x20a   : > { %v3644_v5 = vrot.slane %v3643_v32, 2  ;;  %v3608_v62 = vcombine.low %v3586_v34, %v3593_v54  ;;  %v3655_v20 = vadd.f32 %v3654_v9, %v3631_v61  ;;  %v3661_v24 = vadd.f32 %v3660_v2, %v3632_v29 }
 0x20b   : > { %20178 = vst [vmem:[#allocation21_spill] sm:$0xff] %v17970_v14  ;;  %v15466_v48 = vpop.eup %15465  ;;  %v4455_v31 = vadd.f32 %v4454_v33, %v4453_v12  ;;  %v3639_v45 = vadd.f32 %v3638_v26, %v3637_v22  ;;  %v3650_v25 = vrot.slane %v3649_v50, 2  ;;  %v3666_v54 = vrot.slane %v3633_v38, 4 }
 0x20c   : > { %v17972_v13 = vpop.eup %15467  ;;  %v17975_v37 = vmul.f32 %v15466_v48, %v17915_v44  ;;  %v3645_v15 = vadd.f32 %v3644_v5, %v3643_v32  ;;  %v17979_v60 = vrot.slane %v3608_v62, %v17962_v39  ;;  %v3656_v41 = vrot.slane %v3655_v20, 2 }
 0x20d   : > { %15469 = vrcp.f32 %v4455_v31  ;;  %v5419_v35 = vrot.slane %v17972_v13, 4  ;;  %v3640_v29 = vrot.slane %v3639_v45, 1  ;;  %v3651_v22 = vadd.f32 %v3650_v25, %v3649_v50 }
 0x20e   : > { %v3519_v33 = vmul.f32 %v17975_v37, %v20142_v3  ;;  %v3635_v61 = vmul.f32 %v17975_v37, %v20143_v4  ;;  %v3646_v12 = vrot.slane %v3645_v15, 1  ;;  %v3657_v32 = vadd.f32 %v3656_v41, %v3655_v20 }
 0x20f   : > { %v5420_v44 = vadd.f32 %v17972_v13, %v5419_v35  ;;  %v3662_v47 = vrot.slane %v3661_v24, 2  ;;  %v3641_v2 = vadd.f32 %v3640_v29, %v3639_v45  ;;  %v3652_v5 = vrot.slane %v3651_v22, 1 }
 0x210   : > { %v3562_v9 = vrot.slane %v3519_v33, 4  ;;  %v3647_v34 = vadd.f32 %v3646_v12, %v3645_v15  ;;  %v3658_v48 = vrot.slane %v3657_v32, 1  ;;  %v3667_v14 = vadd.f32 %v3666_v54, %v3633_v38 }
 0x211   : > { %v5421_v26 = vrot.slane %v5420_v44, 2  ;;  %v3663_v31 = vadd.f32 %v3662_v47, %v3661_v24  ;;  %v3672_v43 = vrot.slane %v3634_v8, 4  ;;  %v3678_v17 = vrot.slane %v3635_v61, 4 }
 0x212   : > { %v3563_v62 = vadd.f32 %v3562_v9, %v3519_v33  ;;  %v3653_v40 = vadd.f32 %v3652_v5, %v3651_v22  ;;  %v3659_v3 = vadd.f32 %v3658_v48, %v3657_v32  ;;  %v3668_v50 = vrot.slane %v3667_v14, 2  ;;  %v20179_v22 = vld [vmem:[#allocation63_spill] sm:$0xff] }
 0x213   : > { %v5422_v4 = vadd.f32 %v5421_v26, %v5420_v44  ;;  %v3664_v30 = vrot.slane %v3663_v31, 1  ;;  %v3673_v20 = vadd.f32 %v3672_v43, %v3634_v8  ;;  %v3679_v25 = vadd.f32 %v3678_v17, %v3635_v61 }
 0x214   : > { %v3564_v35 = vrot.slane %v3563_v62, 2  ;;  %v3692_v15 = vcombine.low %v3641_v2, %v3647_v34  ;;  %v3693_v29 = vcombine.low %v3653_v40, %v3659_v3  ;;  %v3669_v7 = vadd.f32 %v3668_v50, %v3667_v14  ;;  %v20180_v14 = vld [vmem:[#allocation12_spill] sm:$0xff] }
 0x215   : > { %v5423_v41 = vrot.slane %v5422_v4, 1  ;;  %v3665_v45 = vadd.f32 %v3664_v30, %v3663_v31  ;;  %v3674_v56 = vrot.slane %v3673_v20, 2  ;;  %v3680_v24 = vrot.slane %v3679_v25, 2  ;;  %v20181_v34 = vld [vmem:[#allocation16_spill] sm:$0xff]  ;;  %v20183_v31 = vld [vmem:[#allocation23_spill] sm:$0xff] }
 0x216   : > { %v3565_v12 = vadd.f32 %v3564_v35, %v3563_v62  ;;  %v3702_v47 = vrot.slane %v3692_v15, %v17962_v39  ;;  %v3709_v44 = vrot.slane %v3693_v29, %v17962_v39  ;;  %v3745_v32 = vmul.f32 %v20159_v27, %v20179_v22 }
 0x217   : > { %v15470_v33 = vpop.eup %15469  ;;  %v5424_v38 = vadd.f32 %v5423_v41, %v5422_v4  ;;  %v3670_v30 = vrot.slane %v3669_v7, 1  ;;  %v3675_v8 = vadd.f32 %v3674_v56, %v3673_v20  ;;  %v3681_v3 = vadd.f32 %v3680_v24, %v3679_v25 }
 0x218   : > { %v17991_v43 = vmul.f32 %v15470_v33, %v17938_v11  ;;  %v3566_v17 = vrot.slane %v3565_v12, 1  ;;  %v3724_v40 = vcombine.low %v3702_v47, %v3709_v44  ;;  %v3746_v61 = vmul.f32 %v20161_v63, %v20180_v14  ;;  %v20182_v11 = vld [vmem:[#allocation43_spill] sm:$0xff] }
 0x219   : > { %15471 = vrcp.f32 %v5424_v38  ;;  %v3671_v9 = vadd.f32 %v3670_v30, %v3669_v7  ;;  %v3676_v2 = vrot.slane %v3675_v8, 1  ;;  %v3747_v54 = vmul.f32 %v20163_v57, %v20181_v34 }
 0x21a   : > { %v3567_v4 = vadd.f32 %v3566_v17, %v3565_v12  ;;  %v3682_v26 = vrot.slane %v3681_v3, 1  ;;  %v3732_v5 = vrot.slane %v3724_v40, %v17962_v39  ;;  %v3748_v48 = vmul.f32 %v20165_v10, %v20182_v11 }
 0x21b   : > { %v3749_v56 = vmul.f32 %v17847_v21, %v20183_v31  ;;  %v3677_v35 = vadd.f32 %v3676_v2, %v3675_v8  ;;  %v3694_v50 = vcombine.low %v3665_v45, %v3671_v9  ;;  %v3750_v7 = vmul.f32 %v17918_v59, %v20154_v19 }
 0x21c   : > { %v3579_v62 = vcombine.low %v17957_v1, %v3567_v4  ;;  %v3683_v20 = vadd.f32 %v3682_v26, %v3681_v3  ;;  %v3751_v25 = vmul.f32 %v17877_v6, %v20133_v58  ;;  %v3752_v41 = vmul.f32 %v17975_v37, %v20144_v49 }
 0x21d   : > { %v3753_v15 = vrot.slane %v3745_v32, 4  ;;  %v3716_v12 = vrot.slane %v3694_v50, %v17962_v39  ;;  %v3759_v24 = vrot.slane %v3746_v61, 4  ;;  %v3765_v33 = vrot.slane %v3747_v54, 4 }
 0x21e   : > { %v3607_v29 = vrot.slane %v3579_v62, %v17962_v39  ;;  %v3695_v1 = vcombine.low %v3677_v35, %v3683_v20  ;;  %v3771_v45 = vrot.slane %v3748_v48, 4  ;;  %v3777_v47 = vrot.slane %v3749_v56, 4 }
 0x21f   : > { %v3754_v38 = vadd.f32 %v3753_v15, %v3745_v32  ;;  %v3760_v17 = vadd.f32 %v3759_v24, %v3746_v61  ;;  %v3766_v30 = vadd.f32 %v3765_v33, %v3747_v54  ;;  %v3783_v8 = vrot.slane %v3750_v7, 4 }
 0x220   : > { %v3609_v44 = vcombine.low %v17967_v55, %v3607_v29  ;;  %v3723_v3 = vrot.slane %v3695_v1, %v17962_v39  ;;  %v3772_v4 = vadd.f32 %v3771_v45, %v3748_v48  ;;  %v3778_v9 = vadd.f32 %v3777_v47, %v3749_v56 }
 0x221   : > { %v3755_v40 = vrot.slane %v3754_v38, 2  ;;  %v3761_v26 = vrot.slane %v3760_v17, 2  ;;  %v3767_v62 = vrot.slane %v3766_v30, 2  ;;  %v3784_v50 = vadd.f32 %v3783_v8, %v3750_v7 }
 0x222   : > { %v3623_v2 = vrot.slane %v3609_v44, %v17962_v39  ;;  %v3725_v35 = vcombine.low %v3716_v12, %v3723_v3  ;;  %v3773_v20 = vrot.slane %v3772_v4, 2  ;;  %v3779_v15 = vrot.slane %v3778_v9, 2 }
 0x223   : > { %v15472_v49 = vpop.eup %15471  ;;  %v3756_v32 = vadd.f32 %v3755_v40, %v3754_v38  ;;  %v3762_v54 = vadd.f32 %v3761_v26, %v3760_v17  ;;  %v3768_v29 = vadd.f32 %v3767_v62, %v3766_v30  ;;  %v3785_v45 = vrot.slane %v3784_v50, 2 }
 0x224   : > { %v18015_v55 = vmul.f32 %v15472_v49, %v17972_v13  ;;  %v3624_v61 = vcombine.low %v17979_v60, %v3623_v2  ;;  %v3739_v48 = vrot.slane %v3725_v35, %v17962_v39  ;;  %v3774_v24 = vadd.f32 %v3773_v20, %v3772_v4  ;;  %v20185_v4 = vld [vmem:[#allocation64_spill] sm:$0xff]  ;;  %v20186_v35 = vld [vmem:[#allocation41_spill] sm:$0xff] }
 0x225   : > { %v3757_v56 = vrot.slane %v3756_v32, 1  ;;  %v3780_v33 = vadd.f32 %v3779_v15, %v3778_v9  ;;  %v3763_v1 = vrot.slane %v3762_v54, 1  ;;  %v3769_v7 = vrot.slane %v3768_v29, 1  ;;  %v20187_v15 = vld [vmem:[#allocation17_spill] sm:$0xff] }
 0x226   : > { %20184 = vst [vmem:[#allocation51_spill] sm:$0xff] %v18015_v55  ;;  %3626 = vst [vmem:[#allocation2] ss:$8 sm:$0xf] %v3624_v61  ;;  %v3789_v12 = vrot.slane %v3751_v25, 4  ;;  %v3740_v38 = vcombine.low %v3732_v5, %v3739_v48  ;;  %v3775_v44 = vrot.slane %v3774_v24, 1  ;;  %v3786_v60 = vadd.f32 %v3785_v45, %v3784_v50 }
 0x227   : > { %3627 = vst [vmem:[#allocation2] ss:$8 sm:$0xf0] %v3624_v61  ;;  %v3758_v47 = vadd.f32 %v3757_v56, %v3756_v32  ;;  %v3781_v49 = vrot.slane %v3780_v33, 1  ;;  %v3764_v13 = vadd.f32 %v3763_v1, %v3762_v54  ;;  %v3770_v8 = vadd.f32 %v3769_v7, %v3768_v29  ;;  %v20189_v56 = vld [vmem:[#allocation36_spill] sm:$0xff] }
 0x228   : > { %v3790_v17 = vadd.f32 %v3789_v12, %v3751_v25  ;;  %3743 = vst [vmem:[#allocation2 + $0x1] ss:$8 sm:$0xf] %v3740_v38  ;;  %v3776_v30 = vadd.f32 %v3775_v44, %v3774_v24  ;;  %v3795_v40 = vrot.slane %v3752_v41, 4  ;;  %v3862_v9 = vmul.f32 %v20159_v27, %v20185_v4  ;;  %v20188_v25 = vld [vmem:[#allocation20_spill] sm:$0xff] }
 0x229   : > { %v3782_v3 = vadd.f32 %v3781_v49, %v3780_v33  ;;  %3744 = vst [vmem:[#allocation2 + $0x1] ss:$8 sm:$0xf0] %v3740_v38  ;;  %v3787_v2 = vrot.slane %v3786_v60, 1  ;;  %v3809_v62 = vcombine.low %v3758_v47, %v3764_v13  ;;  %v3863_v5 = vmul.f32 %v20161_v63, %v20186_v35 }
 0x22a   : > { %v3791_v26 = vrot.slane %v3790_v17, 2  ;;  %v3796_v32 = vadd.f32 %v3795_v40, %v3752_v41  ;;  %v3810_v20 = vcombine.low %v3770_v8, %v3776_v30  ;;  %v3864_v50 = vmul.f32 %v20163_v57, %v20187_v15 }
 0x22b   : > { %v3865_v61 = vmul.f32 %v20165_v10, %v20188_v25  ;;  %v3788_v54 = vadd.f32 %v3787_v2, %v3786_v60  ;;  %v3819_v48 = vrot.slane %v3809_v62, %v17962_v39  ;;  %v3866_v24 = vmul.f32 %v17847_v21, %v20189_v56 }
 0x22c   : > { %v3792_v29 = vadd.f32 %v3791_v26, %v3790_v17  ;;  %v3797_v33 = vrot.slane %v3796_v32, 2  ;;  %v3826_v1 = vrot.slane %v3810_v20, %v17962_v39  ;;  %v3867_v41 = vmul.f32 %v17918_v59, %v20140_v36 }
 0x22d   : > { %v3868_v7 = vmul.f32 %v17877_v6, %v20134_v18  ;;  %v3811_v12 = vcombine.low %v3782_v3, %v3788_v54  ;;  %v3869_v38 = vmul.f32 %v17975_v37, %v20145_v23  ;;  %v3870_v47 = vrot.slane %v3862_v9, 4 }
 0x22e   : > { %v3793_v45 = vrot.slane %v3792_v29, 1  ;;  %v3798_v44 = vadd.f32 %v3797_v33, %v3796_v32  ;;  %v3841_v49 = vcombine.low %v3819_v48, %v3826_v1  ;;  %v3876_v13 = vrot.slane %v3863_v5, 4 }
 0x22f   : > { %v3882_v8 = vrot.slane %v3864_v50, 4  ;;  %v3833_v17 = vrot.slane %v3811_v12, %v17962_v39  ;;  %v3871_v30 = vadd.f32 %v3870_v47, %v3862_v9  ;;  %v3888_v40 = vrot.slane %v3865_v61, 4 }
 0x230   : > { %v3794_v60 = vadd.f32 %v3793_v45, %v3792_v29  ;;  %v3799_v2 = vrot.slane %v3798_v44, 1  ;;  %v3849_v26 = vrot.slane %v3841_v49, %v17962_v39  ;;  %v3877_v62 = vadd.f32 %v3876_v13, %v3863_v5 }
 0x231   : > { %v3883_v20 = vadd.f32 %v3882_v8, %v3864_v50  ;;  %v3872_v55 = vrot.slane %v3871_v30, 2  ;;  %v3889_v3 = vadd.f32 %v3888_v40, %v3865_v61  ;;  %v3894_v54 = vrot.slane %v3866_v24, 4 }
 0x232   : > { %v3900_v18 = vrot.slane %v3867_v41, 4  ;;  %v3800_v23 = vadd.f32 %v3799_v2, %v3798_v44  ;;  %v3878_v36 = vrot.slane %v3877_v62, 2  ;;  %v3906_v48 = vrot.slane %v3868_v7, 4 }
 0x233   : > { %v3884_v32 = vrot.slane %v3883_v20, 2  ;;  %v3873_v33 = vadd.f32 %v3872_v55, %v3871_v30  ;;  %v3890_v1 = vrot.slane %v3889_v3, 2  ;;  %v3895_v29 = vadd.f32 %v3894_v54, %v3866_v24  ;;  %v20190_v54 = vld [vmem:[#allocation57_spill] sm:$0xff] }
 0x234   : > { %v3901_v45 = vadd.f32 %v3900_v18, %v3867_v41  ;;  %v3812_v12 = vcombine.low %v3794_v60, %v3800_v23  ;;  %v3879_v9 = vadd.f32 %v3878_v36, %v3877_v62  ;;  %v3907_v56 = vadd.f32 %v3906_v48, %v3868_v7 }
 0x235   : > { %v3885_v47 = vadd.f32 %v3884_v32, %v3883_v20  ;;  %v3874_v25 = vrot.slane %v3873_v33, 1  ;;  %v3891_v49 = vadd.f32 %v3890_v1, %v3889_v3  ;;  %v3896_v5 = vrot.slane %v3895_v29, 2 }
 0x236   : > { %v3902_v50 = vrot.slane %v3901_v45, 2  ;;  %v3840_v61 = vrot.slane %v3812_v12, %v17962_v39  ;;  %v3880_v13 = vrot.slane %v3879_v9, 1  ;;  %v3908_v44 = vrot.slane %v3907_v56, 2 }
 0x237   : > { %v3886_v8 = vrot.slane %v3885_v47, 1  ;;  %v3875_v40 = vadd.f32 %v3874_v25, %v3873_v33  ;;  %v3892_v2 = vrot.slane %v3891_v49, 1  ;;  %v3897_v15 = vadd.f32 %v3896_v5, %v3895_v29  ;;  %v20192_v5 = vld [vmem:[#allocation59_spill] sm:$0xff] }
 0x238   : > { %v3903_v55 = vadd.f32 %v3902_v50, %v3901_v45  ;;  %v3842_v30 = vcombine.low %v3833_v17, %v3840_v61  ;;  %v3881_v24 = vadd.f32 %v3880_v13, %v3879_v9  ;;  %v3909_v23 = vadd.f32 %v3908_v44, %v3907_v56  ;;  %v20191_v56 = vld [vmem:[#allocation61_spill] sm:$0xff] }
 0x239   : > { %v3887_v18 = vadd.f32 %v3886_v8, %v3885_v47  ;;  %v3893_v36 = vadd.f32 %v3892_v2, %v3891_v49  ;;  %v3898_v41 = vrot.slane %v3897_v15, 1  ;;  %v3912_v60 = vrot.slane %v3869_v38, 4 }
 0x23a   : > { %v3904_v7 = vrot.slane %v3903_v55, 1  ;;  %v3856_v62 = vrot.slane %v3842_v30, %v17962_v39  ;;  %v3910_v20 = vrot.slane %v3909_v23, 1  ;;  %v3926_v3 = vcombine.low %v3875_v40, %v3881_v24 }
 0x23b   : > { %v3979_v32 = vmul.f32 %v20190_v54, %v20159_v27  ;;  %v3899_v48 = vadd.f32 %v3898_v41, %v3897_v15  ;;  %v3913_v33 = vadd.f32 %v3912_v60, %v3869_v38  ;;  %v3927_v1 = vcombine.low %v3887_v18, %v3893_v36  ;;  %v20193_v27 = vld [vmem:[#allocation35_spill] sm:$0xff]  ;;  %v20194_v38 = vld [vmem:[#allocation48_spill] sm:$0xff] }
 0x23c   : > { %v3905_v25 = vadd.f32 %v3904_v7, %v3903_v55  ;;  %v3857_v29 = vcombine.low %v3849_v26, %v3856_v62  ;;  %v3911_v17 = vadd.f32 %v3910_v20, %v3909_v23  ;;  %v3936_v45 = vrot.slane %v3926_v3, %v17962_v39 }
 0x23d   : > { %v3980_v12 = vmul.f32 %v20191_v56, %v20161_v63  ;;  %v3914_v9 = vrot.slane %v3913_v33, 2  ;;  %v3943_v49 = vrot.slane %v3927_v1, %v17962_v39  ;;  %v3981_v50 = vmul.f32 %v20192_v5, %v20163_v57 }
 0x23e   : > { %v3928_v47 = vcombine.low %v3899_v48, %v3905_v25  ;;  %3860 = vst [vmem:[#allocation2 + $0x2] ss:$8 sm:$0xf] %v3857_v29  ;;  %v3982_v15 = vmul.f32 %v20193_v27, %v20165_v10  ;;  %v3983_v26 = vmul.f32 %v20194_v38, %v17847_v21  ;;  %v3984_v61 = vmul.f32 %v20141_v28, %v17918_v59 }
 0x23f   : > { %v3985_v63 = vmul.f32 %v20135_v0, %v17877_v6  ;;  %3861 = vst [vmem:[#allocation2 + $0x2] ss:$8 sm:$0xf0] %v3857_v29  ;;  %v3915_v13 = vadd.f32 %v3914_v9, %v3913_v33  ;;  %v3958_v44 = vcombine.low %v3936_v45, %v3943_v49  ;;  %v3986_v57 = vmul.f32 %v20147_v51, %v17975_v37 }
 0x240   : > { %v3950_v8 = vrot.slane %v3928_v47, %v17962_v39  ;;  %v3987_v40 = vrot.slane %v3979_v32, 4  ;;  %v3993_v2 = vrot.slane %v3980_v12, 4  ;;  %v3999_v10 = vrot.slane %v3981_v50, 4 }
 0x241   : > { %v4005_v55 = vrot.slane %v3982_v15, 4  ;;  %v3916_v30 = vrot.slane %v3915_v13, 1  ;;  %v3966_v21 = vrot.slane %v3958_v44, %v17962_v39  ;;  %v4011_v24 = vrot.slane %v3983_v26, 4 }
 0x242   : > { %v4017_v59 = vrot.slane %v3984_v61, 4  ;;  %v3988_v18 = vadd.f32 %v3987_v40, %v3979_v32  ;;  %v3994_v23 = vadd.f32 %v3993_v2, %v3980_v12  ;;  %v4000_v6 = vadd.f32 %v3999_v10, %v3981_v50 }
 0x243   : > { %v4006_v36 = vadd.f32 %v4005_v55, %v3982_v15  ;;  %v3917_v41 = vadd.f32 %v3916_v30, %v3915_v13  ;;  %v4012_v7 = vadd.f32 %v4011_v24, %v3983_v26  ;;  %v4023_v62 = vrot.slane %v3985_v63, 4 }
 0x244   : > { %v4018_v60 = vadd.f32 %v4017_v59, %v3984_v61  ;;  %v3989_v20 = vrot.slane %v3988_v18, 2  ;;  %v3995_v3 = vrot.slane %v3994_v23, 2  ;;  %v4001_v37 = vrot.slane %v4000_v6, 2 }
 0x245   : > { %v4007_v48 = vrot.slane %v4006_v36, 2  ;;  %v3929_v25 = vcombine.low %v3911_v17, %v3917_v41  ;;  %v4013_v33 = vrot.slane %v4012_v7, 2  ;;  %v4024_v29 = vadd.f32 %v4023_v62, %v3985_v63 }
 0x246   : > { %v4019_v1 = vrot.slane %v4018_v60, 2  ;;  %v3990_v45 = vadd.f32 %v3989_v20, %v3988_v18  ;;  %v3996_v9 = vadd.f32 %v3995_v3, %v3994_v23  ;;  %v4002_v47 = vadd.f32 %v4001_v37, %v4000_v6  ;;  %v20196_v37 = vld [vmem:[#allocation58_spill] sm:$0xff] }
 0x247   : > { %v4008_v49 = vadd.f32 %v4007_v48, %v4006_v36  ;;  %v3957_v32 = vrot.slane %v3929_v25, %v17962_v39  ;;  %v4014_v12 = vadd.f32 %v4013_v33, %v4012_v7  ;;  %v4025_v15 = vrot.slane %v4024_v29, 2 }
 0x248   : > { %v4020_v50 = vadd.f32 %v4019_v1, %v4018_v60  ;;  %v3991_v26 = vrot.slane %v3990_v45, 1  ;;  %v3997_v61 = vrot.slane %v3996_v9, 1  ;;  %v4003_v13 = vrot.slane %v4002_v47, 1  ;;  %v20195_v60 = vld [vmem:[#allocation26_spill] sm:$0xff] }
 0x249   : > { %v4009_v44 = vrot.slane %v4008_v49, 1  ;;  %v3959_v40 = vcombine.low %v3950_v8, %v3957_v32  ;;  %v4015_v2 = vrot.slane %v4014_v12, 1  ;;  %v4026_v17 = vadd.f32 %v4025_v15, %v4024_v29  ;;  %v20197_v29 = vld [vmem:[#allocation9_spill] sm:$0xff] }
 0x24a   : > { %v4021_v10 = vrot.slane %v4020_v50, 1  ;;  %v3992_v55 = vadd.f32 %v3991_v26, %v3990_v45  ;;  %v3998_v30 = vadd.f32 %v3997_v61, %v3996_v9  ;;  %v4004_v63 = vadd.f32 %v4003_v13, %v4002_v47  ;;  %v20202_v61 = vld [vmem:[#allocation39_spill] sm:$0xff]  ;;  %v20203_v13 = vld [vmem:[#allocation29_spill] sm:$0xff] }
 0x24b   : > { %v4010_v24 = vadd.f32 %v4009_v44, %v4008_v49  ;;  %v3973_v59 = vrot.slane %v3959_v40, %v17962_v39  ;;  %v4016_v18 = vadd.f32 %v4015_v2, %v4014_v12  ;;  %v4027_v6 = vrot.slane %v4026_v17, 1  ;;  %v20199_v49 = vld [vmem:[#allocation13_spill] sm:$0xff]  ;;  %v20200_v12 = vld [vmem:[#allocation32_spill] sm:$0xff]  ;;  %v20204_v40 = vld [vmem:[#allocation30_spill] sm:$0xff] }
 0x24c   : > { %v4022_v23 = vadd.f32 %v4021_v10, %v4020_v50  ;;  %v4029_v36 = vrot.slane %v3986_v57, 4  ;;  %v4043_v41 = vcombine.low %v3992_v55, %v3998_v30  ;;  %v4480_v62 = vmul.f32 %v20195_v60, %v20158_v53  ;;  %v20201_v50 = vld [vmem:[#allocation46_spill] sm:$0xff] }
 0x24d   : > { %v4044_v7 = vcombine.low %v4004_v63, %v4010_v24  ;;  %v3974_v20 = vcombine.low %v3966_v21, %v3973_v59  ;;  %v4028_v8 = vadd.f32 %v4027_v6, %v4026_v17  ;;  %v4481_v48 = vmul.f32 %v20196_v37, %v20160_v52  ;;  %v20198_v21 = vld [vmem:[#allocation37_spill] sm:$0xff] }
 0x24e   : > { %v4045_v3 = vcombine.low %v4016_v18, %v4022_v23  ;;  %v4030_v25 = vadd.f32 %v4029_v36, %v3986_v57  ;;  %v4053_v33 = vrot.slane %v4043_v41, %v17962_v39  ;;  %v4482_v45 = vmul.f32 %v20197_v29, %v20162_v46 }
 0x24f   : > { %v4060_v1 = vrot.slane %v4044_v7, %v17962_v39  ;;  %3977 = vst [vmem:[#allocation2 + $0x3] ss:$8 sm:$0xf] %v3974_v20  ;;  %v4483_v47 = vmul.f32 %v17714_v16, %v20164_v42  ;;  %v4484_v32 = vmul.f32 %v20199_v49, %v20198_v21  ;;  %v4485_v15 = vmul.f32 %v20201_v50, %v20200_v12 }
 0x250   : > { %v4067_v9 = vrot.slane %v4045_v3, %v17962_v39  ;;  %3978 = vst [vmem:[#allocation2 + $0x3] ss:$8 sm:$0xf0] %v3974_v20  ;;  %v4031_v57 = vrot.slane %v4030_v25, 2  ;;  %v4486_v44 = vmul.f32 %v20203_v13, %v20202_v61  ;;  %v4487_v2 = vmul.f32 %v17991_v43, %v20204_v40 }
 0x251   : > { %v4075_v26 = vcombine.low %v4053_v33, %v4060_v1  ;;  %v4488_v10 = vrot.slane %v4480_v62, 4  ;;  %v4494_v17 = vrot.slane %v4481_v48, 4  ;;  %v4500_v55 = vrot.slane %v4482_v45, 4 }
 0x252   : > { %v4506_v30 = vrot.slane %v4483_v47, 4  ;;  %v4032_v63 = vadd.f32 %v4031_v57, %v4030_v25  ;;  %v4512_v59 = vrot.slane %v4484_v32, 4  ;;  %v4518_v18 = vrot.slane %v4485_v15, 4 }
 0x253   : > { %v4083_v24 = vrot.slane %v4075_v26, %v17962_v39  ;;  %v4489_v23 = vadd.f32 %v4488_v10, %v4480_v62  ;;  %v4495_v6 = vadd.f32 %v4494_v17, %v4481_v48  ;;  %v4501_v36 = vadd.f32 %v4500_v55, %v4482_v45 }
 0x254   : > { %v4507_v41 = vadd.f32 %v4506_v30, %v4483_v47  ;;  %v4033_v7 = vrot.slane %v4032_v63, 1  ;;  %v4513_v20 = vadd.f32 %v4512_v59, %v4484_v32  ;;  %v4519_v3 = vadd.f32 %v4518_v18, %v4485_v15 }
 0x255   : > { %v4524_v33 = vrot.slane %v4486_v44, 4  ;;  %v4490_v1 = vrot.slane %v4489_v23, 2  ;;  %v4496_v61 = vrot.slane %v4495_v6, 2  ;;  %v4502_v40 = vrot.slane %v4501_v36, 2 }
 0x256   : > { %v4508_v12 = vrot.slane %v4507_v41, 2  ;;  %v4034_v21 = vadd.f32 %v4033_v7, %v4032_v63  ;;  %v4514_v42 = vrot.slane %v4513_v20, 2  ;;  %v4520_v46 = vrot.slane %v4519_v3, 2 }
 0x257   : > { %v4525_v25 = vadd.f32 %v4524_v33, %v4486_v44  ;;  %v4491_v57 = vadd.f32 %v4490_v1, %v4489_v23  ;;  %v4497_v26 = vadd.f32 %v4496_v61, %v4495_v6  ;;  %v4503_v52 = vadd.f32 %v4502_v40, %v4501_v36  ;;  %v20205_v6 = vld [vmem:[#allocation25_spill] sm:$0xff]  ;;  %v20206_v33 = vld [vmem:[#allocation42_spill] sm:$0xff] }
 0x258   : > { %v4509_v53 = vadd.f32 %v4508_v12, %v4507_v41  ;;  %v4046_v62 = vcombine.low %v4028_v8, %v4034_v21  ;;  %v4515_v48 = vadd.f32 %v4514_v42, %v4513_v20  ;;  %v4521_v45 = vadd.f32 %v4520_v46, %v4519_v3 }
 0x259   : > { %v4526_v47 = vrot.slane %v4525_v25, 2  ;;  %v4492_v10 = vrot.slane %v4491_v57, 1  ;;  %v4498_v32 = vrot.slane %v4497_v26, 1  ;;  %v4504_v15 = vrot.slane %v4503_v52, 1 }
 0x25a   : > { %v4510_v17 = vrot.slane %v4509_v53, 1  ;;  %v4074_v55 = vrot.slane %v4046_v62, %v17962_v39  ;;  %v4516_v30 = vrot.slane %v4515_v48, 1  ;;  %v4522_v59 = vrot.slane %v4521_v45, 1 }
 0x25b   : > { %v4527_v63 = vadd.f32 %v4526_v47, %v4525_v25  ;;  %v4493_v18 = vadd.f32 %v4492_v10, %v4491_v57  ;;  %v4499_v7 = vadd.f32 %v4498_v32, %v4497_v26  ;;  %v4505_v44 = vadd.f32 %v4504_v15, %v4503_v52  ;;  %v20209_v47 = vld [vmem:[#allocation14_spill] sm:$0xff] }
 0x25c   : > { %v4511_v23 = vadd.f32 %v4510_v17, %v4509_v53  ;;  %v4076_v61 = vcombine.low %v4067_v9, %v4074_v55  ;;  %v4517_v40 = vadd.f32 %v4516_v30, %v4515_v48  ;;  %v4523_v12 = vadd.f32 %v4522_v59, %v4521_v45  ;;  %v20207_v9 = vld [vmem:[#allocation19_spill] sm:$0xff]  ;;  %v20208_v48 = vld [vmem:[#allocation44_spill] sm:$0xff]  ;;  %v20210_v17 = vld [vmem:[#allocation33_spill] sm:$0xff] }
 0x25d   : > { %v4528_v8 = vrot.slane %v4527_v63, 1  ;;  %v4530_v42 = vrot.slane %v4487_v2, 4  ;;  %v4544_v46 = vcombine.low %v4493_v18, %v4499_v7  ;;  %v4597_v36 = vmul.f32 %v20195_v60, %v20205_v6  ;;  %v20211_v55 = vld [vmem:[#allocation52_spill] sm:$0xff] }
 0x25e   : > { %v4545_v21 = vcombine.low %v4505_v44, %v4511_v23  ;;  %v4090_v41 = vrot.slane %v4076_v61, %v17962_v39  ;;  %v4546_v3 = vcombine.low %v4517_v40, %v4523_v12  ;;  %v4598_v1 = vmul.f32 %v20196_v37, %v20206_v33  ;;  %v20212_v59 = vld [vmem:[#allocation56_spill] sm:$0xff] }
 0x25f   : > { %v4529_v20 = vadd.f32 %v4528_v8, %v4527_v63  ;;  %v4531_v25 = vadd.f32 %v4530_v42, %v4487_v2  ;;  %v4554_v53 = vrot.slane %v4544_v46, %v17962_v39  ;;  %v4599_v57 = vmul.f32 %v20197_v29, %v20207_v9 }
 0x260   : > { %v4561_v52 = vrot.slane %v4545_v21, %v17962_v39  ;;  %v4091_v26 = vcombine.low %v4083_v24, %v4090_v41  ;;  %v4568_v62 = vrot.slane %v4546_v3, %v17962_v39  ;;  %v4600_v45 = vmul.f32 %v17714_v16, %v20208_v48 }
 0x261   : > { %v4601_v10 = vmul.f32 %v20199_v49, %v20209_v47  ;;  %v4532_v32 = vrot.slane %v4531_v25, 2  ;;  %v4602_v2 = vmul.f32 %v20201_v50, %v20210_v17  ;;  %v4603_v30 = vmul.f32 %v20203_v13, %v20211_v55 }
 0x262   : > { %v4576_v15 = vcombine.low %v4554_v53, %v4561_v52  ;;  %4094 = vst [vmem:[#allocation2 + $0x4] ss:$8 sm:$0xf] %v4091_v26  ;;  %v4604_v24 = vmul.f32 %v17991_v43, %v20212_v59  ;;  %v4605_v63 = vrot.slane %v4597_v36, 4  ;;  %v4611_v18 = vrot.slane %v4598_v1, 4 }
 0x263   : > { %v4617_v7 = vrot.slane %v4599_v57, 4  ;;  %4095 = vst [vmem:[#allocation2 + $0x4] ss:$8 sm:$0xf0] %v4091_v26  ;;  %v4533_v44 = vadd.f32 %v4532_v32, %v4531_v25  ;;  %v4623_v61 = vrot.slane %v4600_v45, 4  ;;  %v4629_v40 = vrot.slane %v4601_v10, 4 }
 0x264   : > { %v4584_v23 = vrot.slane %v4576_v15, %v17962_v39  ;;  %v4606_v12 = vadd.f32 %v4605_v63, %v4597_v36  ;;  %v4612_v8 = vadd.f32 %v4611_v18, %v4598_v1  ;;  %v4635_v46 = vrot.slane %v4602_v2, 4 }
 0x265   : > { %v4618_v42 = vadd.f32 %v4617_v7, %v4599_v57  ;;  %v4534_v21 = vrot.slane %v4533_v44, 1  ;;  %v4624_v41 = vadd.f32 %v4623_v61, %v4600_v45  ;;  %v4630_v3 = vadd.f32 %v4629_v40, %v4601_v10 }
 0x266   : > { %v4641_v53 = vrot.slane %v4603_v30, 4  ;;  %v4607_v52 = vrot.slane %v4606_v12, 2  ;;  %v4613_v55 = vrot.slane %v4612_v8, 2  ;;  %v4636_v17 = vadd.f32 %v4635_v46, %v4602_v2 }
 0x267   : > { %v4619_v59 = vrot.slane %v4618_v42, 2  ;;  %v4535_v47 = vadd.f32 %v4534_v21, %v4533_v44  ;;  %v4625_v48 = vrot.slane %v4624_v41, 2  ;;  %v4631_v26 = vrot.slane %v4630_v3, 2 }
 0x268   : > { %v4642_v25 = vadd.f32 %v4641_v53, %v4603_v30  ;;  %v4608_v32 = vadd.f32 %v4607_v52, %v4606_v12  ;;  %v4614_v15 = vadd.f32 %v4613_v55, %v4612_v8  ;;  %v4637_v33 = vrot.slane %v4636_v17, 2 }
 0x269   : > { %v4620_v9 = vadd.f32 %v4619_v59, %v4618_v42  ;;  %v4547_v36 = vcombine.low %v4529_v20, %v4535_v47  ;;  %v4626_v1 = vadd.f32 %v4625_v48, %v4624_v41  ;;  %v4632_v57 = vadd.f32 %v4631_v26, %v4630_v3 }
 0x26a   : > { %v4643_v63 = vrot.slane %v4642_v25, 2  ;;  %v4609_v18 = vrot.slane %v4608_v32, 1  ;;  %v4615_v45 = vrot.slane %v4614_v15, 1  ;;  %v4638_v7 = vadd.f32 %v4637_v33, %v4636_v17 }
 0x26b   : > { %v4621_v10 = vrot.slane %v4620_v9, 1  ;;  %v4575_v61 = vrot.slane %v4547_v36, %v17962_v39  ;;  %v4627_v40 = vrot.slane %v4626_v1, 1  ;;  %v4633_v2 = vrot.slane %v4632_v57, 1 }
 0x26c   : > { %v4644_v44 = vadd.f32 %v4643_v63, %v4642_v25  ;;  %v4610_v46 = vadd.f32 %v4609_v18, %v4608_v32  ;;  %v4616_v21 = vadd.f32 %v4615_v45, %v4614_v15  ;;  %v4639_v12 = vrot.slane %v4638_v7, 1 }
 0x26d   : > { %v4622_v30 = vadd.f32 %v4621_v10, %v4620_v9  ;;  %v4577_v55 = vcombine.low %v4568_v62, %v4575_v61  ;;  %v4628_v59 = vadd.f32 %v4627_v40, %v4626_v1  ;;  %v4634_v8 = vadd.f32 %v4633_v2, %v4632_v57 }
 0x26e   : > { %v4645_v20 = vrot.slane %v4644_v44, 1  ;;  %v4640_v48 = vadd.f32 %v4639_v12, %v4638_v7  ;;  %v4647_v47 = vrot.slane %v4604_v24, 4  ;;  %v4661_v42 = vcombine.low %v4610_v46, %v4616_v21 }
 0x26f   : > { %v4714_v41 = vmul.f32 %v20195_v60, %v20179_v22  ;;  %v4591_v33 = vrot.slane %v4577_v55, %v17962_v39  ;;  %v4662_v3 = vcombine.low %v4622_v30, %v4628_v59  ;;  %v4715_v53 = vmul.f32 %v20196_v37, %v20180_v14 }
 0x270   : > { %v4646_v17 = vadd.f32 %v4645_v20, %v4644_v44  ;;  %v4648_v52 = vadd.f32 %v4647_v47, %v4604_v24  ;;  %v4663_v9 = vcombine.low %v4634_v8, %v4640_v48  ;;  %v4671_v62 = vrot.slane %v4661_v42, %v17962_v39 }
 0x271   : > { %v4716_v26 = vmul.f32 %v20197_v29, %v20181_v34  ;;  %v4592_v25 = vcombine.low %v4584_v23, %v4591_v33  ;;  %v4678_v32 = vrot.slane %v4662_v3, %v17962_v39  ;;  %v4717_v15 = vmul.f32 %v17714_v16, %v20182_v11  ;;  %v20213_v23 = vld [vmem:[#allocation34_spill] sm:$0xff] }
 0x272   : > { %v4718_v36 = vmul.f32 %v20199_v49, %v20183_v31  ;;  %v4649_v1 = vrot.slane %v4648_v52, 2  ;;  %v4685_v57 = vrot.slane %v4663_v9, %v17962_v39  ;;  %v4719_v24 = vmul.f32 %v20201_v50, %v20154_v19 }
 0x273   : > { %v4720_v63 = vmul.f32 %v20203_v13, %v20133_v58  ;;  %4595 = vst [vmem:[#allocation2 + $0x5] ss:$8 sm:$0xf] %v4592_v25  ;;  %v4693_v18 = vcombine.low %v4671_v62, %v4678_v32  ;;  %v4721_v45 = vmul.f32 %v17991_v43, %v20213_v23  ;;  %v4722_v10 = vrot.slane %v4714_v41, 4 }
 0x274   : > { %v4728_v7 = vrot.slane %v4715_v53, 4  ;;  %4596 = vst [vmem:[#allocation2 + $0x5] ss:$8 sm:$0xf0] %v4592_v25  ;;  %v4650_v61 = vadd.f32 %v4649_v1, %v4648_v52  ;;  %v4734_v40 = vrot.slane %v4716_v26, 4  ;;  %v4740_v2 = vrot.slane %v4717_v15, 4 }
 0x275   : > { %v4746_v44 = vrot.slane %v4718_v36, 4  ;;  %v4701_v46 = vrot.slane %v4693_v18, %v17962_v39  ;;  %v4723_v21 = vadd.f32 %v4722_v10, %v4714_v41  ;;  %v4752_v12 = vrot.slane %v4719_v24, 4 }
 0x276   : > { %v4729_v30 = vadd.f32 %v4728_v7, %v4715_v53  ;;  %v4651_v55 = vrot.slane %v4650_v61, 1  ;;  %v4735_v59 = vadd.f32 %v4734_v40, %v4716_v26  ;;  %v4741_v8 = vadd.f32 %v4740_v2, %v4717_v15 }
 0x277   : > { %v4747_v20 = vadd.f32 %v4746_v44, %v4718_v36  ;;  %v4724_v48 = vrot.slane %v4723_v21, 2  ;;  %v4753_v42 = vadd.f32 %v4752_v12, %v4719_v24  ;;  %v4758_v33 = vrot.slane %v4720_v63, 4 }
 0x278   : > { %v4730_v47 = vrot.slane %v4729_v30, 2  ;;  %v4652_v3 = vadd.f32 %v4651_v55, %v4650_v61  ;;  %v4736_v9 = vrot.slane %v4735_v59, 2  ;;  %v4742_v62 = vrot.slane %v4741_v8, 2 }
 0x279   : > { %v4748_v52 = vrot.slane %v4747_v20, 2  ;;  %v4725_v25 = vadd.f32 %v4724_v48, %v4723_v21  ;;  %v4754_v1 = vrot.slane %v4753_v42, 2  ;;  %v4759_v23 = vadd.f32 %v4758_v33, %v4720_v63 }
 0x27a   : > { %v4731_v32 = vadd.f32 %v4730_v47, %v4729_v30  ;;  %v4664_v18 = vcombine.low %v4646_v17, %v4652_v3  ;;  %v4737_v41 = vadd.f32 %v4736_v9, %v4735_v59  ;;  %v4743_v53 = vadd.f32 %v4742_v62, %v4741_v8 }
 0x27b   : > { %v4749_v10 = vadd.f32 %v4748_v52, %v4747_v20  ;;  %v4726_v7 = vrot.slane %v4725_v25, 1  ;;  %v4755_v15 = vadd.f32 %v4754_v1, %v4753_v42  ;;  %v4760_v36 = vrot.slane %v4759_v23, 2  ;;  %v20214_v1 = vld [vmem:[#allocation17_spill] sm:$0xff] }
 0x27c   : > { %v4732_v26 = vrot.slane %v4731_v32, 1  ;;  %v4692_v40 = vrot.slane %v4664_v18, %v17962_v39  ;;  %v4738_v24 = vrot.slane %v4737_v41, 1  ;;  %v4744_v2 = vrot.slane %v4743_v53, 1 }
 0x27d   : > { %v4750_v61 = vrot.slane %v4749_v10, 1  ;;  %v4727_v44 = vadd.f32 %v4726_v7, %v4725_v25  ;;  %v4756_v55 = vrot.slane %v4755_v15, 1  ;;  %v4761_v21 = vadd.f32 %v4760_v36, %v4759_v23  ;;  %v20217_v36 = vld [vmem:[#allocation31_spill] sm:$0xff] }
 0x27e   : > { %v4733_v12 = vadd.f32 %v4732_v26, %v4731_v32  ;;  %v4694_v30 = vcombine.low %v4685_v57, %v4692_v40  ;;  %v4739_v48 = vadd.f32 %v4738_v24, %v4737_v41  ;;  %v4745_v63 = vadd.f32 %v4744_v2, %v4743_v53  ;;  %v20215_v41 = vld [vmem:[#allocation20_spill] sm:$0xff]  ;;  %v20219_v2 = vld [vmem:[#allocation55_spill] sm:$0xff] }
 0x27f   : > { %v4751_v17 = vadd.f32 %v4750_v61, %v4749_v10  ;;  %v4757_v59 = vadd.f32 %v4756_v55, %v4755_v15  ;;  %v4762_v8 = vrot.slane %v4761_v21, 1  ;;  %v4764_v20 = vrot.slane %v4721_v45, 4  ;;  %v20216_v26 = vld [vmem:[#allocation36_spill] sm:$0xff] }
 0x280   : > { %v4778_v47 = vcombine.low %v4727_v44, %v4733_v12  ;;  %v4708_v42 = vrot.slane %v4694_v30, %v17962_v39  ;;  %v4779_v33 = vcombine.low %v4739_v48, %v4745_v63  ;;  %v4831_v3 = vmul.f32 %v20195_v60, %v20185_v4 }
 0x281   : > { %v4832_v9 = vmul.f32 %v20196_v37, %v20186_v35  ;;  %v4763_v62 = vadd.f32 %v4762_v8, %v4761_v21  ;;  %v4765_v52 = vadd.f32 %v4764_v20, %v4721_v45  ;;  %v4780_v23 = vcombine.low %v4751_v17, %v4757_v59 }
 0x282   : > { %v4788_v57 = vrot.slane %v4778_v47, %v17962_v39  ;;  %v4709_v25 = vcombine.low %v4701_v46, %v4708_v42  ;;  %v4795_v32 = vrot.slane %v4779_v33, %v17962_v39  ;;  %v4833_v18 = vmul.f32 %v20197_v29, %v20214_v1  ;;  %v20218_v46 = vld [vmem:[#allocation38_spill] sm:$0xff] }
 0x283   : > { %v4834_v53 = vmul.f32 %v17714_v16, %v20215_v41  ;;  %v4766_v10 = vrot.slane %v4765_v52, 2  ;;  %v4802_v7 = vrot.slane %v4780_v23, %v17962_v39  ;;  %v4835_v15 = vmul.f32 %v20199_v49, %v20216_v26 }
 0x284   : > { %v4836_v45 = vmul.f32 %v20201_v50, %v20217_v36  ;;  %4712 = vst [vmem:[#allocation2 + $0x6] ss:$8 sm:$0xf] %v4709_v25  ;;  %v4810_v40 = vcombine.low %v4788_v57, %v4795_v32  ;;  %v4837_v24 = vmul.f32 %v20203_v13, %v20218_v46  ;;  %v4838_v61 = vmul.f32 %v17991_v43, %v20219_v2 }
 0x285   : > { %v4839_v44 = vrot.slane %v4831_v3, 4  ;;  %4713 = vst [vmem:[#allocation2 + $0x6] ss:$8 sm:$0xf0] %v4709_v25  ;;  %v4767_v12 = vadd.f32 %v4766_v10, %v4765_v52  ;;  %v4845_v55 = vrot.slane %v4832_v9, 4  ;;  %v4851_v21 = vrot.slane %v4833_v18, 4 }
 0x286   : > { %v4857_v30 = vrot.slane %v4834_v53, 4  ;;  %v4818_v48 = vrot.slane %v4810_v40, %v17962_v39  ;;  %v4863_v17 = vrot.slane %v4835_v15, 4  ;;  %v4869_v59 = vrot.slane %v4836_v45, 4 }
 0x287   : > { %v4840_v63 = vadd.f32 %v4839_v44, %v4831_v3  ;;  %v4768_v8 = vrot.slane %v4767_v12, 1  ;;  %v4846_v20 = vadd.f32 %v4845_v55, %v4832_v9  ;;  %v4852_v47 = vadd.f32 %v4851_v21, %v4833_v18 }
 0x288   : > { %v4858_v42 = vadd.f32 %v4857_v30, %v4834_v53  ;;  %v4864_v23 = vadd.f32 %v4863_v17, %v4835_v15  ;;  %v4870_v57 = vadd.f32 %v4869_v59, %v4836_v45  ;;  %v4875_v32 = vrot.slane %v4837_v24, 4 }
 0x289   : > { %v4841_v33 = vrot.slane %v4840_v63, 2  ;;  %v4769_v2 = vadd.f32 %v4768_v8, %v4767_v12  ;;  %v4847_v46 = vrot.slane %v4846_v20, 2  ;;  %v4853_v25 = vrot.slane %v4852_v47, 2 }
 0x28a   : > { %v4859_v52 = vrot.slane %v4858_v42, 2  ;;  %v4865_v36 = vrot.slane %v4864_v23, 2  ;;  %v4871_v26 = vrot.slane %v4870_v57, 2  ;;  %v4876_v41 = vadd.f32 %v4875_v32, %v4837_v24 }
 0x28b   : > { %v4842_v10 = vadd.f32 %v4841_v33, %v4840_v63  ;;  %v4781_v40 = vcombine.low %v4763_v62, %v4769_v2  ;;  %v4848_v3 = vadd.f32 %v4847_v46, %v4846_v20  ;;  %v4854_v44 = vadd.f32 %v4853_v25, %v4852_v47 }
 0x28c   : > { %v4860_v1 = vadd.f32 %v4859_v52, %v4858_v42  ;;  %v4866_v9 = vadd.f32 %v4865_v36, %v4864_v23  ;;  %v4872_v18 = vadd.f32 %v4871_v26, %v4870_v57  ;;  %v4877_v53 = vrot.slane %v4876_v41, 2 }
 0x28d   : > { %v4843_v35 = vrot.slane %v4842_v10, 1  ;;  %v4809_v15 = vrot.slane %v4781_v40, %v17962_v39  ;;  %v4849_v45 = vrot.slane %v4848_v3, 1  ;;  %v4855_v55 = vrot.slane %v4854_v44, 1 }
 0x28e   : > { %v4861_v12 = vrot.slane %v4860_v1, 1  ;;  %v4867_v30 = vrot.slane %v4866_v9, 1  ;;  %v4873_v17 = vrot.slane %v4872_v18, 1  ;;  %v4878_v63 = vadd.f32 %v4877_v53, %v4876_v41 }
 0x28f   : > { %v4844_v21 = vadd.f32 %v4843_v35, %v4842_v10  ;;  %v4811_v59 = vcombine.low %v4802_v7, %v4809_v15  ;;  %v4850_v8 = vadd.f32 %v4849_v45, %v4848_v3  ;;  %v4856_v24 = vadd.f32 %v4855_v55, %v4854_v44 }
 0x290   : > { %v4862_v62 = vadd.f32 %v4861_v12, %v4860_v1  ;;  %v4868_v46 = vadd.f32 %v4867_v30, %v4866_v9  ;;  %v4874_v2 = vadd.f32 %v4873_v17, %v4872_v18  ;;  %v4879_v20 = vrot.slane %v4878_v63, 1 }
 0x291   : > { %v4881_v47 = vrot.slane %v4838_v61, 4  ;;  %v4825_v26 = vrot.slane %v4811_v59, %v17962_v39  ;;  %v4895_v36 = vcombine.low %v4844_v21, %v4850_v8  ;;  %v4948_v33 = vmul.f32 %v20190_v54, %v20195_v60 }
 0x292   : > { %v4896_v42 = vcombine.low %v4856_v24, %v4862_v62  ;;  %v4880_v23 = vadd.f32 %v4879_v20, %v4878_v63  ;;  %v4897_v57 = vcombine.low %v4868_v46, %v4874_v2  ;;  %v4949_v41 = vmul.f32 %v20191_v56, %v20196_v37 }
 0x293   : > { %v4882_v35 = vadd.f32 %v4881_v47, %v4838_v61  ;;  %v4826_v7 = vcombine.low %v4818_v48, %v4825_v26  ;;  %v4905_v1 = vrot.slane %v4895_v36, %v17962_v39  ;;  %v4950_v25 = vmul.f32 %v20192_v5, %v20197_v29 }
 0x294   : > { %v4912_v32 = vrot.slane %v4896_v42, %v17962_v39  ;;  %v4919_v10 = vrot.slane %v4897_v57, %v17962_v39  ;;  %v4951_v60 = vmul.f32 %v20193_v27, %v17714_v16  ;;  %v4952_v61 = vmul.f32 %v20194_v38, %v20199_v49 }
 0x295   : > { %v4883_v52 = vrot.slane %v4882_v35, 2  ;;  %4829 = vst [vmem:[#allocation2 + $0x7] ss:$8 sm:$0xf] %v4826_v7  ;;  %v4953_v37 = vmul.f32 %v20141_v28, %v20201_v50  ;;  %v4954_v48 = vmul.f32 %v20135_v0, %v20203_v13  ;;  %v4955_v29 = vmul.f32 %v20147_v51, %v17991_v43 }
 0x296   : > { %v4927_v40 = vcombine.low %v4905_v1, %v4912_v32  ;;  %4830 = vst [vmem:[#allocation2 + $0x7] ss:$8 sm:$0xf0] %v4826_v7  ;;  %v4956_v44 = vrot.slane %v4948_v33, 4  ;;  %v4962_v9 = vrot.slane %v4949_v41, 4  ;;  %v4968_v18 = vrot.slane %v4950_v25, 4 }
 0x297   : > { %v4884_v3 = vadd.f32 %v4883_v52, %v4882_v35  ;;  %v4974_v53 = vrot.slane %v4951_v60, 4  ;;  %v4980_v49 = vrot.slane %v4952_v61, 4  ;;  %v4986_v15 = vrot.slane %v4953_v37, 4 }
 0x298   : > { %v4935_v16 = vrot.slane %v4927_v40, %v17962_v39  ;;  %v4957_v55 = vadd.f32 %v4956_v44, %v4948_v33  ;;  %v4963_v12 = vadd.f32 %v4962_v9, %v4949_v41  ;;  %v4969_v50 = vadd.f32 %v4968_v18, %v4950_v25 }
 0x299   : > { %v4885_v45 = vrot.slane %v4884_v3, 1  ;;  %v4975_v21 = vadd.f32 %v4974_v53, %v4951_v60  ;;  %v4981_v30 = vadd.f32 %v4980_v49, %v4952_v61  ;;  %v4987_v13 = vadd.f32 %v4986_v15, %v4953_v37 }
 0x29a   : > { %v4992_v17 = vrot.slane %v4954_v48, 4  ;;  %v4958_v43 = vrot.slane %v4957_v55, 2  ;;  %v4964_v59 = vrot.slane %v4963_v12, 2  ;;  %v4970_v8 = vrot.slane %v4969_v50, 2 }
 0x29b   : > { %v4886_v63 = vadd.f32 %v4885_v45, %v4884_v3  ;;  %v4976_v24 = vrot.slane %v4975_v21, 2  ;;  %v4982_v62 = vrot.slane %v4981_v30, 2  ;;  %v4988_v46 = vrot.slane %v4987_v13, 2  ;;  %v20220_v45 = vld [vmem:[#allocation24_spill] sm:$0xff] }
 0x29c   : > { %v4993_v2 = vadd.f32 %v4992_v17, %v4954_v48  ;;  %v4959_v47 = vadd.f32 %v4958_v43, %v4957_v55  ;;  %v4965_v26 = vadd.f32 %v4964_v59, %v4963_v12  ;;  %v4971_v36 = vadd.f32 %v4970_v8, %v4969_v50  ;;  %v20221_v55 = vld [vmem:[#allocation27_spill] sm:$0xff]  ;;  %v20223_v17 = vld [vmem:[#allocation60_spill] sm:$0xff]  ;;  %v20224_v8 = vld [vmem:[#allocation18_spill] sm:$0xff] }
 0x29d   : > { %v4898_v20 = vcombine.low %v4880_v23, %v4886_v63  ;;  %v4977_v42 = vadd.f32 %v4976_v24, %v4975_v21  ;;  %v4983_v33 = vadd.f32 %v4982_v62, %v4981_v30  ;;  %v4989_v35 = vadd.f32 %v4988_v46, %v4987_v13  ;;  %v20222_v13 = vld [vmem:[#allocation40_spill] sm:$0xff]  ;;  %v20225_v24 = vld [vmem:[#allocation11_spill] sm:$0xff] }
 0x29e   : > { %v4994_v57 = vrot.slane %v4993_v2, 2  ;;  %v4960_v7 = vrot.slane %v4959_v47, 1  ;;  %v4966_v1 = vrot.slane %v4965_v26, 1  ;;  %v4972_v32 = vrot.slane %v4971_v36, 1 }
 0x29f   : > { %v4926_v41 = vrot.slane %v4898_v20, %v17962_v39  ;;  %v4978_v25 = vrot.slane %v4977_v42, 1  ;;  %v4984_v52 = vrot.slane %v4983_v33, 1  ;;  %v4990_v60 = vrot.slane %v4989_v35, 1  ;;  %v20226_v20 = vld [vmem:[#allocation45_spill] sm:$0xff] }
 0x2a0   : > { %v4995_v61 = vadd.f32 %v4994_v57, %v4993_v2  ;;  %v4961_v37 = vadd.f32 %v4960_v7, %v4959_v47  ;;  %v4967_v48 = vadd.f32 %v4966_v1, %v4965_v26  ;;  %v4973_v23 = vadd.f32 %v4972_v32, %v4971_v36  ;;  %v20227_v47 = vld [vmem:[#allocation49_spill] sm:$0xff]  ;;  %v20230_v57 = vld [vmem:[#allocation32_spill] sm:$0xff]  ;;  %v20234_v32 = vld [vmem:[#allocation30_spill] sm:$0xff] }
 0x2a1   : > { %v4928_v40 = vcombine.low %v4919_v10, %v4926_v41  ;;  %v4979_v3 = vadd.f32 %v4978_v25, %v4977_v42  ;;  %v4985_v44 = vadd.f32 %v4984_v52, %v4983_v33  ;;  %v4991_v9 = vadd.f32 %v4990_v60, %v4989_v35  ;;  %v20228_v36 = vld [vmem:[#allocation37_spill] sm:$0xff]  ;;  %v20229_v42 = vld [vmem:[#allocation50_spill] sm:$0xff]  ;;  %v20232_v41 = vld [vmem:[#allocation39_spill] sm:$0xff] }
 0x2a2   : > { %v4996_v18 = vrot.slane %v4995_v61, 1  ;;  %v4998_v49 = vrot.slane %v4955_v29, 4  ;;  %v5012_v15 = vcombine.low %v4961_v37, %v4967_v48  ;;  %v5449_v12 = vmul.f32 %v20221_v55, %v20220_v45  ;;  %v20233_v7 = vld [vmem:[#allocation28_spill] sm:$0xff]  ;;  %v20235_v25 = vld [vmem:[#allocation51_spill] sm:$0xff] }
 0x2a3   : > { %v4942_v53 = vrot.slane %v4928_v40, %v17962_v39  ;;  %v5013_v21 = vcombine.low %v4973_v23, %v4979_v3  ;;  %v5014_v30 = vcombine.low %v4985_v44, %v4991_v9  ;;  %v5450_v10 = vmul.f32 %v20223_v17, %v20222_v13 }
 0x2a4   : > { %v4997_v50 = vadd.f32 %v4996_v18, %v4995_v61  ;;  %v4999_v43 = vadd.f32 %v4998_v49, %v4955_v29  ;;  %v5022_v59 = vrot.slane %v5012_v15, %v17962_v39  ;;  %v5451_v62 = vmul.f32 %v20225_v24, %v20224_v8 }
 0x2a5   : > { %v4943_v63 = vcombine.low %v4935_v16, %v4942_v53  ;;  %v5029_v46 = vrot.slane %v5013_v21, %v17962_v39  ;;  %v5036_v2 = vrot.slane %v5014_v30, %v17962_v39  ;;  %v5452_v26 = vmul.f32 %v20227_v47, %v20226_v20  ;;  %v20231_v16 = vld [vmem:[#allocation21_spill] sm:$0xff] }
 0x2a6   : > { %v5453_v33 = vmul.f32 %v20229_v42, %v20228_v36  ;;  %v5000_v35 = vrot.slane %v4999_v43, 2  ;;  %v5454_v29 = vmul.f32 %v20231_v16, %v20230_v57  ;;  %v5455_v1 = vmul.f32 %v20233_v7, %v20232_v41 }
 0x2a7   : > { %4946 = vst [vmem:[#allocation2 + $0x40] ss:$8 sm:$0xf] %v4943_v63  ;;  %v5456_v52 = vmul.f32 %v20235_v25, %v20234_v32  ;;  %4947 = vst [vmem:[#allocation2 + $0x40] ss:$8 sm:$0xf0] %v4943_v63  ;;  %v5044_v60 = vcombine.low %v5022_v59, %v5029_v46 }
 0x2a8   : > { %v5457_v61 = vrot.slane %v5449_v12, 4  ;;  %v5463_v40 = vrot.slane %v5450_v10, 4  ;;  %v5469_v37 = vrot.slane %v5451_v62, 4  ;;  %v5001_v48 = vadd.f32 %v5000_v35, %v4999_v43 }
 0x2a9   : > { %v5475_v23 = vrot.slane %v5452_v26, 4  ;;  %v5481_v3 = vrot.slane %v5453_v33, 4  ;;  %v5487_v44 = vrot.slane %v5454_v29, 4  ;;  %v5052_v9 = vrot.slane %v5044_v60, %v17962_v39 }
 0x2aa   : > { %v5458_v18 = vadd.f32 %v5457_v61, %v5449_v12  ;;  %v5464_v53 = vadd.f32 %v5463_v40, %v5450_v10  ;;  %v5470_v49 = vadd.f32 %v5469_v37, %v5451_v62  ;;  %v5002_v15 = vrot.slane %v5001_v48, 1 }
 0x2ab   : > { %v5476_v45 = vadd.f32 %v5475_v23, %v5452_v26  ;;  %v5482_v21 = vadd.f32 %v5481_v3, %v5453_v33  ;;  %v5488_v30 = vadd.f32 %v5487_v44, %v5454_v29  ;;  %v5493_v59 = vrot.slane %v5455_v1, 4 }
 0x2ac   : > { %v5459_v13 = vrot.slane %v5458_v18, 2  ;;  %v5465_v8 = vrot.slane %v5464_v53, 2  ;;  %v5471_v63 = vrot.slane %v5470_v49, 2  ;;  %v5003_v46 = vadd.f32 %v5002_v15, %v5001_v48 }
 0x2ad   : > { %v5477_v20 = vrot.slane %v5476_v45, 2  ;;  %v5483_v36 = vrot.slane %v5482_v21, 2  ;;  %v5489_v43 = vrot.slane %v5488_v30, 2  ;;  %v5494_v32 = vadd.f32 %v5493_v59, %v5455_v1 }
 0x2ae   : > { %v5460_v35 = vadd.f32 %v5459_v13, %v5458_v18  ;;  %v5466_v57 = vadd.f32 %v5465_v8, %v5464_v53  ;;  %v5472_v41 = vadd.f32 %v5471_v63, %v5470_v49  ;;  %v5015_v60 = vcombine.low %v4997_v50, %v5003_v46  ;;  %v20236_v46 = vld [vmem:[#allocation42_spill] sm:$0xff] }
 0x2af   : > { %v5478_v12 = vadd.f32 %v5477_v20, %v5476_v45  ;;  %v5484_v10 = vadd.f32 %v5483_v36, %v5482_v21  ;;  %v5490_v62 = vadd.f32 %v5489_v43, %v5488_v30  ;;  %v5495_v29 = vrot.slane %v5494_v32, 2 }
 0x2b0   : > { %v5461_v61 = vrot.slane %v5460_v35, 1  ;;  %v5467_v26 = vrot.slane %v5466_v57, 1  ;;  %v5473_v33 = vrot.slane %v5472_v41, 1  ;;  %v5043_v40 = vrot.slane %v5015_v60, %v17962_v39  ;;  %v20238_v60 = vld [vmem:[#allocation44_spill] sm:$0xff] }
 0x2b1   : > { %v5479_v37 = vrot.slane %v5478_v12, 1  ;;  %v5485_v23 = vrot.slane %v5484_v10, 1  ;;  %v5491_v48 = vrot.slane %v5490_v62, 1  ;;  %v5496_v18 = vadd.f32 %v5495_v29, %v5494_v32  ;;  %v20241_v29 = vld [vmem:[#allocation52_spill] sm:$0xff] }
 0x2b2   : > { %v5462_v3 = vadd.f32 %v5461_v61, %v5460_v35  ;;  %v5468_v44 = vadd.f32 %v5467_v26, %v5466_v57  ;;  %v5474_v15 = vadd.f32 %v5473_v33, %v5472_v41  ;;  %v5045_v53 = vcombine.low %v5036_v2, %v5043_v40  ;;  %v20237_v2 = vld [vmem:[#allocation19_spill] sm:$0xff] }
 0x2b3   : > { %v5480_v49 = vadd.f32 %v5479_v37, %v5478_v12  ;;  %v5486_v1 = vadd.f32 %v5485_v23, %v5484_v10  ;;  %v5492_v50 = vadd.f32 %v5491_v48, %v5490_v62  ;;  %v5497_v45 = vrot.slane %v5496_v18, 1  ;;  %v20239_v62 = vld [vmem:[#allocation14_spill] sm:$0xff] }
 0x2b4   : > { %v5499_v21 = vrot.slane %v5456_v52, 4  ;;  %v5513_v30 = vcombine.low %v5462_v3, %v5468_v44  ;;  %v5566_v13 = vmul.f32 %v20221_v55, %v20205_v6  ;;  %v5059_v8 = vrot.slane %v5045_v53, %v17962_v39 }
 0x2b5   : > { %v5514_v63 = vcombine.low %v5474_v15, %v5480_v49  ;;  %v5515_v59 = vcombine.low %v5486_v1, %v5492_v50  ;;  %v5567_v20 = vmul.f32 %v20223_v17, %v20236_v46  ;;  %v5568_v35 = vmul.f32 %v20225_v24, %v20237_v2  ;;  %v20242_v15 = vld [vmem:[#allocation56_spill] sm:$0xff] }
 0x2b6   : > { %v5500_v36 = vadd.f32 %v5499_v21, %v5456_v52  ;;  %v18200_v43 = vrot.slane %v5513_v30, %v17962_v39  ;;  %v5060_v57 = vcombine.low %v5052_v9, %v5059_v8  ;;  %v5498_v41 = vadd.f32 %v5497_v45, %v5496_v18  ;;  %v20240_v52 = vld [vmem:[#allocation33_spill] sm:$0xff] }
 0x2b7   : > { %v5530_v32 = vrot.slane %v5514_v63, %v17962_v39  ;;  %v5569_v6 = vmul.f32 %v20227_v47, %v20238_v60  ;;  %v5537_v10 = vrot.slane %v5515_v59, %v17962_v39  ;;  %v5570_v61 = vmul.f32 %v20229_v42, %v20239_v62 }
 0x2b8   : > { %v5501_v12 = vrot.slane %v5500_v36, 2  ;;  %v5571_v26 = vmul.f32 %v20231_v16, %v20240_v52  ;;  %5063 = vst [vmem:[#allocation2 + $0x41] ss:$8 sm:$0xf] %v5060_v57  ;;  %v5572_v9 = vmul.f32 %v20233_v7, %v20241_v29  ;;  %v5574_v40 = vrot.slane %v5566_v13, 4 }
 0x2b9   : > { %v5545_v33 = vcombine.low %v18200_v43, %v5530_v32  ;;  %v5580_v37 = vrot.slane %v5567_v20, 4  ;;  %5064 = vst [vmem:[#allocation2 + $0x41] ss:$8 sm:$0xf0] %v5060_v57  ;;  %v5586_v48 = vrot.slane %v5568_v35, 4  ;;  %v5592_v3 = vrot.slane %v5569_v6, 4 }
 0x2ba   : > { %v5502_v23 = vadd.f32 %v5501_v12, %v5500_v36  ;;  %v5598_v44 = vrot.slane %v5570_v61, 4  ;;  %v5573_v18 = vmul.f32 %v20235_v25, %v20242_v15  ;;  %v5575_v53 = vadd.f32 %v5574_v40, %v5566_v13 }
 0x2bb   : > { %v5581_v49 = vadd.f32 %v5580_v37, %v5567_v20  ;;  %v5604_v1 = vrot.slane %v5571_v26, 4  ;;  %v5587_v45 = vadd.f32 %v5586_v48, %v5568_v35  ;;  %v5593_v21 = vadd.f32 %v5592_v3, %v5569_v6 }
 0x2bc   : > { %v5503_v50 = vrot.slane %v5502_v23, 1  ;;  %v5599_v30 = vadd.f32 %v5598_v44, %v5570_v61  ;;  %v5576_v8 = vrot.slane %v5575_v53, 2  ;;  %v5610_v46 = vrot.slane %v5572_v9, 4 }
 0x2bd   : > { %v5582_v63 = vrot.slane %v5581_v49, 2  ;;  %v5605_v59 = vadd.f32 %v5604_v1, %v5571_v26  ;;  %v5588_v2 = vrot.slane %v5587_v45, 2  ;;  %v5594_v36 = vrot.slane %v5593_v21, 2 }
 0x2be   : > { %v5504_v43 = vadd.f32 %v5503_v50, %v5502_v23  ;;  %v5600_v57 = vrot.slane %v5599_v30, 2  ;;  %v5577_v32 = vadd.f32 %v5576_v8, %v5575_v53  ;;  %v5611_v62 = vadd.f32 %v5610_v46, %v5572_v9 }
 0x2bf   : > { %v5583_v60 = vadd.f32 %v5582_v63, %v5581_v49  ;;  %v5606_v12 = vrot.slane %v5605_v59, 2  ;;  %v5589_v13 = vadd.f32 %v5588_v2, %v5587_v45  ;;  %v5595_v20 = vadd.f32 %v5594_v36, %v5593_v21 }
 0x2c0   : > { %v5516_v52 = vcombine.low %v5498_v41, %v5504_v43  ;;  %v5601_v29 = vadd.f32 %v5600_v57, %v5599_v30  ;;  %v5578_v40 = vrot.slane %v5577_v32, 1  ;;  %v5612_v61 = vrot.slane %v5611_v62, 2 }
 0x2c1   : > { %v5584_v35 = vrot.slane %v5583_v60, 1  ;;  %v5607_v6 = vadd.f32 %v5606_v12, %v5605_v59  ;;  %v5590_v26 = vrot.slane %v5589_v13, 1  ;;  %v5596_v48 = vrot.slane %v5595_v20, 1 }
 0x2c2   : > { %v5544_v37 = vrot.slane %v5516_v52, %v17962_v39  ;;  %v5602_v23 = vrot.slane %v5601_v29, 1  ;;  %v5579_v3 = vadd.f32 %v5578_v40, %v5577_v32  ;;  %v5613_v53 = vadd.f32 %v5612_v61, %v5611_v62 }
 0x2c3   : > { %v5585_v44 = vadd.f32 %v5584_v35, %v5583_v60  ;;  %v5608_v15 = vrot.slane %v5607_v6, 1  ;;  %v5591_v1 = vadd.f32 %v5590_v26, %v5589_v13  ;;  %v5597_v9 = vadd.f32 %v5596_v48, %v5595_v20  ;;  %v20243_v35 = vld [vmem:[#allocation34_spill] sm:$0xff] }
 0x2c4   : > { %v5546_v49 = vcombine.low %v5537_v10, %v5544_v37  ;;  %v5603_v41 = vadd.f32 %v5602_v23, %v5601_v29  ;;  %v5614_v45 = vrot.slane %v5613_v53, 1  ;;  %v5616_v21 = vrot.slane %v5573_v18, 4 }
 0x2c5   : > { %v5609_v50 = vadd.f32 %v5608_v15, %v5607_v6  ;;  %v5630_v30 = vcombine.low %v5579_v3, %v5585_v44  ;;  %v5553_v8 = vrot.slane %v5545_v33, %v17962_v39  ;;  %v5631_v59 = vcombine.low %v5591_v1, %v5597_v9 }
 0x2c6   : > { %v5560_v63 = vrot.slane %v5546_v49, %v17962_v39  ;;  %v5683_v46 = vmul.f32 %v20221_v55, %v20179_v22  ;;  %v5617_v43 = vadd.f32 %v5616_v21, %v5573_v18  ;;  %v5684_v10 = vmul.f32 %v20223_v17, %v20180_v14 }
 0x2c7   : > { %v5632_v2 = vcombine.low %v5603_v41, %v5609_v50  ;;  %v18223_v36 = vrot.slane %v5630_v30, %v17962_v39  ;;  %v5647_v32 = vrot.slane %v5631_v59, %v17962_v39  ;;  %v5685_v33 = vmul.f32 %v20225_v24, %v20181_v34 }
 0x2c8   : > { %v5561_v57 = vcombine.low %v5553_v8, %v5560_v63  ;;  %v5686_v60 = vmul.f32 %v20227_v47, %v20182_v11  ;;  %v5615_v12 = vadd.f32 %v5614_v45, %v5613_v53  ;;  %v5618_v62 = vrot.slane %v5617_v43, 2 }
 0x2c9   : > { %v5687_v22 = vmul.f32 %v20229_v42, %v20183_v31  ;;  %v5688_v18 = vmul.f32 %v20231_v16, %v20154_v19  ;;  %v5654_v14 = vrot.slane %v5632_v2, %v17962_v39  ;;  %v5662_v52 = vcombine.low %v18223_v36, %v5647_v32 }
 0x2ca   : > { %5564 = vst [vmem:[#allocation2 + $0x42] ss:$8 sm:$0xf] %v5561_v57  ;;  %v5689_v13 = vmul.f32 %v20233_v7, %v20133_v58  ;;  %v5691_v34 = vrot.slane %v5683_v46, 4  ;;  %v5619_v20 = vadd.f32 %v5618_v62, %v5617_v43  ;;  %v5697_v11 = vrot.slane %v5684_v10, 4 }
 0x2cb   : > { %5565 = vst [vmem:[#allocation2 + $0x42] ss:$8 sm:$0xf0] %v5561_v57  ;;  %v5703_v29 = vrot.slane %v5685_v33, 4  ;;  %v5709_v40 = vrot.slane %v5686_v60, 4  ;;  %v5690_v31 = vmul.f32 %v20235_v25, %v20243_v35  ;;  %v5715_v61 = vrot.slane %v5687_v22, 4 }
 0x2cc   : > { %v5692_v6 = vadd.f32 %v5691_v34, %v5683_v46  ;;  %v5721_v19 = vrot.slane %v5688_v18, 4  ;;  %v5620_v37 = vrot.slane %v5619_v20, 1  ;;  %v5698_v26 = vadd.f32 %v5697_v11, %v5684_v10 }
 0x2cd   : > { %v5704_v48 = vadd.f32 %v5703_v29, %v5685_v33  ;;  %v5710_v23 = vadd.f32 %v5709_v40, %v5686_v60  ;;  %v5716_v44 = vadd.f32 %v5715_v61, %v5687_v22  ;;  %v5727_v58 = vrot.slane %v5689_v13, 4 }
 0x2ce   : > { %v5693_v3 = vrot.slane %v5692_v6, 2  ;;  %v5722_v15 = vadd.f32 %v5721_v19, %v5688_v18  ;;  %v5621_v53 = vadd.f32 %v5620_v37, %v5619_v20  ;;  %v5699_v49 = vrot.slane %v5698_v26, 2 }
 0x2cf   : > { %v5705_v1 = vrot.slane %v5704_v48, 2  ;;  %v5711_v9 = vrot.slane %v5710_v23, 2  ;;  %v5717_v50 = vrot.slane %v5716_v44, 2  ;;  %v5728_v21 = vadd.f32 %v5727_v58, %v5689_v13 }
 0x2d0   : > { %v5694_v41 = vadd.f32 %v5693_v3, %v5692_v6  ;;  %v5723_v45 = vrot.slane %v5722_v15, 2  ;;  %v5633_v30 = vcombine.low %v5615_v12, %v5621_v53  ;;  %v5700_v8 = vadd.f32 %v5699_v49, %v5698_v26  ;;  %v20244_v3 = vld [vmem:[#allocation41_spill] sm:$0xff] }
 0x2d1   : > { %v5706_v63 = vadd.f32 %v5705_v1, %v5704_v48  ;;  %v5712_v59 = vadd.f32 %v5711_v9, %v5710_v23  ;;  %v5718_v43 = vadd.f32 %v5717_v50, %v5716_v44  ;;  %v5729_v36 = vrot.slane %v5728_v21, 2  ;;  %v20245_v53 = vld [vmem:[#allocation17_spill] sm:$0xff]  ;;  %v20246_v9 = vld [vmem:[#allocation20_spill] sm:$0xff] }
 0x2d2   : > { %v5695_v46 = vrot.slane %v5694_v41, 1  ;;  %v5724_v2 = vadd.f32 %v5723_v45, %v5722_v15  ;;  %v5661_v10 = vrot.slane %v5633_v30, %v17962_v39  ;;  %v5701_v57 = vrot.slane %v5700_v8, 1 }
 0x2d3   : > { %v5707_v32 = vrot.slane %v5706_v63, 1  ;;  %v5713_v33 = vrot.slane %v5712_v59, 1  ;;  %v5719_v62 = vrot.slane %v5718_v43, 1  ;;  %v5730_v18 = vadd.f32 %v5729_v36, %v5728_v21  ;;  %v20248_v21 = vld [vmem:[#allocation31_spill] sm:$0xff] }
 0x2d4   : > { %v5696_v60 = vadd.f32 %v5695_v46, %v5694_v41  ;;  %v5725_v22 = vrot.slane %v5724_v2, 1  ;;  %v5663_v34 = vcombine.low %v5654_v14, %v5661_v10  ;;  %v5702_v20 = vadd.f32 %v5701_v57, %v5700_v8  ;;  %v20247_v41 = vld [vmem:[#allocation36_spill] sm:$0xff]  ;;  %v20249_v8 = vld [vmem:[#allocation38_spill] sm:$0xff]  ;;  %v20250_v36 = vld [vmem:[#allocation55_spill] sm:$0xff] }
 0x2d5   : > { %v5708_v13 = vadd.f32 %v5707_v32, %v5706_v63  ;;  %v5714_v12 = vadd.f32 %v5713_v33, %v5712_v59  ;;  %v5720_v11 = vadd.f32 %v5719_v62, %v5718_v43  ;;  %v5731_v40 = vrot.slane %v5730_v18, 1 }
 0x2d6   : > { %v5726_v29 = vadd.f32 %v5725_v22, %v5724_v2  ;;  %v5733_v35 = vrot.slane %v5690_v31, 4  ;;  %v5670_v6 = vrot.slane %v5662_v52, %v17962_v39  ;;  %v5677_v61 = vrot.slane %v5663_v34, %v17962_v39 }
 0x2d7   : > { %v5747_v19 = vcombine.low %v5696_v60, %v5702_v20  ;;  %v5748_v37 = vcombine.low %v5708_v13, %v5714_v12  ;;  %v5800_v23 = vmul.f32 %v20221_v55, %v20185_v4  ;;  %v5801_v14 = vmul.f32 %v20223_v17, %v20244_v3 }
 0x2d8   : > { %v5734_v26 = vadd.f32 %v5733_v35, %v5690_v31  ;;  %v5749_v48 = vcombine.low %v5720_v11, %v5726_v29  ;;  %v5678_v44 = vcombine.low %v5670_v6, %v5677_v61  ;;  %v5802_v52 = vmul.f32 %v20225_v24, %v20245_v53 }
 0x2d9   : > { %v5757_v15 = vrot.slane %v5747_v19, %v17962_v39  ;;  %v5764_v58 = vrot.slane %v5748_v37, %v17962_v39  ;;  %v5732_v49 = vadd.f32 %v5731_v40, %v5730_v18  ;;  %v5803_v31 = vmul.f32 %v20227_v47, %v20246_v9 }
 0x2da   : > { %v5735_v1 = vrot.slane %v5734_v26, 2  ;;  %v5804_v50 = vmul.f32 %v20229_v42, %v20247_v41  ;;  %5681 = vst [vmem:[#allocation2 + $0x43] ss:$8 sm:$0xf] %v5678_v44  ;;  %v5771_v4 = vrot.slane %v5749_v48, %v17962_v39  ;;  %v5805_v30 = vmul.f32 %v20231_v16, %v20248_v21 }
 0x2db   : > { %v5779_v45 = vcombine.low %v5757_v15, %v5764_v58  ;;  %v5806_v63 = vmul.f32 %v20233_v7, %v20249_v8  ;;  %5682 = vst [vmem:[#allocation2 + $0x43] ss:$8 sm:$0xf0] %v5678_v44  ;;  %v5808_v46 = vrot.slane %v5800_v23, 4  ;;  %v5814_v43 = vrot.slane %v5801_v14, 4 }
 0x2dc   : > { %v5736_v59 = vadd.f32 %v5735_v1, %v5734_v26  ;;  %v5820_v2 = vrot.slane %v5802_v52, 4  ;;  %v5807_v10 = vmul.f32 %v20235_v25, %v20250_v36  ;;  %v5826_v57 = vrot.slane %v5803_v31, 4 }
 0x2dd   : > { %v5832_v32 = vrot.slane %v5804_v50, 4  ;;  %v5838_v33 = vrot.slane %v5805_v30, 4  ;;  %v5809_v62 = vadd.f32 %v5808_v46, %v5800_v23  ;;  %v5815_v22 = vadd.f32 %v5814_v43, %v5801_v14 }
 0x2de   : > { %v5737_v60 = vrot.slane %v5736_v59, 1  ;;  %v5821_v18 = vadd.f32 %v5820_v2, %v5802_v52  ;;  %v5827_v34 = vadd.f32 %v5826_v57, %v5803_v31  ;;  %v5844_v12 = vrot.slane %v5806_v63, 4 }
 0x2df   : > { %v5833_v20 = vadd.f32 %v5832_v32, %v5804_v50  ;;  %v5839_v13 = vadd.f32 %v5838_v33, %v5805_v30  ;;  %v5810_v29 = vrot.slane %v5809_v62, 2  ;;  %v5816_v40 = vrot.slane %v5815_v22, 2 }
 0x2e0   : > { %v5738_v11 = vadd.f32 %v5737_v60, %v5736_v59  ;;  %v5822_v35 = vrot.slane %v5821_v18, 2  ;;  %v5828_v6 = vrot.slane %v5827_v34, 2  ;;  %v5845_v37 = vadd.f32 %v5844_v12, %v5806_v63 }
 0x2e1   : > { %v5834_v61 = vrot.slane %v5833_v20, 2  ;;  %v5840_v19 = vrot.slane %v5839_v13, 2  ;;  %v5811_v48 = vadd.f32 %v5810_v29, %v5809_v62  ;;  %v5817_v3 = vadd.f32 %v5816_v40, %v5815_v22 }
 0x2e2   : > { %v5750_v26 = vcombine.low %v5732_v49, %v5738_v11  ;;  %v5823_v44 = vadd.f32 %v5822_v35, %v5821_v18  ;;  %v5829_v15 = vadd.f32 %v5828_v6, %v5827_v34  ;;  %v5846_v58 = vrot.slane %v5845_v37, 2 }
 0x2e3   : > { %v5835_v23 = vadd.f32 %v5834_v61, %v5833_v20  ;;  %v5841_v14 = vadd.f32 %v5840_v19, %v5839_v13  ;;  %v5812_v52 = vrot.slane %v5811_v48, 1  ;;  %v5818_v1 = vrot.slane %v5817_v3, 1 }
 0x2e4   : > { %v5778_v53 = vrot.slane %v5750_v26, %v17962_v39  ;;  %v5824_v9 = vrot.slane %v5823_v44, 1  ;;  %v5830_v31 = vrot.slane %v5829_v15, 1  ;;  %v5847_v21 = vadd.f32 %v5846_v58, %v5845_v37 }
 0x2e5   : > { %v5836_v41 = vrot.slane %v5835_v23, 1  ;;  %v5842_v50 = vrot.slane %v5841_v14, 1  ;;  %v5787_v8 = vrot.slane %v5779_v45, %v17962_v39  ;;  %v5813_v49 = vadd.f32 %v5812_v52, %v5811_v48 }
 0x2e6   : > { %v5780_v30 = vcombine.low %v5771_v4, %v5778_v53  ;;  %v5819_v63 = vadd.f32 %v5818_v1, %v5817_v3  ;;  %v5825_v59 = vadd.f32 %v5824_v9, %v5823_v44  ;;  %v5831_v46 = vadd.f32 %v5830_v31, %v5829_v15 }
 0x2e7   : > { %v5837_v43 = vadd.f32 %v5836_v41, %v5835_v23  ;;  %v5848_v2 = vrot.slane %v5847_v21, 1  ;;  %v5843_v57 = vadd.f32 %v5842_v50, %v5841_v14  ;;  %v5850_v32 = vrot.slane %v5807_v10, 4 }
 0x2e8   : > { %v5794_v36 = vrot.slane %v5780_v30, %v17962_v39  ;;  %v5864_v33 = vcombine.low %v5813_v49, %v5819_v63  ;;  %v5917_v60 = vmul.f32 %v20190_v54, %v20221_v55  ;;  %v5918_v62 = vmul.f32 %v20191_v56, %v20223_v17 }
 0x2e9   : > { %v5851_v22 = vadd.f32 %v5850_v32, %v5807_v10  ;;  %v5919_v45 = vmul.f32 %v20192_v5, %v20225_v24  ;;  %v5849_v18 = vadd.f32 %v5848_v2, %v5847_v21  ;;  %v5865_v34 = vcombine.low %v5825_v59, %v5831_v46 }
 0x2ea   : > { %v5795_v4 = vcombine.low %v5787_v8, %v5794_v36  ;;  %v5920_v20 = vmul.f32 %v20193_v27, %v20227_v47  ;;  %v5921_v13 = vmul.f32 %v20194_v38, %v20229_v42  ;;  %v5866_v11 = vcombine.low %v5837_v43, %v5843_v57 }
 0x2eb   : > { %v5852_v12 = vrot.slane %v5851_v22, 2  ;;  %v5874_v54 = vrot.slane %v5864_v33, %v17962_v39  ;;  %v5922_v56 = vmul.f32 %v20141_v28, %v20231_v16  ;;  %v5923_v5 = vmul.f32 %v20135_v0, %v20233_v7 }
 0x2ec   : > { %5798 = vst [vmem:[#allocation2 + $0x44] ss:$8 sm:$0xf] %v5795_v4  ;;  %5799 = vst [vmem:[#allocation2 + $0x44] ss:$8 sm:$0xf0] %v5795_v4  ;;  %v5881_v38 = vrot.slane %v5865_v34, %v17962_v39  ;;  %v5888_v52 = vrot.slane %v5866_v11, %v17962_v39  ;;  %v5924_v9 = vmul.f32 %v20147_v51, %v20235_v25 }
 0x2ed   : > { %v5925_v55 = vrot.slane %v5917_v60, 4  ;;  %v5931_v17 = vrot.slane %v5918_v62, 4  ;;  %v5937_v24 = vrot.slane %v5919_v45, 4  ;;  %v5853_v10 = vadd.f32 %v5852_v12, %v5851_v22 }
 0x2ee   : > { %v5943_v27 = vrot.slane %v5920_v20, 4  ;;  %v5949_v47 = vrot.slane %v5921_v13, 4  ;;  %v5955_v29 = vrot.slane %v5922_v56, 4  ;;  %v5961_v0 = vrot.slane %v5923_v5, 4 }
 0x2ef   : > { %v5926_v42 = vadd.f32 %v5925_v55, %v5917_v60  ;;  %v5932_v40 = vadd.f32 %v5931_v17, %v5918_v62  ;;  %v5938_v35 = vadd.f32 %v5937_v24, %v5919_v45  ;;  %v5854_v6 = vrot.slane %v5853_v10, 1 }
 0x2f0   : > { %v5944_v61 = vadd.f32 %v5943_v27, %v5920_v20  ;;  %v5950_v19 = vadd.f32 %v5949_v47, %v5921_v13  ;;  %v5956_v28 = vadd.f32 %v5955_v29, %v5922_v56  ;;  %v5962_v58 = vadd.f32 %v5961_v0, %v5923_v5  ;;  %v6050_v47 = vld [vmem:[%s19696_s3] sm:$0xff]  ;;  %v6035_v29 = vld [vmem:[#allocation2 + $0x8] sm:$0xff] }
 0x2f1   : > { %v5927_v16 = vrot.slane %v5926_v42, 2  ;;  %v5933_v37 = vrot.slane %v5932_v40, 2  ;;  %v5939_v26 = vrot.slane %v5938_v35, 2  ;;  %v5855_v7 = vadd.f32 %v5854_v6, %v5853_v10  ;;  %v6051_v6 = vld [vmem:[%s19696_s3 + $0x8] sm:$0xff] }
 0x2f2   : > { %v5945_v48 = vrot.slane %v5944_v61, 2  ;;  %v5951_v3 = vrot.slane %v5950_v19, 2  ;;  %v5957_v44 = vrot.slane %v5956_v28, 2  ;;  %v5963_v50 = vrot.slane %v5962_v58, 2 }
 0x2f3   : > { %v5928_v15 = vadd.f32 %v5927_v16, %v5926_v42  ;;  %v5934_v23 = vadd.f32 %v5933_v37, %v5932_v40  ;;  %v5940_v14 = vadd.f32 %v5939_v26, %v5938_v35  ;;  %v5867_v53 = vcombine.low %v5849_v18, %v5855_v7  ;;  %v6037_v40 = vld [vmem:[#allocation2 + $0x18] sm:$0xff]  ;;  %v6034_v35 = vld [vmem:[#allocation2] sm:$0xff]  ;;  %v6036_v26 = vld [vmem:[#allocation2 + $0x10] sm:$0xff] }
 0x2f4   : > { %v5946_v1 = vadd.f32 %v5945_v48, %v5944_v61  ;;  %v5952_v31 = vadd.f32 %v5951_v3, %v5950_v19  ;;  %v5958_v41 = vadd.f32 %v5957_v44, %v5956_v28  ;;  %v5896_v30 = vcombine.low %v5874_v54, %v5881_v38 }
 0x2f5   : > { %v5895_v21 = vrot.slane %v5867_v53, %v17962_v39  ;;  %v5929_v8 = vrot.slane %v5928_v15, 1  ;;  %v5935_v49 = vrot.slane %v5934_v23, 1  ;;  %v5941_v63 = vrot.slane %v5940_v14, 1 }
 0x2f6   : > { %v5947_v59 = vrot.slane %v5946_v1, 1  ;;  %v5953_v43 = vrot.slane %v5952_v31, 1  ;;  %v5959_v2 = vrot.slane %v5958_v41, 1  ;;  %v5964_v36 = vadd.f32 %v5963_v50, %v5962_v58 }
 0x2f7   : > { %v5897_v46 = vcombine.low %v5888_v52, %v5895_v21  ;;  %v5967_v57 = vrot.slane %v5924_v9, 4  ;;  %v5904_v32 = vrot.slane %v5896_v30, %v17962_v39  ;;  %v5930_v51 = vadd.f32 %v5929_v8, %v5928_v15  ;;  %v6053_v8 = vld [vmem:[%s19696_s3 + $0x18] sm:$0xff] }
 0x2f8   : > { %v5936_v25 = vadd.f32 %v5935_v49, %v5934_v23  ;;  %v5942_v60 = vadd.f32 %v5941_v63, %v5940_v14  ;;  %v5948_v62 = vadd.f32 %v5947_v59, %v5946_v1  ;;  %v5954_v45 = vadd.f32 %v5953_v43, %v5952_v31  ;;  %v6052_v1 = vld [vmem:[%s19696_s3 + $0x10] sm:$0xff] }
 0x2f9   : > { %v5911_v33 = vrot.slane %v5897_v46, %v17962_v39  ;;  %v5968_v4 = vadd.f32 %v5967_v57, %v5924_v9  ;;  %v5960_v18 = vadd.f32 %v5959_v2, %v5958_v41  ;;  %v5965_v34 = vrot.slane %v5964_v36, 1 }
 0x2fa   : > { %v5981_v12 = vcombine.low %v5930_v51, %v5936_v25  ;;  %v5982_v11 = vcombine.low %v5942_v60, %v5948_v62  ;;  %v8520_v61 = vsel %vm8518_vm6, %v6050_v47, 0  ;;  %v8555_v28 = vand.u32 4294901760, %v6035_v29 }
 0x2fb   : > { %v5912_v22 = vcombine.low %v5904_v32, %v5911_v33  ;;  %v5969_v20 = vrot.slane %v5968_v4, 2  ;;  %v5966_v54 = vadd.f32 %v5965_v34, %v5964_v36  ;;  %v5983_v5 = vcombine.low %v5954_v45, %v5960_v18 }
 0x2fc   : > { %v5991_v17 = vrot.slane %v5981_v12, %v17962_v39  ;;  %v5998_v24 = vrot.slane %v5982_v11, %v17962_v39  ;;  %v9193_v16 = vand.u32 4294901760, %v6037_v40  ;;  %v8557_v37 = vand.u32 4294901760, %v6034_v35 }
 0x2fd   : > { %5915 = vst [vmem:[#allocation2 + $0x45] ss:$8 sm:$0xf] %v5912_v22  ;;  %5916 = vst [vmem:[#allocation2 + $0x45] ss:$8 sm:$0xf0] %v5912_v22  ;;  %v5970_v13 = vadd.f32 %v5969_v20, %v5968_v4  ;;  %v6005_v27 = vrot.slane %v5983_v5, %v17962_v39  ;;  %v18307_v14 = vsub.f32 %v6035_v29, %v8555_v28 }
 0x2fe   : > { %v6013_v42 = vcombine.low %v5991_v17, %v5998_v24  ;;  %v8523_v0 = vsel %vm8518_vm6, %v6051_v6, 0  ;;  %v18303_v3 = vand.u32 4294901760, %v8520_v61  ;;  %v9195_v15 = vand.u32 4294901760, %v6036_v26 }
 0x2ff   : > { %v5971_v56 = vrot.slane %v5970_v13, 1  ;;  %v18305_v23 = vand.u32 4294901760, %v8523_v0  ;;  %v18309_v58 = vsub.f32 %v6037_v40, %v9193_v16  ;;  %v18311_v53 = vsub.f32 %v6034_v35, %v8557_v37 }
 0x300   : > { %v6021_v7 = vrot.slane %v6013_v42, %v17962_v39  ;;  %v18314_v52 = vsub.f32 %v8520_v61, %v18303_v3  ;;  %v18319_v9 = vsub.f32 %v6036_v26, %v9195_v15  ;;  %v8670_v41 = vand.u32 4294901760, %v18307_v14 }
 0x301   : > { %v5972_v55 = vadd.f32 %v5971_v56, %v5970_v13  ;;  %v18322_v31 = vsub.f32 %v8523_v0, %v18305_v23  ;;  %v9308_v50 = vand.u32 4294901760, %v18309_v58  ;;  %v8676_v21 = vand.u32 4294901760, %v18311_v53 }
 0x302   : > { %v8526_v30 = vsel %vm8518_vm6, %v6052_v1, 0  ;;  %v18332_v49 = vand.u32 4294901760, %v18314_v52  ;;  %v9314_v59 = vand.u32 4294901760, %v18319_v9  ;;  %v8529_v43 = vsel %vm8518_vm6, %v6053_v8, 0 }
 0x303   : > { %v5984_v10 = vcombine.low %v5966_v54, %v5972_v55  ;;  %v18335_v63 = vand.u32 4294901760, %v18322_v31  ;;  %v18338_v46 = vand.u32 4294901760, %v8526_v30  ;;  %v8671_v32 = vsub.f32 %v18307_v14, %v8670_v41 }
 0x304   : > { %v9309_v33 = vsub.f32 %v18309_v58, %v9308_v50  ;;  %v8677_v51 = vsub.f32 %v18311_v53, %v8676_v21  ;;  %v8627_v22 = vsub.f32 %v18314_v52, %v18332_v49  ;;  %v9315_v12 = vsub.f32 %v18319_v9, %v9314_v59 }
 0x305   : > { %v6012_v38 = vrot.slane %v5984_v10, %v17962_v39  ;;  %v18360_v11 = vsub.f32 %v8526_v30, %v18338_v46  ;;  %v18362_v54 = vand.u32 4294901760, %v8529_v43  ;;  %v20251_v8 = vmov 0.0  }
 0x306   : > { %v18382_v29 = vand.u32 4294901760, %v8627_v22  ;;  %v9310_v26 = vand.u32 4294901760, %v9309_v33  ;;  %v8678_v0 = vand.u32 4294901760, %v8677_v51  ;;  %v9316_v30 = vand.u32 4294901760, %v9315_v12  ;;  %v11108_v12 = vld [vmem:[%s19698_s5 + $0x8] sm:$0xff] }
 0x307   : > { %v6014_v19 = vcombine.low %v6005_v27, %v6012_v38  ;;  %v8638_v38 = vsub.f32 %v18322_v31, %v18335_v63  ;;  %v18393_v61 = vand.u32 4294901760, %v18360_v11 }
 0x309   : > { %v6028_v48 = vrot.slane %v6014_v19, %v17962_v39  ;;  %v18396_v19 = vsub.f32 %v8529_v43, %v18362_v54 }
 0x30b   : > { %v6029_v44 = vcombine.low %v6021_v7, %v6028_v48 }
 0x30d   : > { %6032 = vst [vmem:[#allocation2 + $0x46] ss:$8 sm:$0xf] %v6029_v44  ;;  %6033 = vst [vmem:[#allocation2 + $0x46] ss:$8 sm:$0xf0] %v6029_v44 }
 0x30e   : > { %v18412_v44 = vand.u32 4294901760, %v8638_v38  ;;  %v11199_v38 = vld [vmem:[%s19700_s7] sm:$0xff] }
 0x314   : > { %v6043_v2 = vld [vmem:[#allocation2 + $0x48] sm:$0x7f]  ;;  %v6045_v36 = vld [vmem:[#allocation2 + $0x58] sm:$0x7f]  ;;  %v6042_v57 = vld [vmem:[#allocation2 + $0x40] sm:$0x7f] }
 0x315   : > { %v8535_v25 = vsel %vm1047_vm0, %v6043_v2, 0  ;;  %v8541_v60 = vsel %vm1047_vm0, %v6045_v36, 0  ;;  %v8532_v62 = vsel %vm1047_vm0, %v6042_v57, 0  ;;  %v6044_v4 = vld [vmem:[#allocation2 + $0x50] sm:$0x7f]  ;;  %v8649_v36 = vsub.f32 %v18360_v11, %v18393_v61 }
 0x316   : > { %v8559_v45 = vand.u32 4294901760, %v8535_v25  ;;  %v9197_v18 = vand.u32 4294901760, %v8541_v60  ;;  %v8561_v34 = vand.u32 4294901760, %v8532_v62  ;;  %v8538_v20 = vsel %vm1047_vm0, %v6044_v4, 0 }
 0x317   : > { %v9199_v13 = vand.u32 4294901760, %v8538_v20  ;;  %v18419_v57 = vand.u32 4294901760, %v18396_v19  ;;  %v18427_v4 = vand.u32 4294901760, %v8649_v36  ;;  %v6046_v36 = vld [vmem:[#allocation2 + $0x60] sm:$0x7f] }
 0x318   : > { %v18364_v56 = vpack.c.bf16 %v8559_v45, %v8555_v28  ;;  %v18366_v5 = vsub.f32 %v8535_v25, %v8559_v45  ;;  %v18368_v55 = vpack.c.bf16 %v9197_v18, %v9193_v16  ;;  %v18370_v17 = vsub.f32 %v8541_v60, %v9197_v18 }
 0x319   : > { %v18372_v24 = vpack.c.bf16 %v8561_v34, %v8557_v37  ;;  %v18374_v10 = vsub.f32 %v8532_v62, %v8561_v34  ;;  %v18376_v27 = vpack.c.bf16 %v9199_v13, %v9195_v15  ;;  %v18378_v47 = vsub.f32 %v8538_v20, %v9199_v13  ;;  %v11107_v20 = vld [vmem:[%s19698_s5] sm:$0xff] }
 0x31a   : > { %14359 = vmatprep.subr.bf16.mxu0 %v18364_v56  ;;  %14383 = vmatprep.subr.bf16.mxu1 %v18368_v55  ;;  %v8682_v42 = vand.u32 4294901760, %v18366_v5  ;;  %v9320_v40 = vand.u32 4294901760, %v18370_v17  ;;  %v8672_v28 = vand.u32 4294901760, %v8671_v32  ;;  %v14366_v60 = vpack.c.bf16 %v18366_v5, %v18307_v14  ;;  %v11109_v14 = vld [vmem:[%s19698_s5 + $0x10] sm:$0xff] }
 0x31b   : > { %14361 = vmatpush1.bf16.msra.mxu0 %v18372_v24  ;;  %14385 = vmatpush1.bf16.msra.mxu1 %v18376_v27  ;;  %v8688_v35 = vand.u32 4294901760, %v18374_v10  ;;  %v9326_v6 = vand.u32 4294901760, %v18378_v47  ;;  %v14390_v62 = vpack.c.bf16 %v18370_v17, %v18309_v58  ;;  %v8660_v22 = vsub.f32 %v18396_v19, %v18419_v57  ;;  %v11201_v58 = vld [vmem:[%s19700_s7 + $0x10] sm:$0xff] }
 0x31c   : > { %v8683_v16 = vsub.f32 %v18366_v5, %v8682_v42  ;;  %v9321_v37 = vsub.f32 %v18370_v17, %v9320_v40  ;;  %v14368_v18 = vpack.c.bf16 %v18374_v10, %v18311_v53  ;;  %v14392_v34 = vpack.c.bf16 %v18378_v47, %v18319_v9  ;;  %v11200_v5 = vld [vmem:[%s19700_s7 + $0x8] sm:$0xff]  ;;  %v14030_v17 = vld [vmem:[%s19701_s8 + $0x10] sm:$0xff]  ;;  %v11202_v53 = vld [vmem:[%s19700_s7 + $0x18] sm:$0xff] }
 0x31d   : > { %v8689_v7 = vsub.f32 %v18374_v10, %v8688_v35  ;;  %v9327_v48 = vsub.f32 %v18378_v47, %v9326_v6  ;;  %v18435_v45 = vand.u32 4294901760, %v8660_v22  ;;  %v15545_v13 = vmov 0   ;;  %v14156_v9 = vld [vmem:[#allocation3] sm:$0x1]  ;;  %v6039_v47 = vld [vmem:[#allocation2 + $0x28] sm:$0xff] }
 0x31e   : > { %8629 = vmatmul.mubr.f32.vlgmr.msra.gmra.mrb[8].mxu0 %v18382_v29  ;;  %9267 = vmatmul.mubr.f32.vlgmr.msra.gmra.mrb[8].mxu1 %v18382_v29  ;;  %v8684_v15 = vand.u32 4294901760, %v8683_v16  ;;  %v9322_v1 = vand.u32 4294901760, %v9321_v37  ;;  %v14398_v16 = vpack.c.bf16 %v9320_v40, %v9308_v50  ;;  %v14028_v50 = vld [vmem:[%s19701_s8] sm:$0xff]  ;;  %v14400_v40 = vpack.c.bf16 %v9326_v6, %v9314_v59  ;;  %v6049_v59 = vld [vmem:[#allocation2 + $0x78] sm:$0x7f] }
 0x31f   : > { %8634 = vmatprep.mubr.f32.mxu0 %v20251_v8  ;;  %9272 = vmatprep.mubr.f32.mxu1 %v20251_v8  ;;  %v8690_v43 = vand.u32 4294901760, %v8689_v7  ;;  %v9328_v2 = vand.u32 4294901760, %v9327_v48  ;;  %v8553_v10 = vsel %vm1047_vm0, %v6049_v59, 0  ;;  %v6041_v6 = vld [vmem:[#allocation2 + $0x38] sm:$0xff] }
 0x320   : > { %v14362_v32 = vpack.c.bf16 %v8684_v15, %v8672_v28  ;;  %v14386_v33 = vpack.c.bf16 %v9322_v1, %v9310_v26  ;;  %15323 = vset.pattern.permute.xlu0 %v15545_v13  ;;  %15324 = vset.pattern.permute.xlu1 %v15545_v13  ;;  %v14374_v28 = vpack.c.bf16 %v8682_v42, %v8670_v41  ;;  %v11110_v41 = vld [vmem:[%s19698_s5 + $0x18] sm:$0xff]  ;;  %v10473_v26 = vand.u32 4294901760, %v8553_v10 }
 0x321   : > { %v14364_v51 = vpack.c.bf16 %v8690_v43, %v8678_v0  ;;  %v14388_v25 = vpack.c.bf16 %v9328_v2, %v9316_v30  ;;  %11113 = vperm.xlu0 %15323, %v11107_v20   ;;  %11123 = vperm.xlu1 %15324, %v11109_v14   ;;  %v14376_v42 = vpack.c.bf16 %v8688_v35, %v8676_v21  ;;  %v6047_v21 = vld [vmem:[#allocation2 + $0x68] sm:$0x7f]  ;;  %v14031_v37 = vld [vmem:[%s19701_s8 + $0x18] sm:$0xff]  ;;  %v9831_v0 = vand.u32 4294901760, %v6039_v47 }
 0x322   : > { %8640 = vmatmul.mubr.f32.gmra.mrb[10].mxu0 %v18412_v44  ;;  %14363 = vmatprep.subr.bf16.mxu0 %v14362_v32  ;;  %v10469_v7 = vand.u32 4294901760, %v6041_v6  ;;  %v18563_v30 = vsub.f32 %v8553_v10, %v10473_v26  ;;  %v6048_v32 = vld [vmem:[#allocation2 + $0x70] sm:$0x7f] }
 0x323   : > { %9278 = vmatmul.mubr.f32.gmra.mrb[10].mxu1 %v18412_v44  ;;  %14387 = vmatprep.subr.bf16.mxu1 %v14386_v33  ;;  %v18568_v43 = vsub.f32 %v6039_v47, %v9831_v0 }
 0x324   : > { %14365 = vmatpush1.bf16.msra.mxu0 %v14364_v51  ;;  %14389 = vmatpush1.bf16.msra.mxu1 %v14388_v25  ;;  %v18561_v1 = vpack.c.bf16 %v10473_v26, %v10469_v7  ;;  %v18571_v2 = vsub.f32 %v6041_v6, %v10469_v7  ;;  %v8544_v25 = vsel %vm1047_vm0, %v6046_v36, 0 }
 0x325   : > { %14367 = vmatprep.subr.bf16.mxu0 %v14366_v60  ;;  %14391 = vmatprep.subr.bf16.mxu1 %v14390_v62  ;;  %v9946_v33 = vand.u32 4294901760, %v18568_v43  ;;  %v8550_v60 = vsel %vm1047_vm0, %v6048_v32, 0 }
 0x326   : > { %8645 = vmatprep.mubr.f32.mxu0 %v20251_v8  ;;  %9283 = vmatprep.mubr.f32.mxu1 %v20251_v8  ;;  %v10584_v51 = vand.u32 4294901760, %v18571_v2 }
 0x327   : > { %8651 = vmatmul.mubr.f32.gmra.mrb[12].mxu0 %v18427_v4  ;;  %9289 = vmatmul.mubr.f32.gmra.mrb[12].mxu1 %v18427_v4  ;;  %v9947_v20 = vsub.f32 %v18568_v43, %v9946_v33 }
 0x328   : > { %8656 = vmatprep.mubr.f32.mxu0 %v20251_v8  ;;  %9294 = vmatprep.mubr.f32.mxu1 %v20251_v8  ;;  %v10585_v13 = vsub.f32 %v18571_v2, %v10584_v51 }
 0x329   : > { %11118 = vperm.xlu0 %15323, %v11108_v12   ;;  %11128 = vperm.xlu1 %15324, %v11110_v41   ;;  %v9837_v12 = vand.u32 4294901760, %v8544_v25  ;;  %v9948_v41 = vand.u32 4294901760, %v9947_v20 }
 0x32b   : > { %8662 = vmatmul.mubr.f32.gmra.mrb[14].mxu0 %v18435_v45  ;;  %9300 = vmatmul.mubr.f32.gmra.mrb[14].mxu1 %v18435_v45 }
 0x32c   : > { %8752 = vmatprep.mubr.f32.mxu0 %v20251_v8  ;;  %9390 = vmatprep.mubr.f32.mxu1 %v20251_v8 }
 0x32d   : > { %11205 = vperm.xlu0 %15323, %v11199_v38   ;;  %11210 = vperm.xlu1 %15324, %v11200_v5   ;;  %v10475_v38 = vand.u32 4294901760, %v8550_v60 }
 0x32f   : > { %8754 = vmatmul.mubr.f32.vlgmr.msra.gmra.mrb[8].mxu0 %v18303_v3  ;;  %9392 = vmatmul.mubr.f32.vlgmr.msra.gmra.mrb[8].mxu1 %v18303_v3 }
 0x330   : > { %14369 = vmatpush1.bf16.msra.mxu0 %v14368_v18  ;;  %14393 = vmatpush1.bf16.msra.mxu1 %v14392_v34  ;;  %v6038_v18 = vld [vmem:[#allocation2 + $0x20] sm:$0xff]  ;;  %v6040_v34 = vld [vmem:[#allocation2 + $0x30] sm:$0xff] }
 0x331   : > { %14371 = vmatprep.subr.bf16.mxu0 %v18364_v56  ;;  %14395 = vmatprep.subr.bf16.mxu1 %v18368_v55  ;;  %v9833_v14 = vand.u32 4294901760, %v6038_v18 }
 0x332   : > { %8759 = vmatprep.mubr.f32.mxu0 %v20251_v8  ;;  %9397 = vmatprep.mubr.f32.mxu1 %v20251_v8 }
 0x333   : > { %8761 = vmatmul.mubr.f32.gmra.mrb[10].mxu0 %v18305_v23  ;;  %9399 = vmatmul.mubr.f32.gmra.mrb[10].mxu1 %v18305_v23  ;;  %v18605_v5 = vpack.c.bf16 %v9837_v12, %v9833_v14 }
 0x334   : > { %8766 = vmatprep.mubr.f32.mxu0 %v20251_v8  ;;  %9404 = vmatprep.mubr.f32.mxu1 %v20251_v8 }
 0x335   : > { %11215 = vperm.xlu0 %15323, %v11201_v58   ;;  %11220 = vperm.xlu1 %15324, %v11202_v53   ;;  %v10471_v58 = vand.u32 4294901760, %v6040_v34 }
 0x337   : > { %8768 = vmatmul.mubr.f32.gmra.mrb[12].mxu0 %v18338_v46  ;;  %9406 = vmatmul.mubr.f32.gmra.mrb[12].mxu1 %v18338_v46  ;;  %v18619_v59 = vsub.f32 %v6040_v34, %v10471_v58 }
 0x338   : > { %8773 = vmatprep.mubr.f32.mxu0 %v20251_v8  ;;  %9411 = vmatprep.mubr.f32.mxu1 %v20251_v8 }
 0x339   : > { %14034 = vperm.xlu0 %15323, %v14028_v50   ;;  %v10586_v50 = vand.u32 4294901760, %v10585_v13  ;;  %v10590_v47 = vand.u32 4294901760, %v18619_v59 }
 0x33b   : > { %8775 = vmatmul.mubr.f32.gmra.mrb[14].mxu0 %v18362_v54  ;;  %9413 = vmatmul.mubr.f32.gmra.mrb[14].mxu1 %v18362_v54  ;;  %v10591_v26 = vsub.f32 %v18619_v59, %v10590_v47 }
 0x33c   : > { %8853 = vmatprep.mubr.f32.mxu0 %v20251_v8  ;;  %9491 = vmatprep.mubr.f32.mxu1 %v20251_v8 }
 0x33d   : > { %14044 = vperm.xlu0 %15323, %v14030_v17   ;;  %v18607_v17 = vsub.f32 %v8544_v25, %v9837_v12  ;;  %v10592_v32 = vand.u32 4294901760, %v10591_v26 }
 0x33f   : > { %8856 = vmatmul.mubr.f32.vlgmr.msra.gmra.mrb[8].mxu0 %v18314_v52  ;;  %9494 = vmatmul.mubr.f32.vlgmr.msra.gmra.mrb[8].mxu1 %v18314_v52 }
 0x340   : > { %14373 = vmatpush1.bf16.msra.mxu0 %v18372_v24  ;;  %14397 = vmatpush1.bf16.msra.mxu1 %v18376_v27 }
 0x341   : > { %14375 = vmatprep.subr.bf16.mxu0 %v14374_v28  ;;  %14399 = vmatprep.subr.bf16.mxu1 %v14398_v16 }
 0x342   : > { %8861 = vmatprep.mubr.f32.mxu0 %v20251_v8  ;;  %9499 = vmatprep.mubr.f32.mxu1 %v20251_v8 }
 0x343   : > { %8864 = vmatmul.mubr.f32.gmra.mrb[10].mxu0 %v18322_v31  ;;  %9502 = vmatmul.mubr.f32.gmra.mrb[10].mxu1 %v18322_v31 }
 0x344   : > { %8869 = vmatprep.mubr.f32.mxu0 %v20251_v8  ;;  %9507 = vmatprep.mubr.f32.mxu1 %v20251_v8 }
 0x345   : > { %14159 = vperm.xlu0 %15323, %v14156_v9  }
 0x347   : > { %8872 = vmatmul.mubr.f32.gmra.mrb[12].mxu0 %v18360_v11  ;;  %9510 = vmatmul.mubr.f32.gmra.mrb[12].mxu1 %v18360_v11 }
 0x348   : > { %8877 = vmatprep.mubr.f32.mxu0 %v20251_v8  ;;  %9515 = vmatprep.mubr.f32.mxu1 %v20251_v8 }
 0x34b   : > { %8880 = vmatmul.mubr.f32.gmra.mrb[14].mxu0 %v18396_v19  ;;  %9518 = vmatmul.mubr.f32.gmra.mrb[14].mxu1 %v18396_v19 }
 0x34c   : > { %8954 = vmatprep.mubr.f32.mxu0 %v20251_v8  ;;  %9592 = vmatprep.mubr.f32.mxu1 %v20251_v8 }
 0x34f   : > { %8958 = vmatmul.mubr.f32.vlgmr.msra.gmra.mrb[8].mxu0 %v18332_v49  ;;  %9596 = vmatmul.mubr.f32.vlgmr.msra.gmra.mrb[8].mxu1 %v18332_v49 }
 0x350   : > { %14377 = vmatpush1.bf16.msra.mxu0 %v14376_v42  ;;  %14401 = vmatpush1.bf16.msra.mxu1 %v14400_v40  ;;  %v18609_v42 = vpack.c.bf16 %v10475_v38, %v10471_v58  ;;  %v18611_v40 = vsub.f32 %v8550_v60, %v10475_v38 }
 0x351   : > { %14379 = vmatprep.subr.bf16.mxu0 %v18364_v56  ;;  %14403 = vmatprep.subr.bf16.mxu1 %v18368_v55  ;;  %v14029_v56 = vld [vmem:[%s19701_s8 + $0x8] sm:$0xff]  ;;  %v8547_v55 = vsel %vm1047_vm0, %v6047_v21, 0  ;;  %v18616_v21 = vsub.f32 %v6038_v18, %v9833_v14  ;;  %vm11223_vm0 = vcmask 261120  }
 0x352   : > { %8963 = vmatprep.mubr.f32.mxu0 %v20251_v8  ;;  %9601 = vmatprep.mubr.f32.mxu1 %v20251_v8  ;;  %v9835_v35 = vand.u32 4294901760, %v8547_v55 }
 0x353   : > { %8967 = vmatmul.mubr.f32.gmra.mrb[10].mxu0 %v18335_v63  ;;  %9605 = vmatmul.mubr.f32.gmra.mrb[10].mxu1 %v18335_v63  ;;  %v9952_v10 = vand.u32 4294901760, %v18616_v21 }
 0x354   : > { %8972 = vmatprep.mubr.f32.mxu0 %v20251_v8  ;;  %9610 = vmatprep.mubr.f32.mxu1 %v20251_v8  ;;  %v18555_v48 = vpack.c.bf16 %v9835_v35, %v9831_v0  ;;  %v18559_v15 = vsub.f32 %v8547_v55, %v9835_v35  ;;  %v10602_v55 = vand.u32 4294901760, %v18611_v40 }
 0x355   : > { %14039 = vperm.xlu1 %15324, %v14029_v56   ;;  %v9964_v56 = vand.u32 4294901760, %v18607_v17 }
 0x356   : > { %v10603_v6 = vsub.f32 %v18611_v40, %v10602_v55 }
 0x357   : > { %8976 = vmatmul.mubr.f32.gmra.mrb[12].mxu0 %v18393_v61  ;;  %9614 = vmatmul.mubr.f32.gmra.mrb[12].mxu1 %v18393_v61  ;;  %v9965_v35 = vsub.f32 %v18607_v17, %v9964_v56 }
 0x358   : > { %8981 = vmatprep.mubr.f32.mxu0 %v20251_v8  ;;  %9619 = vmatprep.mubr.f32.mxu1 %v20251_v8  ;;  %v10604_v7 = vand.u32 4294901760, %v10603_v6 }
 0x359   : > { %14049 = vperm.xlu1 %15324, %v14031_v37   ;;  %v9953_v37 = vsub.f32 %v18616_v21, %v9952_v10  ;;  %v9966_v0 = vand.u32 4294901760, %v9965_v35 }
 0x35a   : > { %v14436_v60 = vpack.c.bf16 %v10604_v7, %v10592_v32 }
 0x35b   : > { %8985 = vmatmul.mubr.f32.gmra.mrb[14].mxu0 %v18419_v57  ;;  %9623 = vmatmul.mubr.f32.gmra.mrb[14].mxu1 %v18419_v57  ;;  %v9954_v36 = vand.u32 4294901760, %v9953_v37 }
 0x35c   : > { %9067 = vmatprep.mubr.f32.mxu0 %v20251_v8  ;;  %9705 = vmatprep.mubr.f32.mxu1 %v20251_v8 }
 0x35d   : > { %v14412_v25 = vpack.c.bf16 %v9966_v0, %v9954_v36 }
 0x35f   : > { %9069 = vmatmul.mubr.f32.vlgmr.msra.gmra.mrb[8].mxu0 %v18303_v3  ;;  %9707 = vmatmul.mubr.f32.vlgmr.msra.gmra.mrb[8].mxu1 %v18303_v3 }
 0x360   : > { %14381 = vmatpush1.bf16.msra.mxu0 %v18372_v24  ;;  %14405 = vmatpush1.bf16.msra.mxu1 %v18376_v27  ;;  %v9958_v24 = vand.u32 4294901760, %v18559_v15  ;;  %v10596_v27 = vand.u32 4294901760, %v18563_v30 }
 0x361   : > { %14407 = vmatprep.subr.bf16.mxu0 %v18555_v48  ;;  %14431 = vmatprep.subr.bf16.mxu1 %v18561_v1 }
 0x362   : > { %9074 = vmatprep.mubr.f32.mxu0 %v20251_v8  ;;  %9712 = vmatprep.mubr.f32.mxu1 %v20251_v8  ;;  %v9959_v62 = vsub.f32 %v18559_v15, %v9958_v24  ;;  %v10597_v22 = vsub.f32 %v18563_v30, %v10596_v27 }
 0x363   : > { %9076 = vmatmul.mubr.f32.gmra.mrb[10].mxu0 %v18305_v23  ;;  %9714 = vmatmul.mubr.f32.gmra.mrb[10].mxu1 %v18305_v23 }
 0x364   : > { %9081 = vmatprep.mubr.f32.mxu0 %v20251_v8  ;;  %9719 = vmatprep.mubr.f32.mxu1 %v20251_v8  ;;  %v9960_v28 = vand.u32 4294901760, %v9959_v62  ;;  %v10598_v16 = vand.u32 4294901760, %v10597_v22  ;;  %v14414_v62 = vpack.c.bf16 %v18559_v15, %v18568_v43  ;;  %v14438_v22 = vpack.c.bf16 %v18563_v30, %v18571_v2 }
 0x366   : > { %v14410_v53 = vpack.c.bf16 %v9960_v28, %v9948_v41  ;;  %v14434_v9 = vpack.c.bf16 %v10598_v16, %v10586_v50 }
 0x367   : > { %9083 = vmatmul.mubr.f32.gmra.mrb[12].mxu0 %v18338_v46  ;;  %9721 = vmatmul.mubr.f32.gmra.mrb[12].mxu1 %v18338_v46 }
 0x368   : > { %9088 = vmatprep.mubr.f32.mxu0 %v20251_v8  ;;  %9726 = vmatprep.mubr.f32.mxu1 %v20251_v8 }
 0x36b   : > { %9090 = vmatmul.mubr.f32.gmra.mrb[14].mxu0 %v18362_v54  ;;  %9728 = vmatmul.mubr.f32.gmra.mrb[14].mxu1 %v18362_v54 }
 0x36c   : > { %9164 = vmatprep.mubr.f32.mxu0 %v20251_v8  ;;  %9802 = vmatprep.mubr.f32.mxu1 %v20251_v8 }
 0x36f   : > { %9166 = vmatmul.mubr.f32.vlgmr.msra.gmra.mrb[8].mxu0 %v18303_v3  ;;  %9804 = vmatmul.mubr.f32.vlgmr.msra.gmra.mrb[8].mxu1 %v18303_v3 }
 0x370   : > { %14409 = vmatpush1.bf16.msra.mxu0 %v18605_v5  ;;  %14433 = vmatpush1.bf16.msra.mxu1 %v18609_v42 }
 0x371   : > { %14411 = vmatprep.subr.bf16.mxu0 %v14410_v53  ;;  %14435 = vmatprep.subr.bf16.mxu1 %v14434_v9 }
 0x372   : > { %9171 = vmatprep.mubr.f32.mxu0 %v20251_v8  ;;  %9809 = vmatprep.mubr.f32.mxu1 %v20251_v8 }
 0x373   : > { %9173 = vmatmul.mubr.f32.gmra.mrb[10].mxu0 %v18305_v23  ;;  %9811 = vmatmul.mubr.f32.gmra.mrb[10].mxu1 %v18305_v23 }
 0x374   : > { %9178 = vmatprep.mubr.f32.mxu0 %v20251_v8  ;;  %9816 = vmatprep.mubr.f32.mxu1 %v20251_v8 }
 0x377   : > { %9180 = vmatmul.mubr.f32.gmra.mrb[12].mxu0 %v18338_v46  ;;  %9818 = vmatmul.mubr.f32.gmra.mrb[12].mxu1 %v18338_v46 }
 0x378   : > { %9185 = vmatprep.mubr.f32.mxu0 %v20251_v8  ;;  %9823 = vmatprep.mubr.f32.mxu1 %v20251_v8 }
 0x37b   : > { %9187 = vmatmul.mubr.f32.gmra.mrb[14].mxu0 %v18362_v54  ;;  %9825 = vmatmul.mubr.f32.gmra.mrb[14].mxu1 %v18362_v54 }
 0x37c   : > { %9899 = vmatprep.mubr.f32.mxu0 %v20251_v8  ;;  %10537 = vmatprep.mubr.f32.mxu1 %v20251_v8 }
 0x37f   : > { %9905 = vmatmul.mubr.f32.vlgmr.msra.gmra.mrb[16].mxu0 %v18382_v29  ;;  %10543 = vmatmul.mubr.f32.vlgmr.msra.gmra.mrb[16].mxu1 %v18382_v29  ;;  %v14416_v29 = vpack.c.bf16 %v18607_v17, %v18616_v21 }
 0x380   : > { %14413 = vmatpush1.bf16.msra.mxu0 %v14412_v25  ;;  %14437 = vmatpush1.bf16.msra.mxu1 %v14436_v60 }
 0x381   : > { %14415 = vmatprep.subr.bf16.mxu0 %v14414_v62  ;;  %14439 = vmatprep.subr.bf16.mxu1 %v14438_v22 }
 0x382   : > { %9910 = vmatprep.mubr.f32.mxu0 %v20251_v8  ;;  %10548 = vmatprep.mubr.f32.mxu1 %v20251_v8 }
 0x383   : > { %9916 = vmatmul.mubr.f32.gmra.mrb[18].mxu0 %v18412_v44  ;;  %10554 = vmatmul.mubr.f32.gmra.mrb[18].mxu1 %v18412_v44  ;;  %v14440_v44 = vpack.c.bf16 %v18611_v40, %v18619_v59 }
 0x384   : > { %9921 = vmatprep.mubr.f32.mxu0 %v20251_v8  ;;  %10559 = vmatprep.mubr.f32.mxu1 %v20251_v8 }
 0x387   : > { %9927 = vmatmul.mubr.f32.gmra.mrb[20].mxu0 %v18427_v4  ;;  %10565 = vmatmul.mubr.f32.gmra.mrb[20].mxu1 %v18427_v4  ;;  %v14422_v4 = vpack.c.bf16 %v9958_v24, %v9946_v33 }
 0x388   : > { %9932 = vmatprep.mubr.f32.mxu0 %v20251_v8  ;;  %10570 = vmatprep.mubr.f32.mxu1 %v20251_v8 }
 0x38b   : > { %9938 = vmatmul.mubr.f32.gmra.mrb[22].mxu0 %v18435_v45  ;;  %10576 = vmatmul.mubr.f32.gmra.mrb[22].mxu1 %v18435_v45  ;;  %v14446_v45 = vpack.c.bf16 %v10596_v27, %v10584_v51 }
 0x38c   : > { %10028 = vmatprep.mubr.f32.mxu0 %v20251_v8  ;;  %10666 = vmatprep.mubr.f32.mxu1 %v20251_v8 }
 0x38f   : > { %10030 = vmatmul.mubr.f32.vlgmr.msra.gmra.mrb[16].mxu0 %v18303_v3  ;;  %10668 = vmatmul.mubr.f32.vlgmr.msra.gmra.mrb[16].mxu1 %v18303_v3 }
 0x390   : > { %14417 = vmatpush1.bf16.msra.mxu0 %v14416_v29  ;;  %14441 = vmatpush1.bf16.msra.mxu1 %v14440_v44 }
 0x391   : > { %14419 = vmatprep.subr.bf16.mxu0 %v18555_v48  ;;  %14443 = vmatprep.subr.bf16.mxu1 %v18561_v1 }
 0x392   : > { %10035 = vmatprep.mubr.f32.mxu0 %v20251_v8  ;;  %10673 = vmatprep.mubr.f32.mxu1 %v20251_v8 }
 0x393   : > { %10037 = vmatmul.mubr.f32.gmra.mrb[18].mxu0 %v18305_v23  ;;  %10675 = vmatmul.mubr.f32.gmra.mrb[18].mxu1 %v18305_v23 }
 0x394   : > { %10042 = vmatprep.mubr.f32.mxu0 %v20251_v8  ;;  %10680 = vmatprep.mubr.f32.mxu1 %v20251_v8 }
 0x397   : > { %10044 = vmatmul.mubr.f32.gmra.mrb[20].mxu0 %v18338_v46  ;;  %10682 = vmatmul.mubr.f32.gmra.mrb[20].mxu1 %v18338_v46 }
 0x398   : > { %10049 = vmatprep.mubr.f32.mxu0 %v20251_v8  ;;  %10687 = vmatprep.mubr.f32.mxu1 %v20251_v8 }
 0x39b   : > { %10051 = vmatmul.mubr.f32.gmra.mrb[22].mxu0 %v18362_v54  ;;  %10689 = vmatmul.mubr.f32.gmra.mrb[22].mxu1 %v18362_v54 }
 0x39c   : > { %10129 = vmatprep.mubr.f32.mxu0 %v20251_v8  ;;  %10767 = vmatprep.mubr.f32.mxu1 %v20251_v8 }
 0x39f   : > { %10132 = vmatmul.mubr.f32.vlgmr.msra.gmra.mrb[16].mxu0 %v18314_v52  ;;  %10770 = vmatmul.mubr.f32.vlgmr.msra.gmra.mrb[16].mxu1 %v18314_v52  ;;  %v14424_v52 = vpack.c.bf16 %v9964_v56, %v9952_v10 }
 0x3a0   : > { %14421 = vmatpush1.bf16.msra.mxu0 %v18605_v5  ;;  %14445 = vmatpush1.bf16.msra.mxu1 %v18609_v42  ;;  %v18806_v30 = vpop.permute.xlu0 %11113  ;;  %v18842_v0 = vpop.permute.xlu1 %11123 }
 0x3a1   : > { %14423 = vmatprep.subr.bf16.mxu0 %v14422_v4  ;;  %14447 = vmatprep.subr.bf16.mxu1 %v14446_v45  ;;  %20253 = vst [vmem:[#allocation53_spill] sm:$0xff] %v18806_v30  ;;  %20255 = vst [vmem:[#allocation10_spill] sm:$0xff] %v18842_v0 }
 0x3a2   : > { %10137 = vmatprep.mubr.f32.mxu0 %v20251_v8  ;;  %10775 = vmatprep.mubr.f32.mxu1 %v20251_v8 }
 0x3a3   : > { %10140 = vmatmul.mubr.f32.gmra.mrb[18].mxu0 %v18322_v31  ;;  %10778 = vmatmul.mubr.f32.gmra.mrb[18].mxu1 %v18322_v31  ;;  %v14448_v31 = vpack.c.bf16 %v10602_v55, %v10590_v47 }
 0x3a4   : > { %10145 = vmatprep.mubr.f32.mxu0 %v20251_v8  ;;  %10783 = vmatprep.mubr.f32.mxu1 %v20251_v8 }
 0x3a7   : > { %10148 = vmatmul.mubr.f32.gmra.mrb[20].mxu0 %v18360_v11  ;;  %10786 = vmatmul.mubr.f32.gmra.mrb[20].mxu1 %v18360_v11  ;;  %v11197_v11 = vld [vmem:[%s19699_s6 + $0x10] sm:$0xff] }
 0x3a8   : > { %10153 = vmatprep.mubr.f32.mxu0 %v20251_v8  ;;  %10791 = vmatprep.mubr.f32.mxu1 %v20251_v8  ;;  %v18822_v16 = vpop.permute.xlu0 %11118 }
 0x3a9   : > { %20254 = vst [vmem:[#allocation54_spill] sm:$0xff] %v18822_v16 }
 0x3ab   : > { %10156 = vmatmul.mubr.f32.gmra.mrb[22].mxu0 %v18396_v19  ;;  %10794 = vmatmul.mubr.f32.gmra.mrb[22].mxu1 %v18396_v19  ;;  %v11231_v19 = vsel %vm11223_vm0, %v11197_v11, 0 }
 0x3ac   : > { %10230 = vmatprep.mubr.f32.mxu0 %v20251_v8  ;;  %10868 = vmatprep.mubr.f32.mxu1 %v20251_v8 }
 0x3af   : > { %10234 = vmatmul.mubr.f32.vlgmr.msra.gmra.mrb[16].mxu0 %v18332_v49  ;;  %10872 = vmatmul.mubr.f32.vlgmr.msra.gmra.mrb[16].mxu1 %v18332_v49  ;;  %v11196_v49 = vld [vmem:[%s19699_s6 + $0x8] sm:$0xff] }
 0x3b0   : > { %14425 = vmatpush1.bf16.msra.mxu0 %v14424_v52  ;;  %14449 = vmatpush1.bf16.msra.mxu1 %v14448_v31 }
 0x3b1   : > { %14427 = vmatprep.subr.bf16.mxu0 %v18555_v48  ;;  %14451 = vmatprep.subr.bf16.mxu1 %v18561_v1  ;;  %v18804_v1 = vand.u32 4294901760, %v11231_v19 }
 0x3b2   : > { %10239 = vmatprep.mubr.f32.mxu0 %v20251_v8  ;;  %10877 = vmatprep.mubr.f32.mxu1 %v20251_v8 }
 0x3b3   : > { %10243 = vmatmul.mubr.f32.gmra.mrb[18].mxu0 %v18335_v63  ;;  %10881 = vmatmul.mubr.f32.gmra.mrb[18].mxu1 %v18335_v63  ;;  %v18814_v51 = vsub.f32 %v11231_v19, %v18804_v1 }
 0x3b4   : > { %10248 = vmatprep.mubr.f32.mxu0 %v20251_v8  ;;  %10886 = vmatprep.mubr.f32.mxu1 %v20251_v8 }
 0x3b5   : > { %v18829_v53 = vand.u32 4294901760, %v18814_v51 }
 0x3b7   : > { %10252 = vmatmul.mubr.f32.gmra.mrb[20].mxu0 %v18393_v61  ;;  %10890 = vmatmul.mubr.f32.gmra.mrb[20].mxu1 %v18393_v61 }
 0x3b8   : > { %10257 = vmatprep.mubr.f32.mxu0 %v20251_v8  ;;  %10895 = vmatprep.mubr.f32.mxu1 %v20251_v8 }
 0x3bb   : > { %10261 = vmatmul.mubr.f32.gmra.mrb[22].mxu0 %v18419_v57  ;;  %10899 = vmatmul.mubr.f32.gmra.mrb[22].mxu1 %v18419_v57  ;;  %v11198_v57 = vld [vmem:[%s19699_s6 + $0x18] sm:$0xff] }
 0x3bc   : > { %10343 = vmatprep.mubr.f32.mxu0 %v20251_v8  ;;  %10981 = vmatprep.mubr.f32.mxu1 %v20251_v8  ;;  %v11234_v43 = vsel %vm11223_vm0, %v11198_v57, 0 }
 0x3bd   : > { %v18816_v18 = vand.u32 4294901760, %v11234_v43 }
 0x3bf   : > { %10345 = vmatmul.mubr.f32.vlgmr.msra.gmra.mrb[16].mxu0 %v18303_v3  ;;  %10983 = vmatmul.mubr.f32.vlgmr.msra.gmra.mrb[16].mxu1 %v18303_v3  ;;  %v18832_v9 = vsub.f32 %v11234_v43, %v18816_v18 }
 0x3c0   : > { %14429 = vmatpush1.bf16.msra.mxu0 %v18605_v5  ;;  %14453 = vmatpush1.bf16.msra.mxu1 %v18609_v42 }
 0x3c1   : > { %10350 = vmatprep.mubr.f32.mxu0 %v20251_v8  ;;  %10988 = vmatprep.mubr.f32.mxu1 %v20251_v8 }
 0x3c3   : > { %10352 = vmatmul.mubr.f32.gmra.mrb[18].mxu0 %v18305_v23  ;;  %10990 = vmatmul.mubr.f32.gmra.mrb[18].mxu1 %v18305_v23 }
 0x3c4   : > { %10357 = vmatprep.mubr.f32.mxu0 %v20251_v8  ;;  %10995 = vmatprep.mubr.f32.mxu1 %v20251_v8 }
 0x3c7   : > { %10359 = vmatmul.mubr.f32.gmra.mrb[20].mxu0 %v18338_v46  ;;  %10997 = vmatmul.mubr.f32.gmra.mrb[20].mxu1 %v18338_v46 }
 0x3c8   : > { %10364 = vmatprep.mubr.f32.mxu0 %v20251_v8  ;;  %11002 = vmatprep.mubr.f32.mxu1 %v20251_v8 }
 0x3cb   : > { %10366 = vmatmul.mubr.f32.gmra.mrb[22].mxu0 %v18362_v54  ;;  %11004 = vmatmul.mubr.f32.gmra.mrb[22].mxu1 %v18362_v54 }
 0x3cc   : > { %10440 = vmatprep.mubr.f32.mxu0 %v20251_v8  ;;  %11078 = vmatprep.mubr.f32.mxu1 %v20251_v8 }
 0x3cf   : > { %10442 = vmatmul.mubr.f32.vlgmr.msra.gmra.mrb[16].mxu0 %v18303_v3  ;;  %11080 = vmatmul.mubr.f32.vlgmr.msra.gmra.mrb[16].mxu1 %v18303_v3  ;;  %v11195_v3 = vld [vmem:[%s19699_s6] sm:$0xff] }
 0x3d0   : > { %10447 = vmatprep.mubr.f32.mxu0 %v20251_v8  ;;  %11085 = vmatprep.mubr.f32.mxu1 %v20251_v8 }
 0x3d3   : > { %10449 = vmatmul.mubr.f32.gmra.mrb[18].mxu0 %v18305_v23  ;;  %11087 = vmatmul.mubr.f32.gmra.mrb[18].mxu1 %v18305_v23  ;;  %v11225_v23 = vsel %vm11223_vm0, %v11195_v3, 0 }
 0x3d4   : > { %10454 = vmatprep.mubr.f32.mxu0 %v20251_v8  ;;  %11092 = vmatprep.mubr.f32.mxu1 %v20251_v8  ;;  %v18785_v63 = vand.u32 4294901760, %v11225_v23 }
 0x3d7   : > { %10456 = vmatmul.mubr.f32.gmra.mrb[20].mxu0 %v18338_v46  ;;  %11094 = vmatmul.mubr.f32.gmra.mrb[20].mxu1 %v18338_v46  ;;  %v11228_v46 = vsel %vm11223_vm0, %v11196_v49, 0 }
 0x3d8   : > { %10461 = vmatprep.mubr.f32.mxu0 %v20251_v8  ;;  %11099 = vmatprep.mubr.f32.mxu1 %v20251_v8  ;;  %v18793_v61 = vand.u32 4294901760, %v11228_v46 }
 0x3da   : > { %v18802_v15 = vsub.f32 %v11228_v46, %v18793_v61 }
 0x3db   : > { %10463 = vmatmul.mubr.f32.gmra.mrb[22].mxu0 %v18362_v54  ;;  %11101 = vmatmul.mubr.f32.gmra.mrb[22].mxu1 %v18362_v54  ;;  %v18791_v54 = vsub.f32 %v11225_v23, %v18785_v63 }
 0x3dc   : > { %11308 = vmatprep.mubr.f32.mxu0 %v20251_v8  ;;  %11998 = vmatprep.mubr.f32.mxu1 %v20251_v8  ;;  %v18811_v24 = vand.u32 4294901760, %v18802_v15 }
 0x3dd   : > { %v18799_v48 = vand.u32 4294901760, %v18791_v54 }
 0x3df   : > { %20252 = vst [vmem:[#allocation22_spill] sm:$0xff] %v18799_v48  ;;  %v11312_v2 = vsub.f32 %v18791_v54, %v18799_v48 }
 0x3e1   : > { %v18824_v41 = vand.u32 4294901760, %v11312_v2 }
 0x442   : > { %v9167_v27 = vpop.f32.mrb[8].mxu0  ;;  %v9805_v33 = vpop.f32.mrb[8].mxu1 }
 0x443   : > { %v11131_v34 = vadd.f32 %v18806_v30, %v9167_v27  ;;  %v11133_v20 = vadd.f32 %v18806_v30, %v9805_v33  ;;  %v9169_v13 = vpop.f32.mrb[9].mxu0  ;;  %v9807_v12 = vpop.f32.mrb[9].mxu1 }
 0x444   : > { %v11132_v38 = vadd.f32 %v18806_v30, %v9169_v13  ;;  %v11134_v28 = vadd.f32 %v18806_v30, %v9807_v12 }
 0x445   : > { %v11163_v14 = vmax.f32 %v11131_v34, 0.0  ;;  %v11165_v58 = vmax.f32 %v11133_v20, 0.0 }
 0x446   : > { %v11164_v5 = vmax.f32 %v11132_v38, 0.0  ;;  %v11166_v17 = vmax.f32 %v11134_v28, 0.0  ;;  %v9174_v42 = vpop.f32.mrb[10].mxu0  ;;  %v9812_v40 = vpop.f32.mrb[10].mxu1 }
 0x447   : > { %v11238_v21 = vand.u32 4294901760, %v11163_v14  ;;  %v11928_v59 = vand.u32 4294901760, %v11165_v58  ;;  %v11139_v56 = vadd.f32 %v18822_v16, %v9174_v42  ;;  %v11141_v55 = vadd.f32 %v18822_v16, %v9812_v40  ;;  %v9176_v10 = vpop.f32.mrb[11].mxu0  ;;  %v9814_v47 = vpop.f32.mrb[11].mxu1 }
 0x448   : > { %v18836_v35 = vand.u32 4294901760, %v11164_v5  ;;  %v18838_v6 = vand.u32 4294901760, %v11166_v17  ;;  %v11140_v37 = vadd.f32 %v18822_v16, %v9176_v10  ;;  %v11142_v26 = vadd.f32 %v18822_v16, %v9814_v47  ;;  %v18895_v10 = vpop.permute.xlu1 %11128 }
 0x449   : > { %v18844_v7 = vsub.f32 %v11163_v14, %v11238_v21  ;;  %v18846_v36 = vsub.f32 %v11165_v58, %v11928_v59  ;;  %v11171_v32 = vmax.f32 %v11139_v56, 0.0  ;;  %v11173_v25 = vmax.f32 %v11141_v55, 0.0  ;;  %20256 = vst [vmem:[#allocation62_spill] sm:$0xff] %v18895_v10 }
 0x44a   : > { %v18849_v60 = vsub.f32 %v11164_v5, %v18836_v35  ;;  %v18852_v62 = vsub.f32 %v11166_v17, %v18838_v6  ;;  %v11172_v22 = vmax.f32 %v11140_v37, 0.0  ;;  %v11174_v29 = vmax.f32 %v11142_v26, 0.0  ;;  %v9181_v44 = vpop.f32.mrb[12].mxu0  ;;  %v9819_v4 = vpop.f32.mrb[12].mxu1 }
 0x44b   : > { %v19864_v45 = vand.u32 4294901760, %v18844_v7  ;;  %v19862_v52 = vand.u32 4294901760, %v18846_v36  ;;  %v11242_v31 = vand.u32 4294901760, %v11171_v32  ;;  %v11932_v3 = vand.u32 4294901760, %v11173_v25  ;;  %v9183_v23 = vpop.f32.mrb[13].mxu0  ;;  %v9821_v49 = vpop.f32.mrb[13].mxu1 }
 0x44c   : > { %v19870_v46 = vand.u32 4294901760, %v18849_v60  ;;  %v18857_v11 = vand.u32 4294901760, %v11172_v22  ;;  %v18859_v19 = vand.u32 4294901760, %v11174_v29  ;;  %v19874_v58 = vand.u32 4294901760, %v18852_v62 }
 0x44d   : > { %v18866_v43 = vsub.f32 %v18844_v7, %v19864_v45  ;;  %v18871_v2 = vsub.f32 %v18846_v36, %v19862_v52  ;;  %v18873_v27 = vpack.c.bf16 %v11242_v31, %v11238_v21  ;;  %v18875_v33 = vsub.f32 %v11171_v32, %v11242_v31 }
 0x44e   : > { %v18877_v34 = vpack.c.bf16 %v11932_v3, %v11928_v59  ;;  %v18879_v20 = vsub.f32 %v11173_v25, %v11932_v3  ;;  %v18882_v13 = vsub.f32 %v11172_v22, %v18857_v11  ;;  %v18885_v12 = vsub.f32 %v11174_v29, %v18859_v19  ;;  %v9188_v38 = vpop.f32.mrb[14].mxu0  ;;  %v9826_v28 = vpop.f32.mrb[14].mxu1 }
 0x44f   : > { %v19863_v5 = vand.u32 4294901760, %v18875_v33  ;;  %v11147_v17 = vadd.f32 %v18842_v0, %v9181_v44  ;;  %v9190_v42 = vpop.f32.mrb[15].mxu0  ;;  %v9828_v40 = vpop.f32.mrb[15].mxu1  ;;  %v11149_v55 = vadd.f32 %v18842_v0, %v9819_v4  ;;  %v11148_v26 = vadd.f32 %v18842_v0, %v9183_v23 }
 0x450   : > { %v19865_v59 = vand.u32 4294901760, %v18879_v20  ;;  %v19871_v56 = vand.u32 4294901760, %v18882_v13  ;;  %v11150_v32 = vadd.f32 %v18842_v0, %v9821_v49  ;;  %v11155_v29 = vadd.f32 %v18895_v10, %v9188_v38 }
 0x451   : > { %v18900_v47 = vsub.f32 %v18875_v33, %v19863_v5  ;;  %v11179_v37 = vmax.f32 %v11147_v17, 0.0  ;;  %v11181_v22 = vmax.f32 %v11149_v55, 0.0  ;;  %v11157_v44 = vadd.f32 %v18895_v10, %v9826_v28 }
 0x452   : > { %v12064_v4 = vsub.f32 %v18879_v20, %v19865_v59  ;;  %v11180_v3 = vmax.f32 %v11148_v26, 0.0  ;;  %v11182_v57 = vmax.f32 %v11150_v32, 0.0  ;;  %v11187_v23 = vmax.f32 %v11155_v29, 0.0 }
 0x453   : > { %v11246_v31 = vand.u32 4294901760, %v11179_v37  ;;  %v11375_v17 = vand.u32 4294901760, %v18900_v47  ;;  %v11936_v52 = vand.u32 4294901760, %v11181_v22  ;;  %v11189_v5 = vmax.f32 %v11157_v44, 0.0 }
 0x454   : > { %v11244_v45 = vand.u32 4294901760, %v11180_v3  ;;  %v11934_v55 = vand.u32 4294901760, %v11182_v57  ;;  %v11156_v38 = vadd.f32 %v18895_v10, %v9190_v42  ;;  %v11250_v28 = vand.u32 4294901760, %v11187_v23 }
 0x455   : > { %v18911_v49 = vsub.f32 %v11179_v37, %v11246_v31  ;;  %v18914_v50 = vsub.f32 %v11181_v22, %v11936_v52  ;;  %v11940_v21 = vand.u32 4294901760, %v11189_v5  ;;  %v11158_v59 = vadd.f32 %v18895_v10, %v9828_v40 }
 0x456   : > { %v18918_v32 = vsub.f32 %v11180_v3, %v11244_v45  ;;  %v18920_v47 = vsub.f32 %v11182_v57, %v11934_v55  ;;  %v11188_v29 = vmax.f32 %v11156_v38, 0.0  ;;  %v18923_v44 = vpack.c.bf16 %v11250_v28, %v11246_v31 }
 0x457   : > { %v19867_v26 = vand.u32 4294901760, %v18911_v49  ;;  %v19866_v37 = vand.u32 4294901760, %v18914_v50  ;;  %v18925_v14 = vsub.f32 %v11187_v23, %v11250_v28  ;;  %v18927_v42 = vpack.c.bf16 %v11940_v21, %v11936_v52 }
 0x458   : > { %v12065_v22 = vand.u32 4294901760, %v12064_v4  ;;  %v18933_v3 = vsub.f32 %v11189_v5, %v11940_v21  ;;  %v11248_v38 = vand.u32 4294901760, %v11188_v29  ;;  %v11190_v23 = vmax.f32 %v11158_v59, 0.0 }
 0x459   : > { %v11386_v40 = vsub.f32 %v18911_v49, %v19867_v26  ;;  %v12076_v57 = vsub.f32 %v18914_v50, %v19866_v37  ;;  %v19869_v31 = vand.u32 4294901760, %v18925_v14  ;;  %v18943_v28 = vpack.c.bf16 %v18857_v11, %v18836_v35 }
 0x45a   : > { %v19868_v4 = vand.u32 4294901760, %v18933_v3  ;;  %v18947_v5 = vpack.c.bf16 %v18859_v19, %v18838_v6  ;;  %v18952_v26 = vsub.f32 %v11188_v29, %v11248_v38  ;;  %v11938_v59 = vand.u32 4294901760, %v11190_v23 }
 0x45b   : > { %v11387_v21 = vand.u32 4294901760, %v11386_v40  ;;  %v11398_v37 = vsub.f32 %v18925_v14, %v19869_v31  ;;  %v12077_v25 = vand.u32 4294901760, %v12076_v57  ;;  %14455 = vmatprep.subr.bf16.mxu0 %v18943_v28  ;;  %v18959_v35 = vpack.c.bf16 %v11248_v38, %v11244_v45 }
 0x45c   : > { %v12088_v52 = vsub.f32 %v18933_v3, %v19868_v4  ;;  %14503 = vmatprep.subr.bf16.mxu1 %v18947_v5  ;;  %v11356_v6 = vsub.f32 %v18849_v60, %v19870_v46  ;;  %v11391_v19 = vand.u32 4294901760, %v18952_v26  ;;  %v18965_v29 = vsub.f32 %v11190_v23, %v11938_v59  ;;  %14457 = vmatpush1.bf16.msra.mxu0 %v18873_v27 }
 0x45d   : > { %v11399_v11 = vand.u32 4294901760, %v11398_v37  ;;  %14505 = vmatpush1.bf16.msra.mxu1 %v18877_v34  ;;  %v18969_v40 = vpack.c.bf16 %v11938_v59, %v11934_v55  ;;  %14459 = vmatprep.subr.bf16.mxu0 %v18959_v35  ;;  %v11368_v38 = vsub.f32 %v18882_v13, %v19871_v56  ;;  %v12046_v37 = vsub.f32 %v18852_v62, %v19874_v58 }
 0x45e   : > { %v12089_v57 = vand.u32 4294901760, %v12088_v52  ;;  %v11357_v45 = vand.u32 4294901760, %v11356_v6  ;;  %v12081_v23 = vand.u32 4294901760, %v18965_v29  ;;  %v20257_v4 = vand.u32 4294901760, %v18885_v12 }
 0x45f   : > { %14507 = vmatprep.subr.bf16.mxu1 %v18969_v40  ;;  %v20258_v52 = vand.u32 4294901760, %v18866_v43  ;;  %v20259_v6 = vand.u32 4294901760, %v18871_v2  ;;  %v11369_v46 = vand.u32 4294901760, %v11368_v38  ;;  %v12047_v56 = vand.u32 4294901760, %v12046_v37 }
 0x460   : > { %v12058_v55 = vsub.f32 %v18885_v12, %v20257_v4  ;;  %v20260_v39 = vand.u32 4294901760, %v18918_v32  ;;  %v11392_v10 = vsub.f32 %v18952_v26, %v11391_v19  ;;  %14461 = vmatpush1.bf16.msra.mxu0 %v18923_v44  ;;  %v20261_v4 = vand.u32 4294901760, %v18920_v47 }
 0x461   : > { %v14464_v59 = vpack.c.bf16 %v11375_v17, %v20258_v52  ;;  %v14512_v31 = vpack.c.bf16 %v12065_v22, %v20259_v6  ;;  %14509 = vmatpush1.bf16.msra.mxu1 %v18927_v42  ;;  %v12082_v2 = vsub.f32 %v18965_v29, %v12081_v23  ;;  %v14468_v17 = vpack.c.bf16 %v11399_v11, %v11387_v21 }
 0x462   : > { %v11380_v58 = vsub.f32 %v18918_v32, %v20260_v39  ;;  %v12059_v0 = vand.u32 4294901760, %v12058_v55  ;;  %v12070_v43 = vsub.f32 %v18920_v47, %v20261_v4  ;;  %v14462_v22 = vpack.c.bf16 %v11369_v46, %v11357_v45 }
 0x463   : > { %v11393_v37 = vand.u32 4294901760, %v11392_v10  ;;  %v14516_v52 = vpack.c.bf16 %v12089_v57, %v12077_v25  ;;  %v12083_v16 = vand.u32 4294901760, %v12082_v2  ;;  %v14470_v30 = vpack.c.bf16 %v18882_v13, %v18849_v60  ;;  %11314 = vmatmul.mubr.f32.vlgmr.msra.gmra.mrb[24].mxu0 %v18824_v41 }
 0x464   : > { %v11381_v38 = vand.u32 4294901760, %v11380_v58  ;;  %v14510_v6 = vpack.c.bf16 %v12059_v0, %v12047_v56  ;;  %v12071_v39 = vand.u32 4294901760, %v12070_v43  ;;  %14463 = vmatprep.subr.bf16.mxu0 %v14462_v22  ;;  %v20262_v55 = vsub.f32 %v18802_v15, %v18811_v24  ;;  %12004 = vmatmul.mubr.f32.vlgmr.msra.gmra.mrb[24].mxu1 %v18824_v41 }
 0x465   : > { %v14518_v46 = vpack.c.bf16 %v18885_v12, %v18852_v62  ;;  %v14472_v0 = vpack.c.bf16 %v18875_v33, %v18844_v7  ;;  %v19011_v56 = vand.u32 4294901760, %v18832_v9  ;;  %v14520_v10 = vpack.c.bf16 %v18879_v20, %v18846_v36  ;;  %14465 = vmatpush1.bf16.msra.mxu0 %v14464_v59  ;;  %11319 = vmatprep.mubr.f32.mxu0 %v20251_v8 }
 0x466   : > { %v19003_v4 = vand.u32 4294901760, %v20262_v55  ;;  %v14466_v48 = vpack.c.bf16 %v11393_v37, %v11381_v38  ;;  %14511 = vmatprep.subr.bf16.mxu1 %v14510_v6  ;;  %v14514_v58 = vpack.c.bf16 %v12083_v16, %v12071_v39  ;;  %v14474_v25 = vpack.c.bf16 %v18952_v26, %v18918_v32  ;;  %12009 = vmatprep.mubr.f32.mxu1 %v20251_v8 }
 0x467   : > { %20263 = vst [vmem:[#allocation15_spill] sm:$0xff] %v19011_v56  ;;  %14513 = vmatpush1.bf16.msra.mxu1 %v14512_v31  ;;  %v14522_v21 = vpack.c.bf16 %v18965_v29, %v18920_v47  ;;  %v14476_v11 = vpack.c.bf16 %v18925_v14, %v18911_v49  ;;  %v14524_v16 = vpack.c.bf16 %v18933_v3, %v18914_v50  ;;  %v20264_v57 = vand.u32 4294901760, %v18849_v60 }
 0x468   : > { %v20265_v45 = vand.u32 4294901760, %v18882_v13  ;;  %v20266_v31 = vand.u32 4294901760, %v18852_v62  ;;  %v20267_v29 = vand.u32 4294901760, %v18885_v12  ;;  %v20268_v43 = vand.u32 4294901760, %v18844_v7  ;;  %11325 = vmatmul.mubr.f32.gmra.mrb[26].mxu0 %v19003_v4  ;;  %14467 = vmatprep.subr.bf16.mxu0 %v14466_v48 }
 0x469   : > { %v20269_v2 = vand.u32 4294901760, %v18875_v33  ;;  %v20270_v60 = vand.u32 4294901760, %v18846_v36  ;;  %v20271_v13 = vand.u32 4294901760, %v18879_v20  ;;  %v20272_v62 = vand.u32 4294901760, %v18918_v32  ;;  %12015 = vmatmul.mubr.f32.gmra.mrb[26].mxu1 %v19003_v4  ;;  %14515 = vmatprep.subr.bf16.mxu1 %v14514_v58 }
 0x46a   : > { %v19029_v26 = vpack.c.bf16 %v20265_v45, %v20264_v57  ;;  %v19035_v59 = vpack.c.bf16 %v20267_v29, %v20266_v31  ;;  %v20273_v37 = vand.u32 4294901760, %v18920_v47  ;;  %v20274_v48 = vsub.f32 %v18814_v51, %v18829_v53  ;;  %14469 = vmatpush1.bf16.msra.mxu0 %v14468_v17  ;;  %11330 = vmatprep.mubr.f32.mxu0 %v20251_v8  ;;  %v20281_v57 = vld [vmem:[#allocation54_spill] sm:$0xff] }
 0x46b   : > { %v19041_v22 = vpack.c.bf16 %v20269_v2, %v20268_v43  ;;  %v19048_v38 = vpack.c.bf16 %v20271_v13, %v20270_v60  ;;  %v19052_v12 = vpack.c.bf16 %v11391_v19, %v20272_v62  ;;  %v11345_v36 = vsub.f32 %v18832_v9, %v19011_v56  ;;  %14517 = vmatpush1.bf16.msra.mxu1 %v14516_v52 }
 0x46c   : > { %v19056_v7 = vpack.c.bf16 %v12081_v23, %v20273_v37  ;;  %v19062_v33 = vand.u32 4294901760, %v20274_v48  ;;  %v20275_v20 = vand.u32 4294901760, %v18911_v49  ;;  %v20276_v32 = vand.u32 4294901760, %v18925_v14  ;;  %14471 = vmatprep.subr.bf16.mxu0 %v14470_v30  ;;  %14519 = vmatprep.subr.bf16.mxu1 %v14518_v46  ;;  %v20279_v30 = vld [vmem:[#allocation22_spill] sm:$0xff] }
 0x46d   : > { %v20277_v47 = vand.u32 4294901760, %v18914_v50  ;;  %v20278_v23 = vand.u32 4294901760, %v18933_v3  ;;  %12020 = vmatprep.mubr.f32.mxu1 %v20251_v8  ;;  %v19082_v14 = vand.u32 4294901760, %v11345_v36  ;;  %v20280_v3 = vld [vmem:[#allocation53_spill] sm:$0xff] }
 0x46e   : > { %v19070_v19 = vpack.c.bf16 %v20276_v32, %v20275_v20  ;;  %11336 = vmatmul.mubr.f32.gmra.mrb[28].mxu0 %v19062_v33  ;;  %12026 = vmatmul.mubr.f32.gmra.mrb[28].mxu1 %v19062_v33 }
 0x46f   : > { %v19076_v6 = vpack.c.bf16 %v20278_v23, %v20277_v47  ;;  %11341 = vmatprep.mubr.f32.mxu0 %v20251_v8  ;;  %12031 = vmatprep.mubr.f32.mxu1 %v20251_v8 }
 0x472   : > { %11347 = vmatmul.mubr.f32.gmra.mrb[30].mxu0 %v19082_v14  ;;  %12037 = vmatmul.mubr.f32.gmra.mrb[30].mxu1 %v19082_v14 }
 0x473   : > { %11457 = vmatprep.mubr.f32.mxu0 %v20251_v8  ;;  %12147 = vmatprep.mubr.f32.mxu1 %v20251_v8 }
 0x476   : > { %11459 = vmatmul.mubr.f32.vlgmr.msra.gmra.mrb[24].mxu0 %v18785_v63  ;;  %12149 = vmatmul.mubr.f32.vlgmr.msra.gmra.mrb[24].mxu1 %v18785_v63 }
 0x477   : > { %14473 = vmatpush1.bf16.msra.mxu0 %v14472_v0  ;;  %14521 = vmatpush1.bf16.msra.mxu1 %v14520_v10 }
 0x478   : > { %14475 = vmatprep.subr.bf16.mxu0 %v14474_v25  ;;  %14523 = vmatprep.subr.bf16.mxu1 %v14522_v21 }
 0x479   : > { %11464 = vmatprep.mubr.f32.mxu0 %v20251_v8  ;;  %12154 = vmatprep.mubr.f32.mxu1 %v20251_v8 }
 0x47a   : > { %11466 = vmatmul.mubr.f32.gmra.mrb[26].mxu0 %v18793_v61  ;;  %12156 = vmatmul.mubr.f32.gmra.mrb[26].mxu1 %v18793_v61 }
 0x47b   : > { %14477 = vmatpush1.bf16.msra.mxu0 %v14476_v11  ;;  %14525 = vmatpush1.bf16.msra.mxu1 %v14524_v16 }
 0x47c   : > { %14479 = vmatprep.subr.bf16.mxu0 %v18943_v28  ;;  %14527 = vmatprep.subr.bf16.mxu1 %v18947_v5 }
 0x47d   : > { %11471 = vmatprep.mubr.f32.mxu0 %v20251_v8  ;;  %12161 = vmatprep.mubr.f32.mxu1 %v20251_v8 }
 0x47e   : > { %11473 = vmatmul.mubr.f32.gmra.mrb[28].mxu0 %v18804_v1  ;;  %12163 = vmatmul.mubr.f32.gmra.mrb[28].mxu1 %v18804_v1 }
 0x47f   : > { %11478 = vmatprep.mubr.f32.mxu0 %v20251_v8  ;;  %12168 = vmatprep.mubr.f32.mxu1 %v20251_v8 }
 0x482   : > { %11480 = vmatmul.mubr.f32.gmra.mrb[30].mxu0 %v18816_v18  ;;  %12170 = vmatmul.mubr.f32.gmra.mrb[30].mxu1 %v18816_v18 }
 0x483   : > { %11566 = vmatprep.mubr.f32.mxu0 %v20251_v8  ;;  %12256 = vmatprep.mubr.f32.mxu1 %v20251_v8 }
 0x486   : > { %11569 = vmatmul.mubr.f32.vlgmr.msra.gmra.mrb[24].mxu0 %v18791_v54  ;;  %12259 = vmatmul.mubr.f32.vlgmr.msra.gmra.mrb[24].mxu1 %v18791_v54 }
 0x487   : > { %14481 = vmatpush1.bf16.msra.mxu0 %v18873_v27  ;;  %14529 = vmatpush1.bf16.msra.mxu1 %v18877_v34 }
 0x488   : > { %14483 = vmatprep.subr.bf16.mxu0 %v18959_v35  ;;  %14531 = vmatprep.subr.bf16.mxu1 %v18969_v40 }
 0x489   : > { %11574 = vmatprep.mubr.f32.mxu0 %v20251_v8  ;;  %12264 = vmatprep.mubr.f32.mxu1 %v20251_v8 }
 0x48a   : > { %11577 = vmatmul.mubr.f32.gmra.mrb[26].mxu0 %v18802_v15  ;;  %12267 = vmatmul.mubr.f32.gmra.mrb[26].mxu1 %v18802_v15 }
 0x48b   : > { %14485 = vmatpush1.bf16.msra.mxu0 %v18923_v44  ;;  %14533 = vmatpush1.bf16.msra.mxu1 %v18927_v42 }
 0x48c   : > { %14487 = vmatprep.subr.bf16.mxu0 %v19029_v26  ;;  %14535 = vmatprep.subr.bf16.mxu1 %v19035_v59 }
 0x48d   : > { %11582 = vmatprep.mubr.f32.mxu0 %v20251_v8  ;;  %12272 = vmatprep.mubr.f32.mxu1 %v20251_v8 }
 0x48e   : > { %11585 = vmatmul.mubr.f32.gmra.mrb[28].mxu0 %v18814_v51  ;;  %12275 = vmatmul.mubr.f32.gmra.mrb[28].mxu1 %v18814_v51 }
 0x48f   : > { %11590 = vmatprep.mubr.f32.mxu0 %v20251_v8  ;;  %12280 = vmatprep.mubr.f32.mxu1 %v20251_v8 }
 0x492   : > { %11593 = vmatmul.mubr.f32.gmra.mrb[30].mxu0 %v18832_v9  ;;  %12283 = vmatmul.mubr.f32.gmra.mrb[30].mxu1 %v18832_v9 }
 0x493   : > { %11671 = vmatprep.mubr.f32.mxu0 %v20251_v8  ;;  %12361 = vmatprep.mubr.f32.mxu1 %v20251_v8 }
 0x496   : > { %11675 = vmatmul.mubr.f32.vlgmr.msra.gmra.mrb[24].mxu0 %v20279_v30  ;;  %12365 = vmatmul.mubr.f32.vlgmr.msra.gmra.mrb[24].mxu1 %v20279_v30 }
 0x497   : > { %14489 = vmatpush1.bf16.msra.mxu0 %v19041_v22  ;;  %14537 = vmatpush1.bf16.msra.mxu1 %v19048_v38 }
 0x498   : > { %14491 = vmatprep.subr.bf16.mxu0 %v19052_v12  ;;  %14539 = vmatprep.subr.bf16.mxu1 %v19056_v7 }
 0x499   : > { %11680 = vmatprep.mubr.f32.mxu0 %v20251_v8  ;;  %12370 = vmatprep.mubr.f32.mxu1 %v20251_v8 }
 0x49a   : > { %11684 = vmatmul.mubr.f32.gmra.mrb[26].mxu0 %v18811_v24  ;;  %12374 = vmatmul.mubr.f32.gmra.mrb[26].mxu1 %v18811_v24 }
 0x49b   : > { %14493 = vmatpush1.bf16.msra.mxu0 %v19070_v19  ;;  %14541 = vmatpush1.bf16.msra.mxu1 %v19076_v6 }
 0x49c   : > { %14495 = vmatprep.subr.bf16.mxu0 %v18943_v28  ;;  %14543 = vmatprep.subr.bf16.mxu1 %v18947_v5 }
 0x49d   : > { %11689 = vmatprep.mubr.f32.mxu0 %v20251_v8  ;;  %12379 = vmatprep.mubr.f32.mxu1 %v20251_v8 }
 0x49e   : > { %11693 = vmatmul.mubr.f32.gmra.mrb[28].mxu0 %v18829_v53  ;;  %12383 = vmatmul.mubr.f32.gmra.mrb[28].mxu1 %v18829_v53 }
 0x49f   : > { %11698 = vmatprep.mubr.f32.mxu0 %v20251_v8  ;;  %12388 = vmatprep.mubr.f32.mxu1 %v20251_v8 }
 0x4a2   : > { %11702 = vmatmul.mubr.f32.gmra.mrb[30].mxu0 %v19011_v56  ;;  %12392 = vmatmul.mubr.f32.gmra.mrb[30].mxu1 %v19011_v56  ;;  %v10443_v50 = vpop.f32.mrb[16].mxu0  ;;  %v11081_v49 = vpop.f32.mrb[16].mxu1 }
 0x4a3   : > { %11796 = vmatprep.mubr.f32.mxu0 %v20251_v8  ;;  %12486 = vmatprep.mubr.f32.mxu1 %v20251_v8  ;;  %v11135_v28 = vadd.f32 %v20280_v3, %v10443_v50  ;;  %v11137_v5 = vadd.f32 %v20280_v3, %v11081_v49  ;;  %v10445_v17 = vpop.f32.mrb[17].mxu0  ;;  %v11083_v52 = vpop.f32.mrb[17].mxu1 }
 0x4a4   : > { %v11136_v39 = vadd.f32 %v20280_v3, %v10445_v17  ;;  %v11138_v55 = vadd.f32 %v20280_v3, %v11083_v52 }
 0x4a5   : > { %v11167_v46 = vmax.f32 %v11135_v28, 0.0  ;;  %v11169_v0 = vmax.f32 %v11137_v5, 0.0 }
 0x4a6   : > { %11798 = vmatmul.mubr.f32.vlgmr.msra.gmra.mrb[24].mxu0 %v18785_v63  ;;  %12488 = vmatmul.mubr.f32.vlgmr.msra.gmra.mrb[24].mxu1 %v18785_v63  ;;  %v11168_v58 = vmax.f32 %v11136_v39, 0.0  ;;  %v11170_v10 = vmax.f32 %v11138_v55, 0.0  ;;  %v10450_v25 = vpop.f32.mrb[18].mxu0  ;;  %v11088_v21 = vpop.f32.mrb[18].mxu1 }
 0x4a7   : > { %14497 = vmatpush1.bf16.msra.mxu0 %v18873_v27  ;;  %14545 = vmatpush1.bf16.msra.mxu1 %v18877_v34  ;;  %v12618_v11 = vand.u32 4294901760, %v11167_v46  ;;  %v13308_v16 = vand.u32 4294901760, %v11169_v0  ;;  %v11143_v45 = vadd.f32 %v20281_v57, %v10450_v25  ;;  %v11145_v26 = vadd.f32 %v20281_v57, %v11088_v21  ;;  %v10452_v31 = vpop.f32.mrb[19].mxu0  ;;  %v11090_v29 = vpop.f32.mrb[19].mxu1 }
 0x4a8   : > { %14499 = vmatprep.subr.bf16.mxu0 %v18959_v35  ;;  %14547 = vmatprep.subr.bf16.mxu1 %v18969_v40  ;;  %v19168_v59 = vand.u32 4294901760, %v11168_v58  ;;  %v19170_v43 = vand.u32 4294901760, %v11170_v10  ;;  %v11144_v27 = vadd.f32 %v20281_v57, %v10452_v31  ;;  %v11146_v34 = vadd.f32 %v20281_v57, %v11090_v29 }
 0x4a9   : > { %11803 = vmatprep.mubr.f32.mxu0 %v20251_v8  ;;  %12493 = vmatprep.mubr.f32.mxu1 %v20251_v8  ;;  %v19176_v2 = vsub.f32 %v11167_v46, %v12618_v11  ;;  %v19178_v22 = vsub.f32 %v11169_v0, %v13308_v16  ;;  %v11175_v60 = vmax.f32 %v11143_v45, 0.0  ;;  %v11177_v35 = vmax.f32 %v11145_v26, 0.0 }
 0x4aa   : > { %11805 = vmatmul.mubr.f32.gmra.mrb[26].mxu0 %v18793_v61  ;;  %12495 = vmatmul.mubr.f32.gmra.mrb[26].mxu1 %v18793_v61  ;;  %v19183_v40 = vsub.f32 %v11168_v58, %v19168_v59  ;;  %v19186_v13 = vsub.f32 %v11170_v10, %v19170_v43  ;;  %v11176_v38 = vmax.f32 %v11144_v27, 0.0  ;;  %v11178_v62 = vmax.f32 %v11146_v34, 0.0  ;;  %v10457_v12 = vpop.f32.mrb[20].mxu0  ;;  %v11095_v37 = vpop.f32.mrb[20].mxu1 }
 0x4ab   : > { %14501 = vmatpush1.bf16.msra.mxu0 %v18923_v44  ;;  %14549 = vmatpush1.bf16.msra.mxu1 %v18927_v42  ;;  %v19888_v7 = vand.u32 4294901760, %v19176_v2  ;;  %v19886_v48 = vand.u32 4294901760, %v19178_v22  ;;  %v12622_v36 = vand.u32 4294901760, %v11175_v60  ;;  %v13312_v20 = vand.u32 4294901760, %v11177_v35  ;;  %v10459_v32 = vpop.f32.mrb[21].mxu0  ;;  %v11097_v19 = vpop.f32.mrb[21].mxu1 }
 0x4ac   : > { %v19895_v47 = vand.u32 4294901760, %v19183_v40  ;;  %11810 = vmatprep.mubr.f32.mxu0 %v20251_v8  ;;  %12500 = vmatprep.mubr.f32.mxu1 %v20251_v8  ;;  %v19195_v23 = vand.u32 4294901760, %v11176_v38  ;;  %v19197_v6 = vand.u32 4294901760, %v11178_v62  ;;  %v19894_v3 = vand.u32 4294901760, %v19186_v13 }
 0x4ad   : > { %v19202_v44 = vsub.f32 %v19176_v2, %v19888_v7  ;;  %v19207_v42 = vsub.f32 %v19178_v22, %v19886_v48  ;;  %v19209_v50 = vpack.c.bf16 %v12622_v36, %v12618_v11  ;;  %v19211_v49 = vsub.f32 %v11175_v60, %v12622_v36 }
 0x4ae   : > { %11812 = vmatmul.mubr.f32.gmra.mrb[28].mxu0 %v18804_v1  ;;  %12502 = vmatmul.mubr.f32.gmra.mrb[28].mxu1 %v18804_v1  ;;  %v19216_v28 = vpack.c.bf16 %v13312_v20, %v13308_v16  ;;  %v19218_v5 = vsub.f32 %v11177_v35, %v13312_v20  ;;  %v19221_v17 = vsub.f32 %v11176_v38, %v19195_v23  ;;  %v10464_v52 = vpop.f32.mrb[22].mxu0  ;;  %v11102_v39 = vpop.f32.mrb[22].mxu1  ;;  %v20282_v16 = vld [vmem:[#allocation10_spill] sm:$0xff] }
 0x4af   : > { %v12743_v55 = vand.u32 4294901760, %v19202_v44  ;;  %v19887_v0 = vand.u32 4294901760, %v19211_v49  ;;  %v19227_v58 = vsub.f32 %v11178_v62, %v19197_v6  ;;  %11817 = vmatprep.mubr.f32.mxu0 %v20251_v8  ;;  %12507 = vmatprep.mubr.f32.mxu1 %v20251_v8  ;;  %v10466_v10 = vpop.f32.mrb[23].mxu0  ;;  %v11104_v25 = vpop.f32.mrb[23].mxu1  ;;  %v11151_v57 = vadd.f32 %v20282_v16, %v10457_v12  ;;  %v20283_v38 = vld [vmem:[#allocation62_spill] sm:$0xff] }
 0x4b0   : > { %v19885_v21 = vand.u32 4294901760, %v19218_v5  ;;  %v19893_v11 = vand.u32 4294901760, %v19221_v17  ;;  %v11153_v45 = vadd.f32 %v20282_v16, %v11095_v37  ;;  %v11152_v29 = vadd.f32 %v20282_v16, %v10459_v32 }
 0x4b1   : > { %v19238_v26 = vsub.f32 %v19211_v49, %v19887_v0  ;;  %v19896_v31 = vand.u32 4294901760, %v19227_v58  ;;  %v11154_v27 = vadd.f32 %v20282_v16, %v11097_v19  ;;  %v11183_v60 = vmax.f32 %v11151_v57, 0.0 }
 0x4b2   : > { %v19246_v34 = vsub.f32 %v19218_v5, %v19885_v21  ;;  %11819 = vmatmul.mubr.f32.gmra.mrb[30].mxu0 %v18816_v18  ;;  %12509 = vmatmul.mubr.f32.gmra.mrb[30].mxu1 %v18816_v18  ;;  %v11185_v35 = vmax.f32 %v11153_v45, 0.0  ;;  %v11159_v62 = vadd.f32 %v20283_v38, %v10464_v52  ;;  %v11184_v37 = vmax.f32 %v11152_v29, 0.0 }
 0x4b3   : > { %v11186_v36 = vmax.f32 %v11154_v27, 0.0  ;;  %11897 = vmatprep.mubr.f32.mxu0 %v20251_v8  ;;  %12587 = vmatprep.mubr.f32.mxu1 %v20251_v8  ;;  %v11161_v20 = vadd.f32 %v20283_v38, %v11102_v39  ;;  %v12626_v19 = vand.u32 4294901760, %v11183_v60  ;;  %v11160_v52 = vadd.f32 %v20283_v38, %v10466_v10 }
 0x4b4   : > { %v13316_v16 = vand.u32 4294901760, %v11185_v35  ;;  %v11191_v21 = vmax.f32 %v11159_v62, 0.0  ;;  %v12624_v48 = vand.u32 4294901760, %v11184_v37  ;;  %v11162_v39 = vadd.f32 %v20283_v38, %v11104_v25 }
 0x4b5   : > { %v13314_v57 = vand.u32 4294901760, %v11186_v36  ;;  %v11193_v45 = vmax.f32 %v11161_v20, 0.0  ;;  %v19257_v0 = vsub.f32 %v11183_v60, %v12626_v19  ;;  %v11192_v46 = vmax.f32 %v11160_v52, 0.0 }
 0x4b6   : > { %v19259_v29 = vsub.f32 %v11185_v35, %v13316_v16  ;;  %11899 = vmatmul.mubr.f32.vlgmr.msra.gmra.mrb[24].mxu0 %v18785_v63  ;;  %12589 = vmatmul.mubr.f32.vlgmr.msra.gmra.mrb[24].mxu1 %v18785_v63  ;;  %v12630_v27 = vand.u32 4294901760, %v11191_v21  ;;  %v19264_v7 = vsub.f32 %v11184_v37, %v12624_v48 }
 0x4b7   : > { %v19266_v32 = vsub.f32 %v11186_v36, %v13314_v57  ;;  %v13320_v62 = vand.u32 4294901760, %v11193_v45  ;;  %11904 = vmatprep.mubr.f32.mxu0 %v20251_v8  ;;  %12594 = vmatprep.mubr.f32.mxu1 %v20251_v8  ;;  %v19890_v10 = vand.u32 4294901760, %v19257_v0 }
 0x4b8   : > { %v19889_v60 = vand.u32 4294901760, %v19259_v29  ;;  %v19272_v35 = vpack.c.bf16 %v12630_v27, %v12626_v19  ;;  %v19274_v20 = vsub.f32 %v11191_v21, %v12630_v27  ;;  %v12628_v21 = vand.u32 4294901760, %v11192_v46 }
 0x4b9   : > { %v19278_v37 = vpack.c.bf16 %v13320_v62, %v13316_v16  ;;  %v19280_v36 = vsub.f32 %v11193_v45, %v13320_v62  ;;  %v12766_v52 = vsub.f32 %v19257_v0, %v19890_v10  ;;  %v11194_v27 = vmax.f32 %v11162_v39, 0.0 }
 0x4ba   : > { %v13456_v12 = vsub.f32 %v19259_v29, %v19889_v60  ;;  %v19892_v19 = vand.u32 4294901760, %v19274_v20  ;;  %11906 = vmatmul.mubr.f32.gmra.mrb[26].mxu0 %v18793_v61  ;;  %12596 = vmatmul.mubr.f32.gmra.mrb[26].mxu1 %v18793_v61  ;;  %v19294_v45 = vpack.c.bf16 %v19195_v23, %v19168_v59  ;;  %v19298_v62 = vpack.c.bf16 %v19197_v6, %v19170_v43 }
 0x4bb   : > { %v19891_v16 = vand.u32 4294901760, %v19280_v36  ;;  %11911 = vmatprep.mubr.f32.mxu0 %v20251_v8  ;;  %12601 = vmatprep.mubr.f32.mxu1 %v20251_v8  ;;  %v12767_v60 = vand.u32 4294901760, %v12766_v52  ;;  %v19305_v25 = vsub.f32 %v11192_v46, %v12628_v21  ;;  %v13318_v23 = vand.u32 4294901760, %v11194_v27 }
 0x4bc   : > { %v13457_v10 = vand.u32 4294901760, %v13456_v12  ;;  %v12778_v38 = vsub.f32 %v19274_v20, %v19892_v19  ;;  %14551 = vmatprep.subr.bf16.mxu0 %v19294_v45  ;;  %14599 = vmatprep.subr.bf16.mxu1 %v19298_v62  ;;  %v19312_v43 = vpack.c.bf16 %v12628_v21, %v12624_v48  ;;  %v12736_v6 = vsub.f32 %v19183_v40, %v19895_v47 }
 0x4bd   : > { %v13468_v59 = vsub.f32 %v19280_v36, %v19891_v16  ;;  %v12771_v39 = vand.u32 4294901760, %v19305_v25  ;;  %14553 = vmatpush1.bf16.msra.mxu0 %v19209_v50  ;;  %14601 = vmatpush1.bf16.msra.mxu1 %v19216_v28  ;;  %v12748_v46 = vsub.f32 %v19221_v17, %v19893_v11  ;;  %v13426_v48 = vsub.f32 %v19186_v13, %v19894_v3 }
 0x4be   : > { %v12779_v12 = vand.u32 4294901760, %v12778_v38  ;;  %v19326_v21 = vsub.f32 %v11194_v27, %v13318_v23  ;;  %11913 = vmatmul.mubr.f32.gmra.mrb[28].mxu0 %v18804_v1  ;;  %12603 = vmatmul.mubr.f32.gmra.mrb[28].mxu1 %v18804_v1  ;;  %v19330_v38 = vpack.c.bf16 %v13318_v23, %v13314_v57  ;;  %v12737_v16 = vand.u32 4294901760, %v12736_v6 }
 0x4bf   : > { %v13469_v52 = vand.u32 4294901760, %v13468_v59  ;;  %11918 = vmatprep.mubr.f32.mxu0 %v20251_v8  ;;  %12608 = vmatprep.mubr.f32.mxu1 %v20251_v8  ;;  %v12749_v19 = vand.u32 4294901760, %v12748_v46  ;;  %v13427_v11 = vand.u32 4294901760, %v13426_v48  ;;  %v13438_v3 = vsub.f32 %v19227_v58, %v19896_v31 }
 0x4c0   : > { %v20284_v27 = vand.u32 4294901760, %v19238_v26  ;;  %v13461_v47 = vand.u32 4294901760, %v19326_v21  ;;  %14555 = vmatprep.subr.bf16.mxu0 %v19312_v43  ;;  %14603 = vmatprep.subr.bf16.mxu1 %v19330_v38  ;;  %v20285_v57 = vand.u32 4294901760, %v19207_v42  ;;  %v20286_v23 = vand.u32 4294901760, %v19246_v34 }
 0x4c1   : > { %v20287_v46 = vand.u32 4294901760, %v19264_v7  ;;  %v12772_v44 = vsub.f32 %v19305_v25, %v12771_v39  ;;  %14557 = vmatpush1.bf16.msra.mxu0 %v19272_v35  ;;  %14605 = vmatpush1.bf16.msra.mxu1 %v19278_v37  ;;  %v13439_v26 = vand.u32 4294901760, %v13438_v3  ;;  %v14564_v42 = vpack.c.bf16 %v12779_v12, %v12767_v60 }
 0x4c2   : > { %v14560_v59 = vpack.c.bf16 %v20284_v27, %v12743_v55  ;;  %v14608_v6 = vpack.c.bf16 %v20286_v23, %v20285_v57  ;;  %v14558_v55 = vpack.c.bf16 %v12749_v19, %v12737_v16  ;;  %v20288_v27 = vand.u32 4294901760, %v19266_v32  ;;  %11920 = vmatmul.mubr.f32.gmra.mrb[30].mxu0 %v18816_v18  ;;  %12610 = vmatmul.mubr.f32.gmra.mrb[30].mxu1 %v18816_v18 }
 0x4c3   : > { %v12760_v48 = vsub.f32 %v19264_v7, %v20287_v46  ;;  %v12773_v57 = vand.u32 4294901760, %v12772_v44  ;;  %v13462_v23 = vsub.f32 %v19326_v21, %v13461_v47  ;;  %v14612_v46 = vpack.c.bf16 %v13469_v52, %v13457_v10  ;;  %12688 = vmatprep.mubr.f32.mxu0 %v20251_v8  ;;  %13378 = vmatprep.mubr.f32.mxu1 %v20251_v8 }
 0x4c4   : > { %v13450_v31 = vsub.f32 %v19266_v32, %v20288_v27  ;;  %14559 = vmatprep.subr.bf16.mxu0 %v14558_v55  ;;  %v14606_v56 = vpack.c.bf16 %v13439_v26, %v13427_v11  ;;  %v14566_v3 = vpack.c.bf16 %v19221_v17, %v19183_v40  ;;  %v14614_v60 = vpack.c.bf16 %v19227_v58, %v19186_v13 }
 0x4c5   : > { %v12761_v34 = vand.u32 4294901760, %v12760_v48  ;;  %v13463_v12 = vand.u32 4294901760, %v13462_v23  ;;  %v14568_v48 = vpack.c.bf16 %v19211_v49, %v19176_v2  ;;  %v14616_v10 = vpack.c.bf16 %v19218_v5, %v19178_v22 }
 0x4c6   : > { %v13451_v19 = vand.u32 4294901760, %v13450_v31  ;;  %14607 = vmatprep.subr.bf16.mxu1 %v14606_v56  ;;  %v14570_v11 = vpack.c.bf16 %v19305_v25, %v19264_v7  ;;  %v14618_v31 = vpack.c.bf16 %v19326_v21, %v19266_v32  ;;  %v14572_v52 = vpack.c.bf16 %v19274_v20, %v19257_v0  ;;  %12694 = vmatmul.mubr.f32.vlgmr.msra.gmra.mrb[32].mxu0 %v18824_v41 }
 0x4c7   : > { %v14562_v16 = vpack.c.bf16 %v12773_v57, %v12761_v34  ;;  %v14620_v44 = vpack.c.bf16 %v19280_v36, %v19259_v29  ;;  %13384 = vmatmul.mubr.f32.vlgmr.msra.gmra.mrb[32].mxu1 %v18824_v41  ;;  %v20289_v26 = vand.u32 4294901760, %v19183_v40  ;;  %v20290_v56 = vand.u32 4294901760, %v19221_v17  ;;  %14561 = vmatpush1.bf16.msra.mxu0 %v14560_v59 }
 0x4c8   : > { %v14610_v55 = vpack.c.bf16 %v13463_v12, %v13451_v19  ;;  %v20291_v25 = vand.u32 4294901760, %v19186_v13  ;;  %v20292_v21 = vand.u32 4294901760, %v19227_v58  ;;  %14609 = vmatpush1.bf16.msra.mxu1 %v14608_v6  ;;  %v20293_v57 = vand.u32 4294901760, %v19176_v2  ;;  %12699 = vmatprep.mubr.f32.mxu0 %v20251_v8 }
 0x4c9   : > { %v19384_v27 = vpack.c.bf16 %v20290_v56, %v20289_v26  ;;  %v20294_v23 = vand.u32 4294901760, %v19211_v49  ;;  %v20295_v40 = vand.u32 4294901760, %v19178_v22  ;;  %v20296_v17 = vand.u32 4294901760, %v19218_v5  ;;  %13389 = vmatprep.mubr.f32.mxu1 %v20251_v8  ;;  %14563 = vmatprep.subr.bf16.mxu0 %v14562_v16 }
 0x4ca   : > { %v19390_v34 = vpack.c.bf16 %v20292_v21, %v20291_v25  ;;  %v20297_v13 = vand.u32 4294901760, %v19264_v7  ;;  %v20298_v2 = vand.u32 4294901760, %v19266_v32  ;;  %v20299_v49 = vand.u32 4294901760, %v19257_v0  ;;  %14611 = vmatprep.subr.bf16.mxu1 %v14610_v55  ;;  %12705 = vmatmul.mubr.f32.gmra.mrb[34].mxu0 %v19003_v4 }
 0x4cb   : > { %v19396_v41 = vpack.c.bf16 %v20294_v23, %v20293_v57  ;;  %v19402_v19 = vpack.c.bf16 %v20296_v17, %v20295_v40  ;;  %v20300_v22 = vand.u32 4294901760, %v19274_v20  ;;  %v20301_v5 = vand.u32 4294901760, %v19259_v29  ;;  %13395 = vmatmul.mubr.f32.gmra.mrb[34].mxu1 %v19003_v4  ;;  %14565 = vmatpush1.bf16.msra.mxu0 %v14564_v42 }
 0x4cc   : > { %v19406_v12 = vpack.c.bf16 %v12771_v39, %v20297_v13  ;;  %v19412_v58 = vpack.c.bf16 %v13461_v47, %v20298_v2  ;;  %v20302_v7 = vand.u32 4294901760, %v19280_v36  ;;  %14613 = vmatpush1.bf16.msra.mxu1 %v14612_v46  ;;  %14567 = vmatprep.subr.bf16.mxu0 %v14566_v3 }
 0x4cd   : > { %v19418_v59 = vpack.c.bf16 %v20300_v22, %v20299_v49  ;;  %14615 = vmatprep.subr.bf16.mxu1 %v14614_v60  ;;  %12710 = vmatprep.mubr.f32.mxu0 %v20251_v8 }
 0x4ce   : > { %v19424_v39 = vpack.c.bf16 %v20302_v7, %v20301_v5  ;;  %13400 = vmatprep.mubr.f32.mxu1 %v20251_v8  ;;  %12716 = vmatmul.mubr.f32.gmra.mrb[36].mxu0 %v19062_v33 }
 0x4cf   : > { %13406 = vmatmul.mubr.f32.gmra.mrb[36].mxu1 %v19062_v33  ;;  %12721 = vmatprep.mubr.f32.mxu0 %v20251_v8 }
 0x4d0   : > { %13411 = vmatprep.mubr.f32.mxu1 %v20251_v8 }
 0x4d2   : > { %12727 = vmatmul.mubr.f32.gmra.mrb[38].mxu0 %v19082_v14 }
 0x4d3   : > { %13417 = vmatmul.mubr.f32.gmra.mrb[38].mxu1 %v19082_v14  ;;  %12837 = vmatprep.mubr.f32.mxu0 %v20251_v8 }
 0x4d4   : > { %13527 = vmatprep.mubr.f32.mxu1 %v20251_v8 }
 0x4d6   : > { %12839 = vmatmul.mubr.f32.vlgmr.msra.gmra.mrb[32].mxu0 %v18785_v63 }
 0x4d7   : > { %13529 = vmatmul.mubr.f32.vlgmr.msra.gmra.mrb[32].mxu1 %v18785_v63  ;;  %14569 = vmatpush1.bf16.msra.mxu0 %v14568_v48 }
 0x4d8   : > { %14617 = vmatpush1.bf16.msra.mxu1 %v14616_v10  ;;  %14571 = vmatprep.subr.bf16.mxu0 %v14570_v11 }
 0x4d9   : > { %14619 = vmatprep.subr.bf16.mxu1 %v14618_v31  ;;  %12844 = vmatprep.mubr.f32.mxu0 %v20251_v8 }
 0x4da   : > { %13534 = vmatprep.mubr.f32.mxu1 %v20251_v8  ;;  %12846 = vmatmul.mubr.f32.gmra.mrb[34].mxu0 %v18793_v61 }
 0x4db   : > { %13536 = vmatmul.mubr.f32.gmra.mrb[34].mxu1 %v18793_v61  ;;  %14573 = vmatpush1.bf16.msra.mxu0 %v14572_v52 }
 0x4dc   : > { %14621 = vmatpush1.bf16.msra.mxu1 %v14620_v44  ;;  %14575 = vmatprep.subr.bf16.mxu0 %v19294_v45 }
 0x4dd   : > { %14623 = vmatprep.subr.bf16.mxu1 %v19298_v62  ;;  %12851 = vmatprep.mubr.f32.mxu0 %v20251_v8 }
 0x4de   : > { %13541 = vmatprep.mubr.f32.mxu1 %v20251_v8  ;;  %12853 = vmatmul.mubr.f32.gmra.mrb[36].mxu0 %v18804_v1 }
 0x4df   : > { %13543 = vmatmul.mubr.f32.gmra.mrb[36].mxu1 %v18804_v1  ;;  %12858 = vmatprep.mubr.f32.mxu0 %v20251_v8 }
 0x4e0   : > { %13548 = vmatprep.mubr.f32.mxu1 %v20251_v8 }
 0x4e2   : > { %12860 = vmatmul.mubr.f32.gmra.mrb[38].mxu0 %v18816_v18 }
 0x4e3   : > { %13550 = vmatmul.mubr.f32.gmra.mrb[38].mxu1 %v18816_v18  ;;  %12946 = vmatprep.mubr.f32.mxu0 %v20251_v8 }
 0x4e4   : > { %13636 = vmatprep.mubr.f32.mxu1 %v20251_v8 }
 0x4e6   : > { %12949 = vmatmul.mubr.f32.vlgmr.msra.gmra.mrb[32].mxu0 %v18791_v54 }
 0x4e7   : > { %13639 = vmatmul.mubr.f32.vlgmr.msra.gmra.mrb[32].mxu1 %v18791_v54  ;;  %14577 = vmatpush1.bf16.msra.mxu0 %v19209_v50  ;;  %v20303_v54 = vld [vmem:[#allocation15_spill] sm:$0xff] }
 0x4e8   : > { %14625 = vmatpush1.bf16.msra.mxu1 %v19216_v28  ;;  %14579 = vmatprep.subr.bf16.mxu0 %v19312_v43 }
 0x4e9   : > { %14627 = vmatprep.subr.bf16.mxu1 %v19330_v38  ;;  %12954 = vmatprep.mubr.f32.mxu0 %v20251_v8 }
 0x4ea   : > { %13644 = vmatprep.mubr.f32.mxu1 %v20251_v8  ;;  %12957 = vmatmul.mubr.f32.gmra.mrb[34].mxu0 %v18802_v15 }
 0x4eb   : > { %13647 = vmatmul.mubr.f32.gmra.mrb[34].mxu1 %v18802_v15  ;;  %14581 = vmatpush1.bf16.msra.mxu0 %v19272_v35  ;;  %v19542_v15 = vpop.permute.xlu1 %11210 }
 0x4ec   : > { %14629 = vmatpush1.bf16.msra.mxu1 %v19278_v37  ;;  %14583 = vmatprep.subr.bf16.mxu0 %v19384_v27 }
 0x4ed   : > { %14631 = vmatprep.subr.bf16.mxu1 %v19390_v34  ;;  %12962 = vmatprep.mubr.f32.mxu0 %v20251_v8 }
 0x4ee   : > { %13652 = vmatprep.mubr.f32.mxu1 %v20251_v8  ;;  %12965 = vmatmul.mubr.f32.gmra.mrb[36].mxu0 %v18814_v51 }
 0x4ef   : > { %13655 = vmatmul.mubr.f32.gmra.mrb[36].mxu1 %v18814_v51  ;;  %12970 = vmatprep.mubr.f32.mxu0 %v20251_v8  ;;  %v19548_v33 = vpop.permute.xlu1 %11220 }
 0x4f0   : > { %13660 = vmatprep.mubr.f32.mxu1 %v20251_v8 }
 0x4f2   : > { %12973 = vmatmul.mubr.f32.gmra.mrb[38].mxu0 %v18832_v9 }
 0x4f3   : > { %13663 = vmatmul.mubr.f32.gmra.mrb[38].mxu1 %v18832_v9  ;;  %13051 = vmatprep.mubr.f32.mxu0 %v20251_v8 }
 0x4f4   : > { %13741 = vmatprep.mubr.f32.mxu1 %v20251_v8 }
 0x4f6   : > { %13055 = vmatmul.mubr.f32.vlgmr.msra.gmra.mrb[32].mxu0 %v20279_v30 }
 0x4f7   : > { %13745 = vmatmul.mubr.f32.vlgmr.msra.gmra.mrb[32].mxu1 %v20279_v30  ;;  %14585 = vmatpush1.bf16.msra.mxu0 %v19396_v41 }
 0x4f8   : > { %14633 = vmatpush1.bf16.msra.mxu1 %v19402_v19  ;;  %14587 = vmatprep.subr.bf16.mxu0 %v19406_v12 }
 0x4f9   : > { %14635 = vmatprep.subr.bf16.mxu1 %v19412_v58  ;;  %13060 = vmatprep.mubr.f32.mxu0 %v20251_v8 }
 0x4fa   : > { %13750 = vmatprep.mubr.f32.mxu1 %v20251_v8  ;;  %13064 = vmatmul.mubr.f32.gmra.mrb[34].mxu0 %v18811_v24 }
 0x4fb   : > { %13754 = vmatmul.mubr.f32.gmra.mrb[34].mxu1 %v18811_v24  ;;  %14589 = vmatpush1.bf16.msra.mxu0 %v19418_v59 }
 0x4fc   : > { %14637 = vmatpush1.bf16.msra.mxu1 %v19424_v39  ;;  %14591 = vmatprep.subr.bf16.mxu0 %v19294_v45 }
 0x4fd   : > { %14639 = vmatprep.subr.bf16.mxu1 %v19298_v62  ;;  %13069 = vmatprep.mubr.f32.mxu0 %v20251_v8 }
 0x4fe   : > { %13759 = vmatprep.mubr.f32.mxu1 %v20251_v8  ;;  %13073 = vmatmul.mubr.f32.gmra.mrb[36].mxu0 %v18829_v53 }
 0x4ff   : > { %13763 = vmatmul.mubr.f32.gmra.mrb[36].mxu1 %v18829_v53  ;;  %13078 = vmatprep.mubr.f32.mxu0 %v20251_v8 }
 0x500   : > { %13768 = vmatprep.mubr.f32.mxu1 %v20251_v8 }
 0x502   : > { %13082 = vmatmul.mubr.f32.gmra.mrb[38].mxu0 %v20303_v54 }
 0x503   : > { %13772 = vmatmul.mubr.f32.gmra.mrb[38].mxu1 %v20303_v54  ;;  %13176 = vmatprep.mubr.f32.mxu0 %v20251_v8 }
 0x504   : > { %13866 = vmatprep.mubr.f32.mxu1 %v20251_v8 }
 0x506   : > { %13178 = vmatmul.mubr.f32.vlgmr.msra.gmra.mrb[32].mxu0 %v18785_v63 }
 0x507   : > { %13868 = vmatmul.mubr.f32.vlgmr.msra.gmra.mrb[32].mxu1 %v18785_v63  ;;  %14593 = vmatpush1.bf16.msra.mxu0 %v19209_v50 }
 0x508   : > { %14641 = vmatpush1.bf16.msra.mxu1 %v19216_v28  ;;  %14595 = vmatprep.subr.bf16.mxu0 %v19312_v43 }
 0x509   : > { %14643 = vmatprep.subr.bf16.mxu1 %v19330_v38  ;;  %13183 = vmatprep.mubr.f32.mxu0 %v20251_v8  ;;  %v19558_v38 = vpop.permute.xlu1 %14039 }
 0x50a   : > { %13873 = vmatprep.mubr.f32.mxu1 %v20251_v8  ;;  %13185 = vmatmul.mubr.f32.gmra.mrb[34].mxu0 %v18793_v61 }
 0x50b   : > { %13875 = vmatmul.mubr.f32.gmra.mrb[34].mxu1 %v18793_v61  ;;  %14597 = vmatpush1.bf16.msra.mxu0 %v19272_v35 }
 0x50c   : > { %14645 = vmatpush1.bf16.msra.mxu1 %v19278_v37  ;;  %13190 = vmatprep.mubr.f32.mxu0 %v20251_v8 }
 0x50d   : > { %13880 = vmatprep.mubr.f32.mxu1 %v20251_v8 }
 0x50e   : > { %13192 = vmatmul.mubr.f32.gmra.mrb[36].mxu0 %v18804_v1 }
 0x50f   : > { %13882 = vmatmul.mubr.f32.gmra.mrb[36].mxu1 %v18804_v1  ;;  %13197 = vmatprep.mubr.f32.mxu0 %v20251_v8 }
 0x510   : > { %13887 = vmatprep.mubr.f32.mxu1 %v20251_v8 }
 0x512   : > { %13199 = vmatmul.mubr.f32.gmra.mrb[38].mxu0 %v18816_v18 }
 0x513   : > { %13889 = vmatmul.mubr.f32.gmra.mrb[38].mxu1 %v18816_v18  ;;  %13277 = vmatprep.mubr.f32.mxu0 %v20251_v8 }
 0x514   : > { %13967 = vmatprep.mubr.f32.mxu1 %v20251_v8 }
 0x516   : > { %13279 = vmatmul.mubr.f32.vlgmr.msra.gmra.mrb[32].mxu0 %v18785_v63 }
 0x517   : > { %13969 = vmatmul.mubr.f32.vlgmr.msra.gmra.mrb[32].mxu1 %v18785_v63  ;;  %13284 = vmatprep.mubr.f32.mxu0 %v20251_v8  ;;  %v19540_v63 = vpop.permute.xlu0 %11205 }
 0x518   : > { %13974 = vmatprep.mubr.f32.mxu1 %v20251_v8 }
 0x51a   : > { %13286 = vmatmul.mubr.f32.gmra.mrb[34].mxu0 %v18793_v61 }
 0x51b   : > { %13976 = vmatmul.mubr.f32.gmra.mrb[34].mxu1 %v18793_v61  ;;  %13291 = vmatprep.mubr.f32.mxu0 %v20251_v8  ;;  %v19544_v61 = vpop.permute.xlu0 %11215 }
 0x51c   : > { %13981 = vmatprep.mubr.f32.mxu1 %v20251_v8 }
 0x51e   : > { %13293 = vmatmul.mubr.f32.gmra.mrb[36].mxu0 %v18804_v1 }
 0x51f   : > { %13983 = vmatmul.mubr.f32.gmra.mrb[36].mxu1 %v18804_v1  ;;  %13298 = vmatprep.mubr.f32.mxu0 %v20251_v8  ;;  %v19554_v37 = vpop.permute.xlu0 %14034 }
 0x520   : > { %13988 = vmatprep.mubr.f32.mxu1 %v20251_v8 }
 0x522   : > { %13300 = vmatmul.mubr.f32.gmra.mrb[38].mxu0 %v18816_v18 }
 0x523   : > { %13990 = vmatmul.mubr.f32.gmra.mrb[38].mxu1 %v18816_v18  ;;  %v19572_v23 = vpop.permute.xlu0 %14044 }
 0x589   : > { %v11900_v24 = vpop.f32.mrb[24].mxu0  ;;  %v12590_v51 = vpop.f32.mrb[24].mxu1 }
 0x58a   : > { %v14646_v53 = vadd.f32 %v11900_v24, %v19540_v63  ;;  %v14654_v1 = vadd.f32 %v12590_v51, %v19540_v63  ;;  %v11902_v9 = vpop.f32.mrb[25].mxu0  ;;  %v12592_v4 = vpop.f32.mrb[25].mxu1 }
 0x58b   : > { %v14647_v8 = vadd.f32 %v11902_v9, %v19540_v63  ;;  %v14655_v18 = vadd.f32 %v12592_v4, %v19540_v63 }
 0x58c   : > { %v13996_v14 = vmax.f32 %v14646_v53, 0.0  ;;  %v13998_v30 = vmax.f32 %v14654_v1, 0.0 }
 0x58d   : > { %v11907_v47 = vpop.f32.mrb[26].mxu0  ;;  %v12597_v50 = vpop.f32.mrb[26].mxu1  ;;  %v13997_v28 = vmax.f32 %v14647_v8, 0.0  ;;  %v13999_v0 = vmax.f32 %v14655_v18, 0.0 }
 0x58e   : > { %v14648_v32 = vadd.f32 %v11907_v47, %v19542_v15  ;;  %v14656_v29 = vadd.f32 %v12597_v50, %v19542_v15  ;;  %v11909_v35 = vpop.f32.mrb[27].mxu0  ;;  %v12599_v20 = vpop.f32.mrb[27].mxu1  ;;  %v14052_v6 = vmul.f32 %v19554_v37, %v13996_v14  ;;  %v14054_v42 = vmul.f32 %v19554_v37, %v13998_v30 }
 0x58f   : > { %v14649_v36 = vadd.f32 %v11909_v35, %v19542_v15  ;;  %v14657_v45 = vadd.f32 %v12599_v20, %v19542_v15  ;;  %v14053_v60 = vmul.f32 %v19554_v37, %v13997_v28  ;;  %v14055_v16 = vmul.f32 %v19554_v37, %v13999_v0  ;;  %v19582_v18 = vpop.permute.xlu1 %14049 }
 0x590   : > { %v14004_v62 = vmax.f32 %v14648_v32, 0.0  ;;  %v14006_v43 = vmax.f32 %v14656_v29, 0.0 }
 0x591   : > { %v14005_v46 = vmax.f32 %v14649_v36, 0.0  ;;  %v14007_v3 = vmax.f32 %v14657_v45, 0.0  ;;  %v11914_v11 = vpop.f32.mrb[28].mxu0  ;;  %v12604_v31 = vpop.f32.mrb[28].mxu1 }
 0x592   : > { %v14060_v48 = vmul.f32 %v19558_v38, %v14004_v62  ;;  %v14062_v10 = vmul.f32 %v19558_v38, %v14006_v43  ;;  %v14650_v55 = vadd.f32 %v11914_v11, %v19544_v61  ;;  %v14658_v26 = vadd.f32 %v12604_v31, %v19544_v61  ;;  %v11916_v56 = vpop.f32.mrb[29].mxu0  ;;  %v12606_v27 = vpop.f32.mrb[29].mxu1 }
 0x593   : > { %v14061_v52 = vmul.f32 %v19558_v38, %v14005_v46  ;;  %v14063_v44 = vmul.f32 %v19558_v38, %v14007_v3  ;;  %v14651_v34 = vadd.f32 %v11916_v56, %v19544_v61  ;;  %v14659_v57 = vadd.f32 %v12606_v27, %v19544_v61 }
 0x594   : > { %v14084_v25 = vadd.f32 %v14060_v48, %v14052_v6  ;;  %v14102_v21 = vadd.f32 %v14062_v10, %v14054_v42  ;;  %v14012_v17 = vmax.f32 %v14650_v55, 0.0  ;;  %v14014_v19 = vmax.f32 %v14658_v26, 0.0  ;;  %v14160_v55 = vpop.permute.xlu0 %14159 }
 0x595   : > { %v14093_v41 = vadd.f32 %v14061_v52, %v14053_v60  ;;  %v14111_v40 = vadd.f32 %v14063_v44, %v14055_v16  ;;  %v14013_v13 = vmax.f32 %v14651_v34, 0.0  ;;  %v14015_v12 = vmax.f32 %v14659_v57, 0.0  ;;  %v11921_v2 = vpop.f32.mrb[30].mxu0  ;;  %v12611_v58 = vpop.f32.mrb[30].mxu1  ;;  %v20304_v57 = vld [vmem:[#allocation8_spill] sm:$0xff] }
 0x596   : > { %v14068_v49 = vmul.f32 %v19572_v23, %v14012_v17  ;;  %v14070_v22 = vmul.f32 %v19572_v23, %v14014_v19  ;;  %v14652_v59 = vadd.f32 %v11921_v2, %v19548_v33  ;;  %v14660_v5 = vadd.f32 %v12611_v58, %v19548_v33  ;;  %v11923_v7 = vpop.f32.mrb[31].mxu0  ;;  %v12613_v39 = vpop.f32.mrb[31].mxu1 }
 0x597   : > { %v14069_v54 = vmul.f32 %v19572_v23, %v14013_v13  ;;  %v14071_v24 = vmul.f32 %v19572_v23, %v14015_v12  ;;  %v14653_v51 = vadd.f32 %v11923_v7, %v19548_v33  ;;  %v14661_v53 = vadd.f32 %v12613_v39, %v19548_v33 }
 0x598   : > { %v14085_v1 = vadd.f32 %v14084_v25, %v14068_v49  ;;  %v14103_v9 = vadd.f32 %v14102_v21, %v14070_v22  ;;  %v14020_v4 = vmax.f32 %v14652_v59, 0.0  ;;  %v14022_v8 = vmax.f32 %v14660_v5, 0.0  ;;  %v20305_v5 = vld [vmem:[#allocation47_spill] sm:$0xff] }
 0x599   : > { %v14094_v14 = vadd.f32 %v14093_v41, %v14069_v54  ;;  %v14112_v30 = vadd.f32 %v14111_v40, %v14071_v24  ;;  %v14021_v47 = vmax.f32 %v14653_v51, 0.0  ;;  %v14023_v50 = vmax.f32 %v14661_v53, 0.0 }
 0x59a   : > { %v14076_v28 = vmul.f32 %v19582_v18, %v14020_v4  ;;  %v14078_v0 = vmul.f32 %v19582_v18, %v14022_v8  ;;  %v19589_v41 = vrot.slane %v14160_v55, %v20304_v57 }
 0x59b   : > { %v14077_v32 = vmul.f32 %v19582_v18, %v14021_v47  ;;  %v14079_v29 = vmul.f32 %v19582_v18, %v14023_v50 }
 0x59c   : > { %v14086_v35 = vadd.f32 %v14085_v1, %v14076_v28  ;;  %v14104_v20 = vadd.f32 %v14103_v9, %v14078_v0 }
 0x59d   : > { %v14095_v36 = vadd.f32 %v14094_v14, %v14077_v32  ;;  %v14113_v45 = vadd.f32 %v14112_v30, %v14079_v29 }
 0x59e   : > { %v14087_v62 = vrot.slane %v14086_v35, 4  ;;  %v14105_v43 = vrot.slane %v14104_v20, 4 }
 0x59f   : > { %v14096_v6 = vrot.slane %v14095_v36, 4  ;;  %v14114_v42 = vrot.slane %v14113_v45, 4 }
 0x5a0   : > { %v14088_v46 = vadd.f32 %v14087_v62, %v14086_v35  ;;  %v14106_v3 = vadd.f32 %v14105_v43, %v14104_v20 }
 0x5a1   : > { %v14097_v60 = vadd.f32 %v14096_v6, %v14095_v36  ;;  %v14115_v16 = vadd.f32 %v14114_v42, %v14113_v45 }
 0x5a2   : > { %v14089_v48 = vrot.slane %v14088_v46, 2  ;;  %v14107_v10 = vrot.slane %v14106_v3, 2 }
 0x5a3   : > { %v14098_v11 = vrot.slane %v14097_v60, 2  ;;  %v14116_v31 = vrot.slane %v14115_v16, 2 }
 0x5a4   : > { %v14090_v52 = vadd.f32 %v14089_v48, %v14088_v46  ;;  %v14108_v44 = vadd.f32 %v14107_v10, %v14106_v3 }
 0x5a5   : > { %v14099_v26 = vadd.f32 %v14098_v11, %v14097_v60  ;;  %v14117_v56 = vadd.f32 %v14116_v31, %v14115_v16 }
 0x5a6   : > { %v14091_v27 = vrot.slane %v14090_v52, 1  ;;  %v14109_v25 = vrot.slane %v14108_v44, 1 }
 0x5a7   : > { %v14100_v21 = vrot.slane %v14099_v26, 1  ;;  %v14118_v34 = vrot.slane %v14117_v56, 1 }
 0x5a8   : > { %v14092_v40 = vadd.f32 %v14091_v27, %v14090_v52  ;;  %v14110_v17 = vadd.f32 %v14109_v25, %v14108_v44 }
 0x5a9   : > { %v14101_v19 = vadd.f32 %v14100_v21, %v14099_v26  ;;  %v14119_v13 = vadd.f32 %v14118_v34, %v14117_v56 }
 0x5aa   : > { %v14166_v12 = vadd.f32 %v19589_v41, %v14092_v40  ;;  %v14168_v2 = vadd.f32 %v19589_v41, %v14110_v17 }
 0x5ab   : > { %v14167_v58 = vadd.f32 %v19589_v41, %v14101_v19  ;;  %v14169_v49 = vadd.f32 %v19589_v41, %v14119_v13 }
 0x5ad   : > { %v14182_v22 = vcombine.low %v14166_v12, %v14167_v58  ;;  %v14183_v59 = vcombine.low %v14168_v2, %v14169_v49 }
 0x5af   : > { %v19596_v7 = vrot.slane %v14182_v22, %v20305_v5  ;;  %v19599_v39 = vrot.slane %v14183_v59, %v20305_v5 }
 0x5b1   : > { %v14214_v54 = vcombine.low %v19596_v7, %v19599_v39 }
 0x5e9   : > { %v13280_v24 = vpop.f32.mrb[32].mxu0 }
 0x5ea   : > { %v13970_v51 = vpop.f32.mrb[32].mxu1  ;;  %v14662_v53 = vadd.f32 %v13280_v24, %v19540_v63  ;;  %v13282_v9 = vpop.f32.mrb[33].mxu0 }
 0x5eb   : > { %v14670_v1 = vadd.f32 %v13970_v51, %v19540_v63  ;;  %v13972_v4 = vpop.f32.mrb[33].mxu1  ;;  %v14663_v8 = vadd.f32 %v13282_v9, %v19540_v63 }
 0x5ec   : > { %v14671_v14 = vadd.f32 %v13972_v4, %v19540_v63  ;;  %v14000_v30 = vmax.f32 %v14662_v53, 0.0 }
 0x5ed   : > { %v14002_v47 = vmax.f32 %v14670_v1, 0.0  ;;  %v14001_v50 = vmax.f32 %v14663_v8, 0.0  ;;  %v13287_v0 = vpop.f32.mrb[34].mxu0 }
 0x5ee   : > { %v14003_v28 = vmax.f32 %v14671_v14, 0.0  ;;  %v13977_v32 = vpop.f32.mrb[34].mxu1  ;;  %v14664_v29 = vadd.f32 %v13287_v0, %v19542_v15  ;;  %v13289_v20 = vpop.f32.mrb[35].mxu0  ;;  %v14056_v43 = vmul.f32 %v19554_v37, %v14000_v30 }
 0x5ef   : > { %v14672_v35 = vadd.f32 %v13977_v32, %v19542_v15  ;;  %v13979_v36 = vpop.f32.mrb[35].mxu1  ;;  %v14665_v45 = vadd.f32 %v13289_v20, %v19542_v15  ;;  %v14058_v63 = vmul.f32 %v19554_v37, %v14002_v47  ;;  %v14057_v46 = vmul.f32 %v19554_v37, %v14001_v50 }
 0x5f0   : > { %v14673_v62 = vadd.f32 %v13979_v36, %v19542_v15  ;;  %v14008_v6 = vmax.f32 %v14664_v29, 0.0  ;;  %v14059_v3 = vmul.f32 %v19554_v37, %v14003_v28 }
 0x5f1   : > { %v14010_v42 = vmax.f32 %v14672_v35, 0.0  ;;  %v14009_v60 = vmax.f32 %v14665_v45, 0.0  ;;  %v13294_v48 = vpop.f32.mrb[36].mxu0 }
 0x5f2   : > { %v14011_v16 = vmax.f32 %v14673_v62, 0.0  ;;  %v13984_v10 = vpop.f32.mrb[36].mxu1  ;;  %v14064_v11 = vmul.f32 %v19558_v38, %v14008_v6  ;;  %v14666_v15 = vadd.f32 %v13294_v48, %v19544_v61  ;;  %v13296_v44 = vpop.f32.mrb[37].mxu0 }
 0x5f3   : > { %v14066_v31 = vmul.f32 %v19558_v38, %v14010_v42  ;;  %v14674_v52 = vadd.f32 %v13984_v10, %v19544_v61  ;;  %v13986_v55 = vpop.f32.mrb[37].mxu1  ;;  %v14065_v26 = vmul.f32 %v19558_v38, %v14009_v60  ;;  %v14667_v37 = vadd.f32 %v13296_v44, %v19544_v61 }
 0x5f4   : > { %v14067_v56 = vmul.f32 %v19558_v38, %v14011_v16  ;;  %v14675_v27 = vadd.f32 %v13986_v55, %v19544_v61  ;;  %v14120_v25 = vadd.f32 %v14064_v11, %v14056_v43  ;;  %v14016_v34 = vmax.f32 %v14666_v15, 0.0 }
 0x5f5   : > { %v14138_v21 = vadd.f32 %v14066_v31, %v14058_v63  ;;  %v14018_v57 = vmax.f32 %v14674_v52, 0.0  ;;  %v14129_v40 = vadd.f32 %v14065_v26, %v14057_v46  ;;  %v14017_v19 = vmax.f32 %v14667_v37, 0.0  ;;  %v13301_v12 = vpop.f32.mrb[38].mxu0 }
 0x5f6   : > { %v14147_v17 = vadd.f32 %v14067_v56, %v14059_v3  ;;  %v14019_v13 = vmax.f32 %v14675_v27, 0.0  ;;  %v13991_v2 = vpop.f32.mrb[38].mxu1  ;;  %v14072_v58 = vmul.f32 %v19572_v23, %v14016_v34  ;;  %v14668_v38 = vadd.f32 %v13301_v12, %v19548_v33  ;;  %v13303_v59 = vpop.f32.mrb[39].mxu0 }
 0x5f7   : > { %v14074_v49 = vmul.f32 %v19572_v23, %v14018_v57  ;;  %v14676_v22 = vadd.f32 %v13991_v2, %v19548_v33  ;;  %v13993_v61 = vpop.f32.mrb[39].mxu1  ;;  %v14073_v24 = vmul.f32 %v19572_v23, %v14017_v19  ;;  %v14669_v53 = vadd.f32 %v13303_v59, %v19548_v33 }
 0x5f8   : > { %v14075_v51 = vmul.f32 %v19572_v23, %v14019_v13  ;;  %v14677_v1 = vadd.f32 %v13993_v61, %v19548_v33  ;;  %v14121_v9 = vadd.f32 %v14120_v25, %v14072_v58  ;;  %v14024_v8 = vmax.f32 %v14668_v38, 0.0 }
 0x5f9   : > { %v14139_v4 = vadd.f32 %v14138_v21, %v14074_v49  ;;  %v14026_v14 = vmax.f32 %v14676_v22, 0.0  ;;  %v14130_v30 = vadd.f32 %v14129_v40, %v14073_v24  ;;  %v14025_v50 = vmax.f32 %v14669_v53, 0.0 }
 0x5fa   : > { %v14148_v47 = vadd.f32 %v14147_v17, %v14075_v51  ;;  %v14027_v28 = vmax.f32 %v14677_v1, 0.0  ;;  %v14080_v0 = vmul.f32 %v19582_v18, %v14024_v8  ;;  %v14222_v58 = vrot.slane %v14214_v54, %v20305_v5 }
 0x5fb   : > { %v14082_v32 = vmul.f32 %v19582_v18, %v14026_v14  ;;  %v14081_v29 = vmul.f32 %v19582_v18, %v14025_v50 }
 0x5fc   : > { %v14083_v23 = vmul.f32 %v19582_v18, %v14027_v28  ;;  %v14122_v35 = vadd.f32 %v14121_v9, %v14080_v0 }
 0x5fd   : > { %v14140_v20 = vadd.f32 %v14139_v4, %v14082_v32  ;;  %v14131_v36 = vadd.f32 %v14130_v30, %v14081_v29 }
 0x5fe   : > { %v14149_v33 = vadd.f32 %v14148_v47, %v14083_v23  ;;  %v14123_v45 = vrot.slane %v14122_v35, 4 }
 0x5ff   : > { %v14141_v62 = vrot.slane %v14140_v20, 4  ;;  %v14132_v43 = vrot.slane %v14131_v36, 4 }
 0x600   : > { %v14150_v63 = vrot.slane %v14149_v33, 4  ;;  %v14124_v6 = vadd.f32 %v14123_v45, %v14122_v35 }
 0x601   : > { %v14142_v42 = vadd.f32 %v14141_v62, %v14140_v20  ;;  %v14133_v46 = vadd.f32 %v14132_v43, %v14131_v36 }
 0x602   : > { %v14151_v3 = vadd.f32 %v14150_v63, %v14149_v33  ;;  %v14125_v60 = vrot.slane %v14124_v6, 2 }
 0x603   : > { %v14143_v16 = vrot.slane %v14142_v42, 2  ;;  %v14134_v48 = vrot.slane %v14133_v46, 2 }
 0x604   : > { %v14152_v10 = vrot.slane %v14151_v3, 2  ;;  %v14126_v11 = vadd.f32 %v14125_v60, %v14124_v6 }
 0x605   : > { %v14144_v31 = vadd.f32 %v14143_v16, %v14142_v42  ;;  %v14135_v18 = vadd.f32 %v14134_v48, %v14133_v46 }
 0x606   : > { %v14153_v15 = vadd.f32 %v14152_v10, %v14151_v3  ;;  %v14127_v52 = vrot.slane %v14126_v11, 1 }
 0x607   : > { %v14145_v44 = vrot.slane %v14144_v31, 1  ;;  %v14136_v55 = vrot.slane %v14135_v18, 1 }
 0x608   : > { %v14154_v26 = vrot.slane %v14153_v15, 1  ;;  %v14128_v56 = vadd.f32 %v14127_v52, %v14126_v11 }
 0x609   : > { %v14146_v37 = vadd.f32 %v14145_v44, %v14144_v31  ;;  %v14137_v27 = vadd.f32 %v14136_v55, %v14135_v18 }
 0x60a   : > { %v14155_v25 = vadd.f32 %v14154_v26, %v14153_v15  ;;  %v14170_v21 = vadd.f32 %v19589_v41, %v14128_v56 }
 0x60b   : > { %v14172_v34 = vadd.f32 %v19589_v41, %v14146_v37  ;;  %v14171_v57 = vadd.f32 %v19589_v41, %v14137_v27 }
 0x60c   : > { %v14173_v40 = vadd.f32 %v19589_v41, %v14155_v25 }
 0x60d   : > { %v14184_v17 = vcombine.low %v14170_v21, %v14171_v57 }
 0x60e   : > { %v14185_v19 = vcombine.low %v14172_v34, %v14173_v40 }
 0x60f   : > { %v14206_v13 = vrot.slane %v14184_v17, %v20305_v5 }
 0x610   : > { %v14213_v12 = vrot.slane %v14185_v19, %v20305_v5 }
 0x612   : > { %v14215_v2 = vcombine.low %v14206_v13, %v14213_v12 }
 0x614   : > { %v14229_v49 = vrot.slane %v14215_v2, %v20305_v5 }
 0x616   : > { %v14230_v41 = vcombine.low %v14222_v58, %v14229_v49 }
 0x618   : > { %14232 = vst [vmem:[%s369_s30] sm:$0xff] %v14230_v41 }
 0x619   : > { %15486 = shalt.err (!%p15483_p3)
}
 0x61a   : > { %s15487_s27 = scalar_lea.hbm %s19651_s14, 128  ;;  %s15491_s30 = scalar_lea.hbm %s19703_s10, 256 }
 0x61b   : > { %p15488_p4 = scmp.ne.s32.totalorder %s19651_s14, %s15487_s27  ;;  %p15492_p9 = scmp.lt.u32.totalorder %s19651_s14, %s19703_s10 }
 0x61c   : > { %p15493_p10 = scmp.lt.u32.totalorder %s15491_s30, %s15487_s27  ;;  %p15495_p12 = scmp.lt.u32.totalorder %s15487_s27, %s19651_s14 }
 0x61d   : > { %p15489_p7 = pnand %p15488_p4, %p15643_p5 }
 0x61e   : > { %p15494_p11 = por %p15493_p10, %p15492_p9 }
 0x61f   : > { %p15490_p8 = pneg %p15489_p7 }
 0x620   : > { %p15496_p13 = por %p15495_p12, %p15494_p11 }
 0x622   : > { %p15497_p0 = pnand %p15496_p13, %p15490_p8 }
 0x624   : > { %15500 = shalt.err (!%p15497_p0)
}
 0x625   : > { %15275 = dma.vmem_to_hbm [thread:$0]  (%p15643_p5), %s19653_s11, 128, %s19651_s14, %s14234_s9  }
 0x626 PF: > { %p15281_p1 = scmp.ge.s32.totalorder %s15535_s18, 2  ;;  %s14260_s19 = sand.u32 1, %s15523_s15  }
 0x627   : > { %s14261_s21 = scalar_lea.sflag [#allocation5], %s14260_s19 }
 0x628   : > { %p15278_p2 = pnand %p15281_p1, %p15647_p6 }
 0x62a   : > { %15518 = dma.done.wait (!%p15278_p2), %s14261_s21, 128  }
 0x62b   : > { %15520 = vsyncadd (!%p15278_p2), %s14261_s21, 4294967168  ;;  %p22_p3 = scmp.ge.s32.totalorder %s15630_s20, 4   ;;  %s20306_s15 = smov %s15527_s16 }
 0x62c   : > { %s20307_s16 = smov %s15531_s17  ;;  %s20308_s17 = smov %s15641_s23 }
 0x62d   : > { %s20309_s18 = smov %s15630_s20  ;;  %24 = sbr.rel (!%p22_p3) target bundleno = 6 (0x6), region = 112 }
 0x634   :  { %14266 = vsyncpa [#allocation5], 1 }
 0x635   :  { %14268 = vsyncpa [#allocation5 + $0x1], 1 }

</bundles_post_ra>
